<compile_context>
chip_gen: v7x
topology: tpu7x:2x2x1
jax: 0.10.0
libtpu: 0.0.40
codegen_flags: <defaults>
</compile_context>

<pallas_src>
import functools

import numpy as np
import jax
import jax.numpy as jnp
from jax import lax
from jax.experimental import pallas as pl
from jax.experimental.pallas import tpu as pltpu


VMEM_LIMIT = 48 * 1024 * 1024   # > v5e(16MiB)/v6e,v7x(32MiB) scoped defaults, < v7x 64MiB physical


# --------------------------------------------------------------------------
# Tiling helpers
# --------------------------------------------------------------------------

def _pick_row_tile(M, target=512):
    """Largest row tile <= target dividing M, preferring >=2 grid steps."""
    cands = [t for t in (1024, 512, 256, 128, 64, 32, 16, 8) if t <= target and t <= M]
    for t in cands:
        if M % t == 0 and M // t >= 2:
            return t
    for t in cands:
        if M % t == 0:
            return t
    return M


def _pick_window_block(Bw, N, nW, max_rows=512):
    """Windows per grid step.  Must be a multiple of nW (so the mask pattern
    inside a block is grid-step independent) and divide Bw; prefer the largest
    block that still leaves >=2 grid steps (v7x: 2 TensorCores) and keeps
    Wb*N <= max_rows (VMEM budget: the f32 qkv intermediate is 3x the block)."""
    Bn = Bw // nW
    best = 1
    for d in range(1, Bn + 1):
        if Bn % d:
            continue
        if nW * d * N > max_rows:
            continue
        if Bn // d >= 2:
            best = d
    return nW * best


def _pick_height_tile(H2, W2, max_rows=512):
    best = 1
    for t in range(1, H2 + 1):
        if H2 % t == 0 and t * W2 <= max_rows:
            best = t
    return best


# --------------------------------------------------------------------------
# Pallas kernels
# --------------------------------------------------------------------------

def _window_attn_kernel(*refs, num_heads, head_dim, apply_ln):
    """[optional norm1 LayerNorm] + window multi-head self-attention.

    inputs : x (Wb,N,C) [, ln_g (1,C), ln_b (1,C)],
             wqkv (C,3C) bf16 (scale folded into Q cols), wproj (C,C) bf16,
             bproj (1,C) f32, add (nH, Wa, N, N) f32  (bias [+ mask], hoisted)
    output : out (Wb,N,C)
    """
    it = iter(refs)
    x_ref = next(it)
    if apply_ln:
        g_ref = next(it)
        b_ref = next(it)
    wqkv_ref = next(it)
    wproj_ref = next(it)
    bproj_ref = next(it)
    add_ref = next(it)
    o_ref = next(it)

    Wb, N, C = x_ref.shape
    x = x_ref[...].astype(jnp.float32)                      # (Wb, N, C)

    if apply_ln:                                            # fused norm1 (f32)
        mu = jnp.mean(x, axis=-1, keepdims=True)
        var = jnp.mean((x - mu) ** 2, axis=-1, keepdims=True)
        y = (x - mu) * lax.rsqrt(var + 1e-5) * g_ref[...] + b_ref[...]
    else:
        y = x

    # QKV projection for the whole block: (Wb*N, C)bf16 @ (C, 3C)bf16 -> f32
    qkv = jnp.dot(y.reshape(Wb * N, C).astype(jnp.bfloat16), wqkv_ref[...],
                  preferred_element_type=jnp.float32).reshape(Wb, N, 3 * C)

    heads = []
    for h in range(num_heads):
        lo = h * head_dim
        q = qkv[:, :, lo:lo + head_dim]                     # scale already folded in
        k = qkv[:, :, C + lo:C + lo + head_dim]
        v = qkv[:, :, 2 * C + lo:2 * C + lo + head_dim]
        a = jnp.einsum('wqd,wkd->wqk',
                       q.astype(jnp.bfloat16), k.astype(jnp.bfloat16),
                       preferred_element_type=jnp.float32)  # (Wb, N, N)
        a = a + add_ref[h]                                  # bias (+ mask), pre-combined
        a = a - jnp.max(a, axis=-1, keepdims=True)
        e = jnp.exp(a)
        p = e * pl.reciprocal(jnp.sum(e, axis=-1, keepdims=True), approx=False)
        o_h = jnp.einsum('wqk,wkd->wqd',
                         p.astype(jnp.bfloat16), v.astype(jnp.bfloat16),
                         preferred_element_type=jnp.float32)            # (Wb, N, hd)
        heads.append(o_h.reshape(Wb * N, head_dim))

    # single output projection: (Wb*N, C) @ (C, C), K = C instead of 4x K = hd
    o_all = jnp.concatenate(heads, axis=-1)                 # (Wb*N, C)
    out = jnp.dot(o_all.astype(jnp.bfloat16), wproj_ref[...],
                  preferred_element_type=jnp.float32) + bproj_ref[...]
    o_ref[...] = out.reshape(Wb, N, C).astype(o_ref.dtype)


def _fused_mlp_kernel(*refs, apply_ln1):
    """Fused residual + MLP block (row tile):
        s   = norm1(shortcut)           (only for the non-shifted block)
        t   = s + attn_out
        out = t + fc2(gelu(fc1(norm2(t))))            (exact erf-GELU)
    """
    it = iter(refs)
    sc_ref = next(it)
    at_ref = next(it)
    if apply_ln1:
        g1_ref = next(it)
        b1_ref = next(it)
    g2_ref = next(it)
    b2_ref = next(it)
    w1_ref = next(it)
    fb1_ref = next(it)
    w2_ref = next(it)
    fb2_ref = next(it)
    o_ref = next(it)

    s = sc_ref[...].astype(jnp.float32)
    if apply_ln1:
        mu = jnp.mean(s, axis=-1, keepdims=True)
        var = jnp.mean((s - mu) ** 2, axis=-1, keepdims=True)
        s = (s - mu) * lax.rsqrt(var + 1e-5) * g1_ref[...] + b1_ref[...]
    t = s + at_ref[...].astype(jnp.float32)

    mu = jnp.mean(t, axis=-1, keepdims=True)
    var = jnp.mean((t - mu) ** 2, axis=-1, keepdims=True)
    y = (t - mu) * lax.rsqrt(var + 1e-5) * g2_ref[...] + b2_ref[...]

    h = jnp.dot(y.astype(jnp.bfloat16), w1_ref[...],
                preferred_element_type=jnp.float32) + fb1_ref[...]
    h = 0.5 * h * (1.0 + lax.erf(h * 0.7071067811865476))
    h = jnp.dot(h.astype(jnp.bfloat16), w2_ref[...],
                preferred_element_type=jnp.float32) + fb2_ref[...]
    o_ref[...] = (t + h).astype(o_ref.dtype)


def _patch_merge_kernel(e_ref, od_ref, ge_ref, be_ref, go_ref, bo_ref,
                        we_ref, wo_ref, out_ref):
    """PatchMerging: LayerNorm(4C concat) @ W_reduction, with the 2x2 gather
    already expressed in the BlockSpecs.  e = h-even rows = [x0 | x2] channels,
    o = h-odd rows = [x1 | x3]; the reduction weight rows were permuted/split
    host-side so no in-kernel channel concat is needed."""
    e = e_ref[...].astype(jnp.float32)      # (th, W2, 2C)
    o = od_ref[...].astype(jnp.float32)     # (th, W2, 2C)
    C4 = e.shape[-1] + o.shape[-1]

    mu = (jnp.sum(e, axis=-1, keepdims=True) + jnp.sum(o, axis=-1, keepdims=True)) / C4
    var = (jnp.sum((e - mu) ** 2, axis=-1, keepdims=True)
           + jnp.sum((o - mu) ** 2, axis=-1, keepdims=True)) / C4
    r = lax.rsqrt(var + 1e-5)
    en = (e - mu) * r * ge_ref[...] + be_ref[...]
    on = (o - mu) * r * go_ref[...] + bo_ref[...]

    th, W2, C2 = en.shape
    out = (jnp.dot(en.reshape(th * W2, C2).astype(jnp.bfloat16), we_ref[...],
                   preferred_element_type=jnp.float32)
           + jnp.dot(on.reshape(th * W2, C2).astype(jnp.bfloat16), wo_ref[...],
                     preferred_element_type=jnp.float32))
    out_ref[...] = out.reshape(th, W2, out.shape[-1]).astype(out_ref.dtype)


# --------------------------------------------------------------------------
# Pallas wrappers
# --------------------------------------------------------------------------

def window_attention(xw, norm_g, norm_b, attn_prep, add, wb):
    """xw: (Bw, N, C) window tokens.  add: (nH, Wa, N, N) pre-combined bias
    [+ mask] (Wa == 1 for the non-shifted block, Wa == wb for the shifted one)."""
    Bw, N, C = xw.shape
    nH = add.shape[0]
    Wa = add.shape[1]
    hd = C // nH
    apply_ln = norm_g is not None

    kern = functools.partial(_window_attn_kernel, num_heads=nH, head_dim=hd,
                             apply_ln=apply_ln)

    win_spec = pl.BlockSpec((wb, N, C), lambda w: (w, 0, 0))
    vec_c = pl.BlockSpec((1, C), lambda w: (0, 0))

    in_specs = [win_spec]
    args = [xw]
    if apply_ln:
        in_specs += [vec_c, vec_c]
        args += [norm_g.reshape(1, C), norm_b.reshape(1, C)]
    in_specs += [pl.BlockSpec((C, 3 * C), lambda w: (0, 0)),
                 pl.BlockSpec((C, C), lambda w: (0, 0)),
                 vec_c,
                 pl.BlockSpec((nH, Wa, N, N), lambda w: (0, 0, 0, 0))]
    args += [attn_prep['wqkv'], attn_prep['wproj'], attn_prep['bproj'], add]

    return pl.pallas_call(
        kern,
        out_shape=jax.ShapeDtypeStruct((Bw, N, C), xw.dtype),
        grid=(Bw // wb,),
        in_specs=in_specs,
        out_specs=win_spec,
        compiler_params=pltpu.CompilerParams(
            dimension_semantics=("parallel",), vmem_limit_bytes=VMEM_LIMIT),
    )(*args)


def fused_residual_mlp(shortcut, attn_out, blk_prep, norm1=None):
    """[norm1(shortcut)] + attn_out + MLP(norm2(.)) — row-tiled, weights resident."""
    B, L, C = shortcut.shape
    M = B * L
    Hid = blk_prep['fc1_w'].shape[1]
    TM = _pick_row_tile(M)
    apply_ln1 = norm1 is not None
    kern = functools.partial(_fused_mlp_kernel, apply_ln1=apply_ln1)

    row_spec = pl.BlockSpec((TM, C), lambda i: (i, 0))
    vc = pl.BlockSpec((1, C), lambda i: (0, 0))

    in_specs = [row_spec, row_spec]
    args = [shortcut.reshape(M, C), attn_out.reshape(M, C)]
    if apply_ln1:
        in_specs += [vc, vc]
        args += [norm1[0].reshape(1, C), norm1[1].reshape(1, C)]
    in_specs += [vc, vc,
                 pl.BlockSpec((C, Hid), lambda i: (0, 0)),
                 pl.BlockSpec((1, Hid), lambda i: (0, 0)),
                 pl.BlockSpec((Hid, C), lambda i: (0, 0)),
                 vc]
    args += [blk_prep['norm2_g'], blk_prep['norm2_b'],
             blk_prep['fc1_w'], blk_prep['fc1_b'],
             blk_prep['fc2_w'], blk_prep['fc2_b']]

    out = pl.pallas_call(
        kern,
        out_shape=jax.ShapeDtypeStruct((M, C), shortcut.dtype),
        grid=(M // TM,),
        in_specs=in_specs,
        out_specs=row_spec,
        compiler_params=pltpu.CompilerParams(
            dimension_semantics=("parallel",), vmem_limit_bytes=VMEM_LIMIT),
    )(*args)
    return out.reshape(B, L, C)


def patch_merging(x_sp, pm_prep):
    """x_sp: (B, H, W, C) spatial (H, W even).  The 2x2 strided gather is done
    by the BlockSpecs on a (B, H/2, 2, W/2, 2C) view of the same buffer."""
    B, H, W, C = x_sp.shape
    H2, W2 = H // 2, W // 2
    C2 = 2 * C
    Cout = pm_prep['we'].shape[1]
    xe = x_sp.reshape(B, H2, 2, W2, C2)

    th = _pick_height_tile(H2, W2)
    grid = (B, H2 // th)

    blk_e = pl.BlockSpec((None, th, None, W2, C2), lambda b, ht: (b, ht, 0, 0, 0))
    blk_o = pl.BlockSpec((None, th, None, W2, C2), lambda b, ht: (b, ht, 1, 0, 0))
    vec = pl.BlockSpec((1, C2), lambda b, ht: (0, 0))
    wsp = pl.BlockSpec((C2, Cout), lambda b, ht: (0, 0))
    out_spec = pl.BlockSpec((None, th, W2, Cout), lambda b, ht: (b, ht, 0, 0))

    out = pl.pallas_call(
        _patch_merge_kernel,
        out_shape=jax.ShapeDtypeStruct((B, H2, W2, Cout), x_sp.dtype),
        grid=grid,
        in_specs=[blk_e, blk_o, vec, vec, vec, vec, wsp, wsp],
        out_specs=out_spec,
        compiler_params=pltpu.CompilerParams(
            dimension_semantics=("parallel", "parallel"),
            vmem_limit_bytes=VMEM_LIMIT),
    )(xe, xe, pm_prep['ge'], pm_prep['be'], pm_prep['go'], pm_prep['bo'],
      pm_prep['we'], pm_prep['wo'])
    return out.reshape(B, H2 * W2, Cout)


# --------------------------------------------------------------------------
# Window partition / reverse — literal reproduction of the reference einops
# (partition stacks as '(hNum wNum b)'; reverse unpacks as '(b hNum wNum)').
# --------------------------------------------------------------------------

def window_partition_jax(x, ws):
    B, H, W, C = x.shape
    hN, wN = H // ws, W // ws
    x = x.reshape(B, hN, ws, wN, ws, C)
    x = x.transpose(1, 3, 0, 2, 4, 5)          # (hN, wN, B, ws, ws, C)
    return x.reshape(hN * wN * B, ws, ws, C)


def window_reverse_jax(win, ws, H, W):
    hN, wN = H // ws, W // ws
    B = win.shape[0] // (hN * wN)
    C = win.shape[-1]
    x = win.reshape(B, hN, wN, ws, ws, C)      # '(b hNum wNum)' grouping, as in reference
    x = x.transpose(0, 1, 3, 2, 4, 5)
    return x.reshape(B, H, W, C)


# --------------------------------------------------------------------------
# Parameter preparation (hoisted out of the depth loop)
# --------------------------------------------------------------------------

def _rel_pos_bias(table, rel_index, N, num_heads):
    bias = jnp.take(table, rel_index.reshape(-1), axis=0)    # (N*N, nH)
    return bias.reshape(N, N, num_heads).transpose(2, 0, 1)  # (nH, N, N)


def _prep_block(blk, C, scale):
    """bf16 MXU weights, q-scale folded into the Q columns of wqkv."""
    scale_vec = jnp.concatenate([jnp.full((C,), scale, jnp.float32),
                                 jnp.ones((2 * C,), jnp.float32)])
    attn = blk['attn']
    return dict(
        attn=dict(
            wqkv=(attn['wqkv'] * scale_vec[None, :]).astype(jnp.bfloat16),
            wproj=attn['wproj'].astype(jnp.bfloat16),
            bproj=attn['bproj'].reshape(1, C).astype(jnp.float32),
        ),
        norm2_g=blk['norm2_g'].reshape(1, C),
        norm2_b=blk['norm2_b'].reshape(1, C),
        fc1_w=blk['fc1_w'].astype(jnp.bfloat16),
        fc1_b=blk['fc1_b'].reshape(1, -1).astype(jnp.float32),
        fc2_w=blk['fc2_w'].astype(jnp.bfloat16),
        fc2_b=blk['fc2_b'].reshape(1, C).astype(jnp.float32),
    )


def _prep_patch_merge(params, C):
    """Permute reference channel order [x0,x1,x2,x3] into the kernel's natural
    [x0,x2 | x1,x3] order and split the reduction weight accordingly."""
    g, b, w = params['pm_g'], params['pm_b'], params['pm_w']
    ge = jnp.concatenate([g[0:C], g[2 * C:3 * C]]).reshape(1, 2 * C)
    go = jnp.concatenate([g[C:2 * C], g[3 * C:4 * C]]).reshape(1, 2 * C)
    be = jnp.concatenate([b[0:C], b[2 * C:3 * C]]).reshape(1, 2 * C)
    bo = jnp.concatenate([b[C:2 * C], b[3 * C:4 * C]]).reshape(1, 2 * C)
    we = jnp.concatenate([w[0:C], w[2 * C:3 * C]], axis=0).astype(jnp.bfloat16)
    wo = jnp.concatenate([w[C:2 * C], w[3 * C:4 * C]], axis=0).astype(jnp.bfloat16)
    return dict(ge=ge, be=be, go=go, bo=bo, we=we, wo=wo)


# --------------------------------------------------------------------------
# Transformer blocks
# --------------------------------------------------------------------------

def wmsa_forward(x, H, W, blk_prep, add_w, norm1_g, norm1_b, ws, wb):
    # reference: n = norm1(x); shortcut = n; attn(partition(n)); n + reverse(attn); MLP
    B, L, C = x.shape
    xw = window_partition_jax(x.reshape(B, H, W, C), ws).reshape(-1, ws * ws, C)
    aw = window_attention(xw, norm1_g, norm1_b, blk_prep['attn'], add_w, wb)
    a1 = window_reverse_jax(aw.reshape(-1, ws, ws, C), ws, H, W).reshape(B, L, C)
    # norm1 is recomputed on the shortcut rows inside the fused MLP kernel
    return fused_residual_mlp(x, a1, blk_prep, norm1=(norm1_g, norm1_b))


def shift_wmsa_forward(x, Hp, Wp, blk_prep, add_s, ws, shift, wb):
    B, L, C = x.shape
    # TODO(synk): the cyclic shift stays in XLA; folding it into the attention
    # BlockSpec would require the spatial-read path the scrambled reverse forbids.
    xr = jnp.roll(x.reshape(B, Hp, Wp, C), shift=(-shift, -shift), axis=(1, 2))
    xw = window_partition_jax(xr, ws).reshape(-1, ws * ws, C)
    aw = window_attention(xw, None, None, blk_prep['attn'], add_s, wb)
    a2 = window_reverse_jax(aw.reshape(-1, ws, ws, C), ws, Hp, Wp).reshape(B, L, C)
    # NOTE: reference does NOT roll back after attention — reproduced as-is.
    return fused_residual_mlp(x, a2, blk_prep, norm1=None)


def basic_layer_forward(x, params, cfg):
    input_res = cfg['input_res']
    ws = cfg['window_size']
    depth = cfg['depth']
    num_heads = cfg['num_heads']
    rel_index = cfg['rel_index']
    attn_mask = cfg['attn_mask']
    shift = ws // 2

    H = W = input_res
    B, L, C = x.shape
    pad_r = (ws - W % ws) % ws
    pad_b = (ws - H % ws) % ws
    xr = x.reshape(B, H, W, C)
    # F.pad(x, (0,0, pad_r, 0, pad_b, 0)) pads at the START of W (pad_r) and H (pad_b)
    xr = jnp.pad(xr, ((0, 0), (pad_b, 0), (pad_r, 0), (0, 0)))
    H = H + pad_r          # reference bookkeeping (exact here: square input => pad_r == pad_b)
    W = W + pad_b
    x = xr.reshape(B, H * W, C)

    N = ws * ws
    hd = C // num_heads
    scale = hd ** (-0.5)
    nW = (H // ws) * (W // ws)
    Bw = nW * B
    wb = _pick_window_block(Bw, N, nW)
    r = wb // nW

    # weight prep + additive terms: loop-invariant -> computed once per layer call
    prep_w = _prep_block(params['wmsa'], C, scale)
    prep_s = _prep_block(params['shift'], C, scale)
    bias_w = _rel_pos_bias(params['wmsa']['attn']['table'], rel_index, N, num_heads)
    bias_s = _rel_pos_bias(params['shift']['attn']['table'], rel_index, N, num_heads)
    add_w = bias_w[:, None]                                               # (nH, 1, N, N)
    # window j in a block gets mask[j % nW] (== reference's (flat % nW) arithmetic)
    add_s = bias_s[:, None] + jnp.tile(attn_mask, (r, 1, 1))[None]        # (nH, wb, N, N)
    prep_pm = _prep_patch_merge(params, C)

    for _ in range(depth):
        x = wmsa_forward(x, H, W, prep_w, add_w,
                         params['norm1_g'], params['norm1_b'], ws, wb)
        x = shift_wmsa_forward(x, H, W, prep_s, add_s, ws, shift, wb)

    down_x = x.reshape(B, H, W, C)[:, pad_r:, pad_b:, :]
    # TODO(synk): reference PatchMerging's odd-resolution pad branch (fires only
    # when BOTH H and W are odd) is skipped; H, W are even in this configuration.
    x2 = patch_merging(down_x, prep_pm)
    down_x = jnp.transpose(down_x, (0, 3, 1, 2))            # -> NCHW
    return x2, down_x


# --------------------------------------------------------------------------
# Constants: relative position index + shifted-window attention mask
# --------------------------------------------------------------------------

def compute_rel_index(ws):
    coords = np.stack(np.meshgrid(np.arange(ws), np.arange(ws), indexing='ij'))
    cf = coords.reshape(2, -1)
    rel = cf[:, :, None] - cf[:, None, :]
    rel = rel.transpose(1, 2, 0).copy()
    rel[:, :, 0] += ws - 1
    rel[:, :, 1] += ws - 1
    rel[:, :, 0] *= 2 * ws - 1
    return rel.sum(-1).astype(np.int32)                     # (N, N)


def _np_window_partition(x, ws):
    B, H, W, C = x.shape
    hN, wN = H // ws, W // ws
    x = x.reshape(B, hN, ws, wN, ws, C).transpose(1, 3, 0, 2, 4, 5)
    return x.reshape(hN * wN * B, ws, ws, C)


def compute_attn_mask(Hp, Wp, ws, shift):
    img = np.zeros((1, Hp, Wp, 1), np.float32)
    h_slices = (slice(0, -ws), slice(-ws, -shift), slice(-shift, None))
    w_slices = (slice(0, -ws), slice(-ws, -shift), slice(-shift, None))
    cnt = 0
    for h in h_slices:
        for w in w_slices:
            img[:, h, w, :] = cnt
            cnt += 1
    mw = _np_window_partition(img, ws).reshape(-1, ws * ws)
    am = mw[:, None, :] - mw[:, :, None]
    am = np.where(am != 0, -100.0, 0.0).astype(np.float32)
    return am                                               # (nW, N, N)


# --------------------------------------------------------------------------
# Deterministic parameter init (shapes follow the PyTorch __init__)
# --------------------------------------------------------------------------

def init_params(key, dim, num_heads, mlp_ratio, ws):
    hidden = int(dim * mlp_ratio)

    def n(k, shape, std=0.02):
        return (std * jax.random.normal(k, shape)).astype(jnp.float32)

    def attn_params(k):
        k1, k2, k3, k4 = jax.random.split(k, 4)
        return dict(
            wqkv=n(k1, (dim, 3 * dim)),                      # qkv (qkv_bias=False)
            wproj=n(k2, (dim, dim)),
            bproj=n(k3, (1, dim)),
            table=n(k4, ((2 * ws - 1) * (2 * ws - 1), num_heads)),
        )

    def blk_params(k):
        k1, k2, k3, k4, k5 = jax.random.split(k, 5)
        return dict(
            attn=attn_params(k1),
            norm2_g=jnp.ones((dim,), jnp.float32),
            norm2_b=jnp.zeros((dim,), jnp.float32),
            fc1_w=n(k2, (dim, hidden)),
            fc1_b=n(k3, (1, hidden)),
            fc2_w=n(k4, (hidden, dim)),
            fc2_b=n(k5, (1, dim)),
        )

    k0, k1, k2 = jax.random.split(key, 3)
    return dict(
        norm1_g=jnp.ones((dim,), jnp.float32),
        norm1_b=jnp.zeros((dim,), jnp.float32),
        wmsa=blk_params(k0),
        shift=blk_params(k1),
        pm_g=jnp.ones((4 * dim,), jnp.float32),
        pm_b=jnp.zeros((4 * dim,), jnp.float32),
        pm_w=n(k2, (4 * dim, 2 * dim)),                      # PatchMerging reduction (bias=False)
    )


# --------------------------------------------------------------------------

if __name__ == "__main__":
    B = 2
    input_res = 8          # H = W = 8
    dim = 32
    depth = 2
    num_heads = 4
    mlp_ratio = 4
    window_size = 4        # divides input_res -> padding branch inactive

    key = jax.random.PRNGKey(0)
    kx, kp = jax.random.split(key)
    x = jax.random.normal(kx, (B, input_res * input_res, dim), jnp.float32)
    params = init_params(kp, dim, num_heads, mlp_ratio, window_size)

    Hp = int(np.ceil(input_res / window_size)) * window_size
    Wp = int(np.ceil(input_res / window_size)) * window_size
    cfg = dict(
        input_res=input_res,
        window_size=window_size,
        depth=depth,
        num_heads=num_heads,
        rel_index=jnp.asarray(compute_rel_index(window_size)),
        attn_mask=jnp.asarray(compute_attn_mask(Hp, Wp, window_size, window_size // 2)),
    )

    fwd = jax.jit(lambda xx, pp: basic_layer_forward(xx, pp, cfg))
    out, down_x = fwd(x, params)
    jax.block_until_ready((out, down_x))

    assert out.shape == (B, (input_res // 2) ** 2, 2 * dim), out.shape
    assert down_x.shape == (B, dim, input_res, input_res), down_x.shape
    assert bool(jnp.all(jnp.isfinite(out))) and bool(jnp.all(jnp.isfinite(down_x)))
    print("KERNEL_OK")
</pallas_src>

<mosaic_0001>
module attributes {stable_mosaic.version = 11 : i64} {
  func.func @_fused_mlp_kernel(%arg0: i32, %arg1: memref<64x32xf32, #tpu.memory_space<vmem>>, %arg2: memref<64x32xf32, #tpu.memory_space<vmem>>, %arg3: memref<1x32xf32, #tpu.memory_space<vmem>>, %arg4: memref<1x32xf32, #tpu.memory_space<vmem>>, %arg5: memref<1x32xf32, #tpu.memory_space<vmem>>, %arg6: memref<1x32xf32, #tpu.memory_space<vmem>>, %arg7: memref<32x128xbf16, #tpu.memory_space<vmem>>, %arg8: memref<1x128xf32, #tpu.memory_space<vmem>>, %arg9: memref<128x32xbf16, #tpu.memory_space<vmem>>, %arg10: memref<1x32xf32, #tpu.memory_space<vmem>>, %arg11: memref<64x32xf32, #tpu.memory_space<vmem>>) attributes {dimension_semantics = [#tpu.dimension_semantics<parallel>], iteration_bounds = array<i64: 2>, scalar_prefetch = 0 : i64, scratch_operands = 0 : i64, tpu.core_type = #tpu.core_type<tc>, window_params = [{transform_indices = @transform_0, window_bounds = array<i64: 64, 32>}, {transform_indices = @transform_1, window_bounds = array<i64: 64, 32>}, {pipeline_mode = #tpu.pipeline_mode<synchronous>, transform_indices = @transform_2, window_bounds = array<i64: 1, 32>}, {pipeline_mode = #tpu.pipeline_mode<synchronous>, transform_indices = @transform_3, window_bounds = array<i64: 1, 32>}, {pipeline_mode = #tpu.pipeline_mode<synchronous>, transform_indices = @transform_4, window_bounds = array<i64: 1, 32>}, {pipeline_mode = #tpu.pipeline_mode<synchronous>, transform_indices = @transform_5, window_bounds = array<i64: 1, 32>}, {pipeline_mode = #tpu.pipeline_mode<synchronous>, transform_indices = @transform_6, window_bounds = array<i64: 32, 128>}, {pipeline_mode = #tpu.pipeline_mode<synchronous>, transform_indices = @transform_7, window_bounds = array<i64: 1, 128>}, {pipeline_mode = #tpu.pipeline_mode<synchronous>, transform_indices = @transform_8, window_bounds = array<i64: 128, 32>}, {pipeline_mode = #tpu.pipeline_mode<synchronous>, transform_indices = @transform_9, window_bounds = array<i64: 1, 32>}, {transform_indices = @transform_10, window_bounds = array<i64: 64, 32>}]} {
    %c0 = arith.constant 0 : index
    %c0_0 = arith.constant 0 : index
    %0 = vector.load %arg1[%c0, %c0_0] : memref<64x32xf32, #tpu.memory_space<vmem>>, vector<64x32xf32>
    %cst = arith.constant dense<0.000000e+00> : vector<64xf32>
    %1 = vector.multi_reduction <add>, %0, %cst [1] : vector<64x32xf32> to vector<64xf32>
    %2 = vector.shape_cast %1 : vector<64xf32> to vector<64x1xf32>
    %cst_1 = arith.constant 3.200000e+01 : f32
    %3 = vector.broadcast %cst_1 : f32 to vector<64x1xf32>
    %4 = arith.divf %2, %3 : vector<64x1xf32>
    %5 = vector.broadcast %4 : vector<64x1xf32> to vector<64x32xf32>
    %6 = arith.subf %0, %5 : vector<64x32xf32>
    %7 = arith.mulf %6, %6 : vector<64x32xf32>
    %cst_2 = arith.constant dense<0.000000e+00> : vector<64xf32>
    %8 = vector.multi_reduction <add>, %7, %cst_2 [1] : vector<64x32xf32> to vector<64xf32>
    %9 = vector.shape_cast %8 : vector<64xf32> to vector<64x1xf32>
    %cst_3 = arith.constant 3.200000e+01 : f32
    %10 = vector.broadcast %cst_3 : f32 to vector<64x1xf32>
    %11 = arith.divf %9, %10 : vector<64x1xf32>
    %12 = vector.broadcast %4 : vector<64x1xf32> to vector<64x32xf32>
    %13 = arith.subf %0, %12 : vector<64x32xf32>
    %cst_4 = arith.constant 9.99999974E-6 : f32
    %14 = vector.broadcast %cst_4 : f32 to vector<64x1xf32>
    %15 = arith.addf %11, %14 : vector<64x1xf32>
    %16 = math.rsqrt %15 : vector<64x1xf32>
    %17 = vector.broadcast %16 : vector<64x1xf32> to vector<64x32xf32>
    %18 = arith.mulf %13, %17 : vector<64x32xf32>
    %c0_5 = arith.constant 0 : index
    %c0_6 = arith.constant 0 : index
    %19 = vector.load %arg3[%c0_5, %c0_6] : memref<1x32xf32, #tpu.memory_space<vmem>>, vector<1x32xf32>
    %20 = vector.broadcast %19 : vector<1x32xf32> to vector<64x32xf32>
    %21 = arith.mulf %18, %20 : vector<64x32xf32>
    %c0_7 = arith.constant 0 : index
    %c0_8 = arith.constant 0 : index
    %22 = vector.load %arg4[%c0_7, %c0_8] : memref<1x32xf32, #tpu.memory_space<vmem>>, vector<1x32xf32>
    %23 = vector.broadcast %22 : vector<1x32xf32> to vector<64x32xf32>
    %24 = arith.addf %21, %23 : vector<64x32xf32>
    %c0_9 = arith.constant 0 : index
    %c0_10 = arith.constant 0 : index
    %25 = vector.load %arg2[%c0_9, %c0_10] : memref<64x32xf32, #tpu.memory_space<vmem>>, vector<64x32xf32>
    %26 = arith.addf %24, %25 : vector<64x32xf32>
    %cst_11 = arith.constant dense<0.000000e+00> : vector<64xf32>
    %27 = vector.multi_reduction <add>, %26, %cst_11 [1] : vector<64x32xf32> to vector<64xf32>
    %28 = vector.shape_cast %27 : vector<64xf32> to vector<64x1xf32>
    %cst_12 = arith.constant 3.200000e+01 : f32
    %29 = vector.broadcast %cst_12 : f32 to vector<64x1xf32>
    %30 = arith.divf %28, %29 : vector<64x1xf32>
    %31 = vector.broadcast %30 : vector<64x1xf32> to vector<64x32xf32>
    %32 = arith.subf %26, %31 : vector<64x32xf32>
    %33 = arith.mulf %32, %32 : vector<64x32xf32>
    %cst_13 = arith.constant dense<0.000000e+00> : vector<64xf32>
    %34 = vector.multi_reduction <add>, %33, %cst_13 [1] : vector<64x32xf32> to vector<64xf32>
    %35 = vector.shape_cast %34 : vector<64xf32> to vector<64x1xf32>
    %cst_14 = arith.constant 3.200000e+01 : f32
    %36 = vector.broadcast %cst_14 : f32 to vector<64x1xf32>
    %37 = arith.divf %35, %36 : vector<64x1xf32>
    %38 = vector.broadcast %30 : vector<64x1xf32> to vector<64x32xf32>
    %39 = arith.subf %26, %38 : vector<64x32xf32>
    %cst_15 = arith.constant 9.99999974E-6 : f32
    %40 = vector.broadcast %cst_15 : f32 to vector<64x1xf32>
    %41 = arith.addf %37, %40 : vector<64x1xf32>
    %42 = math.rsqrt %41 : vector<64x1xf32>
    %43 = vector.broadcast %42 : vector<64x1xf32> to vector<64x32xf32>
    %44 = arith.mulf %39, %43 : vector<64x32xf32>
    %c0_16 = arith.constant 0 : index
    %c0_17 = arith.constant 0 : index
    %45 = vector.load %arg5[%c0_16, %c0_17] : memref<1x32xf32, #tpu.memory_space<vmem>>, vector<1x32xf32>
    %46 = vector.broadcast %45 : vector<1x32xf32> to vector<64x32xf32>
    %47 = arith.mulf %44, %46 : vector<64x32xf32>
    %c0_18 = arith.constant 0 : index
    %c0_19 = arith.constant 0 : index
    %48 = vector.load %arg6[%c0_18, %c0_19] : memref<1x32xf32, #tpu.memory_space<vmem>>, vector<1x32xf32>
    %49 = vector.broadcast %48 : vector<1x32xf32> to vector<64x32xf32>
    %50 = arith.addf %47, %49 : vector<64x32xf32>
    %51 = arith.truncf %50 : vector<64x32xf32> to vector<64x32xbf16>
    %c0_20 = arith.constant 0 : index
    %c0_21 = arith.constant 0 : index
    %52 = vector.load %arg7[%c0_20, %c0_21] : memref<32x128xbf16, #tpu.memory_space<vmem>>, vector<32x128xbf16>
    %cst_22 = arith.constant dense<0.000000e+00> : vector<64x128xf32>
    %53 = tpu.matmul %51, %52, %cst_22 {dimension_numbers = #tpu.dot_dimension_numbers<[1], [0], [0], [1], [0, 0, 1, 1], [], []>} : vector<64x32xbf16>, vector<32x128xbf16>, vector<64x128xf32> -> vector<64x128xf32>
    %c0_23 = arith.constant 0 : index
    %c0_24 = arith.constant 0 : index
    %54 = vector.load %arg8[%c0_23, %c0_24] : memref<1x128xf32, #tpu.memory_space<vmem>>, vector<1x128xf32>
    %55 = vector.broadcast %54 : vector<1x128xf32> to vector<64x128xf32>
    %56 = arith.addf %53, %55 : vector<64x128xf32>
    %cst_25 = arith.constant 5.000000e-01 : f32
    %57 = vector.broadcast %cst_25 : f32 to vector<64x128xf32>
    %58 = arith.mulf %57, %56 : vector<64x128xf32>
    %cst_26 = arith.constant 0.707106769 : f32
    %59 = vector.broadcast %cst_26 : f32 to vector<64x128xf32>
    %60 = arith.mulf %56, %59 : vector<64x128xf32>
    %61 = math.erf %60 : vector<64x128xf32>
    %cst_27 = arith.constant 1.000000e+00 : f32
    %62 = vector.broadcast %cst_27 : f32 to vector<64x128xf32>
    %63 = arith.addf %62, %61 : vector<64x128xf32>
    %64 = arith.mulf %58, %63 : vector<64x128xf32>
    %65 = arith.truncf %64 : vector<64x128xf32> to vector<64x128xbf16>
    %c0_28 = arith.constant 0 : index
    %c0_29 = arith.constant 0 : index
    %66 = vector.load %arg9[%c0_28, %c0_29] : memref<128x32xbf16, #tpu.memory_space<vmem>>, vector<128x32xbf16>
    %cst_30 = arith.constant dense<0.000000e+00> : vector<64x32xf32>
    %67 = tpu.matmul %65, %66, %cst_30 {dimension_numbers = #tpu.dot_dimension_numbers<[1], [0], [0], [1], [0, 0, 1, 1], [], []>} : vector<64x128xbf16>, vector<128x32xbf16>, vector<64x32xf32> -> vector<64x32xf32>
    %c0_31 = arith.constant 0 : index
    %c0_32 = arith.constant 0 : index
    %68 = vector.load %arg10[%c0_31, %c0_32] : memref<1x32xf32, #tpu.memory_space<vmem>>, vector<1x32xf32>
    %69 = vector.broadcast %68 : vector<1x32xf32> to vector<64x32xf32>
    %70 = arith.addf %67, %69 : vector<64x32xf32>
    %71 = arith.addf %26, %70 : vector<64x32xf32>
    %c0_33 = arith.constant 0 : index
    %c0_34 = arith.constant 0 : index
    %72 = vector.load %arg11[%c0_33, %c0_34] : memref<64x32xf32, #tpu.memory_space<vmem>>, vector<64x32xf32>
    tpu.vector_store %arg11[%c0_33, %c0_34], %71 {strides = array<i32>} : memref<64x32xf32, #tpu.memory_space<vmem>>, vector<64x32xf32>,
    return
  }
  func.func @transform_0(%arg0: i32) -> (i32, i32) {
    %c0_i32 = arith.constant 0 : i32
    %c0_i32_0 = arith.constant 0 : i32
    return %arg0, %c0_i32 : i32, i32
  }
  func.func @transform_1(%arg0: i32) -> (i32, i32) {
    %c0_i32 = arith.constant 0 : i32
    %c0_i32_0 = arith.constant 0 : i32
    return %arg0, %c0_i32 : i32, i32
  }
  func.func @transform_2(%arg0: i32) -> (i32, i32) {
    %c0_i32 = arith.constant 0 : i32
    %c0_i32_0 = arith.constant 0 : i32
    %c0_i32_1 = arith.constant 0 : i32
    return %c0_i32, %c0_i32_0 : i32, i32
  }
  func.func @transform_3(%arg0: i32) -> (i32, i32) {
    %c0_i32 = arith.constant 0 : i32
    %c0_i32_0 = arith.constant 0 : i32
    %c0_i32_1 = arith.constant 0 : i32
    return %c0_i32, %c0_i32_0 : i32, i32
  }
  func.func @transform_4(%arg0: i32) -> (i32, i32) {
    %c0_i32 = arith.constant 0 : i32
    %c0_i32_0 = arith.constant 0 : i32
    %c0_i32_1 = arith.constant 0 : i32
    return %c0_i32, %c0_i32_0 : i32, i32
  }
  func.func @transform_5(%arg0: i32) -> (i32, i32) {
    %c0_i32 = arith.constant 0 : i32
    %c0_i32_0 = arith.constant 0 : i32
    %c0_i32_1 = arith.constant 0 : i32
    return %c0_i32, %c0_i32_0 : i32, i32
  }
  func.func @transform_6(%arg0: i32) -> (i32, i32) {
    %c0_i32 = arith.constant 0 : i32
    %c0_i32_0 = arith.constant 0 : i32
    %c0_i32_1 = arith.constant 0 : i32
    return %c0_i32, %c0_i32_0 : i32, i32
  }
  func.func @transform_7(%arg0: i32) -> (i32, i32) {
    %c0_i32 = arith.constant 0 : i32
    %c0_i32_0 = arith.constant 0 : i32
    %c0_i32_1 = arith.constant 0 : i32
    return %c0_i32, %c0_i32_0 : i32, i32
  }
  func.func @transform_8(%arg0: i32) -> (i32, i32) {
    %c0_i32 = arith.constant 0 : i32
    %c0_i32_0 = arith.constant 0 : i32
    %c0_i32_1 = arith.constant 0 : i32
    return %c0_i32, %c0_i32_0 : i32, i32
  }
  func.func @transform_9(%arg0: i32) -> (i32, i32) {
    %c0_i32 = arith.constant 0 : i32
    %c0_i32_0 = arith.constant 0 : i32
    %c0_i32_1 = arith.constant 0 : i32
    return %c0_i32, %c0_i32_0 : i32, i32
  }
  func.func @transform_10(%arg0: i32) -> (i32, i32) {
    %c0_i32 = arith.constant 0 : i32
    %c0_i32_0 = arith.constant 0 : i32
    return %arg0, %c0_i32 : i32, i32
  }
}

module attributes {stable_mosaic.version = 11 : i64} {
  func.func @_window_attn_kernel(%arg0: i32, %arg1: memref<4x16x32xf32, #tpu.memory_space<vmem>>, %arg2: memref<1x32xf32, #tpu.memory_space<vmem>>, %arg3: memref<1x32xf32, #tpu.memory_space<vmem>>, %arg4: memref<32x96xbf16, #tpu.memory_space<vmem>>, %arg5: memref<32x32xbf16, #tpu.memory_space<vmem>>, %arg6: memref<1x32xf32, #tpu.memory_space<vmem>>, %arg7: memref<4x1x16x16xf32, #tpu.memory_space<vmem>>, %arg8: memref<4x16x32xf32, #tpu.memory_space<vmem>>) attributes {dimension_semantics = [#tpu.dimension_semantics<parallel>], iteration_bounds = array<i64: 2>, scalar_prefetch = 0 : i64, scratch_operands = 0 : i64, tpu.core_type = #tpu.core_type<tc>, window_params = [{transform_indices = @transform_0, window_bounds = array<i64: 4, 16, 32>}, {pipeline_mode = #tpu.pipeline_mode<synchronous>, transform_indices = @transform_1, window_bounds = array<i64: 1, 32>}, {pipeline_mode = #tpu.pipeline_mode<synchronous>, transform_indices = @transform_2, window_bounds = array<i64: 1, 32>}, {pipeline_mode = #tpu.pipeline_mode<synchronous>, transform_indices = @transform_3, window_bounds = array<i64: 32, 96>}, {pipeline_mode = #tpu.pipeline_mode<synchronous>, transform_indices = @transform_4, window_bounds = array<i64: 32, 32>}, {pipeline_mode = #tpu.pipeline_mode<synchronous>, transform_indices = @transform_5, window_bounds = array<i64: 1, 32>}, {pipeline_mode = #tpu.pipeline_mode<synchronous>, transform_indices = @transform_6, window_bounds = array<i64: 4, 1, 16, 16>}, {transform_indices = @transform_7, window_bounds = array<i64: 4, 16, 32>}]} {
    %c0 = arith.constant 0 : index
    %c0_0 = arith.constant 0 : index
    %c0_1 = arith.constant 0 : index
    %0 = vector.load %arg1[%c0, %c0_0, %c0_1] : memref<4x16x32xf32, #tpu.memory_space<vmem>>, vector<4x16x32xf32>
    %cst = arith.constant dense<0.000000e+00> : vector<4x16xf32>
    %1 = vector.multi_reduction <add>, %0, %cst [2] : vector<4x16x32xf32> to vector<4x16xf32>
    %2 = vector.shape_cast %1 : vector<4x16xf32> to vector<4x16x1xf32>
    %cst_2 = arith.constant 3.200000e+01 : f32
    %3 = vector.broadcast %cst_2 : f32 to vector<4x16x1xf32>
    %4 = arith.divf %2, %3 : vector<4x16x1xf32>
    %5 = vector.broadcast %4 : vector<4x16x1xf32> to vector<4x16x32xf32>
    %6 = arith.subf %0, %5 : vector<4x16x32xf32>
    %7 = arith.mulf %6, %6 : vector<4x16x32xf32>
    %cst_3 = arith.constant dense<0.000000e+00> : vector<4x16xf32>
    %8 = vector.multi_reduction <add>, %7, %cst_3 [2] : vector<4x16x32xf32> to vector<4x16xf32>
    %9 = vector.shape_cast %8 : vector<4x16xf32> to vector<4x16x1xf32>
    %cst_4 = arith.constant 3.200000e+01 : f32
    %10 = vector.broadcast %cst_4 : f32 to vector<4x16x1xf32>
    %11 = arith.divf %9, %10 : vector<4x16x1xf32>
    %12 = vector.broadcast %4 : vector<4x16x1xf32> to vector<4x16x32xf32>
    %13 = arith.subf %0, %12 : vector<4x16x32xf32>
    %cst_5 = arith.constant 9.99999974E-6 : f32
    %14 = vector.broadcast %cst_5 : f32 to vector<4x16x1xf32>
    %15 = arith.addf %11, %14 : vector<4x16x1xf32>
    %16 = math.rsqrt %15 : vector<4x16x1xf32>
    %17 = vector.broadcast %16 : vector<4x16x1xf32> to vector<4x16x32xf32>
    %18 = arith.mulf %13, %17 : vector<4x16x32xf32>
    %c0_6 = arith.constant 0 : index
    %c0_7 = arith.constant 0 : index
    %19 = vector.load %arg2[%c0_6, %c0_7] : memref<1x32xf32, #tpu.memory_space<vmem>>, vector<1x32xf32>
    %20 = vector.shape_cast %19 : vector<1x32xf32> to vector<1x1x32xf32>
    %21 = vector.broadcast %20 : vector<1x1x32xf32> to vector<4x16x32xf32>
    %22 = arith.mulf %18, %21 : vector<4x16x32xf32>
    %c0_8 = arith.constant 0 : index
    %c0_9 = arith.constant 0 : index
    %23 = vector.load %arg3[%c0_8, %c0_9] : memref<1x32xf32, #tpu.memory_space<vmem>>, vector<1x32xf32>
    %24 = vector.shape_cast %23 : vector<1x32xf32> to vector<1x1x32xf32>
    %25 = vector.broadcast %24 : vector<1x1x32xf32> to vector<4x16x32xf32>
    %26 = arith.addf %22, %25 : vector<4x16x32xf32>
    %27 = vector.shape_cast %26 : vector<4x16x32xf32> to vector<64x32xf32>
    %28 = arith.truncf %27 : vector<64x32xf32> to vector<64x32xbf16>
    %c0_10 = arith.constant 0 : index
    %c0_11 = arith.constant 0 : index
    %29 = vector.load %arg4[%c0_10, %c0_11] : memref<32x96xbf16, #tpu.memory_space<vmem>>, vector<32x96xbf16>
    %cst_12 = arith.constant dense<0.000000e+00> : vector<64x96xf32>
    %30 = tpu.matmul %28, %29, %cst_12 {dimension_numbers = #tpu.dot_dimension_numbers<[1], [0], [0], [1], [0, 0, 1, 1], [], []>} : vector<64x32xbf16>, vector<32x96xbf16>, vector<64x96xf32> -> vector<64x96xf32>
    %31 = vector.shape_cast %30 : vector<64x96xf32> to vector<4x16x96xf32>
    %32 = vector.extract_strided_slice %31 {offsets = [0, 0, 0], sizes = [4, 16, 8], strides = [1, 1, 1]} : vector<4x16x96xf32> to vector<4x16x8xf32>
    %33 = vector.extract_strided_slice %31 {offsets = [0, 0, 32], sizes = [4, 16, 8], strides = [1, 1, 1]} : vector<4x16x96xf32> to vector<4x16x8xf32>
    %34 = vector.extract_strided_slice %31 {offsets = [0, 0, 64], sizes = [4, 16, 8], strides = [1, 1, 1]} : vector<4x16x96xf32> to vector<4x16x8xf32>
    %35 = arith.truncf %32 : vector<4x16x8xf32> to vector<4x16x8xbf16>
    %36 = arith.truncf %33 : vector<4x16x8xf32> to vector<4x16x8xbf16>
    "tpu.trace_start"() <{level = 10 : i32, message = "wqd,wkd->wqk"}> : () -> ()
    %cst_13 = arith.constant dense<0.000000e+00> : vector<4x16x16xf32>
    %37 = tpu.matmul %35, %36, %cst_13 {dimension_numbers = #tpu.dot_dimension_numbers<[2], [2], [1], [1], [0, 0, 0, 1, 1, 1], [0], [0]>} : vector<4x16x8xbf16>, vector<4x16x8xbf16>, vector<4x16x16xf32> -> vector<4x16x16xf32>
    "tpu.trace_stop"() : () -> ()
    %c0_14 = arith.constant 0 : index
    %c0_15 = arith.constant 0 : index
    %c0_16 = arith.constant 0 : index
    %c0_17 = arith.constant 0 : index
    %38 = vector.load %arg7[%c0_14, %c0_15, %c0_16, %c0_17] : memref<4x1x16x16xf32, #tpu.memory_space<vmem>>, vector<1x1x16x16xf32>
    %39 = vector.shape_cast %38 : vector<1x1x16x16xf32> to vector<1x16x16xf32>
    %40 = vector.broadcast %39 : vector<1x16x16xf32> to vector<4x16x16xf32>
    %41 = arith.addf %37, %40 : vector<4x16x16xf32>
    %cst_18 = arith.constant dense<0xFF800000> : vector<4x16xf32>
    %42 = vector.multi_reduction <maximumf>, %41, %cst_18 [2] : vector<4x16x16xf32> to vector<4x16xf32>
    %43 = vector.shape_cast %42 : vector<4x16xf32> to vector<4x16x1xf32>
    %44 = vector.broadcast %43 : vector<4x16x1xf32> to vector<4x16x16xf32>
    %45 = arith.subf %41, %44 : vector<4x16x16xf32>
    %46 = math.exp %45 : vector<4x16x16xf32>
    %cst_19 = arith.constant dense<0.000000e+00> : vector<4x16xf32>
    %47 = vector.multi_reduction <add>, %46, %cst_19 [2] : vector<4x16x16xf32> to vector<4x16xf32>
    %48 = vector.shape_cast %47 : vector<4x16xf32> to vector<4x16x1xf32>
    %49 = tpu.reciprocal %48 : vector<4x16x1xf32> -> vector<4x16x1xf32>
    %50 = vector.broadcast %49 : vector<4x16x1xf32> to vector<4x16x16xf32>
    %51 = arith.mulf %46, %50 : vector<4x16x16xf32>
    %52 = arith.truncf %51 : vector<4x16x16xf32> to vector<4x16x16xbf16>
    %53 = arith.truncf %34 : vector<4x16x8xf32> to vector<4x16x8xbf16>
    "tpu.trace_start"() <{level = 10 : i32, message = "wqk,wkd->wqd"}> : () -> ()
    %cst_20 = arith.constant dense<0.000000e+00> : vector<4x16x8xf32>
    %54 = tpu.matmul %52, %53, %cst_20 {dimension_numbers = #tpu.dot_dimension_numbers<[2], [1], [1], [2], [0, 0, 0, 1, 1, 2], [0], [0]>} : vector<4x16x16xbf16>, vector<4x16x8xbf16>, vector<4x16x8xf32> -> vector<4x16x8xf32>
    "tpu.trace_stop"() : () -> ()
    %55 = vector.shape_cast %54 : vector<4x16x8xf32> to vector<64x8xf32>
    %56 = vector.extract_strided_slice %31 {offsets = [0, 0, 8], sizes = [4, 16, 8], strides = [1, 1, 1]} : vector<4x16x96xf32> to vector<4x16x8xf32>
    %57 = vector.extract_strided_slice %31 {offsets = [0, 0, 40], sizes = [4, 16, 8], strides = [1, 1, 1]} : vector<4x16x96xf32> to vector<4x16x8xf32>
    %58 = vector.extract_strided_slice %31 {offsets = [0, 0, 72], sizes = [4, 16, 8], strides = [1, 1, 1]} : vector<4x16x96xf32> to vector<4x16x8xf32>
    %59 = arith.truncf %56 : vector<4x16x8xf32> to vector<4x16x8xbf16>
    %60 = arith.truncf %57 : vector<4x16x8xf32> to vector<4x16x8xbf16>
    "tpu.trace_start"() <{level = 10 : i32, message = "wqd,wkd->wqk"}> : () -> ()
    %cst_21 = arith.constant dense<0.000000e+00> : vector<4x16x16xf32>
    %61 = tpu.matmul %59, %60, %cst_21 {dimension_numbers = #tpu.dot_dimension_numbers<[2], [2], [1], [1], [0, 0, 0, 1, 1, 1], [0], [0]>} : vector<4x16x8xbf16>, vector<4x16x8xbf16>, vector<4x16x16xf32> -> vector<4x16x16xf32>
    "tpu.trace_stop"() : () -> ()
    %c1 = arith.constant 1 : index
    %c0_22 = arith.constant 0 : index
    %c0_23 = arith.constant 0 : index
    %c0_24 = arith.constant 0 : index
    %62 = vector.load %arg7[%c1, %c0_22, %c0_23, %c0_24] : memref<4x1x16x16xf32, #tpu.memory_space<vmem>>, vector<1x1x16x16xf32>
    %63 = vector.shape_cast %62 : vector<1x1x16x16xf32> to vector<1x16x16xf32>
    %64 = vector.broadcast %63 : vector<1x16x16xf32> to vector<4x16x16xf32>
    %65 = arith.addf %61, %64 : vector<4x16x16xf32>
    %cst_25 = arith.constant dense<0xFF800000> : vector<4x16xf32>
    %66 = vector.multi_reduction <maximumf>, %65, %cst_25 [2] : vector<4x16x16xf32> to vector<4x16xf32>
    %67 = vector.shape_cast %66 : vector<4x16xf32> to vector<4x16x1xf32>
    %68 = vector.broadcast %67 : vector<4x16x1xf32> to vector<4x16x16xf32>
    %69 = arith.subf %65, %68 : vector<4x16x16xf32>
    %70 = math.exp %69 : vector<4x16x16xf32>
    %cst_26 = arith.constant dense<0.000000e+00> : vector<4x16xf32>
    %71 = vector.multi_reduction <add>, %70, %cst_26 [2] : vector<4x16x16xf32> to vector<4x16xf32>
    %72 = vector.shape_cast %71 : vector<4x16xf32> to vector<4x16x1xf32>
    %73 = tpu.reciprocal %72 : vector<4x16x1xf32> -> vector<4x16x1xf32>
    %74 = vector.broadcast %73 : vector<4x16x1xf32> to vector<4x16x16xf32>
    %75 = arith.mulf %70, %74 : vector<4x16x16xf32>
    %76 = arith.truncf %75 : vector<4x16x16xf32> to vector<4x16x16xbf16>
    %77 = arith.truncf %58 : vector<4x16x8xf32> to vector<4x16x8xbf16>
    "tpu.trace_start"() <{level = 10 : i32, message = "wqk,wkd->wqd"}> : () -> ()
    %cst_27 = arith.constant dense<0.000000e+00> : vector<4x16x8xf32>
    %78 = tpu.matmul %76, %77, %cst_27 {dimension_numbers = #tpu.dot_dimension_numbers<[2], [1], [1], [2], [0, 0, 0, 1, 1, 2], [0], [0]>} : vector<4x16x16xbf16>, vector<4x16x8xbf16>, vector<4x16x8xf32> -> vector<4x16x8xf32>
    "tpu.trace_stop"() : () -> ()
    %79 = vector.shape_cast %78 : vector<4x16x8xf32> to vector<64x8xf32>
    %80 = vector.extract_strided_slice %31 {offsets = [0, 0, 16], sizes = [4, 16, 8], strides = [1, 1, 1]} : vector<4x16x96xf32> to vector<4x16x8xf32>
    %81 = vector.extract_strided_slice %31 {offsets = [0, 0, 48], sizes = [4, 16, 8], strides = [1, 1, 1]} : vector<4x16x96xf32> to vector<4x16x8xf32>
    %82 = vector.extract_strided_slice %31 {offsets = [0, 0, 80], sizes = [4, 16, 8], strides = [1, 1, 1]} : vector<4x16x96xf32> to vector<4x16x8xf32>
    %83 = arith.truncf %80 : vector<4x16x8xf32> to vector<4x16x8xbf16>
    %84 = arith.truncf %81 : vector<4x16x8xf32> to vector<4x16x8xbf16>
    "tpu.trace_start"() <{level = 10 : i32, message = "wqd,wkd->wqk"}> : () -> ()
    %cst_28 = arith.constant dense<0.000000e+00> : vector<4x16x16xf32>
    %85 = tpu.matmul %83, %84, %cst_28 {dimension_numbers = #tpu.dot_dimension_numbers<[2], [2], [1], [1], [0, 0, 0, 1, 1, 1], [0], [0]>} : vector<4x16x8xbf16>, vector<4x16x8xbf16>, vector<4x16x16xf32> -> vector<4x16x16xf32>
    "tpu.trace_stop"() : () -> ()
    %c2 = arith.constant 2 : index
    %c0_29 = arith.constant 0 : index
    %c0_30 = arith.constant 0 : index
    %c0_31 = arith.constant 0 : index
    %86 = vector.load %arg7[%c2, %c0_29, %c0_30, %c0_31] : memref<4x1x16x16xf32, #tpu.memory_space<vmem>>, vector<1x1x16x16xf32>
    %87 = vector.shape_cast %86 : vector<1x1x16x16xf32> to vector<1x16x16xf32>
    %88 = vector.broadcast %87 : vector<1x16x16xf32> to vector<4x16x16xf32>
    %89 = arith.addf %85, %88 : vector<4x16x16xf32>
    %cst_32 = arith.constant dense<0xFF800000> : vector<4x16xf32>
    %90 = vector.multi_reduction <maximumf>, %89, %cst_32 [2] : vector<4x16x16xf32> to vector<4x16xf32>
    %91 = vector.shape_cast %90 : vector<4x16xf32> to vector<4x16x1xf32>
    %92 = vector.broadcast %91 : vector<4x16x1xf32> to vector<4x16x16xf32>
    %93 = arith.subf %89, %92 : vector<4x16x16xf32>
    %94 = math.exp %93 : vector<4x16x16xf32>
    %cst_33 = arith.constant dense<0.000000e+00> : vector<4x16xf32>
    %95 = vector.multi_reduction <add>, %94, %cst_33 [2] : vector<4x16x16xf32> to vector<4x16xf32>
    %96 = vector.shape_cast %95 : vector<4x16xf32> to vector<4x16x1xf32>
    %97 = tpu.reciprocal %96 : vector<4x16x1xf32> -> vector<4x16x1xf32>
    %98 = vector.broadcast %97 : vector<4x16x1xf32> to vector<4x16x16xf32>
    %99 = arith.mulf %94, %98 : vector<4x16x16xf32>
    %100 = arith.truncf %99 : vector<4x16x16xf32> to vector<4x16x16xbf16>
    %101 = arith.truncf %82 : vector<4x16x8xf32> to vector<4x16x8xbf16>
    "tpu.trace_start"() <{level = 10 : i32, message = "wqk,wkd->wqd"}> : () -> ()
    %cst_34 = arith.constant dense<0.000000e+00> : vector<4x16x8xf32>
    %102 = tpu.matmul %100, %101, %cst_34 {dimension_numbers = #tpu.dot_dimension_numbers<[2], [1], [1], [2], [0, 0, 0, 1, 1, 2], [0], [0]>} : vector<4x16x16xbf16>, vector<4x16x8xbf16>, vector<4x16x8xf32> -> vector<4x16x8xf32>
    "tpu.trace_stop"() : () -> ()
    %103 = vector.shape_cast %102 : vector<4x16x8xf32> to vector<64x8xf32>
    %104 = vector.extract_strided_slice %31 {offsets = [0, 0, 24], sizes = [4, 16, 8], strides = [1, 1, 1]} : vector<4x16x96xf32> to vector<4x16x8xf32>
    %105 = vector.extract_strided_slice %31 {offsets = [0, 0, 56], sizes = [4, 16, 8], strides = [1, 1, 1]} : vector<4x16x96xf32> to vector<4x16x8xf32>
    %106 = vector.extract_strided_slice %31 {offsets = [0, 0, 88], sizes = [4, 16, 8], strides = [1, 1, 1]} : vector<4x16x96xf32> to vector<4x16x8xf32>
    %107 = arith.truncf %104 : vector<4x16x8xf32> to vector<4x16x8xbf16>
    %108 = arith.truncf %105 : vector<4x16x8xf32> to vector<4x16x8xbf16>
    "tpu.trace_start"() <{level = 10 : i32, message = "wqd,wkd->wqk"}> : () -> ()
    %cst_35 = arith.constant dense<0.000000e+00> : vector<4x16x16xf32>
    %109 = tpu.matmul %107, %108, %cst_35 {dimension_numbers = #tpu.dot_dimension_numbers<[2], [2], [1], [1], [0, 0, 0, 1, 1, 1], [0], [0]>} : vector<4x16x8xbf16>, vector<4x16x8xbf16>, vector<4x16x16xf32> -> vector<4x16x16xf32>
    "tpu.trace_stop"() : () -> ()
    %c3 = arith.constant 3 : index
    %c0_36 = arith.constant 0 : index
    %c0_37 = arith.constant 0 : index
    %c0_38 = arith.constant 0 : index
    %110 = vector.load %arg7[%c3, %c0_36, %c0_37, %c0_38] : memref<4x1x16x16xf32, #tpu.memory_space<vmem>>, vector<1x1x16x16xf32>
    %111 = vector.shape_cast %110 : vector<1x1x16x16xf32> to vector<1x16x16xf32>
    %112 = vector.broadcast %111 : vector<1x16x16xf32> to vector<4x16x16xf32>
    %113 = arith.addf %109, %112 : vector<4x16x16xf32>
    %cst_39 = arith.constant dense<0xFF800000> : vector<4x16xf32>
    %114 = vector.multi_reduction <maximumf>, %113, %cst_39 [2] : vector<4x16x16xf32> to vector<4x16xf32>
    %115 = vector.shape_cast %114 : vector<4x16xf32> to vector<4x16x1xf32>
    %116 = vector.broadcast %115 : vector<4x16x1xf32> to vector<4x16x16xf32>
    %117 = arith.subf %113, %116 : vector<4x16x16xf32>
    %118 = math.exp %117 : vector<4x16x16xf32>
    %cst_40 = arith.constant dense<0.000000e+00> : vector<4x16xf32>
    %119 = vector.multi_reduction <add>, %118, %cst_40 [2] : vector<4x16x16xf32> to vector<4x16xf32>
    %120 = vector.shape_cast %119 : vector<4x16xf32> to vector<4x16x1xf32>
    %121 = tpu.reciprocal %120 : vector<4x16x1xf32> -> vector<4x16x1xf32>
    %122 = vector.broadcast %121 : vector<4x16x1xf32> to vector<4x16x16xf32>
    %123 = arith.mulf %118, %122 : vector<4x16x16xf32>
    %124 = arith.truncf %123 : vector<4x16x16xf32> to vector<4x16x16xbf16>
    %125 = arith.truncf %106 : vector<4x16x8xf32> to vector<4x16x8xbf16>
    "tpu.trace_start"() <{level = 10 : i32, message = "wqk,wkd->wqd"}> : () -> ()
    %cst_41 = arith.constant dense<0.000000e+00> : vector<4x16x8xf32>
    %126 = tpu.matmul %124, %125, %cst_41 {dimension_numbers = #tpu.dot_dimension_numbers<[2], [1], [1], [2], [0, 0, 0, 1, 1, 2], [0], [0]>} : vector<4x16x16xbf16>, vector<4x16x8xbf16>, vector<4x16x8xf32> -> vector<4x16x8xf32>
    "tpu.trace_stop"() : () -> ()
    %127 = vector.shape_cast %126 : vector<4x16x8xf32> to vector<64x8xf32>
    %128 = tpu.concatenate %55, %79, %103, %127 in 1 : vector<64x8xf32>, vector<64x8xf32>, vector<64x8xf32>, vector<64x8xf32> -> vector<64x32xf32>
    %129 = arith.truncf %128 : vector<64x32xf32> to vector<64x32xbf16>
    %c0_42 = arith.constant 0 : index
    %c0_43 = arith.constant 0 : index
    %130 = vector.load %arg5[%c0_42, %c0_43] : memref<32x32xbf16, #tpu.memory_space<vmem>>, vector<32x32xbf16>
    %cst_44 = arith.constant dense<0.000000e+00> : vector<64x32xf32>
    %131 = tpu.matmul %129, %130, %cst_44 {dimension_numbers = #tpu.dot_dimension_numbers<[1], [0], [0], [1], [0, 0, 1, 1], [], []>} : vector<64x32xbf16>, vector<32x32xbf16>, vector<64x32xf32> -> vector<64x32xf32>
    %c0_45 = arith.constant 0 : index
    %c0_46 = arith.constant 0 : index
    %132 = vector.load %arg6[%c0_45, %c0_46] : memref<1x32xf32, #tpu.memory_space<vmem>>, vector<1x32xf32>
    %133 = vector.broadcast %132 : vector<1x32xf32> to vector<64x32xf32>
    %134 = arith.addf %131, %133 : vector<64x32xf32>
    %135 = vector.shape_cast %134 : vector<64x32xf32> to vector<4x16x32xf32>
    %c0_47 = arith.constant 0 : index
    %c0_48 = arith.constant 0 : index
    %c0_49 = arith.constant 0 : index
    %136 = vector.load %arg8[%c0_47, %c0_48, %c0_49] : memref<4x16x32xf32, #tpu.memory_space<vmem>>, vector<4x16x32xf32>
    tpu.vector_store %arg8[%c0_47, %c0_48, %c0_49], %135 {strides = array<i32>} : memref<4x16x32xf32, #tpu.memory_space<vmem>>, vector<4x16x32xf32>,
    return
  }
  func.func @transform_0(%arg0: i32) -> (i32, i32, i32) {
    %c0_i32 = arith.constant 0 : i32
    %c0_i32_0 = arith.constant 0 : i32
    %c0_i32_1 = arith.constant 0 : i32
    return %arg0, %c0_i32, %c0_i32_0 : i32, i32, i32
  }
  func.func @transform_1(%arg0: i32) -> (i32, i32) {
    %c0_i32 = arith.constant 0 : i32
    %c0_i32_0 = arith.constant 0 : i32
    %c0_i32_1 = arith.constant 0 : i32
    return %c0_i32, %c0_i32_0 : i32, i32
  }
  func.func @transform_2(%arg0: i32) -> (i32, i32) {
    %c0_i32 = arith.constant 0 : i32
    %c0_i32_0 = arith.constant 0 : i32
    %c0_i32_1 = arith.constant 0 : i32
    return %c0_i32, %c0_i32_0 : i32, i32
  }
  func.func @transform_3(%arg0: i32) -> (i32, i32) {
    %c0_i32 = arith.constant 0 : i32
    %c0_i32_0 = arith.constant 0 : i32
    %c0_i32_1 = arith.constant 0 : i32
    return %c0_i32, %c0_i32_0 : i32, i32
  }
  func.func @transform_4(%arg0: i32) -> (i32, i32) {
    %c0_i32 = arith.constant 0 : i32
    %c0_i32_0 = arith.constant 0 : i32
    %c0_i32_1 = arith.constant 0 : i32
    return %c0_i32, %c0_i32_0 : i32, i32
  }
  func.func @transform_5(%arg0: i32) -> (i32, i32) {
    %c0_i32 = arith.constant 0 : i32
    %c0_i32_0 = arith.constant 0 : i32
    %c0_i32_1 = arith.constant 0 : i32
    return %c0_i32, %c0_i32_0 : i32, i32
  }
  func.func @transform_6(%arg0: i32) -> (i32, i32, i32, i32) {
    %c0_i32 = arith.constant 0 : i32
    %c0_i32_0 = arith.constant 0 : i32
    %c0_i32_1 = arith.constant 0 : i32
    %c0_i32_2 = arith.constant 0 : i32
    %c0_i32_3 = arith.constant 0 : i32
    return %c0_i32, %c0_i32_0, %c0_i32_1, %c0_i32_2 : i32, i32, i32, i32
  }
  func.func @transform_7(%arg0: i32) -> (i32, i32, i32) {
    %c0_i32 = arith.constant 0 : i32
    %c0_i32_0 = arith.constant 0 : i32
    %c0_i32_1 = arith.constant 0 : i32
    return %arg0, %c0_i32, %c0_i32_0 : i32, i32, i32
  }
}

module attributes {stable_mosaic.version = 11 : i64} {
  func.func @_window_attn_kernel(%arg0: i32, %arg1: memref<4x16x32xf32, #tpu.memory_space<vmem>>, %arg2: memref<32x96xbf16, #tpu.memory_space<vmem>>, %arg3: memref<32x32xbf16, #tpu.memory_space<vmem>>, %arg4: memref<1x32xf32, #tpu.memory_space<vmem>>, %arg5: memref<4x4x16x16xf32, #tpu.memory_space<vmem>>, %arg6: memref<4x16x32xf32, #tpu.memory_space<vmem>>) attributes {dimension_semantics = [#tpu.dimension_semantics<parallel>], iteration_bounds = array<i64: 2>, scalar_prefetch = 0 : i64, scratch_operands = 0 : i64, tpu.core_type = #tpu.core_type<tc>, window_params = [{transform_indices = @transform_0, window_bounds = array<i64: 4, 16, 32>}, {pipeline_mode = #tpu.pipeline_mode<synchronous>, transform_indices = @transform_1, window_bounds = array<i64: 32, 96>}, {pipeline_mode = #tpu.pipeline_mode<synchronous>, transform_indices = @transform_2, window_bounds = array<i64: 32, 32>}, {pipeline_mode = #tpu.pipeline_mode<synchronous>, transform_indices = @transform_3, window_bounds = array<i64: 1, 32>}, {pipeline_mode = #tpu.pipeline_mode<synchronous>, transform_indices = @transform_4, window_bounds = array<i64: 4, 4, 16, 16>}, {transform_indices = @transform_5, window_bounds = array<i64: 4, 16, 32>}]} {
    %c0 = arith.constant 0 : index
    %c0_0 = arith.constant 0 : index
    %c0_1 = arith.constant 0 : index
    %0 = vector.load %arg1[%c0, %c0_0, %c0_1] : memref<4x16x32xf32, #tpu.memory_space<vmem>>, vector<4x16x32xf32>
    %1 = vector.shape_cast %0 : vector<4x16x32xf32> to vector<64x32xf32>
    %2 = arith.truncf %1 : vector<64x32xf32> to vector<64x32xbf16>
    %c0_2 = arith.constant 0 : index
    %c0_3 = arith.constant 0 : index
    %3 = vector.load %arg2[%c0_2, %c0_3] : memref<32x96xbf16, #tpu.memory_space<vmem>>, vector<32x96xbf16>
    %cst = arith.constant dense<0.000000e+00> : vector<64x96xf32>
    %4 = tpu.matmul %2, %3, %cst {dimension_numbers = #tpu.dot_dimension_numbers<[1], [0], [0], [1], [0, 0, 1, 1], [], []>} : vector<64x32xbf16>, vector<32x96xbf16>, vector<64x96xf32> -> vector<64x96xf32>
    %5 = vector.shape_cast %4 : vector<64x96xf32> to vector<4x16x96xf32>
    %6 = vector.extract_strided_slice %5 {offsets = [0, 0, 0], sizes = [4, 16, 8], strides = [1, 1, 1]} : vector<4x16x96xf32> to vector<4x16x8xf32>
    %7 = vector.extract_strided_slice %5 {offsets = [0, 0, 32], sizes = [4, 16, 8], strides = [1, 1, 1]} : vector<4x16x96xf32> to vector<4x16x8xf32>
    %8 = vector.extract_strided_slice %5 {offsets = [0, 0, 64], sizes = [4, 16, 8], strides = [1, 1, 1]} : vector<4x16x96xf32> to vector<4x16x8xf32>
    %9 = arith.truncf %6 : vector<4x16x8xf32> to vector<4x16x8xbf16>
    %10 = arith.truncf %7 : vector<4x16x8xf32> to vector<4x16x8xbf16>
    "tpu.trace_start"() <{level = 10 : i32, message = "wqd,wkd->wqk"}> : () -> ()
    %cst_4 = arith.constant dense<0.000000e+00> : vector<4x16x16xf32>
    %11 = tpu.matmul %9, %10, %cst_4 {dimension_numbers = #tpu.dot_dimension_numbers<[2], [2], [1], [1], [0, 0, 0, 1, 1, 1], [0], [0]>} : vector<4x16x8xbf16>, vector<4x16x8xbf16>, vector<4x16x16xf32> -> vector<4x16x16xf32>
    "tpu.trace_stop"() : () -> ()
    %c0_5 = arith.constant 0 : index
    %c0_6 = arith.constant 0 : index
    %c0_7 = arith.constant 0 : index
    %c0_8 = arith.constant 0 : index
    %12 = vector.load %arg5[%c0_5, %c0_6, %c0_7, %c0_8] : memref<4x4x16x16xf32, #tpu.memory_space<vmem>>, vector<1x4x16x16xf32>
    %13 = vector.shape_cast %12 : vector<1x4x16x16xf32> to vector<4x16x16xf32>
    %14 = arith.addf %11, %13 : vector<4x16x16xf32>
    %cst_9 = arith.constant dense<0xFF800000> : vector<4x16xf32>
    %15 = vector.multi_reduction <maximumf>, %14, %cst_9 [2] : vector<4x16x16xf32> to vector<4x16xf32>
    %16 = vector.shape_cast %15 : vector<4x16xf32> to vector<4x16x1xf32>
    %17 = vector.broadcast %16 : vector<4x16x1xf32> to vector<4x16x16xf32>
    %18 = arith.subf %14, %17 : vector<4x16x16xf32>
    %19 = math.exp %18 : vector<4x16x16xf32>
    %cst_10 = arith.constant dense<0.000000e+00> : vector<4x16xf32>
    %20 = vector.multi_reduction <add>, %19, %cst_10 [2] : vector<4x16x16xf32> to vector<4x16xf32>
    %21 = vector.shape_cast %20 : vector<4x16xf32> to vector<4x16x1xf32>
    %22 = tpu.reciprocal %21 : vector<4x16x1xf32> -> vector<4x16x1xf32>
    %23 = vector.broadcast %22 : vector<4x16x1xf32> to vector<4x16x16xf32>
    %24 = arith.mulf %19, %23 : vector<4x16x16xf32>
    %25 = arith.truncf %24 : vector<4x16x16xf32> to vector<4x16x16xbf16>
    %26 = arith.truncf %8 : vector<4x16x8xf32> to vector<4x16x8xbf16>
    "tpu.trace_start"() <{level = 10 : i32, message = "wqk,wkd->wqd"}> : () -> ()
    %cst_11 = arith.constant dense<0.000000e+00> : vector<4x16x8xf32>
    %27 = tpu.matmul %25, %26, %cst_11 {dimension_numbers = #tpu.dot_dimension_numbers<[2], [1], [1], [2], [0, 0, 0, 1, 1, 2], [0], [0]>} : vector<4x16x16xbf16>, vector<4x16x8xbf16>, vector<4x16x8xf32> -> vector<4x16x8xf32>
    "tpu.trace_stop"() : () -> ()
    %28 = vector.shape_cast %27 : vector<4x16x8xf32> to vector<64x8xf32>
    %29 = vector.extract_strided_slice %5 {offsets = [0, 0, 8], sizes = [4, 16, 8], strides = [1, 1, 1]} : vector<4x16x96xf32> to vector<4x16x8xf32>
    %30 = vector.extract_strided_slice %5 {offsets = [0, 0, 40], sizes = [4, 16, 8], strides = [1, 1, 1]} : vector<4x16x96xf32> to vector<4x16x8xf32>
    %31 = vector.extract_strided_slice %5 {offsets = [0, 0, 72], sizes = [4, 16, 8], strides = [1, 1, 1]} : vector<4x16x96xf32> to vector<4x16x8xf32>
    %32 = arith.truncf %29 : vector<4x16x8xf32> to vector<4x16x8xbf16>
    %33 = arith.truncf %30 : vector<4x16x8xf32> to vector<4x16x8xbf16>
    "tpu.trace_start"() <{level = 10 : i32, message = "wqd,wkd->wqk"}> : () -> ()
    %cst_12 = arith.constant dense<0.000000e+00> : vector<4x16x16xf32>
    %34 = tpu.matmul %32, %33, %cst_12 {dimension_numbers = #tpu.dot_dimension_numbers<[2], [2], [1], [1], [0, 0, 0, 1, 1, 1], [0], [0]>} : vector<4x16x8xbf16>, vector<4x16x8xbf16>, vector<4x16x16xf32> -> vector<4x16x16xf32>
    "tpu.trace_stop"() : () -> ()
    %c1 = arith.constant 1 : index
    %c0_13 = arith.constant 0 : index
    %c0_14 = arith.constant 0 : index
    %c0_15 = arith.constant 0 : index
    %35 = vector.load %arg5[%c1, %c0_13, %c0_14, %c0_15] : memref<4x4x16x16xf32, #tpu.memory_space<vmem>>, vector<1x4x16x16xf32>
    %36 = vector.shape_cast %35 : vector<1x4x16x16xf32> to vector<4x16x16xf32>
    %37 = arith.addf %34, %36 : vector<4x16x16xf32>
    %cst_16 = arith.constant dense<0xFF800000> : vector<4x16xf32>
    %38 = vector.multi_reduction <maximumf>, %37, %cst_16 [2] : vector<4x16x16xf32> to vector<4x16xf32>
    %39 = vector.shape_cast %38 : vector<4x16xf32> to vector<4x16x1xf32>
    %40 = vector.broadcast %39 : vector<4x16x1xf32> to vector<4x16x16xf32>
    %41 = arith.subf %37, %40 : vector<4x16x16xf32>
    %42 = math.exp %41 : vector<4x16x16xf32>
    %cst_17 = arith.constant dense<0.000000e+00> : vector<4x16xf32>
    %43 = vector.multi_reduction <add>, %42, %cst_17 [2] : vector<4x16x16xf32> to vector<4x16xf32>
    %44 = vector.shape_cast %43 : vector<4x16xf32> to vector<4x16x1xf32>
    %45 = tpu.reciprocal %44 : vector<4x16x1xf32> -> vector<4x16x1xf32>
    %46 = vector.broadcast %45 : vector<4x16x1xf32> to vector<4x16x16xf32>
    %47 = arith.mulf %42, %46 : vector<4x16x16xf32>
    %48 = arith.truncf %47 : vector<4x16x16xf32> to vector<4x16x16xbf16>
    %49 = arith.truncf %31 : vector<4x16x8xf32> to vector<4x16x8xbf16>
    "tpu.trace_start"() <{level = 10 : i32, message = "wqk,wkd->wqd"}> : () -> ()
    %cst_18 = arith.constant dense<0.000000e+00> : vector<4x16x8xf32>
    %50 = tpu.matmul %48, %49, %cst_18 {dimension_numbers = #tpu.dot_dimension_numbers<[2], [1], [1], [2], [0, 0, 0, 1, 1, 2], [0], [0]>} : vector<4x16x16xbf16>, vector<4x16x8xbf16>, vector<4x16x8xf32> -> vector<4x16x8xf32>
    "tpu.trace_stop"() : () -> ()
    %51 = vector.shape_cast %50 : vector<4x16x8xf32> to vector<64x8xf32>
    %52 = vector.extract_strided_slice %5 {offsets = [0, 0, 16], sizes = [4, 16, 8], strides = [1, 1, 1]} : vector<4x16x96xf32> to vector<4x16x8xf32>
    %53 = vector.extract_strided_slice %5 {offsets = [0, 0, 48], sizes = [4, 16, 8], strides = [1, 1, 1]} : vector<4x16x96xf32> to vector<4x16x8xf32>
    %54 = vector.extract_strided_slice %5 {offsets = [0, 0, 80], sizes = [4, 16, 8], strides = [1, 1, 1]} : vector<4x16x96xf32> to vector<4x16x8xf32>
    %55 = arith.truncf %52 : vector<4x16x8xf32> to vector<4x16x8xbf16>
    %56 = arith.truncf %53 : vector<4x16x8xf32> to vector<4x16x8xbf16>
    "tpu.trace_start"() <{level = 10 : i32, message = "wqd,wkd->wqk"}> : () -> ()
    %cst_19 = arith.constant dense<0.000000e+00> : vector<4x16x16xf32>
    %57 = tpu.matmul %55, %56, %cst_19 {dimension_numbers = #tpu.dot_dimension_numbers<[2], [2], [1], [1], [0, 0, 0, 1, 1, 1], [0], [0]>} : vector<4x16x8xbf16>, vector<4x16x8xbf16>, vector<4x16x16xf32> -> vector<4x16x16xf32>
    "tpu.trace_stop"() : () -> ()
    %c2 = arith.constant 2 : index
    %c0_20 = arith.constant 0 : index
    %c0_21 = arith.constant 0 : index
    %c0_22 = arith.constant 0 : index
    %58 = vector.load %arg5[%c2, %c0_20, %c0_21, %c0_22] : memref<4x4x16x16xf32, #tpu.memory_space<vmem>>, vector<1x4x16x16xf32>
    %59 = vector.shape_cast %58 : vector<1x4x16x16xf32> to vector<4x16x16xf32>
    %60 = arith.addf %57, %59 : vector<4x16x16xf32>
    %cst_23 = arith.constant dense<0xFF800000> : vector<4x16xf32>
    %61 = vector.multi_reduction <maximumf>, %60, %cst_23 [2] : vector<4x16x16xf32> to vector<4x16xf32>
    %62 = vector.shape_cast %61 : vector<4x16xf32> to vector<4x16x1xf32>
    %63 = vector.broadcast %62 : vector<4x16x1xf32> to vector<4x16x16xf32>
    %64 = arith.subf %60, %63 : vector<4x16x16xf32>
    %65 = math.exp %64 : vector<4x16x16xf32>
    %cst_24 = arith.constant dense<0.000000e+00> : vector<4x16xf32>
    %66 = vector.multi_reduction <add>, %65, %cst_24 [2] : vector<4x16x16xf32> to vector<4x16xf32>
    %67 = vector.shape_cast %66 : vector<4x16xf32> to vector<4x16x1xf32>
    %68 = tpu.reciprocal %67 : vector<4x16x1xf32> -> vector<4x16x1xf32>
    %69 = vector.broadcast %68 : vector<4x16x1xf32> to vector<4x16x16xf32>
    %70 = arith.mulf %65, %69 : vector<4x16x16xf32>
    %71 = arith.truncf %70 : vector<4x16x16xf32> to vector<4x16x16xbf16>
    %72 = arith.truncf %54 : vector<4x16x8xf32> to vector<4x16x8xbf16>
    "tpu.trace_start"() <{level = 10 : i32, message = "wqk,wkd->wqd"}> : () -> ()
    %cst_25 = arith.constant dense<0.000000e+00> : vector<4x16x8xf32>
    %73 = tpu.matmul %71, %72, %cst_25 {dimension_numbers = #tpu.dot_dimension_numbers<[2], [1], [1], [2], [0, 0, 0, 1, 1, 2], [0], [0]>} : vector<4x16x16xbf16>, vector<4x16x8xbf16>, vector<4x16x8xf32> -> vector<4x16x8xf32>
    "tpu.trace_stop"() : () -> ()
    %74 = vector.shape_cast %73 : vector<4x16x8xf32> to vector<64x8xf32>
    %75 = vector.extract_strided_slice %5 {offsets = [0, 0, 24], sizes = [4, 16, 8], strides = [1, 1, 1]} : vector<4x16x96xf32> to vector<4x16x8xf32>
    %76 = vector.extract_strided_slice %5 {offsets = [0, 0, 56], sizes = [4, 16, 8], strides = [1, 1, 1]} : vector<4x16x96xf32> to vector<4x16x8xf32>
    %77 = vector.extract_strided_slice %5 {offsets = [0, 0, 88], sizes = [4, 16, 8], strides = [1, 1, 1]} : vector<4x16x96xf32> to vector<4x16x8xf32>
    %78 = arith.truncf %75 : vector<4x16x8xf32> to vector<4x16x8xbf16>
    %79 = arith.truncf %76 : vector<4x16x8xf32> to vector<4x16x8xbf16>
    "tpu.trace_start"() <{level = 10 : i32, message = "wqd,wkd->wqk"}> : () -> ()
    %cst_26 = arith.constant dense<0.000000e+00> : vector<4x16x16xf32>
    %80 = tpu.matmul %78, %79, %cst_26 {dimension_numbers = #tpu.dot_dimension_numbers<[2], [2], [1], [1], [0, 0, 0, 1, 1, 1], [0], [0]>} : vector<4x16x8xbf16>, vector<4x16x8xbf16>, vector<4x16x16xf32> -> vector<4x16x16xf32>
    "tpu.trace_stop"() : () -> ()
    %c3 = arith.constant 3 : index
    %c0_27 = arith.constant 0 : index
    %c0_28 = arith.constant 0 : index
    %c0_29 = arith.constant 0 : index
    %81 = vector.load %arg5[%c3, %c0_27, %c0_28, %c0_29] : memref<4x4x16x16xf32, #tpu.memory_space<vmem>>, vector<1x4x16x16xf32>
    %82 = vector.shape_cast %81 : vector<1x4x16x16xf32> to vector<4x16x16xf32>
    %83 = arith.addf %80, %82 : vector<4x16x16xf32>
    %cst_30 = arith.constant dense<0xFF800000> : vector<4x16xf32>
    %84 = vector.multi_reduction <maximumf>, %83, %cst_30 [2] : vector<4x16x16xf32> to vector<4x16xf32>
    %85 = vector.shape_cast %84 : vector<4x16xf32> to vector<4x16x1xf32>
    %86 = vector.broadcast %85 : vector<4x16x1xf32> to vector<4x16x16xf32>
    %87 = arith.subf %83, %86 : vector<4x16x16xf32>
    %88 = math.exp %87 : vector<4x16x16xf32>
    %cst_31 = arith.constant dense<0.000000e+00> : vector<4x16xf32>
    %89 = vector.multi_reduction <add>, %88, %cst_31 [2] : vector<4x16x16xf32> to vector<4x16xf32>
    %90 = vector.shape_cast %89 : vector<4x16xf32> to vector<4x16x1xf32>
    %91 = tpu.reciprocal %90 : vector<4x16x1xf32> -> vector<4x16x1xf32>
    %92 = vector.broadcast %91 : vector<4x16x1xf32> to vector<4x16x16xf32>
    %93 = arith.mulf %88, %92 : vector<4x16x16xf32>
    %94 = arith.truncf %93 : vector<4x16x16xf32> to vector<4x16x16xbf16>
    %95 = arith.truncf %77 : vector<4x16x8xf32> to vector<4x16x8xbf16>
    "tpu.trace_start"() <{level = 10 : i32, message = "wqk,wkd->wqd"}> : () -> ()
    %cst_32 = arith.constant dense<0.000000e+00> : vector<4x16x8xf32>
    %96 = tpu.matmul %94, %95, %cst_32 {dimension_numbers = #tpu.dot_dimension_numbers<[2], [1], [1], [2], [0, 0, 0, 1, 1, 2], [0], [0]>} : vector<4x16x16xbf16>, vector<4x16x8xbf16>, vector<4x16x8xf32> -> vector<4x16x8xf32>
    "tpu.trace_stop"() : () -> ()
    %97 = vector.shape_cast %96 : vector<4x16x8xf32> to vector<64x8xf32>
    %98 = tpu.concatenate %28, %51, %74, %97 in 1 : vector<64x8xf32>, vector<64x8xf32>, vector<64x8xf32>, vector<64x8xf32> -> vector<64x32xf32>
    %99 = arith.truncf %98 : vector<64x32xf32> to vector<64x32xbf16>
    %c0_33 = arith.constant 0 : index
    %c0_34 = arith.constant 0 : index
    %100 = vector.load %arg3[%c0_33, %c0_34] : memref<32x32xbf16, #tpu.memory_space<vmem>>, vector<32x32xbf16>
    %cst_35 = arith.constant dense<0.000000e+00> : vector<64x32xf32>
    %101 = tpu.matmul %99, %100, %cst_35 {dimension_numbers = #tpu.dot_dimension_numbers<[1], [0], [0], [1], [0, 0, 1, 1], [], []>} : vector<64x32xbf16>, vector<32x32xbf16>, vector<64x32xf32> -> vector<64x32xf32>
    %c0_36 = arith.constant 0 : index
    %c0_37 = arith.constant 0 : index
    %102 = vector.load %arg4[%c0_36, %c0_37] : memref<1x32xf32, #tpu.memory_space<vmem>>, vector<1x32xf32>
    %103 = vector.broadcast %102 : vector<1x32xf32> to vector<64x32xf32>
    %104 = arith.addf %101, %103 : vector<64x32xf32>
    %105 = vector.shape_cast %104 : vector<64x32xf32> to vector<4x16x32xf32>
    %c0_38 = arith.constant 0 : index
    %c0_39 = arith.constant 0 : index
    %c0_40 = arith.constant 0 : index
    %106 = vector.load %arg6[%c0_38, %c0_39, %c0_40] : memref<4x16x32xf32, #tpu.memory_space<vmem>>, vector<4x16x32xf32>
    tpu.vector_store %arg6[%c0_38, %c0_39, %c0_40], %105 {strides = array<i32>} : memref<4x16x32xf32, #tpu.memory_space<vmem>>, vector<4x16x32xf32>,
    return
  }
  func.func @transform_0(%arg0: i32) -> (i32, i32, i32) {
    %c0_i32 = arith.constant 0 : i32
    %c0_i32_0 = arith.constant 0 : i32
    %c0_i32_1 = arith.constant 0 : i32
    return %arg0, %c0_i32, %c0_i32_0 : i32, i32, i32
  }
  func.func @transform_1(%arg0: i32) -> (i32, i32) {
    %c0_i32 = arith.constant 0 : i32
    %c0_i32_0 = arith.constant 0 : i32
    %c0_i32_1 = arith.constant 0 : i32
    return %c0_i32, %c0_i32_0 : i32, i32
  }
  func.func @transform_2(%arg0: i32) -> (i32, i32) {
    %c0_i32 = arith.constant 0 : i32
    %c0_i32_0 = arith.constant 0 : i32
    %c0_i32_1 = arith.constant 0 : i32
    return %c0_i32, %c0_i32_0 : i32, i32
  }
  func.func @transform_3(%arg0: i32) -> (i32, i32) {
    %c0_i32 = arith.constant 0 : i32
    %c0_i32_0 = arith.constant 0 : i32
    %c0_i32_1 = arith.constant 0 : i32
    return %c0_i32, %c0_i32_0 : i32, i32
  }
  func.func @transform_4(%arg0: i32) -> (i32, i32, i32, i32) {
    %c0_i32 = arith.constant 0 : i32
    %c0_i32_0 = arith.constant 0 : i32
    %c0_i32_1 = arith.constant 0 : i32
    %c0_i32_2 = arith.constant 0 : i32
    %c0_i32_3 = arith.constant 0 : i32
    return %c0_i32, %c0_i32_0, %c0_i32_1, %c0_i32_2 : i32, i32, i32, i32
  }
  func.func @transform_5(%arg0: i32) -> (i32, i32, i32) {
    %c0_i32 = arith.constant 0 : i32
    %c0_i32_0 = arith.constant 0 : i32
    %c0_i32_1 = arith.constant 0 : i32
    return %arg0, %c0_i32, %c0_i32_0 : i32, i32, i32
  }
}

module attributes {stable_mosaic.version = 11 : i64} {
  func.func @_fused_mlp_kernel(%arg0: i32, %arg1: memref<64x32xf32, #tpu.memory_space<vmem>>, %arg2: memref<64x32xf32, #tpu.memory_space<vmem>>, %arg3: memref<1x32xf32, #tpu.memory_space<vmem>>, %arg4: memref<1x32xf32, #tpu.memory_space<vmem>>, %arg5: memref<32x128xbf16, #tpu.memory_space<vmem>>, %arg6: memref<1x128xf32, #tpu.memory_space<vmem>>, %arg7: memref<128x32xbf16, #tpu.memory_space<vmem>>, %arg8: memref<1x32xf32, #tpu.memory_space<vmem>>, %arg9: memref<64x32xf32, #tpu.memory_space<vmem>>) attributes {dimension_semantics = [#tpu.dimension_semantics<parallel>], iteration_bounds = array<i64: 2>, scalar_prefetch = 0 : i64, scratch_operands = 0 : i64, tpu.core_type = #tpu.core_type<tc>, window_params = [{transform_indices = @transform_0, window_bounds = array<i64: 64, 32>}, {transform_indices = @transform_1, window_bounds = array<i64: 64, 32>}, {pipeline_mode = #tpu.pipeline_mode<synchronous>, transform_indices = @transform_2, window_bounds = array<i64: 1, 32>}, {pipeline_mode = #tpu.pipeline_mode<synchronous>, transform_indices = @transform_3, window_bounds = array<i64: 1, 32>}, {pipeline_mode = #tpu.pipeline_mode<synchronous>, transform_indices = @transform_4, window_bounds = array<i64: 32, 128>}, {pipeline_mode = #tpu.pipeline_mode<synchronous>, transform_indices = @transform_5, window_bounds = array<i64: 1, 128>}, {pipeline_mode = #tpu.pipeline_mode<synchronous>, transform_indices = @transform_6, window_bounds = array<i64: 128, 32>}, {pipeline_mode = #tpu.pipeline_mode<synchronous>, transform_indices = @transform_7, window_bounds = array<i64: 1, 32>}, {transform_indices = @transform_8, window_bounds = array<i64: 64, 32>}]} {
    %c0 = arith.constant 0 : index
    %c0_0 = arith.constant 0 : index
    %0 = vector.load %arg1[%c0, %c0_0] : memref<64x32xf32, #tpu.memory_space<vmem>>, vector<64x32xf32>
    %c0_1 = arith.constant 0 : index
    %c0_2 = arith.constant 0 : index
    %1 = vector.load %arg2[%c0_1, %c0_2] : memref<64x32xf32, #tpu.memory_space<vmem>>, vector<64x32xf32>
    %2 = arith.addf %0, %1 : vector<64x32xf32>
    %cst = arith.constant dense<0.000000e+00> : vector<64xf32>
    %3 = vector.multi_reduction <add>, %2, %cst [1] : vector<64x32xf32> to vector<64xf32>
    %4 = vector.shape_cast %3 : vector<64xf32> to vector<64x1xf32>
    %cst_3 = arith.constant 3.200000e+01 : f32
    %5 = vector.broadcast %cst_3 : f32 to vector<64x1xf32>
    %6 = arith.divf %4, %5 : vector<64x1xf32>
    %7 = vector.broadcast %6 : vector<64x1xf32> to vector<64x32xf32>
    %8 = arith.subf %2, %7 : vector<64x32xf32>
    %9 = arith.mulf %8, %8 : vector<64x32xf32>
    %cst_4 = arith.constant dense<0.000000e+00> : vector<64xf32>
    %10 = vector.multi_reduction <add>, %9, %cst_4 [1] : vector<64x32xf32> to vector<64xf32>
    %11 = vector.shape_cast %10 : vector<64xf32> to vector<64x1xf32>
    %cst_5 = arith.constant 3.200000e+01 : f32
    %12 = vector.broadcast %cst_5 : f32 to vector<64x1xf32>
    %13 = arith.divf %11, %12 : vector<64x1xf32>
    %14 = vector.broadcast %6 : vector<64x1xf32> to vector<64x32xf32>
    %15 = arith.subf %2, %14 : vector<64x32xf32>
    %cst_6 = arith.constant 9.99999974E-6 : f32
    %16 = vector.broadcast %cst_6 : f32 to vector<64x1xf32>
    %17 = arith.addf %13, %16 : vector<64x1xf32>
    %18 = math.rsqrt %17 : vector<64x1xf32>
    %19 = vector.broadcast %18 : vector<64x1xf32> to vector<64x32xf32>
    %20 = arith.mulf %15, %19 : vector<64x32xf32>
    %c0_7 = arith.constant 0 : index
    %c0_8 = arith.constant 0 : index
    %21 = vector.load %arg3[%c0_7, %c0_8] : memref<1x32xf32, #tpu.memory_space<vmem>>, vector<1x32xf32>
    %22 = vector.broadcast %21 : vector<1x32xf32> to vector<64x32xf32>
    %23 = arith.mulf %20, %22 : vector<64x32xf32>
    %c0_9 = arith.constant 0 : index
    %c0_10 = arith.constant 0 : index
    %24 = vector.load %arg4[%c0_9, %c0_10] : memref<1x32xf32, #tpu.memory_space<vmem>>, vector<1x32xf32>
    %25 = vector.broadcast %24 : vector<1x32xf32> to vector<64x32xf32>
    %26 = arith.addf %23, %25 : vector<64x32xf32>
    %27 = arith.truncf %26 : vector<64x32xf32> to vector<64x32xbf16>
    %c0_11 = arith.constant 0 : index
    %c0_12 = arith.constant 0 : index
    %28 = vector.load %arg5[%c0_11, %c0_12] : memref<32x128xbf16, #tpu.memory_space<vmem>>, vector<32x128xbf16>
    %cst_13 = arith.constant dense<0.000000e+00> : vector<64x128xf32>
    %29 = tpu.matmul %27, %28, %cst_13 {dimension_numbers = #tpu.dot_dimension_numbers<[1], [0], [0], [1], [0, 0, 1, 1], [], []>} : vector<64x32xbf16>, vector<32x128xbf16>, vector<64x128xf32> -> vector<64x128xf32>
    %c0_14 = arith.constant 0 : index
    %c0_15 = arith.constant 0 : index
    %30 = vector.load %arg6[%c0_14, %c0_15] : memref<1x128xf32, #tpu.memory_space<vmem>>, vector<1x128xf32>
    %31 = vector.broadcast %30 : vector<1x128xf32> to vector<64x128xf32>
    %32 = arith.addf %29, %31 : vector<64x128xf32>
    %cst_16 = arith.constant 5.000000e-01 : f32
    %33 = vector.broadcast %cst_16 : f32 to vector<64x128xf32>
    %34 = arith.mulf %33, %32 : vector<64x128xf32>
    %cst_17 = arith.constant 0.707106769 : f32
    %35 = vector.broadcast %cst_17 : f32 to vector<64x128xf32>
    %36 = arith.mulf %32, %35 : vector<64x128xf32>
    %37 = math.erf %36 : vector<64x128xf32>
    %cst_18 = arith.constant 1.000000e+00 : f32
    %38 = vector.broadcast %cst_18 : f32 to vector<64x128xf32>
    %39 = arith.addf %38, %37 : vector<64x128xf32>
    %40 = arith.mulf %34, %39 : vector<64x128xf32>
    %41 = arith.truncf %40 : vector<64x128xf32> to vector<64x128xbf16>
    %c0_19 = arith.constant 0 : index
    %c0_20 = arith.constant 0 : index
    %42 = vector.load %arg7[%c0_19, %c0_20] : memref<128x32xbf16, #tpu.memory_space<vmem>>, vector<128x32xbf16>
    %cst_21 = arith.constant dense<0.000000e+00> : vector<64x32xf32>
    %43 = tpu.matmul %41, %42, %cst_21 {dimension_numbers = #tpu.dot_dimension_numbers<[1], [0], [0], [1], [0, 0, 1, 1], [], []>} : vector<64x128xbf16>, vector<128x32xbf16>, vector<64x32xf32> -> vector<64x32xf32>
    %c0_22 = arith.constant 0 : index
    %c0_23 = arith.constant 0 : index
    %44 = vector.load %arg8[%c0_22, %c0_23] : memref<1x32xf32, #tpu.memory_space<vmem>>, vector<1x32xf32>
    %45 = vector.broadcast %44 : vector<1x32xf32> to vector<64x32xf32>
    %46 = arith.addf %43, %45 : vector<64x32xf32>
    %47 = arith.addf %2, %46 : vector<64x32xf32>
    %c0_24 = arith.constant 0 : index
    %c0_25 = arith.constant 0 : index
    %48 = vector.load %arg9[%c0_24, %c0_25] : memref<64x32xf32, #tpu.memory_space<vmem>>, vector<64x32xf32>
    tpu.vector_store %arg9[%c0_24, %c0_25], %47 {strides = array<i32>} : memref<64x32xf32, #tpu.memory_space<vmem>>, vector<64x32xf32>,
    return
  }
  func.func @transform_0(%arg0: i32) -> (i32, i32) {
    %c0_i32 = arith.constant 0 : i32
    %c0_i32_0 = arith.constant 0 : i32
    return %arg0, %c0_i32 : i32, i32
  }
  func.func @transform_1(%arg0: i32) -> (i32, i32) {
    %c0_i32 = arith.constant 0 : i32
    %c0_i32_0 = arith.constant 0 : i32
    return %arg0, %c0_i32 : i32, i32
  }
  func.func @transform_2(%arg0: i32) -> (i32, i32) {
    %c0_i32 = arith.constant 0 : i32
    %c0_i32_0 = arith.constant 0 : i32
    %c0_i32_1 = arith.constant 0 : i32
    return %c0_i32, %c0_i32_0 : i32, i32
  }
  func.func @transform_3(%arg0: i32) -> (i32, i32) {
    %c0_i32 = arith.constant 0 : i32
    %c0_i32_0 = arith.constant 0 : i32
    %c0_i32_1 = arith.constant 0 : i32
    return %c0_i32, %c0_i32_0 : i32, i32
  }
  func.func @transform_4(%arg0: i32) -> (i32, i32) {
    %c0_i32 = arith.constant 0 : i32
    %c0_i32_0 = arith.constant 0 : i32
    %c0_i32_1 = arith.constant 0 : i32
    return %c0_i32, %c0_i32_0 : i32, i32
  }
  func.func @transform_5(%arg0: i32) -> (i32, i32) {
    %c0_i32 = arith.constant 0 : i32
    %c0_i32_0 = arith.constant 0 : i32
    %c0_i32_1 = arith.constant 0 : i32
    return %c0_i32, %c0_i32_0 : i32, i32
  }
  func.func @transform_6(%arg0: i32) -> (i32, i32) {
    %c0_i32 = arith.constant 0 : i32
    %c0_i32_0 = arith.constant 0 : i32
    %c0_i32_1 = arith.constant 0 : i32
    return %c0_i32, %c0_i32_0 : i32, i32
  }
  func.func @transform_7(%arg0: i32) -> (i32, i32) {
    %c0_i32 = arith.constant 0 : i32
    %c0_i32_0 = arith.constant 0 : i32
    %c0_i32_1 = arith.constant 0 : i32
    return %c0_i32, %c0_i32_0 : i32, i32
  }
  func.func @transform_8(%arg0: i32) -> (i32, i32) {
    %c0_i32 = arith.constant 0 : i32
    %c0_i32_0 = arith.constant 0 : i32
    return %arg0, %c0_i32 : i32, i32
  }
}

module attributes {stable_mosaic.version = 11 : i64} {
  func.func @_patch_merge_kernel(%arg0: i32, %arg1: i32, %arg2: memref<1x4x1x4x64xf32, #tpu.memory_space<vmem>>, %arg3: memref<1x4x1x4x64xf32, #tpu.memory_space<vmem>>, %arg4: memref<1x64xf32, #tpu.memory_space<vmem>>, %arg5: memref<1x64xf32, #tpu.memory_space<vmem>>, %arg6: memref<1x64xf32, #tpu.memory_space<vmem>>, %arg7: memref<1x64xf32, #tpu.memory_space<vmem>>, %arg8: memref<64x64xbf16, #tpu.memory_space<vmem>>, %arg9: memref<64x64xbf16, #tpu.memory_space<vmem>>, %arg10: memref<1x4x4x64xf32, #tpu.memory_space<vmem>>) attributes {dimension_semantics = [#tpu.dimension_semantics<parallel>, #tpu.dimension_semantics<parallel>], iteration_bounds = array<i64: 2, 1>, scalar_prefetch = 0 : i64, scratch_operands = 0 : i64, tpu.core_type = #tpu.core_type<tc>, window_params = [{transform_indices = @transform_0, window_bounds = array<i64: 1, 4, 1, 4, 64>}, {transform_indices = @transform_1, window_bounds = array<i64: 1, 4, 1, 4, 64>}, {pipeline_mode = #tpu.pipeline_mode<synchronous>, transform_indices = @transform_2, window_bounds = array<i64: 1, 64>}, {pipeline_mode = #tpu.pipeline_mode<synchronous>, transform_indices = @transform_3, window_bounds = array<i64: 1, 64>}, {pipeline_mode = #tpu.pipeline_mode<synchronous>, transform_indices = @transform_4, window_bounds = array<i64: 1, 64>}, {pipeline_mode = #tpu.pipeline_mode<synchronous>, transform_indices = @transform_5, window_bounds = array<i64: 1, 64>}, {pipeline_mode = #tpu.pipeline_mode<synchronous>, transform_indices = @transform_6, window_bounds = array<i64: 64, 64>}, {pipeline_mode = #tpu.pipeline_mode<synchronous>, transform_indices = @transform_7, window_bounds = array<i64: 64, 64>}, {transform_indices = @transform_8, window_bounds = array<i64: 1, 4, 4, 64>}]} {
    %c0 = arith.constant 0 : index
    %c0_0 = arith.constant 0 : index
    %c0_1 = arith.constant 0 : index
    %c0_2 = arith.constant 0 : index
    %c0_3 = arith.constant 0 : index
    %0 = vector.load %arg2[%c0, %c0_0, %c0_1, %c0_2, %c0_3] : memref<1x4x1x4x64xf32, #tpu.memory_space<vmem>>, vector<1x4x1x4x64xf32>
    %1 = vector.shape_cast %0 : vector<1x4x1x4x64xf32> to vector<4x4x64xf32>
    %c0_4 = arith.constant 0 : index
    %c0_5 = arith.constant 0 : index
    %c0_6 = arith.constant 0 : index
    %c0_7 = arith.constant 0 : index
    %c0_8 = arith.constant 0 : index
    %2 = vector.load %arg3[%c0_4, %c0_5, %c0_6, %c0_7, %c0_8] : memref<1x4x1x4x64xf32, #tpu.memory_space<vmem>>, vector<1x4x1x4x64xf32>
    %3 = vector.shape_cast %2 : vector<1x4x1x4x64xf32> to vector<4x4x64xf32>
    %cst = arith.constant dense<0.000000e+00> : vector<4x4xf32>
    %4 = vector.multi_reduction <add>, %1, %cst [2] : vector<4x4x64xf32> to vector<4x4xf32>
    %5 = vector.shape_cast %4 : vector<4x4xf32> to vector<4x4x1xf32>
    %cst_9 = arith.constant dense<0.000000e+00> : vector<4x4xf32>
    %6 = vector.multi_reduction <add>, %3, %cst_9 [2] : vector<4x4x64xf32> to vector<4x4xf32>
    %7 = vector.shape_cast %6 : vector<4x4xf32> to vector<4x4x1xf32>
    %8 = arith.addf %5, %7 : vector<4x4x1xf32>
    %cst_10 = arith.constant 1.280000e+02 : f32
    %9 = vector.broadcast %cst_10 : f32 to vector<4x4x1xf32>
    %10 = arith.divf %8, %9 : vector<4x4x1xf32>
    %11 = vector.broadcast %10 : vector<4x4x1xf32> to vector<4x4x64xf32>
    %12 = arith.subf %1, %11 : vector<4x4x64xf32>
    %13 = arith.mulf %12, %12 : vector<4x4x64xf32>
    %cst_11 = arith.constant dense<0.000000e+00> : vector<4x4xf32>
    %14 = vector.multi_reduction <add>, %13, %cst_11 [2] : vector<4x4x64xf32> to vector<4x4xf32>
    %15 = vector.shape_cast %14 : vector<4x4xf32> to vector<4x4x1xf32>
    %16 = vector.broadcast %10 : vector<4x4x1xf32> to vector<4x4x64xf32>
    %17 = arith.subf %3, %16 : vector<4x4x64xf32>
    %18 = arith.mulf %17, %17 : vector<4x4x64xf32>
    %cst_12 = arith.constant dense<0.000000e+00> : vector<4x4xf32>
    %19 = vector.multi_reduction <add>, %18, %cst_12 [2] : vector<4x4x64xf32> to vector<4x4xf32>
    %20 = vector.shape_cast %19 : vector<4x4xf32> to vector<4x4x1xf32>
    %21 = arith.addf %15, %20 : vector<4x4x1xf32>
    %cst_13 = arith.constant 1.280000e+02 : f32
    %22 = vector.broadcast %cst_13 : f32 to vector<4x4x1xf32>
    %23 = arith.divf %21, %22 : vector<4x4x1xf32>
    %cst_14 = arith.constant 9.99999974E-6 : f32
    %24 = vector.broadcast %cst_14 : f32 to vector<4x4x1xf32>
    %25 = arith.addf %23, %24 : vector<4x4x1xf32>
    %26 = math.rsqrt %25 : vector<4x4x1xf32>
    %27 = vector.broadcast %10 : vector<4x4x1xf32> to vector<4x4x64xf32>
    %28 = arith.subf %1, %27 : vector<4x4x64xf32>
    %29 = vector.broadcast %26 : vector<4x4x1xf32> to vector<4x4x64xf32>
    %30 = arith.mulf %28, %29 : vector<4x4x64xf32>
    %c0_15 = arith.constant 0 : index
    %c0_16 = arith.constant 0 : index
    %31 = vector.load %arg4[%c0_15, %c0_16] : memref<1x64xf32, #tpu.memory_space<vmem>>, vector<1x64xf32>
    %32 = vector.shape_cast %31 : vector<1x64xf32> to vector<1x1x64xf32>
    %33 = vector.broadcast %32 : vector<1x1x64xf32> to vector<4x4x64xf32>
    %34 = arith.mulf %30, %33 : vector<4x4x64xf32>
    %c0_17 = arith.constant 0 : index
    %c0_18 = arith.constant 0 : index
    %35 = vector.load %arg5[%c0_17, %c0_18] : memref<1x64xf32, #tpu.memory_space<vmem>>, vector<1x64xf32>
    %36 = vector.shape_cast %35 : vector<1x64xf32> to vector<1x1x64xf32>
    %37 = vector.broadcast %36 : vector<1x1x64xf32> to vector<4x4x64xf32>
    %38 = arith.addf %34, %37 : vector<4x4x64xf32>
    %39 = vector.broadcast %10 : vector<4x4x1xf32> to vector<4x4x64xf32>
    %40 = arith.subf %3, %39 : vector<4x4x64xf32>
    %41 = vector.broadcast %26 : vector<4x4x1xf32> to vector<4x4x64xf32>
    %42 = arith.mulf %40, %41 : vector<4x4x64xf32>
    %c0_19 = arith.constant 0 : index
    %c0_20 = arith.constant 0 : index
    %43 = vector.load %arg6[%c0_19, %c0_20] : memref<1x64xf32, #tpu.memory_space<vmem>>, vector<1x64xf32>
    %44 = vector.shape_cast %43 : vector<1x64xf32> to vector<1x1x64xf32>
    %45 = vector.broadcast %44 : vector<1x1x64xf32> to vector<4x4x64xf32>
    %46 = arith.mulf %42, %45 : vector<4x4x64xf32>
    %c0_21 = arith.constant 0 : index
    %c0_22 = arith.constant 0 : index
    %47 = vector.load %arg7[%c0_21, %c0_22] : memref<1x64xf32, #tpu.memory_space<vmem>>, vector<1x64xf32>
    %48 = vector.shape_cast %47 : vector<1x64xf32> to vector<1x1x64xf32>
    %49 = vector.broadcast %48 : vector<1x1x64xf32> to vector<4x4x64xf32>
    %50 = arith.addf %46, %49 : vector<4x4x64xf32>
    %51 = vector.shape_cast %38 : vector<4x4x64xf32> to vector<16x64xf32>
    %52 = arith.truncf %51 : vector<16x64xf32> to vector<16x64xbf16>
    %c0_23 = arith.constant 0 : index
    %c0_24 = arith.constant 0 : index
    %53 = vector.load %arg8[%c0_23, %c0_24] : memref<64x64xbf16, #tpu.memory_space<vmem>>, vector<64x64xbf16>
    %cst_25 = arith.constant dense<0.000000e+00> : vector<16x64xf32>
    %54 = tpu.matmul %52, %53, %cst_25 {dimension_numbers = #tpu.dot_dimension_numbers<[1], [0], [0], [1], [0, 0, 1, 1], [], []>} : vector<16x64xbf16>, vector<64x64xbf16>, vector<16x64xf32> -> vector<16x64xf32>
    %55 = vector.shape_cast %50 : vector<4x4x64xf32> to vector<16x64xf32>
    %56 = arith.truncf %55 : vector<16x64xf32> to vector<16x64xbf16>
    %c0_26 = arith.constant 0 : index
    %c0_27 = arith.constant 0 : index
    %57 = vector.load %arg9[%c0_26, %c0_27] : memref<64x64xbf16, #tpu.memory_space<vmem>>, vector<64x64xbf16>
    %cst_28 = arith.constant dense<0.000000e+00> : vector<16x64xf32>
    %58 = tpu.matmul %56, %57, %cst_28 {dimension_numbers = #tpu.dot_dimension_numbers<[1], [0], [0], [1], [0, 0, 1, 1], [], []>} : vector<16x64xbf16>, vector<64x64xbf16>, vector<16x64xf32> -> vector<16x64xf32>
    %59 = arith.addf %54, %58 : vector<16x64xf32>
    %60 = vector.shape_cast %59 : vector<16x64xf32> to vector<4x4x64xf32>
    %c0_29 = arith.constant 0 : index
    %c0_30 = arith.constant 0 : index
    %c0_31 = arith.constant 0 : index
    %c0_32 = arith.constant 0 : index
    %61 = vector.load %arg10[%c0_29, %c0_30, %c0_31, %c0_32] : memref<1x4x4x64xf32, #tpu.memory_space<vmem>>, vector<1x4x4x64xf32>
    %62 = vector.shape_cast %61 : vector<1x4x4x64xf32> to vector<4x4x64xf32>
    %63 = vector.shape_cast %60 : vector<4x4x64xf32> to vector<1x4x4x64xf32>
    tpu.vector_store %arg10[%c0_29, %c0_30, %c0_31, %c0_32], %63 {strides = array<i32>} : memref<1x4x4x64xf32, #tpu.memory_space<vmem>>, vector<1x4x4x64xf32>,
    return
  }
  func.func @transform_0(%arg0: i32, %arg1: i32) -> (i32, i32, i32, i32, i32) {
    %c0_i32 = arith.constant 0 : i32
    %c0_i32_0 = arith.constant 0 : i32
    %c0_i32_1 = arith.constant 0 : i32
    %c0_i32_2 = arith.constant 0 : i32
    return %arg0, %arg1, %c0_i32, %c0_i32_0, %c0_i32_1 : i32, i32, i32, i32, i32
  }
  func.func @transform_1(%arg0: i32, %arg1: i32) -> (i32, i32, i32, i32, i32) {
    %c1_i32 = arith.constant 1 : i32
    %c0_i32 = arith.constant 0 : i32
    %c0_i32_0 = arith.constant 0 : i32
    %c0_i32_1 = arith.constant 0 : i32
    return %arg0, %arg1, %c1_i32, %c0_i32, %c0_i32_0 : i32, i32, i32, i32, i32
  }
  func.func @transform_2(%arg0: i32, %arg1: i32) -> (i32, i32) {
    %c0_i32 = arith.constant 0 : i32
    %c0_i32_0 = arith.constant 0 : i32
    %c0_i32_1 = arith.constant 0 : i32
    return %c0_i32, %c0_i32_0 : i32, i32
  }
  func.func @transform_3(%arg0: i32, %arg1: i32) -> (i32, i32) {
    %c0_i32 = arith.constant 0 : i32
    %c0_i32_0 = arith.constant 0 : i32
    %c0_i32_1 = arith.constant 0 : i32
    return %c0_i32, %c0_i32_0 : i32, i32
  }
  func.func @transform_4(%arg0: i32, %arg1: i32) -> (i32, i32) {
    %c0_i32 = arith.constant 0 : i32
    %c0_i32_0 = arith.constant 0 : i32
    %c0_i32_1 = arith.constant 0 : i32
    return %c0_i32, %c0_i32_0 : i32, i32
  }
  func.func @transform_5(%arg0: i32, %arg1: i32) -> (i32, i32) {
    %c0_i32 = arith.constant 0 : i32
    %c0_i32_0 = arith.constant 0 : i32
    %c0_i32_1 = arith.constant 0 : i32
    return %c0_i32, %c0_i32_0 : i32, i32
  }
  func.func @transform_6(%arg0: i32, %arg1: i32) -> (i32, i32) {
    %c0_i32 = arith.constant 0 : i32
    %c0_i32_0 = arith.constant 0 : i32
    %c0_i32_1 = arith.constant 0 : i32
    return %c0_i32, %c0_i32_0 : i32, i32
  }
  func.func @transform_7(%arg0: i32, %arg1: i32) -> (i32, i32) {
    %c0_i32 = arith.constant 0 : i32
    %c0_i32_0 = arith.constant 0 : i32
    %c0_i32_1 = arith.constant 0 : i32
    return %c0_i32, %c0_i32_0 : i32, i32
  }
  func.func @transform_8(%arg0: i32, %arg1: i32) -> (i32, i32, i32, i32) {
    %c0_i32 = arith.constant 0 : i32
    %c0_i32_0 = arith.constant 0 : i32
    %c0_i32_1 = arith.constant 0 : i32
    return %arg0, %arg1, %c0_i32, %c0_i32_0 : i32, i32, i32, i32
  }
}

</mosaic_0001>

<bundles_post_ra>
// kernel: _lambda_.10
= control target key start
LH: loop header
LB: loop body
LE: loop exit
PB: predicated region body
PF: predicated region fallthrough
CT: control target
= control target key end

     0   :  { %s1264_s13 = smov 0   ;;  %s1511_s0 = inlined_call_operand.vmem [shape: f32[128,32], index: 0, kind: input, shape index: {}]   ;;  %s1512_s1 = inlined_call_operand.vmem [shape: f32[128,32], index: 1, kind: input, shape index: {}]   ;;  %s1513_s2 = inlined_call_operand.vmem [shape: f32[1,32], index: 2, kind: input, shape index: {}]   ;;  %s1514_s3 = inlined_call_operand.vmem [shape: f32[1,32], index: 3, kind: input, shape index: {}]   ;;  %s1515_s4 = inlined_call_operand.vmem [shape: f32[1,32], index: 4, kind: input, shape index: {}]   ;;  %s1516_s5 = inlined_call_operand.vmem [shape: f32[1,32], index: 5, kind: input, shape index: {}]   ;;  %s1517_s6 = inlined_call_operand.vmem [shape: bf16[32,128], index: 6, kind: input, shape index: {}]   ;;  %s1518_s7 = inlined_call_operand.vmem [shape: f32[1,128], index: 7, kind: input, shape index: {}]   ;;  %s1519_s8 = inlined_call_operand.vmem [shape: bf16[128,32], index: 8, kind: input, shape index: {}]   ;;  %s1520_s9 = inlined_call_operand.vmem [shape: f32[1,32], index: 9, kind: input, shape index: {}]   ;;  %s1521_s10 = inlined_call_operand.vmem [shape: f32[128,32], index: 10, kind: output, shape index: {}]  }
   0x1 LB: > { %s1048_s14 = sadd.s32 4294967295, %s1207_s13   ;;  %p1052_p0 = scmp.ge.s32.totalorder %s1207_s13, 1  ;;  %s1207_s13 = sphi %s1264_s13, %s20_s13  }
   0x2   : > { %p324_p1 = scmp.lt.s32.totalorder %s1207_s13, 3 }
   0x4   : > { %p325_p2 = pnand %p1052_p0, %p324_p1 }
   0x5   : > { %s1053_s15 = sshll.u32 (!%p325_p2), %s1048_s14, 3  ;;  %vm394_vm0 = vcmask (!%p325_p2), 261120  }
   0x6   : > { %328 = sbr.rel (%p325_p2) target bundleno = 1120 (0x460), region = 60  ;;  %p368_p3 = scmp.lt.s32.totalorder (!%p325_p2), %s1053_s15, 15 }
   0xd   : > { %s1523_s15 = smov (!%p368_p3, %s1053_s15), 15 }
   0xe   : > { %s1272_s16 = sshll.u32 %s1523_s15, 3 }
   0xf   : > { %s371_s19 = scalar_lea.vmem %s1511_s0, %s1272_s16  ;;  %s1333_s24 = scalar_lea.vmem %s1512_s1, %s1272_s16 }
  0x10   : > { %v386_v0 = vld [vmem:[%s371_s19] sm:$0xff]  ;;  %v388_v1 = vld [vmem:[%s371_s19 + $0x10] sm:$0xff]  ;;  %v387_v2 = vld [vmem:[%s371_s19 + $0x8] sm:$0xff]  ;;  %s383_s21 = scalar_lea.vmem %s1521_s10, %s1272_s16 }
  0x11   : > { %v395_v3 = vsel %vm394_vm0, %v386_v0, 0.0  ;;  %v401_v4 = vsel %vm394_vm0, %v388_v1, 0.0  ;;  %v389_v5 = vld [vmem:[%s371_s19 + $0x18] sm:$0xff]  ;;  %v398_v6 = vsel %vm394_vm0, %v387_v2, 0.0  ;;  %v390_v8 = vld [vmem:[%s371_s19 + $0x20] sm:$0xff]  ;;  %v391_v9 = vld [vmem:[%s371_s19 + $0x28] sm:$0xff] }
  0x12   : > { %396 = vadd.xlane.f32.xlu0 %v395_v3  ;;  %402 = vadd.xlane.f32.xlu1 %v401_v4  ;;  %v404_v7 = vsel %vm394_vm0, %v389_v5, 0.0  ;;  %v407_v10 = vsel %vm394_vm0, %v390_v8, 0.0  ;;  %v410_v11 = vsel %vm394_vm0, %v391_v9, 0.0  ;;  %v392_v12 = vld [vmem:[%s371_s19 + $0x30] sm:$0xff]  ;;  %v393_v13 = vld [vmem:[%s371_s19 + $0x38] sm:$0xff] }
  0x13   : > { %v413_v14 = vsel %vm394_vm0, %v392_v12, 0.0  ;;  %v416_v15 = vsel %vm394_vm0, %v393_v13, 0.0 }
  0x16   : > { %399 = vadd.xlane.f32.xlu0 %v398_v6  ;;  %405 = vadd.xlane.f32.xlu1 %v404_v7 }
  0x1a   : > { %408 = vadd.xlane.f32.xlu0 %v407_v10  ;;  %411 = vadd.xlane.f32.xlu1 %v410_v11 }
  0x1e   : > { %414 = vadd.xlane.f32.xlu0 %v413_v14  ;;  %417 = vadd.xlane.f32.xlu1 %v416_v15  ;;  %v1059_v14 = vld [vmem:[%s1513_s2] ss:$0 sm:$0xff] }
  0x9f   : > { %v397_v16 = vpop.xlane.xlu0 %396  ;;  %v403_v17 = vpop.xlane.xlu1 %402 }
  0xa0   : > { %v420_v18 = vmul.f32 0.03125, %v397_v16  ;;  %v422_v19 = vmul.f32 0.03125, %v403_v17 }
  0xa2   : > { %v1286_v20 = vsub.f32 %v386_v0, %v420_v18  ;;  %v1288_v21 = vsub.f32 %v388_v1, %v422_v19  ;;  %v1060_v18 = vld [vmem:[%s1514_s3] ss:$0 sm:$0xff] }
  0xa3   : > { %v400_v22 = vpop.xlane.xlu0 %399  ;;  %v406_v23 = vpop.xlane.xlu1 %405 }
  0xa4   : > { %v421_v24 = vmul.f32 0.03125, %v400_v22  ;;  %v423_v25 = vmul.f32 0.03125, %v406_v23  ;;  %v436_v26 = vmul.f32 %v1286_v20, %v1286_v20  ;;  %v438_v27 = vmul.f32 %v1288_v21, %v1288_v21 }
  0xa6   : > { %v1294_v28 = vsub.f32 %v387_v2, %v421_v24  ;;  %v1296_v29 = vsub.f32 %v389_v5, %v423_v25  ;;  %v444_v30 = vsel %vm394_vm0, %v436_v26, 0.0  ;;  %v450_v33 = vsel %vm394_vm0, %v438_v27, 0.0  ;;  %v530_v24 = vld [vmem:[%s1333_s24] sm:$0xff] }
  0xa7   : > { %445 = vadd.xlane.f32.xlu0 %v444_v30  ;;  %v409_v31 = vpop.xlane.xlu0 %408  ;;  %v412_v32 = vpop.xlane.xlu1 %411 }
  0xa8   : > { %v424_v34 = vmul.f32 0.03125, %v409_v31  ;;  %v425_v35 = vmul.f32 0.03125, %v412_v32  ;;  %v437_v36 = vmul.f32 %v1294_v28, %v1294_v28  ;;  %v439_v37 = vmul.f32 %v1296_v29, %v1296_v29 }
  0xaa   : > { %v1304_v38 = vsub.f32 %v390_v8, %v424_v34  ;;  %v1306_v39 = vsub.f32 %v391_v9, %v425_v35  ;;  %v447_v40 = vsel %vm394_vm0, %v437_v36, 0.0  ;;  %v453_v43 = vsel %vm394_vm0, %v439_v37, 0.0 }
  0xab   : > { %451 = vadd.xlane.f32.xlu0 %v450_v33  ;;  %448 = vadd.xlane.f32.xlu1 %v447_v40  ;;  %v415_v41 = vpop.xlane.xlu0 %414  ;;  %v418_v42 = vpop.xlane.xlu1 %417  ;;  %v531_v33 = vld [vmem:[%s1333_s24 + $0x8] sm:$0xff]  ;;  %v532_v40 = vld [vmem:[%s1333_s24 + $0x10] sm:$0xff] }
  0xac   : > { %v426_v44 = vmul.f32 0.03125, %v415_v41  ;;  %v427_v45 = vmul.f32 0.03125, %v418_v42  ;;  %v440_v46 = vmul.f32 %v1304_v38, %v1304_v38  ;;  %v441_v47 = vmul.f32 %v1306_v39, %v1306_v39 }
  0xae   : > { %v1314_v48 = vsub.f32 %v392_v12, %v426_v44  ;;  %v1316_v49 = vsub.f32 %v393_v13, %v427_v45  ;;  %v456_v50 = vsel %vm394_vm0, %v440_v46, 0.0  ;;  %v459_v51 = vsel %vm394_vm0, %v441_v47, 0.0  ;;  %v533_v46 = vld [vmem:[%s1333_s24 + $0x18] sm:$0xff] }
  0xaf   : > { %454 = vadd.xlane.f32.xlu1 %v453_v43  ;;  %457 = vadd.xlane.f32.xlu0 %v456_v50 }
  0xb0   : > { %v442_v52 = vmul.f32 %v1314_v48, %v1314_v48  ;;  %v443_v53 = vmul.f32 %v1316_v49, %v1316_v49 }
  0xb2   : > { %v462_v54 = vsel %vm394_vm0, %v442_v52, 0.0  ;;  %v465_v55 = vsel %vm394_vm0, %v443_v53, 0.0 }
  0xb3   : > { %460 = vadd.xlane.f32.xlu1 %v459_v51  ;;  %463 = vadd.xlane.f32.xlu0 %v462_v54 }
  0xb7   : > { %466 = vadd.xlane.f32.xlu1 %v465_v55 }
 0x134   : > { %v446_v56 = vpop.xlane.xlu0 %445 }
 0x135   : > { %v468_v57 = vmul.f32 0.03125, %v446_v56 }
 0x137   : > { %v476_v58 = vadd.f32 1e-05, %v468_v57 }
 0x138   : > { %v449_v59 = vpop.xlane.xlu1 %448  ;;  %v452_v60 = vpop.xlane.xlu0 %451 }
 0x139   : > { %1153 = vrsqrt.f32 %v476_v58  ;;  %v469_v61 = vmul.f32 0.03125, %v449_v59  ;;  %v470_v62 = vmul.f32 0.03125, %v452_v60  ;;  %v535_v60 = vld [vmem:[%s1333_s24 + $0x28] sm:$0xff] }
 0x13b   : > { %v477_v63 = vadd.f32 1e-05, %v469_v61  ;;  %v478_v0 = vadd.f32 1e-05, %v470_v62 }
 0x13c   : > { %v455_v1 = vpop.xlane.xlu1 %454  ;;  %v458_v2 = vpop.xlane.xlu0 %457 }
 0x13d   : > { %1155 = vrsqrt.f32 %v477_v63  ;;  %v471_v3 = vmul.f32 0.03125, %v455_v1  ;;  %v472_v4 = vmul.f32 0.03125, %v458_v2  ;;  %v536_v63 = vld [vmem:[%s1333_s24 + $0x30] sm:$0xff] }
 0x13e   : > { %1157 = vrsqrt.f32 %v478_v0 }
 0x13f   : > { %v479_v5 = vadd.f32 1e-05, %v471_v3  ;;  %v480_v6 = vadd.f32 1e-05, %v472_v4 }
 0x140   : > { %v461_v7 = vpop.xlane.xlu1 %460  ;;  %v464_v8 = vpop.xlane.xlu0 %463 }
 0x141   : > { %1159 = vrsqrt.f32 %v479_v5  ;;  %v473_v9 = vmul.f32 0.03125, %v461_v7  ;;  %v474_v10 = vmul.f32 0.03125, %v464_v8  ;;  %v537_v5 = vld [vmem:[%s1333_s24 + $0x38] sm:$0xff] }
 0x142   : > { %1161 = vrsqrt.f32 %v480_v6 }
 0x143   : > { %v1154_v11 = vpop.eup %1153  ;;  %v481_v12 = vadd.f32 1e-05, %v473_v9  ;;  %v482_v13 = vadd.f32 1e-05, %v474_v10 }
 0x144   : > { %v467_v15 = vpop.xlane.xlu1 %466  ;;  %v492_v16 = vmul.f32 %v1154_v11, %v1286_v20 }
 0x145   : > { %1163 = vrsqrt.f32 %v481_v12  ;;  %v475_v17 = vmul.f32 0.03125, %v467_v15 }
 0x146   : > { %1165 = vrsqrt.f32 %v482_v13  ;;  %v507_v19 = vmul.f32 %v1059_v14, %v492_v16 }
 0x147   : > { %v1156_v22 = vpop.eup %1155  ;;  %v483_v23 = vadd.f32 1e-05, %v475_v17 }
 0x148   : > { %v1158_v25 = vpop.eup %1157  ;;  %v522_v26 = vadd.f32 %v1060_v18, %v507_v19  ;;  %v493_v27 = vmul.f32 %v1156_v22, %v1294_v28 }
 0x149   : > { %1167 = vrsqrt.f32 %v483_v23  ;;  %v494_v20 = vmul.f32 %v1158_v25, %v1288_v21 }
 0x14a   : > { %v1342_v30 = vadd.f32 %v530_v24, %v522_v26  ;;  %v508_v31 = vmul.f32 %v1059_v14, %v493_v27 }
 0x14b   : > { %v1160_v32 = vpop.eup %1159  ;;  %v509_v34 = vmul.f32 %v1059_v14, %v494_v20 }
 0x14c   : > { %v1162_v35 = vpop.eup %1161  ;;  %v546_v36 = vsel %vm394_vm0, %v1342_v30, 0.0  ;;  %v523_v37 = vadd.f32 %v1060_v18, %v508_v31  ;;  %v495_v41 = vmul.f32 %v1160_v32, %v1296_v29  ;;  %v534_v29 = vld [vmem:[%s1333_s24 + $0x20] sm:$0xff] }
 0x14d   : > { %547 = vadd.xlane.f32.xlu0 %v546_v36  ;;  %v524_v28 = vadd.f32 %v1060_v18, %v509_v34  ;;  %v496_v21 = vmul.f32 %v1162_v35, %v1304_v38 }
 0x14e   : > { %v1350_v42 = vadd.f32 %v531_v33, %v523_v37  ;;  %v510_v43 = vmul.f32 %v1059_v14, %v495_v41 }
 0x14f   : > { %v1164_v44 = vpop.eup %1163  ;;  %v1352_v45 = vadd.f32 %v532_v40, %v524_v28  ;;  %v511_v47 = vmul.f32 %v1059_v14, %v496_v21 }
 0x150   : > { %v1166_v50 = vpop.eup %1165  ;;  %v549_v51 = vsel %vm394_vm0, %v1350_v42, 0.0  ;;  %v525_v52 = vadd.f32 %v1060_v18, %v510_v43  ;;  %v497_v53 = vmul.f32 %v1164_v44, %v1306_v39 }
 0x151   : > { %550 = vadd.xlane.f32.xlu1 %v549_v51  ;;  %v552_v38 = vsel %vm394_vm0, %v1352_v45, 0.0  ;;  %v526_v54 = vadd.f32 %v1060_v18, %v511_v47  ;;  %v498_v55 = vmul.f32 %v1166_v50, %v1314_v48 }
 0x152   : > { %553 = vadd.xlane.f32.xlu0 %v552_v38  ;;  %v1362_v56 = vadd.f32 %v533_v46, %v525_v52  ;;  %v512_v57 = vmul.f32 %v1059_v14, %v497_v53 }
 0x153   : > { %v1168_v58 = vpop.eup %1167  ;;  %v1364_v59 = vadd.f32 %v534_v29, %v526_v54  ;;  %v513_v61 = vmul.f32 %v1059_v14, %v498_v55 }
 0x154   : > { %v555_v39 = vsel %vm394_vm0, %v1362_v56, 0.0  ;;  %v527_v62 = vadd.f32 %v1060_v18, %v512_v57  ;;  %v499_v0 = vmul.f32 %v1168_v58, %v1316_v49  ;;  %v1143_v57 = vld [vmem:[%s1517_s6] sm:$0xff]   ;;  %v1144_v58 = vld [vmem:[%s1517_s6 + $0x8] sm:$0xff]  }
 0x155   : > { %556 = vadd.xlane.f32.xlu1 %v555_v39  ;;  %v558_v48 = vsel %vm394_vm0, %v1364_v59, 0.0  ;;  %v528_v1 = vadd.f32 %v1060_v18, %v513_v61  ;;  %1099 = vmatprep.subr.bf16.mxu0 %v1143_v57  ;;  %v1146_v61 = vld [vmem:[%s1519_s8 + $0x8] sm:$0xff]  }
 0x156   : > { %559 = vadd.xlane.f32.xlu0 %v558_v48  ;;  %v1373_v2 = vadd.f32 %v535_v60, %v527_v62  ;;  %v514_v3 = vmul.f32 %v1059_v14, %v499_v0  ;;  %1100 = vmatpush3.bf16.msra.mxu0 %v1143_v57  ;;  %v1145_v60 = vld [vmem:[%s1519_s8] sm:$0xff]  }
 0x157   : > { %v1375_v4 = vadd.f32 %v536_v63, %v528_v1  ;;  %1101 = vmatprep.subr.bf16.mxu0 %v1144_v58  ;;  %1111 = vmatprep.subr.bf16.mxu1 %v1145_v60 }
 0x158   : > { %v561_v6 = vsel %vm394_vm0, %v1373_v2, 0.0  ;;  %v529_v7 = vadd.f32 %v1060_v18, %v514_v3  ;;  %1112 = vmatpush3.bf16.msra.mxu1 %v1145_v60 }
 0x159   : > { %562 = vadd.xlane.f32.xlu1 %v561_v6  ;;  %v564_v49 = vsel %vm394_vm0, %v1375_v4, 0.0  ;;  %1113 = vmatprep.subr.bf16.mxu1 %v1146_v61 }
 0x15a   : > { %565 = vadd.xlane.f32.xlu0 %v564_v49  ;;  %v1382_v8 = vadd.f32 %v537_v5, %v529_v7  ;;  %1102 = vmatpush3.bf16.msra.mxu0 %v1144_v58 }
 0x15c   : > { %v567_v9 = vsel %vm394_vm0, %v1382_v8, 0.0  ;;  %1114 = vmatpush3.bf16.msra.mxu1 %v1146_v61 }
 0x15d   : > { %568 = vadd.xlane.f32.xlu1 %v567_v9 }
 0x1da   : > { %v548_v10 = vpop.xlane.xlu0 %547 }
 0x1db   : > { %v570_v11 = vmul.f32 0.03125, %v548_v10 }
 0x1dd   : > { %v1387_v12 = vsub.f32 %v1342_v30, %v570_v11 }
 0x1de   : > { %v551_v13 = vpop.xlane.xlu1 %550 }
 0x1df   : > { %v571_v14 = vmul.f32 0.03125, %v551_v13  ;;  %v554_v15 = vpop.xlane.xlu0 %553  ;;  %v586_v16 = vmul.f32 %v1387_v12, %v1387_v12 }
 0x1e0   : > { %v572_v17 = vmul.f32 0.03125, %v554_v15 }
 0x1e1   : > { %v1392_v18 = vsub.f32 %v1350_v42, %v571_v14  ;;  %v594_v19 = vsel %vm394_vm0, %v586_v16, 0.0 }
 0x1e2   : > { %v1396_v22 = vsub.f32 %v1352_v45, %v572_v17  ;;  %v557_v23 = vpop.xlane.xlu1 %556  ;;  %595 = vadd.xlane.f32.xlu0 %v594_v19 }
 0x1e3   : > { %v573_v24 = vmul.f32 0.03125, %v557_v23  ;;  %v560_v25 = vpop.xlane.xlu0 %559  ;;  %v587_v26 = vmul.f32 %v1392_v18, %v1392_v18 }
 0x1e4   : > { %v574_v27 = vmul.f32 0.03125, %v560_v25  ;;  %v588_v20 = vmul.f32 %v1396_v22, %v1396_v22 }
 0x1e5   : > { %v1403_v31 = vsub.f32 %v1362_v56, %v573_v24  ;;  %v597_v32 = vsel %vm394_vm0, %v587_v26, 0.0 }
 0x1e6   : > { %v1407_v33 = vsub.f32 %v1364_v59, %v574_v27  ;;  %598 = vadd.xlane.f32.xlu1 %v597_v32  ;;  %v563_v34 = vpop.xlane.xlu1 %562  ;;  %v600_v35 = vsel %vm394_vm0, %v588_v20, 0.0  ;;  %v1061_v20 = vld [vmem:[%s1515_s4] ss:$0 sm:$0xff] }
 0x1e7   : > { %v575_v36 = vmul.f32 0.03125, %v563_v34  ;;  %601 = vadd.xlane.f32.xlu0 %v600_v35  ;;  %v566_v37 = vpop.xlane.xlu0 %565  ;;  %v589_v40 = vmul.f32 %v1403_v31, %v1403_v31 }
 0x1e8   : > { %v576_v41 = vmul.f32 0.03125, %v566_v37  ;;  %v590_v28 = vmul.f32 %v1407_v33, %v1407_v33 }
 0x1e9   : > { %v1415_v21 = vsub.f32 %v1373_v2, %v575_v36  ;;  %v603_v43 = vsel %vm394_vm0, %v589_v40, 0.0 }
 0x1ea   : > { %v1419_v44 = vsub.f32 %v1375_v4, %v576_v41  ;;  %604 = vadd.xlane.f32.xlu1 %v603_v43  ;;  %v569_v46 = vpop.xlane.xlu1 %568  ;;  %v606_v47 = vsel %vm394_vm0, %v590_v28, 0.0 }
 0x1eb   : > { %v577_v50 = vmul.f32 0.03125, %v569_v46  ;;  %607 = vadd.xlane.f32.xlu0 %v606_v47  ;;  %v591_v51 = vmul.f32 %v1415_v21, %v1415_v21 }
 0x1ec   : > { %v592_v52 = vmul.f32 %v1419_v44, %v1419_v44 }
 0x1ed   : > { %v1427_v29 = vsub.f32 %v1382_v8, %v577_v50  ;;  %v609_v53 = vsel %vm394_vm0, %v591_v51, 0.0 }
 0x1ee   : > { %610 = vadd.xlane.f32.xlu1 %v609_v53  ;;  %v612_v38 = vsel %vm394_vm0, %v592_v52, 0.0 }
 0x1ef   : > { %613 = vadd.xlane.f32.xlu0 %v612_v38  ;;  %v593_v54 = vmul.f32 %v1427_v29, %v1427_v29 }
 0x1f1   : > { %v615_v55 = vsel %vm394_vm0, %v593_v54, 0.0 }
 0x1f2   : > { %616 = vadd.xlane.f32.xlu1 %v615_v55 }
 0x26f   : > { %v596_v39 = vpop.xlane.xlu0 %595 }
 0x270   : > { %v618_v62 = vmul.f32 0.03125, %v596_v39 }
 0x272   : > { %v626_v63 = vadd.f32 1e-05, %v618_v62 }
 0x273   : > { %v599_v0 = vpop.xlane.xlu1 %598 }
 0x274   : > { %1169 = vrsqrt.f32 %v626_v63  ;;  %v619_v48 = vmul.f32 0.03125, %v599_v0  ;;  %v602_v1 = vpop.xlane.xlu0 %601 }
 0x275   : > { %v620_v3 = vmul.f32 0.03125, %v602_v1 }
 0x276   : > { %v627_v5 = vadd.f32 1e-05, %v619_v48 }
 0x277   : > { %v628_v6 = vadd.f32 1e-05, %v620_v3  ;;  %v605_v7 = vpop.xlane.xlu1 %604 }
 0x278   : > { %1171 = vrsqrt.f32 %v627_v5  ;;  %v621_v49 = vmul.f32 0.03125, %v605_v7  ;;  %v608_v9 = vpop.xlane.xlu0 %607  ;;  %v1150_v7 = vld [vmem:[%s1519_s8 + $0x28] sm:$0xff]  }
 0x279   : > { %1173 = vrsqrt.f32 %v628_v6  ;;  %v622_v10 = vmul.f32 0.03125, %v608_v9  ;;  %v1149_v6 = vld [vmem:[%s1519_s8 + $0x20] sm:$0xff]   ;;  %v1152_v9 = vld [vmem:[%s1519_s8 + $0x38] sm:$0xff]  }
 0x27a   : > { %v629_v11 = vadd.f32 1e-05, %v621_v49  ;;  %v1151_v49 = vld [vmem:[%s1519_s8 + $0x30] sm:$0xff]  }
 0x27b   : > { %v630_v13 = vadd.f32 1e-05, %v622_v10  ;;  %v611_v14 = vpop.xlane.xlu1 %610  ;;  %v1063_v10 = vld [vmem:[%s1518_s7] ss:$0 sm:$0xff] }
 0x27c   : > { %1175 = vrsqrt.f32 %v629_v11  ;;  %v623_v15 = vmul.f32 0.03125, %v611_v14  ;;  %v614_v16 = vpop.xlane.xlu0 %613 }
 0x27d   : > { %1177 = vrsqrt.f32 %v630_v13  ;;  %v624_v17 = vmul.f32 0.03125, %v614_v16 }
 0x27e   : > { %v1170_v19 = vpop.eup %1169  ;;  %v631_v23 = vadd.f32 1e-05, %v623_v15 }
 0x27f   : > { %v632_v24 = vadd.f32 1e-05, %v624_v17  ;;  %v617_v25 = vpop.xlane.xlu1 %616  ;;  %v642_v26 = vmul.f32 %v1170_v19, %v1387_v12  ;;  %v1062_v12 = vld [vmem:[%s1516_s5] ss:$0 sm:$0xff] }
 0x280   : > { %1179 = vrsqrt.f32 %v631_v23  ;;  %v625_v27 = vmul.f32 0.03125, %v617_v25 }
 0x281   : > { %1181 = vrsqrt.f32 %v632_v24  ;;  %v657_v37 = vmul.f32 %v1061_v20, %v642_v26 }
 0x282   : > { %v1172_v32 = vpop.eup %1171  ;;  %v633_v34 = vadd.f32 1e-05, %v625_v27 }
 0x283   : > { %v1174_v35 = vpop.eup %1173  ;;  %v643_v36 = vmul.f32 %v1172_v32, %v1392_v18  ;;  %v672_v47 = vadd.f32 %v1062_v12, %v657_v37 }
 0x284   : > { %v644_v40 = vmul.f32 %v1174_v35, %v1396_v22  ;;  %1183 = vrsqrt.f32 %v633_v34 }
 0x285   : > { %v658_v41 = vmul.f32 %v1061_v20, %v643_v36 }
 0x286   : > { %v1176_v28 = vpop.eup %1175  ;;  %v659_v51 = vmul.f32 %v1061_v20, %v644_v40 }
 0x287   : > { %v1178_v43 = vpop.eup %1177  ;;  %v645_v46 = vmul.f32 %v1176_v28, %v1403_v31  ;;  %v673_v50 = vadd.f32 %v1062_v12, %v658_v41 }
 0x288   : > { %v646_v52 = vmul.f32 %v1178_v43, %v1407_v33  ;;  %v674_v55 = vadd.f32 %v1062_v12, %v659_v51 }
 0x289   : > { %v680_v53 = vpack.c.bf16 %v673_v50, %v672_v47  ;;  %v660_v18 = vmul.f32 %v1061_v20, %v645_v46 }
 0x28a   : > { %v1180_v38 = vpop.eup %1179  ;;  %v661_v58 = vmul.f32 %v1061_v20, %v646_v52 }
 0x28b   : > { %v1182_v54 = vpop.eup %1181  ;;  %v647_v22 = vmul.f32 %v1180_v38, %v1415_v21  ;;  %1103 = vmatprep.mubr.msk.bf16.mxu0 %vm394_vm0, %v680_v53  ;;  %v675_v57 = vadd.f32 %v1062_v12, %v660_v18 }
 0x28c   : > { %v648_v60 = vmul.f32 %v1182_v54, %v1419_v44  ;;  %v676_v33 = vadd.f32 %v1062_v12, %v661_v58  ;;  %v1147_v44 = vld [vmem:[%s1519_s8 + $0x10] sm:$0xff]  }
 0x28d   : > { %v681_v61 = vpack.c.bf16 %v675_v57, %v674_v55  ;;  %v662_v31 = vmul.f32 %v1061_v20, %v647_v22  ;;  %1115 = vmatprep.subr.bf16.mxu1 %v1147_v44 }
 0x28e   : > { %v1184_v39 = vpop.eup %1183  ;;  %v663_v0 = vmul.f32 %v1061_v20, %v648_v60  ;;  %1116 = vmatpush3.bf16.msra.mxu1 %v1147_v44 }
 0x28f   : > { %v649_v62 = vmul.f32 %v1184_v39, %v1427_v29  ;;  %1104 = vmatmul.mubr.msk.bf16.vlgmr.msra.gmra.mrb[0].mxu0 %vm394_vm0, %v681_v61  ;;  %v677_v63 = vadd.f32 %v1062_v12, %v662_v31  ;;  %v1148_v29 = vld [vmem:[%s1519_s8 + $0x18] sm:$0xff]  }
 0x290   : > { %v678_v21 = vadd.f32 %v1062_v12, %v663_v0  ;;  %1117 = vmatprep.subr.bf16.mxu1 %v1148_v29 }
 0x291   : > { %v682_v48 = vpack.c.bf16 %v677_v63, %v676_v33  ;;  %v664_v1 = vmul.f32 %v1061_v20, %v649_v62 }
 0x292   : > { %1118 = vmatpush3.bf16.msra.mxu1 %v1148_v29 }
 0x293   : > { %1107 = vmatprep.mubr.msk.bf16.mxu0 %vm394_vm0, %v682_v48  ;;  %v679_v3 = vadd.f32 %v1062_v12, %v664_v1  ;;  %1119 = vmatprep.subr.bf16.mxu1 %v1149_v6 }
 0x295   : > { %v683_v5 = vpack.c.bf16 %v679_v3, %v678_v21 }
 0x296   : > { %1120 = vmatpush3.bf16.msra.mxu1 %v1149_v6 }
 0x297   : > { %1108 = vmatmul.mubr.msk.bf16.gmra.mrb[4].mxu0 %vm394_vm0, %v683_v5  ;;  %1121 = vmatprep.subr.bf16.mxu1 %v1150_v7 }
 0x29a   : > { %1122 = vmatpush3.bf16.msra.mxu1 %v1150_v7 }
 0x29b   : > { %1123 = vmatprep.subr.bf16.mxu1 %v1151_v49 }
 0x29e   : > { %1124 = vmatpush3.bf16.msra.mxu1 %v1151_v49 }
 0x29f   : > { %1125 = vmatprep.subr.bf16.mxu1 %v1152_v9 }
 0x2a2   : > { %1126 = vmatpush3.bf16.msra.mxu1 %v1152_v9 }
 0x362   : > { %v1105_v11 = vpop.f32.mrb[0].mxu0 }
 0x363   : > { %v762_v13 = vadd.f32 %v1105_v11, %v1063_v10  ;;  %v753_v14 = vpop.f32.mrb[1].mxu0 }
 0x364   : > { %v754_v15 = vadd.f32 %v1063_v10, %v753_v14  ;;  %v1106_v16 = vpop.f32.mrb[2].mxu0 }
 0x365   : > { %v794_v17 = vmul.f32 0.70710677, %v762_v13  ;;  %v765_v19 = vadd.f32 %v1106_v16, %v1063_v10  ;;  %v756_v23 = vpop.f32.mrb[3].mxu0  ;;  %v786_v38 = vmul.f32 0.5, %v762_v13  ;;  %v1070_v16 = vld [vmem:[%s1520_s9] ss:$0 sm:$0xff] }
 0x366   : > { %v792_v24 = vmul.f32 0.70710677, %v754_v15  ;;  %v757_v25 = vadd.f32 %v1063_v10, %v756_v23  ;;  %v784_v55 = vmul.f32 0.5, %v754_v15 }
 0x367   : > { %1185 = verf.f32 %v794_v17  ;;  %v795_v26 = vmul.f32 0.70710677, %v765_v19  ;;  %v787_v54 = vmul.f32 0.5, %v765_v19 }
 0x368   : > { %1187 = verf.f32 %v792_v24  ;;  %v793_v27 = vmul.f32 0.70710677, %v757_v25  ;;  %v785_v57 = vmul.f32 0.5, %v757_v25 }
 0x369   : > { %1189 = verf.f32 %v795_v26 }
 0x36a   : > { %1191 = verf.f32 %v793_v27  ;;  %v1109_v20 = vpop.f32.mrb[4].mxu0 }
 0x36b   : > { %v778_v32 = vadd.f32 %v1109_v20, %v1063_v10  ;;  %v769_v34 = vpop.f32.mrb[5].mxu0 }
 0x36c   : > { %v770_v35 = vadd.f32 %v1063_v10, %v769_v34  ;;  %v1110_v36 = vpop.f32.mrb[6].mxu0 }
 0x36d   : > { %v798_v37 = vmul.f32 0.70710677, %v778_v32  ;;  %v781_v40 = vadd.f32 %v1110_v36, %v1063_v10  ;;  %v772_v12 = vpop.f32.mrb[7].mxu0  ;;  %v790_v5 = vmul.f32 0.5, %v778_v32 }
 0x36e   : > { %v796_v41 = vmul.f32 0.70710677, %v770_v35  ;;  %v773_v28 = vadd.f32 %v1063_v10, %v772_v12  ;;  %v788_v6 = vmul.f32 0.5, %v770_v35 }
 0x36f   : > { %1193 = verf.f32 %v798_v37  ;;  %v799_v43 = vmul.f32 0.70710677, %v781_v40  ;;  %v791_v44 = vmul.f32 0.5, %v781_v40 }
 0x370   : > { %1195 = verf.f32 %v796_v41  ;;  %v797_v46 = vmul.f32 0.70710677, %v773_v28  ;;  %v789_v7 = vmul.f32 0.5, %v773_v28 }
 0x371   : > { %v1186_v47 = vpop.eup %1185  ;;  %1197 = verf.f32 %v799_v43 }
 0x372   : > { %v1188_v50 = vpop.eup %1187  ;;  %v810_v51 = vadd.f32 1.0, %v1186_v47  ;;  %1199 = verf.f32 %v797_v46 }
 0x373   : > { %v1190_v52 = vpop.eup %1189  ;;  %v808_v53 = vadd.f32 1.0, %v1188_v50 }
 0x374   : > { %v1192_v18 = vpop.eup %1191  ;;  %v811_v22 = vadd.f32 1.0, %v1190_v52  ;;  %v818_v60 = vmul.f32 %v810_v51, %v786_v38 }
 0x375   : > { %v809_v58 = vadd.f32 1.0, %v1192_v18  ;;  %v816_v31 = vmul.f32 %v808_v53, %v784_v55 }
 0x376   : > { %v819_v61 = vmul.f32 %v811_v22, %v787_v54 }
 0x377   : > { %v817_v39 = vmul.f32 %v809_v58, %v785_v57 }
 0x378   : > { %v825_v62 = vpack.c.bf16 %v819_v61, %v818_v60 }
 0x379   : > { %v1194_v33 = vpop.eup %1193  ;;  %v824_v63 = vpack.c.bf16 %v817_v39, %v816_v31 }
 0x37a   : > { %v1196_v0 = vpop.eup %1195  ;;  %v814_v48 = vadd.f32 1.0, %v1194_v33 }
 0x37b   : > { %v1198_v1 = vpop.eup %1197  ;;  %v812_v21 = vadd.f32 1.0, %v1196_v0  ;;  %1127 = vmatprep.mubr.bf16.mxu1 %v824_v63 }
 0x37c   : > { %v1200_v3 = vpop.eup %1199  ;;  %v815_v29 = vadd.f32 1.0, %v1198_v1  ;;  %1128 = vmatmul.mubr.bf16.vlgmr.msra.gmra.mrb[0].mxu1 %v825_v62  ;;  %v822_v9 = vmul.f32 %v814_v48, %v790_v5 }
 0x37d   : > { %v813_v49 = vadd.f32 1.0, %v1200_v3  ;;  %v820_v11 = vmul.f32 %v812_v21, %v788_v6 }
 0x37e   : > { %v823_v10 = vmul.f32 %v815_v29, %v791_v44 }
 0x37f   : > { %v821_v13 = vmul.f32 %v813_v49, %v789_v7 }
 0x380   : > { %v827_v14 = vpack.c.bf16 %v823_v10, %v822_v9 }
 0x381   : > { %v826_v15 = vpack.c.bf16 %v821_v13, %v820_v11 }
 0x383   : > { %1131 = vmatprep.mubr.bf16.mxu1 %v826_v15 }
 0x384   : > { %1132 = vmatmul.mubr.bf16.gmra.mrb[4].mxu1 %v827_v14 }
 0x44f   : > { %v1129_v17 = vpop.f32.mrb[0].mxu1 }
 0x450   : > { %v942_v19 = vadd.f32 %v1129_v17, %v1070_v16  ;;  %v933_v23 = vpop.f32.mrb[1].mxu1 }
 0x451   : > { %v934_v24 = vadd.f32 %v1070_v16, %v933_v23  ;;  %v1130_v25 = vpop.f32.mrb[2].mxu1 }
 0x452   : > { %v966_v26 = vadd.f32 %v942_v19, %v1352_v45  ;;  %v945_v27 = vadd.f32 %v1130_v25, %v1070_v16  ;;  %v936_v20 = vpop.f32.mrb[3].mxu1 }
 0x453   : > { %v964_v32 = vadd.f32 %v934_v24, %v1342_v30  ;;  %v937_v34 = vadd.f32 %v1070_v16, %v936_v20 }
 0x454   : > { %974 = vst.msk [vmem:[%s383_s21 + $0x10] sm:$0xff] %vm394_vm0, %v966_v26  ;;  %v967_v35 = vadd.f32 %v945_v27, %v1362_v56 }
 0x455   : > { %972 = vst.msk [vmem:[%s383_s21] sm:$0xff] %vm394_vm0, %v964_v32  ;;  %v965_v36 = vadd.f32 %v937_v34, %v1350_v42 }
 0x456   : > { %975 = vst.msk [vmem:[%s383_s21 + $0x18] sm:$0xff] %vm394_vm0, %v967_v35 }
 0x457   : > { %973 = vst.msk [vmem:[%s383_s21 + $0x8] sm:$0xff] %vm394_vm0, %v965_v36  ;;  %v1133_v37 = vpop.f32.mrb[4].mxu1 }
 0x458   : > { %v958_v40 = vadd.f32 %v1133_v37, %v1070_v16  ;;  %v949_v45 = vpop.f32.mrb[5].mxu1 }
 0x459   : > { %v950_v12 = vadd.f32 %v1070_v16, %v949_v45  ;;  %v1134_v41 = vpop.f32.mrb[6].mxu1 }
 0x45a   : > { %v970_v30 = vadd.f32 %v958_v40, %v1375_v4  ;;  %v961_v28 = vadd.f32 %v1134_v41, %v1070_v16  ;;  %v952_v43 = vpop.f32.mrb[7].mxu1 }
 0x45b   : > { %v968_v46 = vadd.f32 %v950_v12, %v1364_v59  ;;  %v953_v56 = vadd.f32 %v1070_v16, %v952_v43 }
 0x45c   : > { %978 = vst.msk [vmem:[%s383_s21 + $0x30] sm:$0xff] %vm394_vm0, %v970_v30  ;;  %v971_v42 = vadd.f32 %v961_v28, %v1382_v8 }
 0x45d   : > { %976 = vst.msk [vmem:[%s383_s21 + $0x20] sm:$0xff] %vm394_vm0, %v968_v46  ;;  %v969_v47 = vadd.f32 %v953_v56, %v1373_v2 }
 0x45e   : > { %979 = vst.msk [vmem:[%s383_s21 + $0x38] sm:$0xff] %vm394_vm0, %v971_v42 }
 0x45f   : > { %977 = vst.msk [vmem:[%s383_s21 + $0x28] sm:$0xff] %vm394_vm0, %v969_v47 }
 0x460 PF: > { %s20_s13 = sadd.s32 1, %s1207_s13  }
 0x461   : > { %p17_p4 = scmp.ge.s32.totalorder %s20_s13, 4  }
 0x463   :  { %19 = sbr.rel (!%p17_p4) target bundleno = 1 (0x1), region = 93 }

// kernel: _lambda_.12
= control target key start
LH: loop header
LB: loop body
LE: loop exit
PB: predicated region body
PF: predicated region fallthrough
CT: control target
= control target key end

     0   :  { %s1048_s27 = smov 0   ;;  %s1223_s0 = inlined_call_operand.vmem [shape: f32[128,32], index: 0, kind: input, shape index: {}]   ;;  %s1224_s1 = inlined_call_operand.vmem [shape: f32[128,32], index: 1, kind: input, shape index: {}]   ;;  %s1225_s2 = inlined_call_operand.vmem [shape: f32[1,32], index: 2, kind: input, shape index: {}]   ;;  %s1226_s3 = inlined_call_operand.vmem [shape: f32[1,32], index: 3, kind: input, shape index: {}]   ;;  %s1227_s4 = inlined_call_operand.vmem [shape: bf16[32,128], index: 4, kind: input, shape index: {}]   ;;  %s1228_s5 = inlined_call_operand.vmem [shape: f32[1,128], index: 5, kind: input, shape index: {}]   ;;  %s1229_s6 = inlined_call_operand.vmem [shape: bf16[128,32], index: 6, kind: input, shape index: {}]   ;;  %s1230_s7 = inlined_call_operand.vmem [shape: f32[1,32], index: 7, kind: input, shape index: {}]   ;;  %s1231_s8 = inlined_call_operand.vmem [shape: f32[128,32], index: 8, kind: output, shape index: {}]  }
   0x1 LB: > { %s860_s28 = sadd.s32 4294967295, %s1001_s27   ;;  %p864_p0 = scmp.ge.s32.totalorder %s1001_s27, 1  ;;  %s1001_s27 = sphi %s1048_s27, %s18_s27  }
   0x2   : > { %p274_p1 = scmp.lt.s32.totalorder %s1001_s27, 3 }
   0x4   : > { %p275_p2 = pnand %p864_p0, %p274_p1 }
   0x5   : > { %s865_s29 = sshll.u32 (!%p275_p2), %s860_s28, 3  ;;  %vm356_vm0 = vcmask (!%p275_p2), 261120  }
   0x6   : > { %278 = sbr.rel (%p275_p2) target bundleno = 808 (0x328), region = 52  ;;  %p314_p3 = scmp.lt.s32.totalorder (!%p275_p2), %s865_s29, 15 }
   0xd   : > { %s1233_s29 = smov (!%p314_p3, %s865_s29), 15 }
   0xe   : > { %s1056_s30 = sshll.u32 %s1233_s29, 3 }
   0xf   : > { %s317_s11 = scalar_lea.vmem %s1223_s0, %s1056_s30  ;;  %s323_s14 = scalar_lea.vmem %s1224_s1, %s1056_s30 }
  0x10   : > { %v332_v0 = vld [vmem:[%s317_s11] sm:$0xff]  ;;  %v334_v2 = vld [vmem:[%s317_s11 + $0x10] sm:$0xff]  ;;  %v333_v5 = vld [vmem:[%s317_s11 + $0x8] sm:$0xff]  ;;  %s329_s25 = scalar_lea.vmem %s1231_s8, %s1056_s30 }
  0x11   : > { %v340_v1 = vld [vmem:[%s323_s14] sm:$0xff]  ;;  %v342_v4 = vld [vmem:[%s323_s14 + $0x10] sm:$0xff]  ;;  %v341_v6 = vld [vmem:[%s323_s14 + $0x8] sm:$0xff] }
  0x12   : > { %v1066_v3 = vadd.f32 %v340_v1, %v332_v0  ;;  %v1068_v7 = vadd.f32 %v342_v4, %v334_v2  ;;  %v1070_v8 = vadd.f32 %v341_v6, %v333_v5  ;;  %v335_v9 = vld [vmem:[%s317_s11 + $0x18] sm:$0xff]  ;;  %v336_v11 = vld [vmem:[%s317_s11 + $0x20] sm:$0xff]  ;;  %v337_v15 = vld [vmem:[%s317_s11 + $0x28] sm:$0xff] }
  0x13   : > { %v343_v10 = vld [vmem:[%s323_s14 + $0x18] sm:$0xff]  ;;  %v344_v14 = vld [vmem:[%s323_s14 + $0x20] sm:$0xff]  ;;  %v345_v16 = vld [vmem:[%s323_s14 + $0x28] sm:$0xff] }
  0x14   : > { %v357_v12 = vsel %vm356_vm0, %v1066_v3, 0.0  ;;  %v1074_v13 = vadd.f32 %v343_v10, %v335_v9  ;;  %v363_v17 = vsel %vm356_vm0, %v1068_v7, 0.0  ;;  %v360_v18 = vsel %vm356_vm0, %v1070_v8, 0.0  ;;  %v338_v22 = vld [vmem:[%s317_s11 + $0x30] sm:$0xff]  ;;  %v339_v24 = vld [vmem:[%s317_s11 + $0x38] sm:$0xff] }
  0x15   : > { %358 = vadd.xlane.f32.xlu0 %v357_v12  ;;  %364 = vadd.xlane.f32.xlu1 %v363_v17  ;;  %v1080_v19 = vadd.f32 %v344_v14, %v336_v11  ;;  %v1084_v21 = vadd.f32 %v345_v16, %v337_v15  ;;  %v346_v23 = vld [vmem:[%s323_s14 + $0x30] sm:$0xff]  ;;  %v347_v25 = vld [vmem:[%s323_s14 + $0x38] sm:$0xff]  ;;  %v953_v11 = vld [vmem:[%s1227_s4] sm:$0xff]  }
  0x16   : > { %v366_v20 = vsel %vm356_vm0, %v1074_v13, 0.0  ;;  %v1088_v27 = vadd.f32 %v346_v23, %v338_v22  ;;  %v1092_v29 = vadd.f32 %v347_v25, %v339_v24  ;;  %909 = vmatprep.subr.bf16.mxu0 %v953_v11  ;;  %v954_v12 = vld [vmem:[%s1227_s4 + $0x8] sm:$0xff]   ;;  %v955_v14 = vld [vmem:[%s1229_s6] sm:$0xff]  }
  0x17   : > { %v369_v26 = vsel %vm356_vm0, %v1080_v19, 0.0  ;;  %v372_v28 = vsel %vm356_vm0, %v1084_v21, 0.0  ;;  %910 = vmatpush3.bf16.msra.mxu0 %v953_v11  ;;  %v956_v15 = vld [vmem:[%s1229_s6 + $0x8] sm:$0xff]   ;;  %921 = vmatprep.subr.bf16.mxu1 %v955_v14 }
  0x18   : > { %v375_v30 = vsel %vm356_vm0, %v1088_v27, 0.0  ;;  %v378_v31 = vsel %vm356_vm0, %v1092_v29, 0.0  ;;  %911 = vmatprep.subr.bf16.mxu0 %v954_v12  ;;  %922 = vmatpush3.bf16.msra.mxu1 %v955_v14 }
  0x19   : > { %361 = vadd.xlane.f32.xlu0 %v360_v18  ;;  %367 = vadd.xlane.f32.xlu1 %v366_v20 }
  0x1a   : > { %923 = vmatprep.subr.bf16.mxu1 %v956_v15 }
  0x1b   : > { %912 = vmatpush3.bf16.msra.mxu0 %v954_v12 }
  0x1c   : > { %924 = vmatpush3.bf16.msra.mxu1 %v956_v15 }
  0x1d   : > { %370 = vadd.xlane.f32.xlu0 %v369_v26  ;;  %373 = vadd.xlane.f32.xlu1 %v372_v28 }
  0x21   : > { %376 = vadd.xlane.f32.xlu0 %v375_v30  ;;  %379 = vadd.xlane.f32.xlu1 %v378_v31 }
  0xa2   : > { %v359_v32 = vpop.xlane.xlu0 %358  ;;  %v365_v34 = vpop.xlane.xlu1 %364 }
  0xa3   : > { %v382_v33 = vmul.f32 0.03125, %v359_v32  ;;  %v384_v35 = vmul.f32 0.03125, %v365_v34 }
  0xa5   : > { %v1099_v36 = vsub.f32 %v1066_v3, %v382_v33  ;;  %v1102_v37 = vsub.f32 %v1068_v7, %v384_v35 }
  0xa6   : > { %v362_v38 = vpop.xlane.xlu0 %361  ;;  %v368_v40 = vpop.xlane.xlu1 %367 }
  0xa7   : > { %v383_v39 = vmul.f32 0.03125, %v362_v38  ;;  %v398_v41 = vmul.f32 %v1099_v36, %v1099_v36  ;;  %v385_v42 = vmul.f32 0.03125, %v368_v40  ;;  %v400_v43 = vmul.f32 %v1102_v37, %v1102_v37 }
  0xa9   : > { %v1109_v44 = vsub.f32 %v1070_v8, %v383_v39  ;;  %v406_v45 = vsel %vm356_vm0, %v398_v41, 0.0  ;;  %v1113_v46 = vsub.f32 %v1074_v13, %v385_v42  ;;  %v412_v50 = vsel %vm356_vm0, %v400_v43, 0.0 }
  0xaa   : > { %407 = vadd.xlane.f32.xlu0 %v406_v45  ;;  %v371_v47 = vpop.xlane.xlu0 %370  ;;  %v374_v49 = vpop.xlane.xlu1 %373 }
  0xab   : > { %v386_v48 = vmul.f32 0.03125, %v371_v47  ;;  %v399_v51 = vmul.f32 %v1109_v44, %v1109_v44  ;;  %v387_v52 = vmul.f32 0.03125, %v374_v49  ;;  %v401_v53 = vmul.f32 %v1113_v46, %v1113_v46  ;;  %v871_v49 = vld [vmem:[%s1225_s2] ss:$0 sm:$0xff] }
  0xad   : > { %v1121_v54 = vsub.f32 %v1080_v19, %v386_v48  ;;  %v409_v55 = vsel %vm356_vm0, %v399_v51, 0.0  ;;  %v1125_v56 = vsub.f32 %v1084_v21, %v387_v52  ;;  %v415_v60 = vsel %vm356_vm0, %v401_v53, 0.0 }
  0xae   : > { %413 = vadd.xlane.f32.xlu0 %v412_v50  ;;  %410 = vadd.xlane.f32.xlu1 %v409_v55  ;;  %v377_v57 = vpop.xlane.xlu0 %376  ;;  %v380_v59 = vpop.xlane.xlu1 %379 }
  0xaf   : > { %v388_v58 = vmul.f32 0.03125, %v377_v57  ;;  %v402_v61 = vmul.f32 %v1121_v54, %v1121_v54  ;;  %v389_v62 = vmul.f32 0.03125, %v380_v59  ;;  %v403_v63 = vmul.f32 %v1125_v56, %v1125_v56 }
  0xb1   : > { %v1133_v0 = vsub.f32 %v1088_v27, %v388_v58  ;;  %v418_v1 = vsel %vm356_vm0, %v402_v61, 0.0  ;;  %v1137_v2 = vsub.f32 %v1092_v29, %v389_v62  ;;  %v421_v4 = vsel %vm356_vm0, %v403_v63, 0.0 }
  0xb2   : > { %416 = vadd.xlane.f32.xlu1 %v415_v60  ;;  %419 = vadd.xlane.f32.xlu0 %v418_v1 }
  0xb3   : > { %v404_v5 = vmul.f32 %v1133_v0, %v1133_v0  ;;  %v405_v6 = vmul.f32 %v1137_v2, %v1137_v2 }
  0xb5   : > { %v424_v9 = vsel %vm356_vm0, %v404_v5, 0.0  ;;  %v427_v10 = vsel %vm356_vm0, %v405_v6, 0.0 }
  0xb6   : > { %422 = vadd.xlane.f32.xlu1 %v421_v4  ;;  %425 = vadd.xlane.f32.xlu0 %v424_v9 }
  0xba   : > { %428 = vadd.xlane.f32.xlu1 %v427_v10 }
 0x137   : > { %v408_v16 = vpop.xlane.xlu0 %407 }
 0x138   : > { %v430_v17 = vmul.f32 0.03125, %v408_v16 }
 0x13a   : > { %v438_v18 = vadd.f32 1e-05, %v430_v17 }
 0x13b   : > { %v411_v20 = vpop.xlane.xlu1 %410  ;;  %v414_v22 = vpop.xlane.xlu0 %413 }
 0x13c   : > { %963 = vrsqrt.f32 %v438_v18  ;;  %v431_v23 = vmul.f32 0.03125, %v411_v20  ;;  %v432_v24 = vmul.f32 0.03125, %v414_v22 }
 0x13e   : > { %v439_v25 = vadd.f32 1e-05, %v431_v23  ;;  %v440_v26 = vadd.f32 1e-05, %v432_v24 }
 0x13f   : > { %v417_v28 = vpop.xlane.xlu1 %416  ;;  %v420_v30 = vpop.xlane.xlu0 %419 }
 0x140   : > { %965 = vrsqrt.f32 %v439_v25  ;;  %v433_v31 = vmul.f32 0.03125, %v417_v28  ;;  %v434_v32 = vmul.f32 0.03125, %v420_v30  ;;  %v960_v28 = vld [vmem:[%s1229_s6 + $0x28] sm:$0xff]   ;;  %v961_v30 = vld [vmem:[%s1229_s6 + $0x30] sm:$0xff]  }
 0x141   : > { %967 = vrsqrt.f32 %v440_v26  ;;  %v959_v26 = vld [vmem:[%s1229_s6 + $0x20] sm:$0xff]  }
 0x142   : > { %v441_v33 = vadd.f32 1e-05, %v433_v31  ;;  %v442_v34 = vadd.f32 1e-05, %v434_v32  ;;  %v962_v31 = vld [vmem:[%s1229_s6 + $0x38] sm:$0xff]  }
 0x143   : > { %v423_v35 = vpop.xlane.xlu1 %422  ;;  %v426_v38 = vpop.xlane.xlu0 %425  ;;  %v873_v32 = vld [vmem:[%s1228_s5] ss:$0 sm:$0xff] }
 0x144   : > { %969 = vrsqrt.f32 %v441_v33  ;;  %v435_v39 = vmul.f32 0.03125, %v423_v35  ;;  %v436_v40 = vmul.f32 0.03125, %v426_v38 }
 0x145   : > { %971 = vrsqrt.f32 %v442_v34 }
 0x146   : > { %v964_v41 = vpop.eup %963  ;;  %v443_v42 = vadd.f32 1e-05, %v435_v39  ;;  %v444_v43 = vadd.f32 1e-05, %v436_v40 }
 0x147   : > { %v429_v45 = vpop.xlane.xlu1 %428  ;;  %v454_v47 = vmul.f32 %v964_v41, %v1099_v36  ;;  %v872_v36 = vld [vmem:[%s1226_s3] ss:$0 sm:$0xff] }
 0x148   : > { %973 = vrsqrt.f32 %v443_v42  ;;  %v437_v48 = vmul.f32 0.03125, %v429_v45 }
 0x149   : > { %975 = vrsqrt.f32 %v444_v43  ;;  %v469_v55 = vmul.f32 %v871_v49, %v454_v47 }
 0x14a   : > { %v966_v50 = vpop.eup %965  ;;  %v445_v51 = vadd.f32 1e-05, %v437_v48 }
 0x14b   : > { %v968_v52 = vpop.eup %967  ;;  %v455_v53 = vmul.f32 %v966_v50, %v1109_v44  ;;  %v484_v62 = vadd.f32 %v872_v36, %v469_v55 }
 0x14c   : > { %v456_v57 = vmul.f32 %v968_v52, %v1102_v37  ;;  %977 = vrsqrt.f32 %v445_v51 }
 0x14d   : > { %v470_v58 = vmul.f32 %v871_v49, %v455_v53 }
 0x14e   : > { %v970_v59 = vpop.eup %969  ;;  %v471_v1 = vmul.f32 %v871_v49, %v456_v57 }
 0x14f   : > { %v972_v60 = vpop.eup %971  ;;  %v457_v61 = vmul.f32 %v970_v59, %v1113_v46  ;;  %v485_v63 = vadd.f32 %v872_v36, %v470_v58 }
 0x150   : > { %v458_v4 = vmul.f32 %v972_v60, %v1121_v54  ;;  %v486_v10 = vadd.f32 %v872_v36, %v471_v1 }
 0x151   : > { %v492_v5 = vpack.c.bf16 %v485_v63, %v484_v62  ;;  %v472_v44 = vmul.f32 %v871_v49, %v457_v61 }
 0x152   : > { %v974_v6 = vpop.eup %973  ;;  %v473_v12 = vmul.f32 %v871_v49, %v458_v4 }
 0x153   : > { %v976_v9 = vpop.eup %975  ;;  %v459_v37 = vmul.f32 %v974_v6, %v1125_v56  ;;  %913 = vmatprep.mubr.msk.bf16.mxu0 %vm356_vm0, %v492_v5  ;;  %v487_v11 = vadd.f32 %v872_v36, %v472_v44 }
 0x154   : > { %v460_v14 = vmul.f32 %v976_v9, %v1133_v0  ;;  %v488_v54 = vadd.f32 %v872_v36, %v473_v12  ;;  %v957_v0 = vld [vmem:[%s1229_s6 + $0x10] sm:$0xff]  }
 0x155   : > { %v493_v15 = vpack.c.bf16 %v487_v11, %v486_v10  ;;  %v474_v46 = vmul.f32 %v871_v49, %v459_v37  ;;  %925 = vmatprep.subr.bf16.mxu1 %v957_v0 }
 0x156   : > { %v978_v16 = vpop.eup %977  ;;  %v475_v20 = vmul.f32 %v871_v49, %v460_v14  ;;  %926 = vmatpush3.bf16.msra.mxu1 %v957_v0 }
 0x157   : > { %v461_v17 = vmul.f32 %v978_v16, %v1137_v2  ;;  %914 = vmatmul.mubr.msk.bf16.vlgmr.msra.gmra.mrb[0].mxu0 %vm356_vm0, %v493_v15  ;;  %v489_v18 = vadd.f32 %v872_v36, %v474_v46  ;;  %v958_v2 = vld [vmem:[%s1229_s6 + $0x18] sm:$0xff]  }
 0x158   : > { %v490_v56 = vadd.f32 %v872_v36, %v475_v20  ;;  %927 = vmatprep.subr.bf16.mxu1 %v958_v2 }
 0x159   : > { %v494_v22 = vpack.c.bf16 %v489_v18, %v488_v54  ;;  %v476_v23 = vmul.f32 %v871_v49, %v461_v17 }
 0x15a   : > { %928 = vmatpush3.bf16.msra.mxu1 %v958_v2 }
 0x15b   : > { %917 = vmatprep.mubr.msk.bf16.mxu0 %vm356_vm0, %v494_v22  ;;  %v491_v24 = vadd.f32 %v872_v36, %v476_v23  ;;  %929 = vmatprep.subr.bf16.mxu1 %v959_v26 }
 0x15d   : > { %v495_v25 = vpack.c.bf16 %v491_v24, %v490_v56 }
 0x15e   : > { %930 = vmatpush3.bf16.msra.mxu1 %v959_v26 }
 0x15f   : > { %918 = vmatmul.mubr.msk.bf16.gmra.mrb[4].mxu0 %vm356_vm0, %v495_v25  ;;  %931 = vmatprep.subr.bf16.mxu1 %v960_v28 }
 0x162   : > { %932 = vmatpush3.bf16.msra.mxu1 %v960_v28 }
 0x163   : > { %933 = vmatprep.subr.bf16.mxu1 %v961_v30 }
 0x166   : > { %934 = vmatpush3.bf16.msra.mxu1 %v961_v30 }
 0x167   : > { %935 = vmatprep.subr.bf16.mxu1 %v962_v31 }
 0x16a   : > { %936 = vmatpush3.bf16.msra.mxu1 %v962_v31 }
 0x22a   : > { %v915_v33 = vpop.f32.mrb[0].mxu0 }
 0x22b   : > { %v574_v34 = vadd.f32 %v915_v33, %v873_v32  ;;  %v565_v35 = vpop.f32.mrb[1].mxu0 }
 0x22c   : > { %v566_v38 = vadd.f32 %v873_v32, %v565_v35  ;;  %v916_v39 = vpop.f32.mrb[2].mxu0 }
 0x22d   : > { %v606_v40 = vmul.f32 0.70710677, %v574_v34  ;;  %v577_v41 = vadd.f32 %v916_v39, %v873_v32  ;;  %v568_v42 = vpop.f32.mrb[3].mxu0  ;;  %v598_v6 = vmul.f32 0.5, %v574_v34  ;;  %v880_v39 = vld [vmem:[%s1230_s7] ss:$0 sm:$0xff] }
 0x22e   : > { %v604_v43 = vmul.f32 0.70710677, %v566_v38  ;;  %v569_v45 = vadd.f32 %v873_v32, %v568_v42  ;;  %v596_v10 = vmul.f32 0.5, %v566_v38 }
 0x22f   : > { %979 = verf.f32 %v606_v40  ;;  %v607_v47 = vmul.f32 0.70710677, %v577_v41  ;;  %v599_v9 = vmul.f32 0.5, %v577_v41 }
 0x230   : > { %981 = verf.f32 %v604_v43  ;;  %v605_v48 = vmul.f32 0.70710677, %v569_v45  ;;  %v597_v11 = vmul.f32 0.5, %v569_v45 }
 0x231   : > { %983 = verf.f32 %v607_v47 }
 0x232   : > { %985 = verf.f32 %v605_v48  ;;  %v919_v49 = vpop.f32.mrb[4].mxu0 }
 0x233   : > { %v590_v50 = vadd.f32 %v919_v49, %v873_v32  ;;  %v581_v51 = vpop.f32.mrb[5].mxu0 }
 0x234   : > { %v582_v52 = vadd.f32 %v873_v32, %v581_v51  ;;  %v920_v53 = vpop.f32.mrb[6].mxu0 }
 0x235   : > { %v610_v55 = vmul.f32 0.70710677, %v590_v50  ;;  %v593_v57 = vadd.f32 %v920_v53, %v873_v32  ;;  %v584_v36 = vpop.f32.mrb[7].mxu0  ;;  %v602_v25 = vmul.f32 0.5, %v590_v50 }
 0x236   : > { %v608_v58 = vmul.f32 0.70710677, %v582_v52  ;;  %v585_v59 = vadd.f32 %v873_v32, %v584_v36  ;;  %v600_v26 = vmul.f32 0.5, %v582_v52 }
 0x237   : > { %987 = verf.f32 %v610_v55  ;;  %v611_v60 = vmul.f32 0.70710677, %v593_v57  ;;  %v603_v0 = vmul.f32 0.5, %v593_v57 }
 0x238   : > { %989 = verf.f32 %v608_v58  ;;  %v609_v61 = vmul.f32 0.70710677, %v585_v59  ;;  %v601_v28 = vmul.f32 0.5, %v585_v59 }
 0x239   : > { %v980_v62 = vpop.eup %979  ;;  %991 = verf.f32 %v611_v60 }
 0x23a   : > { %v982_v63 = vpop.eup %981  ;;  %v622_v1 = vadd.f32 1.0, %v980_v62  ;;  %993 = verf.f32 %v609_v61 }
 0x23b   : > { %v984_v4 = vpop.eup %983  ;;  %v620_v5 = vadd.f32 1.0, %v982_v63 }
 0x23c   : > { %v986_v44 = vpop.eup %985  ;;  %v623_v37 = vadd.f32 1.0, %v984_v4  ;;  %v630_v14 = vmul.f32 %v622_v1, %v598_v6 }
 0x23d   : > { %v621_v12 = vadd.f32 1.0, %v986_v44  ;;  %v628_v46 = vmul.f32 %v620_v5, %v596_v10 }
 0x23e   : > { %v631_v15 = vmul.f32 %v623_v37, %v599_v9 }
 0x23f   : > { %v629_v16 = vmul.f32 %v621_v12, %v597_v11 }
 0x240   : > { %v637_v17 = vpack.c.bf16 %v631_v15, %v630_v14 }
 0x241   : > { %v988_v54 = vpop.eup %987  ;;  %v636_v18 = vpack.c.bf16 %v629_v16, %v628_v46 }
 0x242   : > { %v990_v20 = vpop.eup %989  ;;  %v626_v22 = vadd.f32 1.0, %v988_v54 }
 0x243   : > { %v992_v23 = vpop.eup %991  ;;  %v624_v56 = vadd.f32 1.0, %v990_v20  ;;  %937 = vmatprep.mubr.bf16.mxu1 %v636_v18 }
 0x244   : > { %v994_v24 = vpop.eup %993  ;;  %v627_v2 = vadd.f32 1.0, %v992_v23  ;;  %938 = vmatmul.mubr.bf16.vlgmr.msra.gmra.mrb[0].mxu1 %v637_v17  ;;  %v634_v31 = vmul.f32 %v626_v22, %v602_v25 }
 0x245   : > { %v625_v30 = vadd.f32 1.0, %v994_v24  ;;  %v632_v33 = vmul.f32 %v624_v56, %v600_v26 }
 0x246   : > { %v635_v32 = vmul.f32 %v627_v2, %v603_v0 }
 0x247   : > { %v633_v34 = vmul.f32 %v625_v30, %v601_v28 }
 0x248   : > { %v639_v35 = vpack.c.bf16 %v635_v32, %v634_v31 }
 0x249   : > { %v638_v38 = vpack.c.bf16 %v633_v34, %v632_v33 }
 0x24b   : > { %941 = vmatprep.mubr.bf16.mxu1 %v638_v38 }
 0x24c   : > { %942 = vmatmul.mubr.bf16.gmra.mrb[4].mxu1 %v639_v35 }
 0x317   : > { %v939_v40 = vpop.f32.mrb[0].mxu1 }
 0x318   : > { %v754_v41 = vadd.f32 %v939_v40, %v880_v39  ;;  %v745_v42 = vpop.f32.mrb[1].mxu1 }
 0x319   : > { %v746_v43 = vadd.f32 %v880_v39, %v745_v42  ;;  %v940_v45 = vpop.f32.mrb[2].mxu1 }
 0x31a   : > { %v778_v47 = vadd.f32 %v754_v41, %v1068_v7  ;;  %v757_v48 = vadd.f32 %v940_v45, %v880_v39  ;;  %v748_v49 = vpop.f32.mrb[3].mxu1 }
 0x31b   : > { %v776_v50 = vadd.f32 %v746_v43, %v1066_v3  ;;  %v749_v51 = vadd.f32 %v880_v39, %v748_v49 }
 0x31c   : > { %786 = vst.msk [vmem:[%s329_s25 + $0x10] sm:$0xff] %vm356_vm0, %v778_v47  ;;  %v779_v52 = vadd.f32 %v757_v48, %v1074_v13 }
 0x31d   : > { %784 = vst.msk [vmem:[%s329_s25] sm:$0xff] %vm356_vm0, %v776_v50  ;;  %v777_v53 = vadd.f32 %v749_v51, %v1070_v8 }
 0x31e   : > { %787 = vst.msk [vmem:[%s329_s25 + $0x18] sm:$0xff] %vm356_vm0, %v779_v52 }
 0x31f   : > { %785 = vst.msk [vmem:[%s329_s25 + $0x8] sm:$0xff] %vm356_vm0, %v777_v53  ;;  %v943_v55 = vpop.f32.mrb[4].mxu1 }
 0x320   : > { %v770_v57 = vadd.f32 %v943_v55, %v880_v39  ;;  %v761_v7 = vpop.f32.mrb[5].mxu1 }
 0x321   : > { %v762_v36 = vadd.f32 %v880_v39, %v761_v7  ;;  %v944_v58 = vpop.f32.mrb[6].mxu1 }
 0x322   : > { %v782_v3 = vadd.f32 %v770_v57, %v1088_v27  ;;  %v773_v59 = vadd.f32 %v944_v58, %v880_v39  ;;  %v764_v60 = vpop.f32.mrb[7].mxu1 }
 0x323   : > { %v780_v61 = vadd.f32 %v762_v36, %v1080_v19  ;;  %v765_v13 = vadd.f32 %v880_v39, %v764_v60 }
 0x324   : > { %790 = vst.msk [vmem:[%s329_s25 + $0x30] sm:$0xff] %vm356_vm0, %v782_v3  ;;  %v783_v8 = vadd.f32 %v773_v59, %v1092_v29 }
 0x325   : > { %788 = vst.msk [vmem:[%s329_s25 + $0x20] sm:$0xff] %vm356_vm0, %v780_v61  ;;  %v781_v62 = vadd.f32 %v765_v13, %v1084_v21 }
 0x326   : > { %791 = vst.msk [vmem:[%s329_s25 + $0x38] sm:$0xff] %vm356_vm0, %v783_v8 }
 0x327   : > { %789 = vst.msk [vmem:[%s329_s25 + $0x28] sm:$0xff] %vm356_vm0, %v781_v62 }
 0x328 PF: > { %s18_s27 = sadd.s32 1, %s1001_s27  }
 0x329   : > { %p15_p4 = scmp.ge.s32.totalorder %s18_s27, 4  }
 0x32b   :  { %17 = sbr.rel (!%p15_p4) target bundleno = 1 (0x1), region = 85 }

// kernel: _lambda_.9
= control target key start
LH: loop header
LB: loop body
LE: loop exit
PB: predicated region body
PF: predicated region fallthrough
CT: control target
= control target key end

     0   :  { %s3429_s24 = smov 0   ;;  %s4062_s0 = inlined_call_operand.vmem [shape: f32[8,16,32], index: 0, kind: input, shape index: {}]   ;;  %s4063_s1 = inlined_call_operand.vmem [shape: f32[1,32], index: 1, kind: input, shape index: {}]   ;;  %s4064_s2 = inlined_call_operand.vmem [shape: f32[1,32], index: 2, kind: input, shape index: {}]   ;;  %s4065_s3 = inlined_call_operand.vmem [shape: bf16[32,96], index: 3, kind: input, shape index: {}]   ;;  %s4066_s4 = inlined_call_operand.vmem [shape: bf16[32,32], index: 4, kind: input, shape index: {}]   ;;  %s4067_s5 = inlined_call_operand.vmem [shape: f32[1,32], index: 5, kind: input, shape index: {}]   ;;  %s4068_s6 = inlined_call_operand.vmem [shape: f32[4,1,16,16], index: 6, kind: input, shape index: {}]   ;;  %s4069_s7 = inlined_call_operand.vmem [shape: f32[8,16,32], index: 7, kind: output, shape index: {}]  }
   0x1 LB: > { %s2769_s25 = sadd.s32 4294967295, %s3371_s24   ;;  %p2773_p0 = scmp.ge.s32.totalorder %s3371_s24, 1  ;;  %s3371_s24 = sphi %s3429_s24, %s17_s24  }
   0x2   : > { %p239_p1 = scmp.lt.s32.totalorder %s3371_s24, 3 }
   0x4   : > { %p240_p2 = pnand %p2773_p0, %p239_p1 }
   0x5   : > { %s2774_s26 = sshll.u32 (!%p240_p2), %s2769_s25, 2  ;;  %vm296_vm0 = vcmask (!%p240_p2), 261120   ;;  %v3217_v56 = vld [vmem:[%s4065_s3] sm:$0xff] (!%p240_p2)   ;;  %v3218_v57 = vld [vmem:[%s4065_s3 + $0x8] sm:$0xff] (!%p240_p2)   ;;  %vm3374_vm1 = vmmov (!%p240_p2), 0   ;;  %s3375_s16 = smov (!%p240_p2), 96  }
   0x6   : > { %243 = sbr.rel (%p240_p2) target bundleno = 3689 (0xe69), region = 48  ;;  %p274_p3 = scmp.lt.s32.totalorder (!%p240_p2), %s2774_s26, 7  ;;  %2913 = vmatprep.subr.bf16.mxu0 (!%p240_p2), %v3217_v56  ;;  %3129 = vmatprep.subr.bf16.mxu1 (!%p240_p2), %v3217_v56  ;;  %vm538_vm2 = vcmask (!%p240_p2), 64512   ;;  %vm736_vm3 = vcmask (!%p240_p2), 130048   ;;  %vm2590_vm4 = vcmask (!%p240_p2), 195584  }
   0x7   : > { %2914 = vmatpush3.bf16.msra.mxu0 (!%p240_p2), %v3217_v56  ;;  %3131 = vmatpush3.bf16.msra.mxu1 (!%p240_p2), %v3217_v56  ;;  %s3376_s21 = smov (!%p240_p2), 64   ;;  %s3377_s22 = smov (!%p240_p2), 88  }
   0x8   : > { %2915 = vmatprep.subr.bf16.mxu0 (!%p240_p2), %v3218_v57  ;;  %3130 = vmatprep.subr.bf16.mxu1 (!%p240_p2), %v3218_v57  ;;  %s3378_s23 = smov (!%p240_p2), 120   ;;  %s3379_s8 = smov (!%p240_p2), 56  }
   0x9   : > { %s3380_s9 = smov (!%p240_p2), 80   ;;  %s3381_s10 = smov (!%p240_p2), 112  }
   0xa   : > { %s3382_s15 = smov (!%p240_p2), 48   ;;  %s3384_s17 = smov (!%p240_p2), 104  }
   0xb   : > { %2916 = vmatpush3.bf16.msra.mxu0 (!%p240_p2), %v3218_v57  ;;  %3132 = vmatpush3.bf16.msra.mxu1 (!%p240_p2), %v3218_v57  ;;  %s3387_s25 = smov (!%p240_p2), 16  }
   0xd   : > { %s4071_s26 = smov (!%p274_p3, %s2774_s26), 7 }
   0xe   : > { %s2835_s27 = sshll.u32 %s4071_s26, 4 }
   0xf   : > { %s278_s30 = scalar_lea.vmem %s4062_s0, %s2835_s27  ;;  %s285_s14 = scalar_lea.vmem %s4069_s7, %s2835_s27 }
  0x10   : > { %v288_v0 = vld [vmem:[%s278_s30] sm:$0xff]  ;;  %v290_v1 = vld [vmem:[%s278_s30 + $0x10] sm:$0xff]  ;;  %v289_v2 = vld [vmem:[%s278_s30 + $0x8] sm:$0xff] }
  0x11   : > { %v297_v3 = vsel %vm296_vm0, %v288_v0, 0.0  ;;  %v303_v4 = vsel %vm296_vm0, %v290_v1, 0.0  ;;  %v291_v5 = vld [vmem:[%s278_s30 + $0x18] sm:$0xff]  ;;  %v300_v6 = vsel %vm296_vm0, %v289_v2, 0.0  ;;  %v292_v8 = vld [vmem:[%s278_s30 + $0x20] sm:$0xff]  ;;  %v293_v9 = vld [vmem:[%s278_s30 + $0x28] sm:$0xff] }
  0x12   : > { %298 = vadd.xlane.f32.xlu0 %v297_v3  ;;  %304 = vadd.xlane.f32.xlu1 %v303_v4  ;;  %v306_v7 = vsel %vm296_vm0, %v291_v5, 0.0  ;;  %v309_v10 = vsel %vm296_vm0, %v292_v8, 0.0  ;;  %v312_v11 = vsel %vm296_vm0, %v293_v9, 0.0  ;;  %v294_v12 = vld [vmem:[%s278_s30 + $0x30] sm:$0xff]  ;;  %v295_v13 = vld [vmem:[%s278_s30 + $0x38] sm:$0xff] }
  0x13   : > { %v315_v14 = vsel %vm296_vm0, %v294_v12, 0.0  ;;  %v318_v15 = vsel %vm296_vm0, %v295_v13, 0.0 }
  0x16   : > { %301 = vadd.xlane.f32.xlu0 %v300_v6  ;;  %307 = vadd.xlane.f32.xlu1 %v306_v7 }
  0x1a   : > { %310 = vadd.xlane.f32.xlu0 %v309_v10  ;;  %313 = vadd.xlane.f32.xlu1 %v312_v11 }
  0x1e   : > { %316 = vadd.xlane.f32.xlu0 %v315_v14  ;;  %319 = vadd.xlane.f32.xlu1 %v318_v15 }
  0x9f   : > { %v299_v16 = vpop.xlane.xlu0 %298  ;;  %v305_v17 = vpop.xlane.xlu1 %304 }
  0xa0   : > { %v322_v18 = vmul.f32 0.03125, %v299_v16  ;;  %v324_v19 = vmul.f32 0.03125, %v305_v17 }
  0xa2   : > { %v3453_v20 = vsub.f32 %v288_v0, %v322_v18  ;;  %v3455_v21 = vsub.f32 %v290_v1, %v324_v19  ;;  %v2780_v19 = vld [vmem:[%s4063_s1] ss:$0 sm:$0xff] }
  0xa3   : > { %v302_v22 = vpop.xlane.xlu0 %301  ;;  %v308_v23 = vpop.xlane.xlu1 %307 }
  0xa4   : > { %v323_v24 = vmul.f32 0.03125, %v302_v22  ;;  %v325_v25 = vmul.f32 0.03125, %v308_v23  ;;  %v338_v26 = vmul.f32 %v3453_v20, %v3453_v20  ;;  %v340_v27 = vmul.f32 %v3455_v21, %v3455_v21 }
  0xa6   : > { %v3461_v28 = vsub.f32 %v289_v2, %v323_v24  ;;  %v3463_v29 = vsub.f32 %v291_v5, %v325_v25  ;;  %v346_v30 = vsel %vm296_vm0, %v338_v26, 0.0  ;;  %v352_v33 = vsel %vm296_vm0, %v340_v27, 0.0  ;;  %v2781_v27 = vld [vmem:[%s4064_s2] ss:$0 sm:$0xff] }
  0xa7   : > { %347 = vadd.xlane.f32.xlu0 %v346_v30  ;;  %v311_v31 = vpop.xlane.xlu0 %310  ;;  %v314_v32 = vpop.xlane.xlu1 %313 }
  0xa8   : > { %v326_v34 = vmul.f32 0.03125, %v311_v31  ;;  %v327_v35 = vmul.f32 0.03125, %v314_v32  ;;  %v339_v36 = vmul.f32 %v3461_v28, %v3461_v28  ;;  %v341_v37 = vmul.f32 %v3463_v29, %v3463_v29 }
  0xaa   : > { %v3471_v38 = vsub.f32 %v292_v8, %v326_v34  ;;  %v3473_v39 = vsub.f32 %v293_v9, %v327_v35  ;;  %v349_v40 = vsel %vm296_vm0, %v339_v36, 0.0  ;;  %v355_v43 = vsel %vm296_vm0, %v341_v37, 0.0 }
  0xab   : > { %353 = vadd.xlane.f32.xlu0 %v352_v33  ;;  %350 = vadd.xlane.f32.xlu1 %v349_v40  ;;  %v317_v41 = vpop.xlane.xlu0 %316  ;;  %v320_v42 = vpop.xlane.xlu1 %319 }
  0xac   : > { %v328_v44 = vmul.f32 0.03125, %v317_v41  ;;  %v329_v45 = vmul.f32 0.03125, %v320_v42  ;;  %v342_v46 = vmul.f32 %v3471_v38, %v3471_v38  ;;  %v343_v47 = vmul.f32 %v3473_v39, %v3473_v39 }
  0xae   : > { %v3481_v48 = vsub.f32 %v294_v12, %v328_v44  ;;  %v3483_v49 = vsub.f32 %v295_v13, %v329_v45  ;;  %v358_v50 = vsel %vm296_vm0, %v342_v46, 0.0  ;;  %v361_v51 = vsel %vm296_vm0, %v343_v47, 0.0 }
  0xaf   : > { %356 = vadd.xlane.f32.xlu1 %v355_v43  ;;  %359 = vadd.xlane.f32.xlu0 %v358_v50 }
  0xb0   : > { %v344_v52 = vmul.f32 %v3481_v48, %v3481_v48  ;;  %v345_v53 = vmul.f32 %v3483_v49, %v3483_v49 }
  0xb2   : > { %v364_v54 = vsel %vm296_vm0, %v344_v52, 0.0  ;;  %v367_v55 = vsel %vm296_vm0, %v345_v53, 0.0 }
  0xb3   : > { %362 = vadd.xlane.f32.xlu1 %v361_v51  ;;  %365 = vadd.xlane.f32.xlu0 %v364_v54 }
  0xb7   : > { %368 = vadd.xlane.f32.xlu1 %v367_v55 }
 0x134   : > { %v348_v58 = vpop.xlane.xlu0 %347 }
 0x135   : > { %v370_v59 = vmul.f32 0.03125, %v348_v58 }
 0x137   : > { %v378_v60 = vadd.f32 1e-05, %v370_v59 }
 0x138   : > { %v351_v61 = vpop.xlane.xlu1 %350  ;;  %v354_v62 = vpop.xlane.xlu0 %353 }
 0x139   : > { %3221 = vrsqrt.f32 %v378_v60  ;;  %v371_v63 = vmul.f32 0.03125, %v351_v61  ;;  %v372_v0 = vmul.f32 0.03125, %v354_v62 }
 0x13b   : > { %v379_v1 = vadd.f32 1e-05, %v371_v63  ;;  %v380_v2 = vadd.f32 1e-05, %v372_v0 }
 0x13c   : > { %v357_v3 = vpop.xlane.xlu1 %356  ;;  %v360_v4 = vpop.xlane.xlu0 %359 }
 0x13d   : > { %3223 = vrsqrt.f32 %v379_v1  ;;  %v373_v5 = vmul.f32 0.03125, %v357_v3  ;;  %v374_v6 = vmul.f32 0.03125, %v360_v4 }
 0x13e   : > { %3225 = vrsqrt.f32 %v380_v2 }
 0x13f   : > { %v381_v7 = vadd.f32 1e-05, %v373_v5  ;;  %v382_v8 = vadd.f32 1e-05, %v374_v6 }
 0x140   : > { %v363_v9 = vpop.xlane.xlu1 %362  ;;  %v366_v10 = vpop.xlane.xlu0 %365 }
 0x141   : > { %3227 = vrsqrt.f32 %v381_v7  ;;  %v375_v11 = vmul.f32 0.03125, %v363_v9  ;;  %v376_v12 = vmul.f32 0.03125, %v366_v10 }
 0x142   : > { %3229 = vrsqrt.f32 %v382_v8 }
 0x143   : > { %v3222_v13 = vpop.eup %3221  ;;  %v383_v14 = vadd.f32 1e-05, %v375_v11  ;;  %v384_v15 = vadd.f32 1e-05, %v376_v12 }
 0x144   : > { %v369_v16 = vpop.xlane.xlu1 %368  ;;  %v394_v17 = vmul.f32 %v3222_v13, %v3453_v20  ;;  %v533_v13 = vld [vmem:[%s4068_s6] sm:$0xff] }
 0x145   : > { %3231 = vrsqrt.f32 %v383_v14  ;;  %v377_v18 = vmul.f32 0.03125, %v369_v16 }
 0x146   : > { %3233 = vrsqrt.f32 %v384_v15  ;;  %v409_v26 = vmul.f32 %v2780_v19, %v394_v17  ;;  %v534_v15 = vld [vmem:[%s4068_s6 + $0x8] sm:$0xff] }
 0x147   : > { %v3224_v22 = vpop.eup %3223  ;;  %v385_v23 = vadd.f32 1e-05, %v377_v18 }
 0x148   : > { %v3226_v24 = vpop.eup %3225  ;;  %v395_v25 = vmul.f32 %v3224_v22, %v3461_v28  ;;  %v424_v33 = vadd.f32 %v2781_v27, %v409_v26 }
 0x149   : > { %3235 = vrsqrt.f32 %v385_v23  ;;  %v396_v20 = vmul.f32 %v3226_v24, %v3455_v21 }
 0x14a   : > { %v410_v30 = vmul.f32 %v2780_v19, %v395_v25 }
 0x14b   : > { %v3228_v31 = vpop.eup %3227  ;;  %v411_v36 = vmul.f32 %v2780_v19, %v396_v20 }
 0x14c   : > { %v3230_v32 = vpop.eup %3229  ;;  %v425_v34 = vadd.f32 %v2781_v27, %v410_v30  ;;  %v397_v35 = vmul.f32 %v3228_v31, %v3463_v29 }
 0x14d   : > { %v398_v37 = vmul.f32 %v3230_v32, %v3471_v38  ;;  %v426_v43 = vadd.f32 %v2781_v27, %v411_v36 }
 0x14e   : > { %v432_v40 = vpack.c.bf16 %v425_v34, %v424_v33  ;;  %v412_v28 = vmul.f32 %v2780_v19, %v397_v35 }
 0x14f   : > { %v3232_v41 = vpop.eup %3231  ;;  %v413_v45 = vmul.f32 %v2780_v19, %v398_v37 }
 0x150   : > { %v3234_v42 = vpop.eup %3233  ;;  %2917 = vmatprep.mubr.msk.bf16.mxu0 %vm296_vm0, %v432_v40  ;;  %v427_v44 = vadd.f32 %v2781_v27, %v412_v28  ;;  %v399_v21 = vmul.f32 %v3232_v41, %v3473_v39 }
 0x151   : > { %v400_v46 = vmul.f32 %v3234_v42, %v3481_v48  ;;  %v428_v29 = vadd.f32 %v2781_v27, %v413_v45  ;;  %v3373_v48 = vmov 0.0  }
 0x152   : > { %v433_v47 = vpack.c.bf16 %v427_v44, %v426_v43  ;;  %v414_v50 = vmul.f32 %v2780_v19, %v399_v21  ;;  %2925 = vmatprep.subr.bf16.mxu1 %v3373_v48  ;;  %2937 = vmatprep.subr.bf16.mxu0 %v3373_v48 }
 0x153   : > { %v3236_v51 = vpop.eup %3235  ;;  %v415_v53 = vmul.f32 %v2780_v19, %v400_v46 }
 0x154   : > { %2918 = vmatmul.mubr.msk.bf16.vlgmr.msra.gmra.mrb[0].mxu0 %vm296_vm0, %v433_v47  ;;  %v429_v38 = vadd.f32 %v2781_v27, %v414_v50  ;;  %v401_v52 = vmul.f32 %v3236_v51, %v3483_v49 }
 0x155   : > { %v430_v56 = vadd.f32 %v2781_v27, %v415_v53  ;;  %2939 = vmatprep.mubr.msk.bf16.mxu0 %vm3374_vm1, %v3373_v48 }
 0x156   : > { %v434_v54 = vpack.c.bf16 %v429_v38, %v428_v29  ;;  %v416_v55 = vmul.f32 %v2780_v19, %v401_v52 }
 0x158   : > { %2921 = vmatprep.mubr.msk.bf16.mxu1 %vm296_vm0, %v434_v54  ;;  %v431_v57 = vadd.f32 %v2781_v27, %v416_v55 }
 0x15a   : > { %v435_v39 = vpack.c.bf16 %v431_v57, %v430_v56 }
 0x15c   : > { %2922 = vmatmul.mubr.msk.bf16.vlgmr.msra.gmra.mrb[0].mxu1 %vm296_vm0, %v435_v39 }
 0x15d   : > { %2927 = vmatprep.mubr.msk.bf16.mxu1 %vm3374_vm1, %v3373_v48 }
 0x227   : > { %v2919_v49 = vpop.f32.mrb[0].mxu0 }
 0x228   : > { %v498_v58 = vpop.f32.mrb[1].mxu0 }
 0x229   : > { %v2920_v59 = vpop.f32.mrb[2].mxu0 }
 0x22a   : > { %v3523_v60 = vpack.c.bf16 %v2920_v59, %v2919_v49  ;;  %v501_v61 = vpop.f32.mrb[3].mxu0 }
 0x22b   : > { %v3525_v62 = vpack.c.bf16 %v501_v61, %v498_v58 }
 0x22c   : > { %587 = vrot.lane.b32.xlu1 %v3523_v60, %s3375_s16 }
 0x22d   : > { %536 = vrot.lane.b32.xlu0 %v3525_v62, %s3375_s16 }
 0x22f   : > { %v2923_v63 = vpop.f32.mrb[0].mxu1 }
 0x230   : > { %v514_v0 = vpop.f32.mrb[1].mxu1 }
 0x231   : > { %v2924_v1 = vpop.f32.mrb[2].mxu1 }
 0x232   : > { %v3529_v2 = vpack.c.bf16 %v2924_v1, %v2923_v63  ;;  %v517_v3 = vpop.f32.mrb[3].mxu1 }
 0x233   : > { %v3531_v4 = vpack.c.bf16 %v517_v3, %v514_v0 }
 0x235   : > { %637 = vrot.lane.b32.xlu1 %v3531_v4, %s3375_s16 }
 0x239   : > { %687 = vrot.lane.b32.xlu1 %v3529_v2, %s3375_s16  ;;  %s3383_s16 = smov 72  }
 0x29e   : > { %v588_v7 = vpop.permute.xlu1 %587 }
 0x29f   : > { %v537_v5 = vpop.permute.xlu0 %536  ;;  %v593_v9 = vsel %vm538_vm2, %v588_v7, 0 }
 0x2a0   : > { %v543_v6 = vsel %vm538_vm2, %v537_v5, 0 }
 0x2a1   : > { %2926 = vmatpush3.bf16.xpose.msra.mxu1 %v543_v6 }
 0x2a2   : > { %2931 = vmatprep.subr.bf16.mxu1 %v3373_v48 }
 0x2a7   : > { %v638_v8 = vpop.permute.xlu1 %637 }
 0x2a8   : > { %v643_v10 = vsel %vm538_vm2, %v638_v8, 0  ;;  %2928 = vmatmul.mubr.msk.bf16.vlgmr.msra.gmra.mrb[4].mxu1 %vm538_vm2, %v3525_v62 }
 0x2a9   : > { %2932 = vmatpush3.bf16.xpose.msra.mxu1 %v593_v9  ;;  %2938 = vmatpush3.bf16.xpose.msra.mxu0 %v643_v10 }
 0x2aa   : > { %2933 = vmatprep.mubr.msk.bf16.mxu1 %vm3374_vm1, %v3373_v48  ;;  %2943 = vmatprep.subr.bf16.mxu1 %v3373_v48 }
 0x2ab   : > { %2949 = vmatprep.subr.bf16.mxu0 %v3373_v48  ;;  %v688_v11 = vpop.permute.xlu1 %687 }
 0x2ac   : > { %v693_v12 = vsel %vm538_vm2, %v688_v11, 0 }
 0x2b0   : > { %2934 = vmatmul.mubr.msk.bf16.vlgmr.msra.gmra.mrb[8].mxu1 %vm538_vm2, %v3523_v60  ;;  %2940 = vmatmul.mubr.msk.bf16.vlgmr.msra.gmra.mrb[4].mxu0 %vm538_vm2, %v3531_v4 }
 0x2b1   : > { %2944 = vmatpush3.bf16.xpose.msra.mxu1 %v693_v12  ;;  %2945 = vmatprep.mubr.msk.bf16.mxu1 %vm3374_vm1, %v3373_v48 }
 0x2b2   : > { %2955 = vmatprep.subr.bf16.mxu1 %v3373_v48  ;;  %2951 = vmatprep.mubr.msk.bf16.mxu0 %vm3374_vm1, %v3373_v48 }
 0x2b8   : > { %2946 = vmatmul.mubr.msk.bf16.vlgmr.msra.gmra.mrb[12].mxu1 %vm538_vm2, %v3529_v2 }
 0x2b9   : > { %2957 = vmatprep.mubr.msk.bf16.mxu1 %vm3374_vm1, %v3373_v48 }
 0x37b   : > { %v579_v14 = vpop.f32.mrb[4].mxu1 }
 0x37c   : > { %v580_v16 = vadd.f32 %v579_v14, %v533_v13  ;;  %v2929_v17 = vpop.f32.mrb[5].mxu1 }
 0x37d   : > { %v582_v18 = vpop.f32.mrb[6].mxu1 }
 0x37e   : > { %v583_v19 = vadd.f32 %v582_v18, %v534_v15  ;;  %v2930_v22 = vpop.f32.mrb[7].mxu1  ;;  %v737_v23 = vsel %vm736_vm3, %v580_v16, -inf }
 0x37f   : > { %738 = vmax.xlane.f32.xlu0 %v737_v23 }
 0x380   : > { %v740_v24 = vsel %vm736_vm3, %v583_v19, -inf }
 0x381   : > { %741 = vmax.xlane.f32.xlu1 %v740_v24 }
 0x383   : > { %v629_v25 = vpop.f32.mrb[8].mxu1  ;;  %v679_v26 = vpop.f32.mrb[4].mxu0 }
 0x384   : > { %v630_v27 = vadd.f32 %v629_v25, %v533_v13  ;;  %v2935_v20 = vpop.f32.mrb[9].mxu1  ;;  %v2941_v30 = vpop.f32.mrb[5].mxu0  ;;  %v680_v28 = vadd.f32 %v679_v26, %v533_v13 }
 0x385   : > { %v632_v31 = vpop.f32.mrb[10].mxu1  ;;  %v682_v32 = vpop.f32.mrb[6].mxu0 }
 0x386   : > { %v3567_v33 = vadd.f32 %v632_v31, %v534_v15  ;;  %v683_v34 = vadd.f32 %v682_v32, %v534_v15  ;;  %v2936_v35 = vpop.f32.mrb[11].mxu1  ;;  %v2942_v36 = vpop.f32.mrb[7].mxu0  ;;  %v743_v37 = vsel %vm736_vm3, %v630_v27, -inf  ;;  %v749_v47 = vsel %vm736_vm3, %v680_v28, -inf }
 0x387   : > { %744 = vmax.xlane.f32.xlu0 %v743_v37 }
 0x388   : > { %v752_v40 = vsel %vm736_vm3, %v683_v34, -inf  ;;  %v746_v41 = vsel %vm736_vm3, %v3567_v33, -inf }
 0x389   : > { %753 = vmax.xlane.f32.xlu1 %v752_v40 }
 0x38b   : > { %747 = vmax.xlane.f32.xlu0 %v746_v41  ;;  %v729_v42 = vpop.f32.mrb[12].mxu1 }
 0x38c   : > { %v2947_v43 = vpop.f32.mrb[13].mxu1  ;;  %v730_v21 = vadd.f32 %v729_v42, %v533_v13 }
 0x38d   : > { %v732_v44 = vpop.f32.mrb[14].mxu1 }
 0x38e   : > { %v3573_v45 = vadd.f32 %v732_v44, %v534_v15  ;;  %v2948_v46 = vpop.f32.mrb[15].mxu1  ;;  %v755_v51 = vsel %vm736_vm3, %v730_v21, -inf }
 0x38f   : > { %750 = vmax.xlane.f32.xlu0 %v749_v47 }
 0x390   : > { %v758_v50 = vsel %vm736_vm3, %v3573_v45, -inf }
 0x391   : > { %759 = vmax.xlane.f32.xlu1 %v758_v50 }
 0x393   : > { %756 = vmax.xlane.f32.xlu0 %v755_v51 }
 0x40c   : > { %v739_v29 = vpop.xlane.xlu0 %738 }
 0x40d   : > { %v761_v38 = vsub.f32 %v580_v16, %v739_v29 }
 0x40e   : > { %v742_v52 = vpop.xlane.xlu1 %741 }
 0x40f   : > { %v769_v53 = vmul.f32 1.442695, %v761_v38  ;;  %v762_v54 = vsub.f32 %v583_v19, %v742_v52 }
 0x411   : > { %3237 = vpow2.f32 %v769_v53  ;;  %v771_v55 = vmul.f32 1.442695, %v762_v54 }
 0x413   : > { %3239 = vpow2.f32 %v771_v55 }
 0x414   : > { %v745_v56 = vpop.xlane.xlu0 %744 }
 0x415   : > { %v763_v61 = vsub.f32 %v630_v27, %v745_v56 }
 0x416   : > { %v754_v57 = vpop.xlane.xlu1 %753 }
 0x417   : > { %v766_v39 = vsub.f32 %v683_v34, %v754_v57  ;;  %v773_v6 = vmul.f32 1.442695, %v763_v61 }
 0x418   : > { %v748_v49 = vpop.xlane.xlu0 %747 }
 0x419   : > { %v779_v58 = vmul.f32 1.442695, %v766_v39  ;;  %v764_v15 = vsub.f32 %v3567_v33, %v748_v49 }
 0x41b   : > { %v3579_v59 = vpop.eup %3237  ;;  %3241 = vpow2.f32 %v779_v58  ;;  %v775_v17 = vmul.f32 1.442695, %v764_v15 }
 0x41c   : > { %v751_v63 = vpop.xlane.xlu0 %750  ;;  %v785_v0 = vsel %vm736_vm3, %v3579_v59, 0.0 }
 0x41d   : > { %v3583_v1 = vpop.eup %3239  ;;  %v765_v3 = vsub.f32 %v680_v28, %v751_v63  ;;  %786 = vadd.xlane.f32.xlu0 %v785_v0 }
 0x41e   : > { %v788_v5 = vsel %vm736_vm3, %v3583_v1, 0.0  ;;  %v760_v25 = vpop.xlane.xlu1 %759 }
 0x41f   : > { %v777_v7 = vmul.f32 1.442695, %v765_v3  ;;  %789 = vadd.xlane.f32.xlu1 %v788_v5  ;;  %v768_v26 = vsub.f32 %v3573_v45, %v760_v25  ;;  %v2797_v25 = vld [vmem:[%s4068_s6 + $0x18] sm:$0xff] }
 0x420   : > { %v757_v14 = vpop.xlane.xlu0 %756 }
 0x421   : > { %3243 = vpow2.f32 %v777_v7  ;;  %v767_v16 = vsub.f32 %v730_v21, %v757_v14  ;;  %v783_v27 = vmul.f32 1.442695, %v768_v26 }
 0x422   : > { %3245 = vpow2.f32 %v773_v6 }
 0x423   : > { %v781_v18 = vmul.f32 1.442695, %v767_v16  ;;  %3247 = vpow2.f32 %v775_v17 }
 0x425   : > { %v3587_v8 = vpop.eup %3241  ;;  %3249 = vpow2.f32 %v781_v18 }
 0x426   : > { %v800_v9 = vsel %vm736_vm3, %v3587_v8, 0.0  ;;  %3251 = vpow2.f32 %v783_v27 }
 0x427   : > { %801 = vadd.xlane.f32.xlu1 %v800_v9 }
 0x42b   : > { %v3591_v10 = vpop.eup %3243 }
 0x42c   : > { %v797_v11 = vsel %vm736_vm3, %v3591_v10, 0.0  ;;  %v3595_v12 = vpop.eup %3245 }
 0x42d   : > { %798 = vadd.xlane.f32.xlu0 %v797_v11  ;;  %v791_v13 = vsel %vm736_vm3, %v3595_v12, 0.0  ;;  %v3604_v19 = vpop.eup %3247 }
 0x42e   : > { %v794_v23 = vsel %vm736_vm3, %v3604_v19, 0.0 }
 0x42f   : > { %v3606_v22 = vpop.eup %3249 }
 0x430   : > { %v803_v24 = vsel %vm736_vm3, %v3606_v22, 0.0  ;;  %v3618_v20 = vpop.eup %3251 }
 0x431   : > { %792 = vadd.xlane.f32.xlu0 %v791_v13  ;;  %v806_v30 = vsel %vm736_vm3, %v3618_v20, 0.0 }
 0x438   : > { %876 = vrot.lane.b32.xlu1 %v3523_v60, %s3376_s21 }
 0x43c   : > { %923 = vrot.lane.b32.xlu1 %v3531_v4, %s3376_s21 }
 0x440   : > { %970 = vrot.lane.b32.xlu1 %v3529_v2, %s3376_s21 }
 0x447   : > { %829 = vrot.lane.b32.xlu0 %v3525_v62, %s3376_s21 }
 0x464   : > { %795 = vadd.xlane.f32.xlu1 %v794_v23  ;;  %v2796_v23 = vld [vmem:[%s4068_s6 + $0x10] sm:$0xff] }
 0x466   : > { %804 = vadd.xlane.f32.xlu0 %v803_v24 }
 0x475   : > { %1073 = vrot.lane.b32.xlu1 %v3523_v60, %s3377_s22 }
 0x47c   : > { %1022 = vrot.lane.b32.xlu0 %v3525_v62, %s3377_s22 }
 0x480   : > { %1020 = vrot.lane.b32.xlu0 %v3525_v62, %s3378_s23 }
 0x484   : > { %1071 = vrot.lane.b32.xlu0 %v3523_v60, %s3378_s23 }
 0x488   : > { %1122 = vrot.lane.b32.xlu0 %v3531_v4, %s3378_s23 }
 0x499   : > { %807 = vadd.xlane.f32.xlu1 %v806_v30 }
 0x4aa   : > { %1124 = vrot.lane.b32.xlu1 %v3531_v4, %s3377_s22  ;;  %v787_v32 = vpop.xlane.xlu0 %786 }
 0x4ac   : > { %v790_v31 = vpop.xlane.xlu1 %789 }
 0x4ad   : > { %3253 = vrcp.f32 %v790_v31 }
 0x4ae   : > { %1175 = vrot.lane.b32.xlu1 %v3529_v2, %s3377_s22  ;;  %3255 = vrcp.f32 %v787_v32  ;;  %s3385_s22 = smov 40  }
 0x4b2   : > { %1173 = vrot.lane.b32.xlu1 %v3529_v2, %s3378_s23  ;;  %s3386_s23 = smov 8  }
 0x4b4   : > { %v802_v33 = vpop.xlane.xlu1 %801 }
 0x4b7   : > { %v3254_v36 = vpop.eup %3253 }
 0x4b8   : > { %v877_v34 = vpop.permute.xlu1 %876  ;;  %v3256_v40 = vpop.eup %3255  ;;  %v818_v28 = vmul.f32 %v3254_v36, %v3583_v1 }
 0x4b9   : > { %2956 = vmatpush3.bf16.msra.mxu1 %v877_v34  ;;  %v817_v41 = vmul.f32 %v3256_v40, %v3579_v59 }
 0x4ba   : > { %v799_v35 = vpop.xlane.xlu0 %798  ;;  %2967 = vmatprep.subr.bf16.mxu1 %v3373_v48 }
 0x4bb   : > { %3257 = vrcp.f32 %v799_v35  ;;  %v825_v43 = vpack.c.bf16 %v818_v28, %v817_v41 }
 0x4bc   : > { %3259 = vrcp.f32 %v802_v33  ;;  %v924_v21 = vpop.permute.xlu1 %923 }
 0x4be   : > { %v793_v37 = vpop.xlane.xlu0 %792 }
 0x4bf   : > { %3261 = vrcp.f32 %v793_v37 }
 0x4c0   : > { %v971_v51 = vpop.permute.xlu1 %970 }
 0x4c2   : > { %v830_v42 = vpop.permute.xlu0 %829 }
 0x4c3   : > { %2950 = vmatpush3.bf16.msra.mxu0 %v830_v42 }
 0x4c4   : > { %2961 = vmatprep.subr.bf16.mxu0 %v3373_v48 }
 0x4c5   : > { %v3258_v44 = vpop.eup %3257 }
 0x4c6   : > { %2952 = vmatmul.mubr.msk.bf16.vlgmr.msra.gmra.mrb[8].mxu0 %vm736_vm3, %v825_v43  ;;  %v3260_v45 = vpop.eup %3259  ;;  %v821_v46 = vmul.f32 %v3258_v44, %v3591_v10 }
 0x4c7   : > { %2962 = vmatpush3.bf16.msra.mxu0 %v924_v21  ;;  %2963 = vmatprep.mubr.msk.bf16.mxu0 %vm3374_vm1, %v3373_v48  ;;  %v822_v47 = vmul.f32 %v3260_v45, %v3587_v8 }
 0x4c8   : > { %2973 = vmatprep.subr.bf16.mxu0 %v3373_v48 }
 0x4c9   : > { %v827_v50 = vpack.c.bf16 %v822_v47, %v821_v46  ;;  %v3262_v54 = vpop.eup %3261 }
 0x4ca   : > { %v819_v56 = vmul.f32 %v3262_v54, %v3595_v12 }
 0x4ce   : > { %2964 = vmatmul.mubr.msk.bf16.vlgmr.msra.gmra.mrb[12].mxu0 %vm736_vm3, %v827_v50 }
 0x4cf   : > { %2975 = vmatprep.mubr.msk.bf16.mxu0 %vm3374_vm1, %v3373_v48 }
 0x4f1   : > { %v796_v29 = vpop.xlane.xlu1 %795 }
 0x4f2   : > { %3263 = vrcp.f32 %v796_v29 }
 0x4f3   : > { %v805_v38 = vpop.xlane.xlu0 %804 }
 0x4f4   : > { %3265 = vrcp.f32 %v805_v38 }
 0x4f5   : > { %v1074_v58 = vpop.permute.xlu1 %1073 }
 0x4f6   : > { %v1079_v9 = vsel %vm538_vm2, %v1074_v58, 0 }
 0x4f7   : > { %v1023_v52 = vpop.permute.xlu0 %1022 }
 0x4f8   : > { %v1028_v53 = vsel %vm538_vm2, %v1023_v52, 0 }
 0x4f9   : > { %2974 = vmatpush3.bf16.xpose.msra.mxu0 %v1028_v53 }
 0x4fa   : > { %2985 = vmatprep.subr.bf16.mxu0 %v3373_v48 }
 0x4fb   : > { %v1021_v39 = vpop.permute.xlu0 %1020 }
 0x4fc   : > { %v3264_v55 = vpop.eup %3263 }
 0x4fd   : > { %v820_v57 = vmul.f32 %v3264_v55, %v3604_v19 }
 0x4fe   : > { %v3266_v1 = vpop.eup %3265 }
 0x4ff   : > { %v826_v49 = vpack.c.bf16 %v820_v57, %v819_v56  ;;  %v1072_v0 = vpop.permute.xlu0 %1071  ;;  %v823_v5 = vmul.f32 %v3266_v1, %v3606_v22 }
 0x500   : > { %2976 = vmatmul.mubr.msk.bf16.vlgmr.msra.gmra.mrb[16].mxu0 %vm538_vm2, %v1021_v39 }
 0x501   : > { %2958 = vmatmul.mubr.msk.bf16.vlgmr.msra.gmra.mrb[16].mxu1 %vm736_vm3, %v826_v49  ;;  %2987 = vmatprep.mubr.msk.bf16.mxu0 %vm3374_vm1, %v3373_v48 }
 0x502   : > { %2968 = vmatpush3.bf16.msra.mxu1 %v971_v51  ;;  %2969 = vmatprep.mubr.msk.bf16.mxu1 %vm3374_vm1, %v3373_v48 }
 0x503   : > { %2979 = vmatprep.subr.bf16.mxu1 %v3373_v48  ;;  %v1123_v6 = vpop.permute.xlu0 %1122 }
 0x526   : > { %v808_v59 = vpop.xlane.xlu1 %807 }
 0x527   : > { %3267 = vrcp.f32 %v808_v59 }
 0x52a   : > { %v1125_v61 = vpop.permute.xlu1 %1124 }
 0x52b   : > { %v1130_v63 = vsel %vm538_vm2, %v1125_v61, 0 }
 0x52c   : > { %2986 = vmatpush3.bf16.xpose.msra.mxu0 %v1130_v63 }
 0x52d   : > { %2997 = vmatprep.subr.bf16.mxu0 %v3373_v48 }
 0x52e   : > { %v1176_v10 = vpop.permute.xlu1 %1175 }
 0x52f   : > { %v1181_v11 = vsel %vm538_vm2, %v1176_v10, 0 }
 0x531   : > { %v3268_v3 = vpop.eup %3267 }
 0x532   : > { %v824_v7 = vmul.f32 %v3268_v3, %v3618_v20  ;;  %v1174_v12 = vpop.permute.xlu1 %1173 }
 0x533   : > { %2988 = vmatmul.mubr.msk.bf16.vlgmr.msra.gmra.mrb[20].mxu0 %vm538_vm2, %v1123_v6 }
 0x534   : > { %v828_v8 = vpack.c.bf16 %v824_v7, %v823_v5  ;;  %2999 = vmatprep.mubr.msk.bf16.mxu0 %vm3374_vm1, %v3373_v48 }
 0x536   : > { %2970 = vmatmul.mubr.msk.bf16.vlgmr.msra.gmra.mrb[20].mxu1 %vm736_vm3, %v828_v8 }
 0x537   : > { %2980 = vmatpush3.bf16.xpose.msra.mxu1 %v1079_v9  ;;  %2981 = vmatprep.mubr.msk.bf16.mxu1 %vm3374_vm1, %v3373_v48 }
 0x538   : > { %2991 = vmatprep.subr.bf16.mxu1 %v3373_v48 }
 0x53e   : > { %2982 = vmatmul.mubr.msk.bf16.vlgmr.msra.gmra.mrb[24].mxu1 %vm538_vm2, %v1072_v0 }
 0x53f   : > { %2992 = vmatpush3.bf16.xpose.msra.mxu1 %v1181_v11  ;;  %2993 = vmatprep.mubr.msk.bf16.mxu1 %vm3374_vm1, %v3373_v48 }
 0x540   : > { %3003 = vmatprep.subr.bf16.mxu1 %v3373_v48 }
 0x546   : > { %2994 = vmatmul.mubr.msk.bf16.vlgmr.msra.gmra.mrb[28].mxu1 %vm538_vm2, %v1174_v12 }
 0x547   : > { %3005 = vmatprep.mubr.msk.bf16.mxu1 %vm3374_vm1, %v3373_v48 }
 0x599   : > { %v3669_v13 = vpop.f32.mrb[8].mxu0 }
 0x59a   : > { %v2953_v14 = vpop.f32.mrb[9].mxu0 }
 0x59b   : > { %v3671_v15 = vpop.f32.mrb[10].mxu0 }
 0x59c   : > { %v2954_v16 = vpop.f32.mrb[11].mxu0 }
 0x5a1   : > { %v3673_v17 = vpop.f32.mrb[12].mxu0 }
 0x5a2   : > { %v2965_v18 = vpop.f32.mrb[13].mxu0 }
 0x5a3   : > { %v3675_v19 = vpop.f32.mrb[14].mxu0 }
 0x5a4   : > { %v2966_v22 = vpop.f32.mrb[15].mxu0 }
 0x5d3   : > { %v1064_v24 = vpop.f32.mrb[16].mxu0 }
 0x5d4   : > { %v1065_v26 = vadd.f32 %v2796_v23, %v1064_v24  ;;  %v3683_v27 = vpop.f32.mrb[16].mxu1  ;;  %v2977_v20 = vpop.f32.mrb[17].mxu0 }
 0x5d5   : > { %v2959_v30 = vpop.f32.mrb[17].mxu1  ;;  %v1067_v31 = vpop.f32.mrb[18].mxu0 }
 0x5d6   : > { %v1068_v32 = vadd.f32 %v2797_v25, %v1067_v31  ;;  %v3685_v33 = vpop.f32.mrb[18].mxu1  ;;  %v2978_v34 = vpop.f32.mrb[19].mxu0  ;;  %v1224_v35 = vsel %vm736_vm3, %v1065_v26, -inf }
 0x5d7   : > { %1225 = vmax.xlane.f32.xlu0 %v1224_v35  ;;  %v2960_v36 = vpop.f32.mrb[19].mxu1 }
 0x5d8   : > { %v1227_v37 = vsel %vm736_vm3, %v1068_v32, -inf }
 0x5d9   : > { %1228 = vmax.xlane.f32.xlu1 %v1227_v37 }
 0x606   : > { %v1166_v40 = vpop.f32.mrb[20].mxu0 }
 0x607   : > { %v2989_v28 = vpop.f32.mrb[21].mxu0  ;;  %v1167_v55 = vadd.f32 %v2796_v23, %v1166_v40 }
 0x608   : > { %v1169_v41 = vpop.f32.mrb[22].mxu0 }
 0x609   : > { %v1170_v42 = vadd.f32 %v2797_v25, %v1169_v41  ;;  %v3689_v43 = vpop.f32.mrb[20].mxu1  ;;  %v2990_v44 = vpop.f32.mrb[23].mxu0  ;;  %v1236_v61 = vsel %vm736_vm3, %v1167_v55, -inf }
 0x60a   : > { %v2971_v21 = vpop.f32.mrb[21].mxu1 }
 0x60b   : > { %v3691_v45 = vpop.f32.mrb[22].mxu1  ;;  %v1239_v46 = vsel %vm736_vm3, %v1170_v42, -inf }
 0x60c   : > { %1240 = vmax.xlane.f32.xlu1 %v1239_v46  ;;  %v2972_v47 = vpop.f32.mrb[23].mxu1 }
 0x611   : > { %v1115_v50 = vpop.f32.mrb[24].mxu1 }
 0x612   : > { %v1116_v51 = vadd.f32 %v2796_v23, %v1115_v50  ;;  %v2983_v29 = vpop.f32.mrb[25].mxu1 }
 0x613   : > { %v1118_v38 = vpop.f32.mrb[26].mxu1 }
 0x614   : > { %v1119_v52 = vadd.f32 %v2797_v25, %v1118_v38  ;;  %v2984_v53 = vpop.f32.mrb[27].mxu1  ;;  %v1230_v54 = vsel %vm736_vm3, %v1116_v51, -inf }
 0x615   : > { %1231 = vmax.xlane.f32.xlu0 %v1230_v54 }
 0x616   : > { %v1233_v56 = vsel %vm736_vm3, %v1119_v52, -inf }
 0x619   : > { %1234 = vmax.xlane.f32.xlu0 %v1233_v56  ;;  %v1217_v57 = vpop.f32.mrb[28].mxu1 }
 0x61a   : > { %v2995_v39 = vpop.f32.mrb[29].mxu1  ;;  %v1218_v58 = vadd.f32 %v2796_v23, %v1217_v57 }
 0x61b   : > { %v1220_v49 = vpop.f32.mrb[30].mxu1 }
 0x61c   : > { %v2996_v59 = vpop.f32.mrb[31].mxu1  ;;  %v1242_v63 = vsel %vm736_vm3, %v1218_v58, -inf  ;;  %v3701_v0 = vadd.f32 %v2797_v25, %v1220_v49 }
 0x61d   : > { %1363 = vrot.lane.b32.xlu1 %v3523_v60, %s3379_s8  ;;  %1237 = vmax.xlane.f32.xlu0 %v1236_v61 }
 0x61e   : > { %v1245_v1 = vsel %vm736_vm3, %v3701_v0, -inf }
 0x621   : > { %1410 = vrot.lane.b32.xlu1 %v3531_v4, %s3379_s8  ;;  %1243 = vmax.xlane.f32.xlu0 %v1242_v63 }
 0x637   : > { %1316 = vrot.lane.b32.xlu0 %v3525_v62, %s3379_s8 }
 0x645   : > { %1246 = vmax.xlane.f32.xlu1 %v1245_v1 }
 0x656   : > { %1457 = vrot.lane.b32.xlu1 %v3529_v2, %s3379_s8 }
 0x664   : > { %v1226_v3 = vpop.xlane.xlu0 %1225 }
 0x665   : > { %v1248_v5 = vsub.f32 %v1065_v26, %v1226_v3 }
 0x666   : > { %v1229_v6 = vpop.xlane.xlu1 %1228 }
 0x667   : > { %v1256_v7 = vmul.f32 1.442695, %v1248_v5  ;;  %v1249_v8 = vsub.f32 %v1068_v32, %v1229_v6 }
 0x669   : > { %3269 = vpow2.f32 %v1256_v7  ;;  %v1258_v9 = vmul.f32 1.442695, %v1249_v8 }
 0x66b   : > { %3271 = vpow2.f32 %v1258_v9 }
 0x673   : > { %v3706_v10 = vpop.eup %3269 }
 0x674   : > { %v1272_v11 = vsel %vm736_vm3, %v3706_v10, 0.0 }
 0x675   : > { %1273 = vadd.xlane.f32.xlu0 %v1272_v11  ;;  %v3710_v12 = vpop.eup %3271 }
 0x676   : > { %v1275_v14 = vsel %vm736_vm3, %v3710_v12, 0.0 }
 0x67a   : > { %1276 = vadd.xlane.f32.xlu1 %v1275_v14 }
 0x699   : > { %v1241_v16 = vpop.xlane.xlu1 %1240 }
 0x69a   : > { %v1253_v24 = vsub.f32 %v1170_v42, %v1241_v16 }
 0x69c   : > { %v1266_v30 = vmul.f32 1.442695, %v1253_v24 }
 0x69d   : > { %v1364_v18 = vpop.permute.xlu1 %1363 }
 0x69e   : > { %3004 = vmatpush3.bf16.msra.mxu1 %v1364_v18 }
 0x69f   : > { %3015 = vmatprep.subr.bf16.mxu1 %v3373_v48 }
 0x6a2   : > { %v1232_v22 = vpop.xlane.xlu0 %1231 }
 0x6a3   : > { %v1250_v23 = vsub.f32 %v1116_v51, %v1232_v22 }
 0x6a5   : > { %v1260_v25 = vmul.f32 1.442695, %v1250_v23 }
 0x6a6   : > { %v1235_v26 = vpop.xlane.xlu0 %1234 }
 0x6a7   : > { %3273 = vpow2.f32 %v1260_v25  ;;  %v1251_v20 = vsub.f32 %v1119_v52, %v1235_v26  ;;  %v1411_v52 = vpop.permute.xlu1 %1410 }
 0x6a9   : > { %v1262_v31 = vmul.f32 1.442695, %v1251_v20 }
 0x6aa   : > { %v1238_v32 = vpop.xlane.xlu0 %1237 }
 0x6ab   : > { %3275 = vpow2.f32 %v1262_v31  ;;  %v1252_v34 = vsub.f32 %v1167_v55, %v1238_v32 }
 0x6ac   : > { %3277 = vpow2.f32 %v1266_v30 }
 0x6ad   : > { %v1264_v35 = vmul.f32 1.442695, %v1252_v34 }
 0x6ae   : > { %v1244_v36 = vpop.xlane.xlu0 %1243 }
 0x6af   : > { %3279 = vpow2.f32 %v1264_v35  ;;  %v1254_v37 = vsub.f32 %v1218_v58, %v1244_v36 }
 0x6b1   : > { %v3274_v40 = vpop.eup %3273  ;;  %v1268_v28 = vmul.f32 1.442695, %v1254_v37 }
 0x6b2   : > { %v1317_v41 = vpop.permute.xlu0 %1316  ;;  %v1278_v44 = vsel %vm736_vm3, %v3274_v40, 0.0 }
 0x6b3   : > { %3281 = vpow2.f32 %v1268_v28  ;;  %1279 = vadd.xlane.f32.xlu0 %v1278_v44  ;;  %2998 = vmatpush3.bf16.msra.mxu0 %v1317_v41 }
 0x6b4   : > { %3009 = vmatprep.subr.bf16.mxu0 %v3373_v48 }
 0x6b5   : > { %v3276_v42 = vpop.eup %3275 }
 0x6b6   : > { %v1281_v21 = vsel %vm736_vm3, %v3276_v42, 0.0  ;;  %v3278_v46 = vpop.eup %3277 }
 0x6b7   : > { %1282 = vadd.xlane.f32.xlu1 %v1281_v21  ;;  %v1287_v51 = vsel %vm736_vm3, %v3278_v46, 0.0 }
 0x6b9   : > { %v3280_v47 = vpop.eup %3279 }
 0x6ba   : > { %v1284_v50 = vsel %vm736_vm3, %v3280_v47, 0.0 }
 0x6bb   : > { %1285 = vadd.xlane.f32.xlu0 %v1284_v50  ;;  %1288 = vadd.xlane.f32.xlu1 %v1287_v51 }
 0x6bd   : > { %v3720_v29 = vpop.eup %3281 }
 0x6be   : > { %v1290_v38 = vsel %vm736_vm3, %v3720_v29, 0.0 }
 0x6bf   : > { %1291 = vadd.xlane.f32.xlu0 %v1290_v38 }
 0x6cc   : > { %1560 = vrot.lane.b32.xlu1 %v3523_v60, %s3380_s9 }
 0x6d2   : > { %v1247_v53 = vpop.xlane.xlu1 %1246 }
 0x6d3   : > { %v1255_v54 = vsub.f32 %v3701_v0, %v1247_v53 }
 0x6d5   : > { %1509 = vrot.lane.b32.xlu0 %v3525_v62, %s3380_s9  ;;  %v1270_v55 = vmul.f32 1.442695, %v1255_v54 }
 0x6d6   : > { %v1458_v39 = vpop.permute.xlu1 %1457 }
 0x6d7   : > { %3283 = vpow2.f32 %v1270_v55 }
 0x6d9   : > { %1507 = vrot.lane.b32.xlu0 %v3525_v62, %s3381_s10 }
 0x6dd   : > { %1558 = vrot.lane.b32.xlu0 %v3523_v60, %s3381_s10 }
 0x6e1   : > { %1609 = vrot.lane.b32.xlu0 %v3531_v4, %s3381_s10  ;;  %v3730_v56 = vpop.eup %3283 }
 0x6e2   : > { %v1293_v57 = vsel %vm736_vm3, %v3730_v56, 0.0 }
 0x6f0   : > { %1294 = vadd.xlane.f32.xlu1 %v1293_v57 }
 0x701   : > { %1611 = vrot.lane.b32.xlu1 %v3531_v4, %s3380_s9 }
 0x702   : > { %v1274_v49 = vpop.xlane.xlu0 %1273 }
 0x703   : > { %3285 = vrcp.f32 %v1274_v49 }
 0x705   : > { %1662 = vrot.lane.b32.xlu1 %v3529_v2, %s3380_s9  ;;  %s3388_s9 = smov 24  }
 0x707   : > { %v1277_v58 = vpop.xlane.xlu1 %1276 }
 0x708   : > { %3287 = vrcp.f32 %v1277_v58 }
 0x709   : > { %1660 = vrot.lane.b32.xlu1 %v3529_v2, %s3381_s10 }
 0x70d   : > { %v3286_v59 = vpop.eup %3285 }
 0x70e   : > { %v1304_v63 = vmul.f32 %v3286_v59, %v3706_v10 }
 0x712   : > { %v3288_v61 = vpop.eup %3287 }
 0x713   : > { %v1305_v0 = vmul.f32 %v3288_v61, %v3710_v12 }
 0x715   : > { %v1312_v1 = vpack.c.bf16 %v1305_v0, %v1304_v63  ;;  %v2806_v63 = vld [vmem:[%s4068_s6 + $0x20] sm:$0xff] }
 0x717   : > { %3000 = vmatmul.mubr.msk.bf16.vlgmr.msra.gmra.mrb[24].mxu0 %vm736_vm3, %v1312_v1  ;;  %v2807_v1 = vld [vmem:[%s4068_s6 + $0x28] sm:$0xff] }
 0x718   : > { %3010 = vmatpush3.bf16.msra.mxu0 %v1411_v52  ;;  %3011 = vmatprep.mubr.msk.bf16.mxu0 %vm3374_vm1, %v3373_v48 }
 0x719   : > { %3021 = vmatprep.subr.bf16.mxu0 %v3373_v48 }
 0x740   : > { %v1280_v3 = vpop.xlane.xlu0 %1279 }
 0x741   : > { %3289 = vrcp.f32 %v1280_v3 }
 0x744   : > { %v1283_v5 = vpop.xlane.xlu1 %1282 }
 0x745   : > { %3291 = vrcp.f32 %v1283_v5 }
 0x748   : > { %v1286_v6 = vpop.xlane.xlu0 %1285  ;;  %v1289_v7 = vpop.xlane.xlu1 %1288 }
 0x749   : > { %3293 = vrcp.f32 %v1286_v6 }
 0x74a   : > { %3295 = vrcp.f32 %v1289_v7 }
 0x74b   : > { %v3290_v8 = vpop.eup %3289 }
 0x74c   : > { %v1306_v10 = vmul.f32 %v3290_v8, %v3274_v40  ;;  %v1292_v12 = vpop.xlane.xlu0 %1291  ;;  %v1561_v30 = vpop.permute.xlu1 %1560 }
 0x74d   : > { %3297 = vrcp.f32 %v1292_v12 }
 0x74f   : > { %v3292_v9 = vpop.eup %3291 }
 0x750   : > { %v1307_v11 = vmul.f32 %v3292_v9, %v3276_v42  ;;  %v1510_v24 = vpop.permute.xlu0 %1509  ;;  %v1566_v42 = vsel %vm538_vm2, %v1561_v30, 0 }
 0x751   : > { %v1515_v26 = vsel %vm538_vm2, %v1510_v24, 0 }
 0x752   : > { %v1313_v14 = vpack.c.bf16 %v1307_v11, %v1306_v10 }
 0x753   : > { %v3294_v16 = vpop.eup %3293 }
 0x754   : > { %v3296_v18 = vpop.eup %3295  ;;  %v1308_v22 = vmul.f32 %v3294_v16, %v3280_v47  ;;  %3006 = vmatmul.mubr.msk.bf16.vlgmr.msra.gmra.mrb[32].mxu1 %vm736_vm3, %v1313_v14  ;;  %v1508_v20 = vpop.permute.xlu0 %1507 }
 0x755   : > { %v1309_v23 = vmul.f32 %v3296_v18, %v3278_v46  ;;  %3016 = vmatpush3.bf16.msra.mxu1 %v1458_v39  ;;  %3017 = vmatprep.mubr.msk.bf16.mxu1 %vm3374_vm1, %v3373_v48 }
 0x756   : > { %3027 = vmatprep.subr.bf16.mxu1 %v3373_v48 }
 0x757   : > { %v1314_v25 = vpack.c.bf16 %v1309_v23, %v1308_v22  ;;  %v3298_v36 = vpop.eup %3297 }
 0x758   : > { %v1559_v35 = vpop.permute.xlu0 %1558  ;;  %v1310_v40 = vmul.f32 %v3298_v36, %v3720_v29 }
 0x759   : > { %3012 = vmatmul.mubr.msk.bf16.vlgmr.msra.gmra.mrb[28].mxu0 %vm736_vm3, %v1314_v25 }
 0x75a   : > { %3022 = vmatpush3.bf16.xpose.msra.mxu0 %v1515_v26  ;;  %3023 = vmatprep.mubr.msk.bf16.mxu0 %vm3374_vm1, %v3373_v48 }
 0x75b   : > { %3033 = vmatprep.subr.bf16.mxu0 %v3373_v48 }
 0x75c   : > { %v1610_v28 = vpop.permute.xlu0 %1609 }
 0x761   : > { %3024 = vmatmul.mubr.msk.bf16.vlgmr.msra.gmra.mrb[32].mxu0 %vm538_vm2, %v1508_v20 }
 0x762   : > { %3035 = vmatprep.mubr.msk.bf16.mxu0 %vm3374_vm1, %v3373_v48 }
 0x77d   : > { %v1295_v31 = vpop.xlane.xlu1 %1294 }
 0x77e   : > { %3299 = vrcp.f32 %v1295_v31 }
 0x781   : > { %v1612_v32 = vpop.permute.xlu1 %1611 }
 0x782   : > { %v1617_v34 = vsel %vm538_vm2, %v1612_v32, 0 }
 0x783   : > { %3034 = vmatpush3.bf16.xpose.msra.mxu0 %v1617_v34 }
 0x784   : > { %3045 = vmatprep.subr.bf16.mxu0 %v3373_v48 }
 0x785   : > { %v1663_v21 = vpop.permute.xlu1 %1662 }
 0x786   : > { %v1668_v46 = vsel %vm538_vm2, %v1663_v21, 0 }
 0x788   : > { %v3300_v37 = vpop.eup %3299 }
 0x789   : > { %v1311_v41 = vmul.f32 %v3300_v37, %v3730_v56  ;;  %v1661_v47 = vpop.permute.xlu1 %1660 }
 0x78a   : > { %3036 = vmatmul.mubr.msk.bf16.vlgmr.msra.gmra.mrb[36].mxu0 %vm538_vm2, %v1610_v28 }
 0x78b   : > { %v1315_v44 = vpack.c.bf16 %v1311_v41, %v1310_v40  ;;  %3047 = vmatprep.mubr.msk.bf16.mxu0 %vm3374_vm1, %v3373_v48 }
 0x78d   : > { %3018 = vmatmul.mubr.msk.bf16.vlgmr.msra.gmra.mrb[36].mxu1 %vm736_vm3, %v1315_v44 }
 0x78e   : > { %3028 = vmatpush3.bf16.xpose.msra.mxu1 %v1566_v42  ;;  %3029 = vmatprep.mubr.msk.bf16.mxu1 %vm3374_vm1, %v3373_v48 }
 0x78f   : > { %3039 = vmatprep.subr.bf16.mxu1 %v3373_v48 }
 0x795   : > { %3030 = vmatmul.mubr.msk.bf16.vlgmr.msra.gmra.mrb[40].mxu1 %vm538_vm2, %v1559_v35 }
 0x796   : > { %3040 = vmatpush3.bf16.xpose.msra.mxu1 %v1668_v46  ;;  %3041 = vmatprep.mubr.msk.bf16.mxu1 %vm3374_vm1, %v3373_v48 }
 0x797   : > { %3051 = vmatprep.subr.bf16.mxu1 %v3373_v48 }
 0x79d   : > { %3042 = vmatmul.mubr.msk.bf16.vlgmr.msra.gmra.mrb[44].mxu1 %vm538_vm2, %v1661_v47 }
 0x79e   : > { %3053 = vmatprep.mubr.msk.bf16.mxu1 %vm3374_vm1, %v3373_v48 }
 0x7ea   : > { %v3775_v50 = vpop.f32.mrb[24].mxu0 }
 0x7eb   : > { %v3001_v51 = vpop.f32.mrb[25].mxu0 }
 0x7ec   : > { %v3777_v29 = vpop.f32.mrb[26].mxu0 }
 0x7ed   : > { %v3157_v38 = vpack.i.bf16 %v3777_v29, %v3775_v50  ;;  %v3002_v52 = vpop.f32.mrb[27].mxu0 }
 0x827   : > { %v3781_v53 = vpop.f32.mrb[32].mxu1 }
 0x828   : > { %v3007_v54 = vpop.f32.mrb[33].mxu1 }
 0x829   : > { %v3783_v55 = vpop.f32.mrb[34].mxu1 }
 0x82a   : > { %v3162_v56 = vpack.i.bf16 %v3783_v55, %v3781_v53  ;;  %v3008_v57 = vpop.f32.mrb[35].mxu1 }
 0x82c   : > { %v3787_v39 = vpop.f32.mrb[28].mxu0 }
 0x82d   : > { %v3013_v49 = vpop.f32.mrb[29].mxu0 }
 0x82e   : > { %v3789_v58 = vpop.f32.mrb[30].mxu0 }
 0x82f   : > { %v3177_v59 = vpack.i.bf16 %v3789_v58, %v3787_v39  ;;  %v3014_v61 = vpop.f32.mrb[31].mxu0 }
 0x834   : > { %v1551_v0 = vpop.f32.mrb[32].mxu0 }
 0x835   : > { %v1552_v3 = vadd.f32 %v2806_v63, %v1551_v0  ;;  %v3025_v5 = vpop.f32.mrb[33].mxu0 }
 0x836   : > { %v1554_v6 = vpop.f32.mrb[34].mxu0 }
 0x837   : > { %v1555_v7 = vadd.f32 %v2807_v1, %v1554_v6  ;;  %v3026_v8 = vpop.f32.mrb[35].mxu0  ;;  %v1711_v9 = vsel %vm736_vm3, %v1552_v3, -inf }
 0x838   : > { %1712 = vmax.xlane.f32.xlu0 %v1711_v9 }
 0x839   : > { %v1714_v10 = vsel %vm736_vm3, %v1555_v7, -inf }
 0x83a   : > { %1715 = vmax.xlane.f32.xlu1 %v1714_v10 }
 0x85d   : > { %v1653_v11 = vpop.f32.mrb[36].mxu0 }
 0x85e   : > { %v3037_v12 = vpop.f32.mrb[37].mxu0  ;;  %v1654_v40 = vadd.f32 %v2806_v63, %v1653_v11 }
 0x85f   : > { %v1656_v14 = vpop.f32.mrb[38].mxu0 }
 0x860   : > { %v1657_v16 = vadd.f32 %v2807_v1, %v1656_v14  ;;  %v3801_v18 = vpop.f32.mrb[36].mxu1  ;;  %v3038_v22 = vpop.f32.mrb[39].mxu0  ;;  %v1723_v51 = vsel %vm736_vm3, %v1654_v40, -inf }
 0x861   : > { %v3019_v23 = vpop.f32.mrb[37].mxu1 }
 0x862   : > { %v3803_v24 = vpop.f32.mrb[38].mxu1  ;;  %v1726_v25 = vsel %vm736_vm3, %v1657_v16, -inf }
 0x863   : > { %v3182_v26 = vpack.i.bf16 %v3803_v24, %v3801_v18  ;;  %1727 = vmax.xlane.f32.xlu1 %v1726_v25  ;;  %v3020_v20 = vpop.f32.mrb[39].mxu1 }
 0x868   : > { %v1602_v30 = vpop.f32.mrb[40].mxu1 }
 0x869   : > { %v1603_v31 = vadd.f32 %v2806_v63, %v1602_v30  ;;  %v3031_v32 = vpop.f32.mrb[41].mxu1 }
 0x86a   : > { %v1605_v34 = vpop.f32.mrb[42].mxu1 }
 0x86b   : > { %v1606_v35 = vadd.f32 %v2807_v1, %v1605_v34  ;;  %v3032_v36 = vpop.f32.mrb[43].mxu1  ;;  %v1717_v37 = vsel %vm736_vm3, %v1603_v31, -inf }
 0x86c   : > { %1718 = vmax.xlane.f32.xlu0 %v1717_v37 }
 0x86d   : > { %v1720_v28 = vsel %vm736_vm3, %v1606_v35, -inf }
 0x870   : > { %1721 = vmax.xlane.f32.xlu0 %v1720_v28  ;;  %v1704_v41 = vpop.f32.mrb[44].mxu1 }
 0x871   : > { %v1705_v44 = vadd.f32 %v2806_v63, %v1704_v41  ;;  %v3043_v42 = vpop.f32.mrb[45].mxu1 }
 0x872   : > { %v1707_v21 = vpop.f32.mrb[46].mxu1 }
 0x873   : > { %v3810_v46 = vadd.f32 %v2807_v1, %v1707_v21  ;;  %v3044_v47 = vpop.f32.mrb[47].mxu1  ;;  %v1729_v52 = vsel %vm736_vm3, %v1705_v44, -inf }
 0x874   : > { %1850 = vrot.lane.b32.xlu1 %v3523_v60, %s3382_s15  ;;  %1724 = vmax.xlane.f32.xlu0 %v1723_v51 }
 0x875   : > { %v1732_v54 = vsel %vm736_vm3, %v3810_v46, -inf }
 0x878   : > { %1897 = vrot.lane.b32.xlu1 %v3531_v4, %s3382_s15  ;;  %1730 = vmax.xlane.f32.xlu0 %v1729_v52 }
 0x88e   : > { %1803 = vrot.lane.b32.xlu0 %v3525_v62, %s3382_s15 }
 0x89c   : > { %1733 = vmax.xlane.f32.xlu1 %v1732_v54 }
 0x8ad   : > { %1944 = vrot.lane.b32.xlu1 %v3529_v2, %s3382_s15 }
 0x8c5   : > { %v1713_v57 = vpop.xlane.xlu0 %1712 }
 0x8c6   : > { %v1735_v49 = vsub.f32 %v1552_v3, %v1713_v57 }
 0x8c7   : > { %v1716_v61 = vpop.xlane.xlu1 %1715 }
 0x8c8   : > { %v1743_v63 = vmul.f32 1.442695, %v1735_v49  ;;  %v1736_v0 = vsub.f32 %v1555_v7, %v1716_v61 }
 0x8ca   : > { %3301 = vpow2.f32 %v1743_v63  ;;  %v1745_v1 = vmul.f32 1.442695, %v1736_v0 }
 0x8cc   : > { %3303 = vpow2.f32 %v1745_v1 }
 0x8d4   : > { %v3820_v5 = vpop.eup %3301 }
 0x8d5   : > { %v1759_v6 = vsel %vm736_vm3, %v3820_v5, 0.0 }
 0x8d6   : > { %v3824_v8 = vpop.eup %3303  ;;  %1760 = vadd.xlane.f32.xlu0 %v1759_v6 }
 0x8d7   : > { %v1762_v9 = vsel %vm736_vm3, %v3824_v8, 0.0 }
 0x8d8   : > { %1763 = vadd.xlane.f32.xlu1 %v1762_v9 }
 0x8f0   : > { %v1728_v10 = vpop.xlane.xlu1 %1727 }
 0x8f1   : > { %v1740_v12 = vsub.f32 %v1657_v16, %v1728_v10 }
 0x8f3   : > { %v1753_v25 = vmul.f32 1.442695, %v1740_v12 }
 0x8f4   : > { %v1851_v3 = vpop.permute.xlu1 %1850 }
 0x8f5   : > { %3052 = vmatpush3.bf16.msra.mxu1 %v1851_v3 }
 0x8f6   : > { %3063 = vmatprep.subr.bf16.mxu1 %v3373_v48 }
 0x8f8   : > { %v1898_v54 = vpop.permute.xlu1 %1897 }
 0x8f9   : > { %v1719_v7 = vpop.xlane.xlu0 %1718 }
 0x8fa   : > { %v1737_v11 = vsub.f32 %v1603_v31, %v1719_v7 }
 0x8fc   : > { %v1747_v14 = vmul.f32 1.442695, %v1737_v11 }
 0x8fd   : > { %v1722_v22 = vpop.xlane.xlu0 %1721 }
 0x8fe   : > { %3305 = vpow2.f32 %v1747_v14  ;;  %v1738_v23 = vsub.f32 %v1606_v35, %v1722_v22 }
 0x900   : > { %v1749_v20 = vmul.f32 1.442695, %v1738_v23 }
 0x901   : > { %v1725_v30 = vpop.xlane.xlu0 %1724 }
 0x902   : > { %3307 = vpow2.f32 %v1749_v20  ;;  %v1739_v32 = vsub.f32 %v1654_v40, %v1725_v30 }
 0x903   : > { %3309 = vpow2.f32 %v1753_v25 }
 0x904   : > { %v1751_v34 = vmul.f32 1.442695, %v1739_v32 }
 0x905   : > { %v1731_v36 = vpop.xlane.xlu0 %1730 }
 0x906   : > { %3311 = vpow2.f32 %v1751_v34  ;;  %v1741_v37 = vsub.f32 %v1705_v44, %v1731_v36 }
 0x908   : > { %v3306_v28 = vpop.eup %3305  ;;  %v1755_v41 = vmul.f32 1.442695, %v1741_v37 }
 0x909   : > { %v1804_v42 = vpop.permute.xlu0 %1803  ;;  %v1765_v31 = vsel %vm736_vm3, %v3306_v28, 0.0 }
 0x90a   : > { %3313 = vpow2.f32 %v1755_v41  ;;  %1766 = vadd.xlane.f32.xlu0 %v1765_v31  ;;  %3046 = vmatpush3.bf16.msra.mxu0 %v1804_v42 }
 0x90b   : > { %3057 = vmatprep.subr.bf16.mxu0 %v3373_v48 }
 0x90c   : > { %v3308_v16 = vpop.eup %3307 }
 0x90d   : > { %v1768_v35 = vsel %vm736_vm3, %v3308_v16, 0.0  ;;  %v3310_v21 = vpop.eup %3309 }
 0x90e   : > { %1769 = vadd.xlane.f32.xlu1 %v1768_v35  ;;  %v1774_v44 = vsel %vm736_vm3, %v3310_v21, 0.0 }
 0x910   : > { %v3312_v40 = vpop.eup %3311 }
 0x911   : > { %v1771_v47 = vsel %vm736_vm3, %v3312_v40, 0.0 }
 0x912   : > { %1772 = vadd.xlane.f32.xlu0 %v1771_v47  ;;  %1775 = vadd.xlane.f32.xlu1 %v1774_v44 }
 0x914   : > { %v3834_v51 = vpop.eup %3313 }
 0x915   : > { %v1777_v52 = vsel %vm736_vm3, %v3834_v51, 0.0 }
 0x916   : > { %1778 = vadd.xlane.f32.xlu0 %v1777_v52 }
 0x923   : > { %2047 = vrot.lane.b32.xlu1 %v3523_v60, %s3383_s16 }
 0x929   : > { %v1734_v57 = vpop.xlane.xlu1 %1733 }
 0x92a   : > { %v1742_v49 = vsub.f32 %v3810_v46, %v1734_v57 }
 0x92c   : > { %1996 = vrot.lane.b32.xlu0 %v3525_v62, %s3383_s16  ;;  %v1757_v61 = vmul.f32 1.442695, %v1742_v49 }
 0x92d   : > { %v1945_v1 = vpop.permute.xlu1 %1944 }
 0x92e   : > { %3315 = vpow2.f32 %v1757_v61 }
 0x930   : > { %1994 = vrot.lane.b32.xlu0 %v3525_v62, %s3384_s17 }
 0x934   : > { %2045 = vrot.lane.b32.xlu0 %v3523_v60, %s3384_s17 }
 0x938   : > { %2096 = vrot.lane.b32.xlu0 %v3531_v4, %s3384_s17  ;;  %v3844_v63 = vpop.eup %3315 }
 0x939   : > { %v1780_v0 = vsel %vm736_vm3, %v3844_v63, 0.0 }
 0x947   : > { %1781 = vadd.xlane.f32.xlu1 %v1780_v0 }
 0x958   : > { %2098 = vrot.lane.b32.xlu1 %v3531_v4, %s3383_s16 }
 0x95c   : > { %2149 = vrot.lane.b32.xlu1 %v3529_v2, %s3383_s16 }
 0x960   : > { %2147 = vrot.lane.b32.xlu1 %v3529_v2, %s3384_s17 }
 0x963   : > { %v1761_v46 = vpop.xlane.xlu0 %1760 }
 0x964   : > { %3317 = vrcp.f32 %v1761_v46 }
 0x965   : > { %v1764_v6 = vpop.xlane.xlu1 %1763 }
 0x966   : > { %3319 = vrcp.f32 %v1764_v6 }
 0x96e   : > { %v3318_v9 = vpop.eup %3317 }
 0x96f   : > { %v1791_v3 = vmul.f32 %v3318_v9, %v3820_v5 }
 0x970   : > { %v3320_v10 = vpop.eup %3319 }
 0x971   : > { %v1792_v7 = vmul.f32 %v3320_v10, %v3824_v8 }
 0x973   : > { %v1799_v11 = vpack.c.bf16 %v1792_v7, %v1791_v3 }
 0x975   : > { %3048 = vmatmul.mubr.msk.bf16.vlgmr.msra.gmra.mrb[40].mxu0 %vm736_vm3, %v1799_v11 }
 0x976   : > { %3058 = vmatpush3.bf16.msra.mxu0 %v1898_v54  ;;  %3059 = vmatprep.mubr.msk.bf16.mxu0 %vm3374_vm1, %v3373_v48 }
 0x977   : > { %3069 = vmatprep.subr.bf16.mxu0 %v3373_v48 }
 0x997   : > { %v1767_v12 = vpop.xlane.xlu0 %1766 }
 0x998   : > { %3321 = vrcp.f32 %v1767_v12 }
 0x99b   : > { %v1770_v14 = vpop.xlane.xlu1 %1769 }
 0x99c   : > { %3323 = vrcp.f32 %v1770_v14 }
 0x99f   : > { %v1773_v22 = vpop.xlane.xlu0 %1772  ;;  %v1776_v23 = vpop.xlane.xlu1 %1775 }
 0x9a0   : > { %3325 = vrcp.f32 %v1773_v22 }
 0x9a1   : > { %3327 = vrcp.f32 %v1776_v23 }
 0x9a2   : > { %v3322_v5 = vpop.eup %3321 }
 0x9a3   : > { %v1793_v8 = vmul.f32 %v3322_v5, %v3306_v28  ;;  %v1779_v30 = vpop.xlane.xlu0 %1778 }
 0x9a4   : > { %3329 = vrcp.f32 %v1779_v30 }
 0x9a6   : > { %v3324_v25 = vpop.eup %3323 }
 0x9a7   : > { %v1794_v20 = vmul.f32 %v3324_v25, %v3308_v16  ;;  %v1997_v42 = vpop.permute.xlu0 %1996  ;;  %v2048_v16 = vpop.permute.xlu1 %2047 }
 0x9a8   : > { %v2002_v35 = vsel %vm538_vm2, %v1997_v42, 0 }
 0x9a9   : > { %v1800_v32 = vpack.c.bf16 %v1794_v20, %v1793_v8 }
 0x9aa   : > { %v3326_v34 = vpop.eup %3325 }
 0x9ab   : > { %v3328_v36 = vpop.eup %3327  ;;  %v1795_v37 = vmul.f32 %v3326_v34, %v3312_v40  ;;  %3054 = vmatmul.mubr.msk.bf16.vlgmr.msra.gmra.mrb[48].mxu1 %vm736_vm3, %v1800_v32  ;;  %v1995_v28 = vpop.permute.xlu0 %1994  ;;  %v2816_v32 = vld [vmem:[%s4068_s6 + $0x30] sm:$0xff] }
 0x9ac   : > { %v1796_v41 = vmul.f32 %v3328_v36, %v3310_v21  ;;  %3064 = vmatpush3.bf16.msra.mxu1 %v1945_v1  ;;  %3065 = vmatprep.mubr.msk.bf16.mxu1 %vm3374_vm1, %v3373_v48  ;;  %v2053_v1 = vsel %vm538_vm2, %v2048_v16, 0  ;;  %v2817_v36 = vld [vmem:[%s4068_s6 + $0x38] sm:$0xff] }
 0x9ad   : > { %3075 = vmatprep.subr.bf16.mxu1 %v3373_v48 }
 0x9ae   : > { %v1801_v31 = vpack.c.bf16 %v1796_v41, %v1795_v37  ;;  %v3330_v52 = vpop.eup %3329 }
 0x9af   : > { %v2046_v44 = vpop.permute.xlu0 %2045  ;;  %v1797_v57 = vmul.f32 %v3330_v52, %v3834_v51 }
 0x9b0   : > { %3060 = vmatmul.mubr.msk.bf16.vlgmr.msra.gmra.mrb[44].mxu0 %vm736_vm3, %v1801_v31 }
 0x9b1   : > { %3070 = vmatpush3.bf16.xpose.msra.mxu0 %v2002_v35  ;;  %3071 = vmatprep.mubr.msk.bf16.mxu0 %vm3374_vm1, %v3373_v48 }
 0x9b2   : > { %3081 = vmatprep.subr.bf16.mxu0 %v3373_v48 }
 0x9b3   : > { %v2097_v49 = vpop.permute.xlu0 %2096 }
 0x9b8   : > { %3072 = vmatmul.mubr.msk.bf16.vlgmr.msra.gmra.mrb[48].mxu0 %vm538_vm2, %v1995_v28 }
 0x9b9   : > { %3083 = vmatprep.mubr.msk.bf16.mxu0 %vm3374_vm1, %v3373_v48 }
 0x9d4   : > { %v1782_v21 = vpop.xlane.xlu1 %1781 }
 0x9d5   : > { %3331 = vrcp.f32 %v1782_v21 }
 0x9d8   : > { %v2099_v40 = vpop.permute.xlu1 %2098 }
 0x9d9   : > { %v2104_v47 = vsel %vm538_vm2, %v2099_v40, 0 }
 0x9da   : > { %3082 = vmatpush3.bf16.xpose.msra.mxu0 %v2104_v47 }
 0x9db   : > { %3093 = vmatprep.subr.bf16.mxu0 %v3373_v48 }
 0x9dc   : > { %v2150_v51 = vpop.permute.xlu1 %2149 }
 0x9dd   : > { %v2155_v46 = vsel %vm538_vm2, %v2150_v51, 0 }
 0x9df   : > { %v3332_v54 = vpop.eup %3331 }
 0x9e0   : > { %v1798_v61 = vmul.f32 %v3332_v54, %v3844_v63  ;;  %v2148_v63 = vpop.permute.xlu1 %2147 }
 0x9e1   : > { %3084 = vmatmul.mubr.msk.bf16.vlgmr.msra.gmra.mrb[52].mxu0 %vm538_vm2, %v2097_v49 }
 0x9e2   : > { %v1802_v0 = vpack.c.bf16 %v1798_v61, %v1797_v57  ;;  %3095 = vmatprep.mubr.msk.bf16.mxu0 %vm3374_vm1, %v3373_v48 }
 0x9e4   : > { %3066 = vmatmul.mubr.msk.bf16.vlgmr.msra.gmra.mrb[52].mxu1 %vm736_vm3, %v1802_v0 }
 0x9e5   : > { %3076 = vmatpush3.bf16.xpose.msra.mxu1 %v2053_v1  ;;  %3077 = vmatprep.mubr.msk.bf16.mxu1 %vm3374_vm1, %v3373_v48 }
 0x9e6   : > { %3087 = vmatprep.subr.bf16.mxu1 %v3373_v48 }
 0x9ec   : > { %3078 = vmatmul.mubr.msk.bf16.vlgmr.msra.gmra.mrb[56].mxu1 %vm538_vm2, %v2046_v44 }
 0x9ed   : > { %3088 = vmatpush3.bf16.xpose.msra.mxu1 %v2155_v46  ;;  %3089 = vmatprep.mubr.msk.bf16.mxu1 %vm3374_vm1, %v3373_v48 }
 0x9ee   : > { %3099 = vmatprep.subr.bf16.mxu1 %v3373_v48 }
 0x9f4   : > { %3090 = vmatmul.mubr.msk.bf16.vlgmr.msra.gmra.mrb[60].mxu1 %vm538_vm2, %v2148_v63 }
 0x9f5   : > { %3101 = vmatprep.mubr.msk.bf16.mxu1 %vm3374_vm1, %v3373_v48 }
 0xa48   : > { %v3889_v6 = vpop.f32.mrb[40].mxu0 }
 0xa49   : > { %v3049_v9 = vpop.f32.mrb[41].mxu0 }
 0xa4a   : > { %v3891_v10 = vpop.f32.mrb[42].mxu0 }
 0xa4b   : > { %v3167_v3 = vpack.i.bf16 %v3891_v10, %v3889_v6  ;;  %v3050_v7 = vpop.f32.mrb[43].mxu0 }
 0xa7e   : > { %v3895_v11 = vpop.f32.mrb[48].mxu1 }
 0xa7f   : > { %v3055_v12 = vpop.f32.mrb[49].mxu1 }
 0xa80   : > { %v3897_v14 = vpop.f32.mrb[50].mxu1 }
 0xa81   : > { %v3172_v22 = vpack.i.bf16 %v3897_v14, %v3895_v11  ;;  %v3056_v23 = vpop.f32.mrb[51].mxu1 }
 0xa83   : > { %v3901_v5 = vpop.f32.mrb[44].mxu0 }
 0xa84   : > { %v3061_v25 = vpop.f32.mrb[45].mxu0 }
 0xa85   : > { %v3903_v8 = vpop.f32.mrb[46].mxu0 }
 0xa86   : > { %v3192_v20 = vpack.i.bf16 %v3903_v8, %v3901_v5  ;;  %v3062_v30 = vpop.f32.mrb[47].mxu0 }
 0xa8b   : > { %v2038_v34 = vpop.f32.mrb[48].mxu0 }
 0xa8c   : > { %v2039_v37 = vadd.f32 %v2816_v32, %v2038_v34  ;;  %v3073_v41 = vpop.f32.mrb[49].mxu0 }
 0xa8d   : > { %v2041_v42 = vpop.f32.mrb[50].mxu0 }
 0xa8e   : > { %v2042_v31 = vadd.f32 %v2817_v36, %v2041_v42  ;;  %v3074_v35 = vpop.f32.mrb[51].mxu0  ;;  %v2198_v28 = vsel %vm736_vm3, %v2039_v37, -inf }
 0xa8f   : > { %2199 = vmax.xlane.f32.xlu0 %v2198_v28 }
 0xa90   : > { %v2201_v16 = vsel %vm736_vm3, %v2042_v31, -inf }
 0xa91   : > { %2202 = vmax.xlane.f32.xlu1 %v2201_v16 }
 0xab4   : > { %v2140_v21 = vpop.f32.mrb[52].mxu0 }
 0xab5   : > { %v3085_v40 = vpop.f32.mrb[53].mxu0  ;;  %v2141_v25 = vadd.f32 %v2816_v32, %v2140_v21 }
 0xab6   : > { %v2143_v47 = vpop.f32.mrb[54].mxu0 }
 0xab7   : > { %v2144_v44 = vadd.f32 %v2817_v36, %v2143_v47  ;;  %v3915_v52 = vpop.f32.mrb[52].mxu1  ;;  %v3086_v54 = vpop.f32.mrb[55].mxu0  ;;  %v2210_v40 = vsel %vm736_vm3, %v2141_v25, -inf }
 0xab8   : > { %v3067_v57 = vpop.f32.mrb[53].mxu1 }
 0xab9   : > { %v3917_v49 = vpop.f32.mrb[54].mxu1  ;;  %v2213_v61 = vsel %vm736_vm3, %v2144_v44, -inf }
 0xaba   : > { %v3202_v0 = vpack.i.bf16 %v3917_v49, %v3915_v52  ;;  %2214 = vmax.xlane.f32.xlu1 %v2213_v61  ;;  %v3068_v1 = vpop.f32.mrb[55].mxu1 }
 0xabf   : > { %v2089_v51 = vpop.f32.mrb[56].mxu1 }
 0xac0   : > { %v2090_v46 = vadd.f32 %v2816_v32, %v2089_v51  ;;  %v3079_v63 = vpop.f32.mrb[57].mxu1 }
 0xac1   : > { %v2092_v9 = vpop.f32.mrb[58].mxu1 }
 0xac2   : > { %v2093_v7 = vadd.f32 %v2817_v36, %v2092_v9  ;;  %v3080_v12 = vpop.f32.mrb[59].mxu1  ;;  %v2204_v23 = vsel %vm736_vm3, %v2090_v46, -inf }
 0xac3   : > { %2205 = vmax.xlane.f32.xlu0 %v2204_v23 }
 0xac4   : > { %v2207_v30 = vsel %vm736_vm3, %v2093_v7, -inf }
 0xac7   : > { %2208 = vmax.xlane.f32.xlu0 %v2207_v30  ;;  %v2191_v34 = vpop.f32.mrb[60].mxu1 }
 0xac8   : > { %v2192_v41 = vadd.f32 %v2816_v32, %v2191_v34  ;;  %v3091_v42 = vpop.f32.mrb[61].mxu1 }
 0xac9   : > { %v2194_v35 = vpop.f32.mrb[62].mxu1 }
 0xaca   : > { %v3924_v28 = vadd.f32 %v2817_v36, %v2194_v35  ;;  %v3092_v16 = vpop.f32.mrb[63].mxu1  ;;  %v2216_v54 = vsel %vm736_vm3, %v2192_v41, -inf }
 0xacb   : > { %2211 = vmax.xlane.f32.xlu0 %v2210_v40 }
 0xacc   : > { %v2219_v47 = vsel %vm736_vm3, %v3924_v28, -inf }
 0xacd   : > { %2220 = vmax.xlane.f32.xlu1 %v2219_v47 }
 0xacf   : > { %2217 = vmax.xlane.f32.xlu0 %v2216_v54 }
 0xb1c   : > { %v2200_v21 = vpop.xlane.xlu0 %2199 }
 0xb1d   : > { %v2222_v57 = vsub.f32 %v2039_v37, %v2200_v21 }
 0xb1e   : > { %v2203_v61 = vpop.xlane.xlu1 %2202 }
 0xb1f   : > { %v2230_v1 = vmul.f32 1.442695, %v2222_v57  ;;  %v2223_v32 = vsub.f32 %v2042_v31, %v2203_v61 }
 0xb21   : > { %3333 = vpow2.f32 %v2230_v1  ;;  %v2232_v51 = vmul.f32 1.442695, %v2223_v32 }
 0xb23   : > { %3335 = vpow2.f32 %v2232_v51 }
 0xb2b   : > { %v3930_v36 = vpop.eup %3333 }
 0xb2c   : > { %v2246_v63 = vsel %vm736_vm3, %v3930_v36, 0.0 }
 0xb2d   : > { %v3934_v9 = vpop.eup %3335  ;;  %2247 = vadd.xlane.f32.xlu0 %v2246_v63 }
 0xb2e   : > { %v2249_v12 = vsel %vm736_vm3, %v3934_v9, 0.0 }
 0xb2f   : > { %2250 = vadd.xlane.f32.xlu1 %v2249_v12 }
 0xb47   : > { %v2215_v23 = vpop.xlane.xlu1 %2214 }
 0xb48   : > { %v2227_v34 = vsub.f32 %v2144_v44, %v2215_v23 }
 0xb4a   : > { %v2240_v16 = vmul.f32 1.442695, %v2227_v34 }
 0xb50   : > { %v2206_v37 = vpop.xlane.xlu0 %2205 }
 0xb51   : > { %v2224_v30 = vsub.f32 %v2090_v46, %v2206_v37 }
 0xb53   : > { %v2234_v31 = vmul.f32 1.442695, %v2224_v30 }
 0xb54   : > { %v2209_v42 = vpop.xlane.xlu0 %2208 }
 0xb55   : > { %3337 = vpow2.f32 %v2234_v31  ;;  %v2225_v35 = vsub.f32 %v2093_v7, %v2209_v42 }
 0xb57   : > { %v2236_v40 = vmul.f32 1.442695, %v2225_v35 }
 0xb58   : > { %v2212_v47 = vpop.xlane.xlu0 %2211 }
 0xb59   : > { %3339 = vpow2.f32 %v2236_v40  ;;  %v2226_v54 = vsub.f32 %v2141_v25, %v2212_v47 }
 0xb5a   : > { %3341 = vpow2.f32 %v2240_v16  ;;  %v2221_v37 = vpop.xlane.xlu1 %2220 }
 0xb5b   : > { %v2238_v21 = vmul.f32 1.442695, %v2226_v54  ;;  %v2229_v30 = vsub.f32 %v3924_v28, %v2221_v37 }
 0xb5c   : > { %v2218_v57 = vpop.xlane.xlu0 %2217 }
 0xb5d   : > { %3343 = vpow2.f32 %v2238_v21  ;;  %v2228_v61 = vsub.f32 %v2192_v41, %v2218_v57 }
 0xb5f   : > { %v3338_v1 = vpop.eup %3337  ;;  %v2242_v32 = vmul.f32 1.442695, %v2228_v61  ;;  %v3220_v61 = vld [vmem:[%s4066_s4 + $0x8] sm:$0xff]  }
 0xb60   : > { %v2252_v51 = vsel %vm736_vm3, %v3338_v1, 0.0 }
 0xb61   : > { %3345 = vpow2.f32 %v2242_v32  ;;  %2253 = vadd.xlane.f32.xlu0 %v2252_v51 }
 0xb63   : > { %v3340_v44 = vpop.eup %3339 }
 0xb64   : > { %v2255_v46 = vsel %vm736_vm3, %v3340_v44, 0.0  ;;  %v3940_v7 = vpop.eup %3341 }
 0xb65   : > { %2256 = vadd.xlane.f32.xlu1 %v2255_v46  ;;  %v2261_v41 = vsel %vm736_vm3, %v3940_v7, 0.0 }
 0xb67   : > { %v3942_v63 = vpop.eup %3343 }
 0xb68   : > { %v2258_v25 = vsel %vm736_vm3, %v3942_v63, 0.0 }
 0xb69   : > { %2259 = vadd.xlane.f32.xlu0 %v2258_v25  ;;  %2262 = vadd.xlane.f32.xlu1 %v2261_v41 }
 0xb6b   : > { %v3948_v12 = vpop.eup %3345 }
 0xb6c   : > { %v2264_v23 = vsel %vm736_vm3, %v3948_v12, 0.0 }
 0xb6d   : > { %2265 = vadd.xlane.f32.xlu0 %v2264_v23 }
 0xb7a   : > { %2337 = vrot.lane.b32.xlu1 %v3523_v60, %s3385_s22  ;;  %v2244_v60 = vmul.f32 1.442695, %v2229_v30 }
 0xb7c   : > { %3347 = vpow2.f32 %v2244_v60 }
 0xb7e   : > { %2384 = vrot.lane.b32.xlu1 %v3531_v4, %s3385_s22 }
 0xb83   : > { %2290 = vrot.lane.b32.xlu0 %v3525_v62, %s3385_s22 }
 0xb86   : > { %v3348_v62 = vpop.eup %3347 }
 0xb87   : > { %3158 = vrot.lane.b32.xlu0 %v3157_v38, %s3386_s23  ;;  %v2267_v4 = vsel %vm736_vm3, %v3348_v62, 0.0 }
 0xb8b   : > { %3168 = vrot.lane.b32.xlu0 %v3167_v3, %s3387_s25 }
 0xb8f   : > { %3178 = vrot.lane.b32.xlu0 %v3177_v59, %s3386_s23 }
 0xba2   : > { %2268 = vadd.xlane.f32.xlu1 %v2267_v4 }
 0xbb3   : > { %2431 = vrot.lane.b32.xlu1 %v3529_v2, %s3385_s22 }
 0xbb7   : > { %3163 = vrot.lane.b32.xlu1 %v3162_v56, %s3386_s23 }
 0xbba   : > { %v2248_v50 = vpop.xlane.xlu0 %2247 }
 0xbbb   : > { %3173 = vrot.lane.b32.xlu1 %v3172_v22, %s3387_s25 }
 0xbbc   : > { %v2251_v29 = vpop.xlane.xlu1 %2250 }
 0xbbd   : > { %3349 = vrcp.f32 %v2251_v29 }
 0xbbe   : > { %3351 = vrcp.f32 %v2248_v50 }
 0xbbf   : > { %3183 = vrot.lane.b32.xlu1 %v3182_v26, %s3386_s23 }
 0xbc7   : > { %v3350_v55 = vpop.eup %3349 }
 0xbc8   : > { %v3352_v56 = vpop.eup %3351  ;;  %v2279_v18 = vmul.f32 %v3350_v55, %v3934_v9 }
 0xbc9   : > { %v2278_v26 = vmul.f32 %v3352_v56, %v3930_v36 }
 0xbcb   : > { %v2286_v14 = vpack.c.bf16 %v2279_v18, %v2278_v26 }
 0xbee   : > { %v2254_v38 = vpop.xlane.xlu0 %2253 }
 0xbef   : > { %3353 = vrcp.f32 %v2254_v38 }
 0xbf2   : > { %v2257_v2 = vpop.xlane.xlu1 %2256 }
 0xbf3   : > { %3355 = vrcp.f32 %v2257_v2 }
 0xbf6   : > { %v2260_v39 = vpop.xlane.xlu0 %2259  ;;  %v2263_v53 = vpop.xlane.xlu1 %2262 }
 0xbf7   : > { %3357 = vrcp.f32 %v2260_v39 }
 0xbf8   : > { %3359 = vrcp.f32 %v2263_v53 }
 0xbf9   : > { %v3354_v6 = vpop.eup %3353 }
 0xbfa   : > { %v2266_v58 = vpop.xlane.xlu0 %2265  ;;  %v2338_v59 = vpop.permute.xlu1 %2337  ;;  %v2280_v10 = vmul.f32 %v3354_v6, %v3338_v1 }
 0xbfb   : > { %3100 = vmatpush3.bf16.msra.mxu1 %v2338_v59  ;;  %3361 = vrcp.f32 %v2266_v58 }
 0xbfc   : > { %3111 = vmatprep.subr.bf16.mxu1 %v3373_v48 }
 0xbfd   : > { %v3356_v24 = vpop.eup %3355 }
 0xbfe   : > { %v2281_v3 = vmul.f32 %v3356_v24, %v3340_v44  ;;  %v2291_v11 = vpop.permute.xlu0 %2290  ;;  %v2385_v31 = vpop.permute.xlu1 %2384 }
 0xbff   : > { %3094 = vmatpush3.bf16.msra.mxu0 %v2291_v11 }
 0xc00   : > { %3105 = vmatprep.subr.bf16.mxu0 %v3373_v48  ;;  %v2287_v22 = vpack.c.bf16 %v2281_v3, %v2280_v10 }
 0xc01   : > { %v3358_v28 = vpop.eup %3357 }
 0xc02   : > { %v3360_v34 = vpop.eup %3359  ;;  %3096 = vmatmul.mubr.msk.bf16.vlgmr.msra.gmra.mrb[56].mxu0 %vm736_vm3, %v2286_v14  ;;  %3102 = vmatmul.mubr.msk.bf16.vlgmr.msra.gmra.mrb[64].mxu1 %vm736_vm3, %v2287_v22  ;;  %v2282_v36 = vmul.f32 %v3358_v28, %v3942_v63  ;;  %v3159_v39 = vpop.permute.xlu0 %3158 }
 0xc03   : > { %3106 = vmatpush3.bf16.msra.mxu0 %v2385_v31  ;;  %3107 = vmatprep.mubr.msk.bf16.mxu0 %vm3374_vm1, %v3373_v48  ;;  %v2283_v9 = vmul.f32 %v3360_v34, %v3940_v7  ;;  %v3160_v55 = vunpack.i.l.bf16 %v3159_v39 }
 0xc04   : > { %3113 = vmatprep.mubr.msk.bf16.mxu1 %vm3374_vm1, %v3373_v48  ;;  %v3219_v48 = vld [vmem:[%s4066_s4] sm:$0xff]  }
 0xc05   : > { %v2288_v42 = vpack.c.bf16 %v2283_v9, %v2282_v36  ;;  %v3362_v40 = vpop.eup %3361  ;;  %3117 = vmatprep.subr.bf16.mxu0 %v3219_v48  ;;  %v2574_v26 = vsel %vm538_vm2, %v3669_v13, %v3160_v55 }
 0xc06   : > { %v2284_v54 = vmul.f32 %v3362_v40, %v3948_v12  ;;  %v3169_v5 = vpop.permute.xlu0 %3168 }
 0xc07   : > { %v3170_v59 = vunpack.i.l.bf16 %v3169_v5 }
 0xc09   : > { %v2582_v36 = vsel %vm736_vm3, %v2574_v26, %v3170_v59 }
 0xc0a   : > { %3108 = vmatmul.mubr.msk.bf16.vlgmr.msra.gmra.mrb[60].mxu0 %vm736_vm3, %v2288_v42  ;;  %v3179_v56 = vpop.permute.xlu0 %3178 }
 0xc0b   : > { %3118 = vmatpush3.bf16.msra.mxu0 %v3219_v48 }
 0xc0c   : > { %3119 = vmatprep.subr.bf16.mxu0 %v3220_v61 }
 0xc0f   : > { %3120 = vmatpush3.bf16.msra.mxu0 %v3220_v61 }
 0xc2f   : > { %v2269_v35 = vpop.xlane.xlu1 %2268 }
 0xc30   : > { %3363 = vrcp.f32 %v2269_v35 }
 0xc33   : > { %v2432_v16 = vpop.permute.xlu1 %2431 }
 0xc34   : > { %3112 = vmatpush3.bf16.msra.mxu1 %v2432_v16 }
 0xc37   : > { %v3164_v53 = vpop.permute.xlu1 %3163 }
 0xc38   : > { %v3166_v58 = vunpack.i.h.bf16 %v3164_v53  ;;  %v3165_v52 = vunpack.i.l.bf16 %v3164_v53 }
 0xc3a   : > { %v3364_v47 = vpop.eup %3363  ;;  %v2577_v10 = vsel %vm538_vm2, %v3685_v33, %v3166_v58  ;;  %v2576_v3 = vsel %vm538_vm2, %v3683_v27, %v3165_v52 }
 0xc3b   : > { %v2285_v21 = vmul.f32 %v3364_v47, %v3348_v62  ;;  %v3174_v8 = vpop.permute.xlu1 %3173 }
 0xc3c   : > { %v3176_v6 = vunpack.i.h.bf16 %v3174_v8  ;;  %v3175_v18 = vunpack.i.l.bf16 %v3174_v8 }
 0xc3d   : > { %v2289_v57 = vpack.c.bf16 %v2285_v21, %v2284_v54  ;;  %v3181_v54 = vunpack.i.h.bf16 %v3179_v56  ;;  %v3180_v21 = vunpack.i.l.bf16 %v3179_v56 }
 0xc3e   : > { %v2584_v9 = vsel %vm736_vm3, %v2576_v3, %v3175_v18  ;;  %v2585_v13 = vsel %vm736_vm3, %v2577_v10, %v3176_v6 }
 0xc3f   : > { %3114 = vmatmul.mubr.msk.bf16.vlgmr.msra.gmra.mrb[68].mxu1 %vm736_vm3, %v2289_v57  ;;  %v3184_v49 = vpop.permute.xlu1 %3183 }
 0xcd5   : > { %v2330_v1 = vpop.f32.mrb[56].mxu0  ;;  %v2377_v32 = vpop.f32.mrb[64].mxu1 }
 0xcd6   : > { %v3097_v51 = vpop.f32.mrb[57].mxu0  ;;  %v3103_v44 = vpop.f32.mrb[65].mxu1 }
 0xcd7   : > { %v2333_v46 = vpop.f32.mrb[58].mxu0  ;;  %v2380_v7 = vpop.f32.mrb[66].mxu1 }
 0xcd8   : > { %v3187_v63 = vpack.i.bf16 %v2333_v46, %v2330_v1  ;;  %v3197_v25 = vpack.i.bf16 %v2380_v7, %v2377_v32  ;;  %v3098_v41 = vpop.f32.mrb[59].mxu0  ;;  %v3104_v12 = vpop.f32.mrb[67].mxu1  ;;  %v2579_v1 = vsel %vm538_vm2, %v3675_v19, %v3181_v54  ;;  %v2578_v32 = vsel %vm538_vm2, %v3673_v17, %v3180_v21 }
 0xcda   : > { %3188 = vrot.lane.b32.xlu0 %v3187_v63, %s3388_s9  ;;  %3198 = vrot.lane.b32.xlu1 %v3197_v25, %s3388_s9 }
 0xcdd   : > { %v2424_v23 = vpop.f32.mrb[60].mxu0 }
 0xcde   : > { %3193 = vrot.lane.b32.xlu0 %v3192_v20, %s3387_s25  ;;  %v3109_v37 = vpop.f32.mrb[61].mxu0  ;;  %3203 = vrot.lane.b32.xlu1 %v3202_v0, %s3387_s25  ;;  %v3161_v20 = vunpack.i.h.bf16 %v3159_v39  ;;  %v3171_v0 = vunpack.i.h.bf16 %v3169_v5 }
 0xcdf   : > { %v2427_v30 = vpop.f32.mrb[62].mxu0  ;;  %v3185_v37 = vunpack.i.l.bf16 %v3184_v49 }
 0xce0   : > { %v3207_v60 = vpack.i.bf16 %v2427_v30, %v2424_v23  ;;  %v3110_v62 = vpop.f32.mrb[63].mxu0  ;;  %v2575_v24 = vsel %vm538_vm2, %v3671_v15, %v3161_v20  ;;  %v3186_v23 = vunpack.i.h.bf16 %v3184_v49 }
 0xce1   : > { %v2583_v15 = vsel %vm736_vm3, %v2575_v24, %v3171_v0  ;;  %v2580_v62 = vsel %vm538_vm2, %v3689_v43, %v3185_v37 }
 0xce2   : > { %3208 = vrot.lane.b32.xlu0 %v3207_v60, %s3388_s9  ;;  %v2581_v60 = vsel %vm538_vm2, %v3691_v45, %v3186_v23  ;;  %v2826_v45 = vld [vmem:[%s4067_s5] ss:$0 sm:$0xff] }
 0xd12   : > { %v2471_v4 = vpop.f32.mrb[68].mxu1 }
 0xd13   : > { %v3115_v50 = vpop.f32.mrb[69].mxu1 }
 0xd14   : > { %v2474_v29 = vpop.f32.mrb[70].mxu1 }
 0xd15   : > { %v3212_v38 = vpack.i.bf16 %v2474_v29, %v2471_v4  ;;  %v3116_v2 = vpop.f32.mrb[71].mxu1 }
 0xd17   : > { %3213 = vrot.lane.b32.xlu1 %v3212_v38, %s3388_s9 }
 0xd4c   : > { %v3189_v11 = vpop.permute.xlu0 %3188  ;;  %v3199_v14 = vpop.permute.xlu1 %3198 }
 0xd4d   : > { %v3191_v22 = vunpack.i.h.bf16 %v3189_v11  ;;  %v3190_v28 = vunpack.i.l.bf16 %v3189_v11  ;;  %v3201_v34 = vunpack.i.h.bf16 %v3199_v14  ;;  %v3200_v31 = vunpack.i.l.bf16 %v3199_v14 }
 0xd4f   : > { %v2592_v33 = vsel %vm2590_vm4, %v2583_v15, %v3191_v22  ;;  %v2591_v42 = vsel %vm2590_vm4, %v2582_v36, %v3190_v28  ;;  %v2594_v27 = vsel %vm2590_vm4, %v2585_v13, %v3201_v34  ;;  %v2593_v35 = vsel %vm2590_vm4, %v2584_v9, %v3200_v31 }
 0xd50   : > { %v2599_v16 = vpack.c.bf16 %v2592_v33, %v2591_v42  ;;  %v2600_v40 = vpack.c.bf16 %v2594_v27, %v2593_v35  ;;  %v3194_v47 = vpop.permute.xlu0 %3193  ;;  %v3204_v12 = vpop.permute.xlu1 %3203 }
 0xd51   : > { %v3196_v57 = vunpack.i.h.bf16 %v3194_v47  ;;  %v3195_v48 = vunpack.i.l.bf16 %v3194_v47  ;;  %v3206_v19 = vunpack.i.h.bf16 %v3204_v12  ;;  %v3205_v30 = vunpack.i.l.bf16 %v3204_v12 }
 0xd52   : > { %3121 = vmatprep.mubr.msk.bf16.mxu0 %vm296_vm0, %v2599_v16 }
 0xd53   : > { %3122 = vmatmul.mubr.msk.bf16.vlgmr.msra.gmra.mrb[64].mxu0 %vm296_vm0, %v2600_v40  ;;  %v2587_v46 = vsel %vm736_vm3, %v2579_v1, %v3196_v57  ;;  %v2586_v7 = vsel %vm736_vm3, %v2578_v32, %v3195_v48  ;;  %v2589_v29 = vsel %vm736_vm3, %v2581_v60, %v3206_v19  ;;  %v2588_v38 = vsel %vm736_vm3, %v2580_v62, %v3205_v30 }
 0xd54   : > { %v3209_v61 = vpop.permute.xlu0 %3208 }
 0xd55   : > { %v3211_v51 = vunpack.i.h.bf16 %v3209_v61  ;;  %v3210_v44 = vunpack.i.l.bf16 %v3209_v61 }
 0xd57   : > { %v2596_v63 = vsel %vm2590_vm4, %v2587_v46, %v3211_v51  ;;  %v2595_v25 = vsel %vm2590_vm4, %v2586_v7, %v3210_v44 }
 0xd58   : > { %v2601_v41 = vpack.c.bf16 %v2596_v63, %v2595_v25 }
 0xd5a   : > { %3125 = vmatprep.mubr.msk.bf16.mxu0 %vm296_vm0, %v2601_v41 }
 0xd89   : > { %v3214_v17 = vpop.permute.xlu1 %3213 }
 0xd8a   : > { %v3216_v4 = vunpack.i.h.bf16 %v3214_v17  ;;  %v3215_v50 = vunpack.i.l.bf16 %v3214_v17 }
 0xd8c   : > { %v2598_v2 = vsel %vm2590_vm4, %v2589_v29, %v3216_v4  ;;  %v2597_v39 = vsel %vm2590_vm4, %v2588_v38, %v3215_v50 }
 0xd8d   : > { %v2602_v53 = vpack.c.bf16 %v2598_v2, %v2597_v39 }
 0xd8f   : > { %3126 = vmatmul.mubr.msk.bf16.gmra.mrb[68].mxu0 %vm296_vm0, %v2602_v53 }
 0xe26   : > { %v3123_v5 = vpop.f32.mrb[64].mxu0 }
 0xe27   : > { %v2672_v43 = vpop.f32.mrb[65].mxu0  ;;  %v2681_v55 = vadd.f32 %v3123_v5, %v2826_v45 }
 0xe28   : > { %v2673_v8 = vadd.f32 %v2826_v45, %v2672_v43  ;;  %v3124_v20 = vpop.f32.mrb[66].mxu0 }
 0xe29   : > { %v2675_v56 = vpop.f32.mrb[67].mxu0  ;;  %2705 = vst.msk [vmem:[%s285_s14 + $0x10] sm:$0xff] %vm296_vm0, %v2681_v55  ;;  %v2684_v52 = vadd.f32 %v3124_v20, %v2826_v45 }
 0xe2a   : > { %2703 = vst.msk [vmem:[%s285_s14] sm:$0xff] %vm296_vm0, %v2673_v8  ;;  %v2676_v58 = vadd.f32 %v2826_v45, %v2675_v56 }
 0xe2b   : > { %2706 = vst.msk [vmem:[%s285_s14 + $0x18] sm:$0xff] %vm296_vm0, %v2684_v52 }
 0xe2c   : > { %2704 = vst.msk [vmem:[%s285_s14 + $0x8] sm:$0xff] %vm296_vm0, %v2676_v58 }
 0xe62   : > { %v3127_v49 = vpop.f32.mrb[68].mxu0 }
 0xe63   : > { %v2688_v0 = vpop.f32.mrb[69].mxu0  ;;  %v2697_v18 = vadd.f32 %v3127_v49, %v2826_v45 }
 0xe64   : > { %v2689_v59 = vadd.f32 %v2826_v45, %v2688_v0  ;;  %v3128_v6 = vpop.f32.mrb[70].mxu0 }
 0xe65   : > { %v2691_v24 = vpop.f32.mrb[71].mxu0  ;;  %2709 = vst.msk [vmem:[%s285_s14 + $0x30] sm:$0xff] %vm296_vm0, %v2697_v18  ;;  %v2700_v10 = vadd.f32 %v3128_v6, %v2826_v45 }
 0xe66   : > { %2707 = vst.msk [vmem:[%s285_s14 + $0x20] sm:$0xff] %vm296_vm0, %v2689_v59  ;;  %v2692_v26 = vadd.f32 %v2826_v45, %v2691_v24 }
 0xe67   : > { %2710 = vst.msk [vmem:[%s285_s14 + $0x38] sm:$0xff] %vm296_vm0, %v2700_v10 }
 0xe68   : > { %2708 = vst.msk [vmem:[%s285_s14 + $0x28] sm:$0xff] %vm296_vm0, %v2692_v26 }
 0xe69 PF: > { %s17_s24 = sadd.s32 1, %s3371_s24  }
 0xe6a   : > { %p14_p4 = scmp.ge.s32.totalorder %s17_s24, 4  }
 0xe6c   :  { %16 = sbr.rel (!%p14_p4) target bundleno = 1 (0x1), region = 81 }

// kernel: _lambda_.11
= control target key start
LH: loop header
LB: loop body
LE: loop exit
PB: predicated region body
PF: predicated region fallthrough
CT: control target
= control target key end

     0   :  { %s3254_s18 = smov 0   ;;  %s3857_s0 = inlined_call_operand.vmem [shape: f32[8,16,32], index: 0, kind: input, shape index: {}]   ;;  %s3858_s1 = inlined_call_operand.vmem [shape: bf16[32,96], index: 1, kind: input, shape index: {}]   ;;  %s3859_s2 = inlined_call_operand.vmem [shape: bf16[32,32], index: 2, kind: input, shape index: {}]   ;;  %s3860_s3 = inlined_call_operand.vmem [shape: f32[1,32], index: 3, kind: input, shape index: {}]   ;;  %s3861_s4 = inlined_call_operand.vmem [shape: f32[4,4,16,16], index: 4, kind: input, shape index: {}]   ;;  %s3862_s5 = inlined_call_operand.vmem [shape: f32[8,16,32], index: 5, kind: output, shape index: {}]  }
   0x1 LB: > { %s2604_s19 = sadd.s32 4294967295, %s3206_s18   ;;  %p2608_p0 = scmp.ge.s32.totalorder %s3206_s18, 1  ;;  %s3206_s18 = sphi %s3254_s18, %s15_s18  }
   0x2   : > { %p189_p1 = scmp.lt.s32.totalorder %s3206_s18, 3 }
   0x4   : > { %p190_p2 = pnand %p2608_p0, %p189_p1 }
   0x5   : > { %v3068_v0 = vld [vmem:[%s3858_s1] sm:$0xff] (!%p190_p2)   ;;  %s2609_s22 = sshll.u32 (!%p190_p2), %s2604_s19, 2  ;;  %v3069_v1 = vld [vmem:[%s3858_s1 + $0x8] sm:$0xff] (!%p190_p2)   ;;  %vm262_vm0 = vcmask (!%p190_p2), 261120   ;;  %v3208_v14 = vmov (!%p190_p2), 0.0   ;;  %vm3209_vm1 = vmmov (!%p190_p2), 0  }
   0x6   : > { %193 = sbr.rel (%p190_p2) target bundleno = 3171 (0xc63), region = 40  ;;  %p220_p3 = scmp.lt.s32.totalorder (!%p190_p2), %s2609_s22, 7  ;;  %2764 = vmatprep.subr.bf16.mxu0 (!%p190_p2), %v3068_v0  ;;  %2980 = vmatprep.subr.bf16.mxu1 (!%p190_p2), %v3068_v0  ;;  %vm355_vm2 = vcmask (!%p190_p2), 64512   ;;  %v344_v35 = vld [vmem:[%s3861_s4] sm:$0xff] (!%p190_p2)  ;;  %vm553_vm3 = vcmask (!%p190_p2), 130048   ;;  %v345_v41 = vld [vmem:[%s3861_s4 + $0x8] sm:$0xff] (!%p190_p2) }
   0x7   : > { %2765 = vmatpush3.bf16.msra.mxu0 (!%p190_p2), %v3068_v0  ;;  %2982 = vmatpush3.bf16.msra.mxu1 (!%p190_p2), %v3068_v0  ;;  %s3210_s29 = smov (!%p190_p2), 96   ;;  %v348_v36 = vld [vmem:[%s3861_s4 + $0x20] sm:$0xff] (!%p190_p2)  ;;  %v346_v51 = vld [vmem:[%s3861_s4 + $0x10] sm:$0xff] (!%p190_p2)  ;;  %v347_v54 = vld [vmem:[%s3861_s4 + $0x18] sm:$0xff] (!%p190_p2)  ;;  %s3211_s23 = smov (!%p190_p2), 64   ;;  %vm2425_vm4 = vcmask (!%p190_p2), 195584  }
   0x8   : > { %2766 = vmatprep.subr.bf16.mxu0 (!%p190_p2), %v3069_v1  ;;  %2981 = vmatprep.subr.bf16.mxu1 (!%p190_p2), %v3069_v1  ;;  %v349_v61 = vld [vmem:[%s3861_s4 + $0x28] sm:$0xff] (!%p190_p2)  ;;  %v350_v62 = vld [vmem:[%s3861_s4 + $0x30] sm:$0xff] (!%p190_p2)  ;;  %s3212_s24 = smov (!%p190_p2), 88   ;;  %s3213_s26 = smov (!%p190_p2), 120  }
   0x9   : > { %s3214_s19 = smov (!%p190_p2), 56   ;;  %s3215_s20 = smov (!%p190_p2), 80  }
   0xa   : > { %s3216_s21 = smov (!%p190_p2), 112   ;;  %s3217_s15 = smov (!%p190_p2), 48  }
   0xb   : > { %2767 = vmatpush3.bf16.msra.mxu0 (!%p190_p2), %v3069_v1  ;;  %2983 = vmatpush3.bf16.msra.mxu1 (!%p190_p2), %v3069_v1  ;;  %s3218_s16 = smov (!%p190_p2), 72   ;;  %s3219_s17 = smov (!%p190_p2), 104  }
   0xc   : > { %2776 = vmatprep.subr.bf16.mxu1 (!%p190_p2), %v3208_v14  ;;  %2788 = vmatprep.subr.bf16.mxu0 (!%p190_p2), %v3208_v14  ;;  %s3220_s12 = smov (!%p190_p2), 40   ;;  %s3221_s13 = smov (!%p190_p2), 8  }
   0xd   : > { %s3864_s22 = smov (!%p220_p3, %s2609_s22), 7  ;;  %s3222_s14 = smov 16  }
   0xe   : > { %s2686_s25 = sshll.u32 %s3864_s22, 4 }
   0xf   : > { %s224_s28 = scalar_lea.vmem %s3857_s0, %s2686_s25  ;;  %s231_s27 = scalar_lea.vmem %s3862_s5, %s2686_s25 }
  0x10   : > { %v234_v2 = vld [vmem:[%s224_s28] sm:$0xff]  ;;  %v235_v3 = vld [vmem:[%s224_s28 + $0x8] sm:$0xff]  ;;  %v236_v7 = vld [vmem:[%s224_s28 + $0x10] sm:$0xff] }
  0x11   : > { %v238_v4 = vld [vmem:[%s224_s28 + $0x20] sm:$0xff]  ;;  %v242_v5 = vpack.c.bf16 %v235_v3, %v234_v2  ;;  %v239_v6 = vld [vmem:[%s224_s28 + $0x28] sm:$0xff]  ;;  %v237_v8 = vld [vmem:[%s224_s28 + $0x18] sm:$0xff] }
  0x12   : > { %v244_v9 = vpack.c.bf16 %v239_v6, %v238_v4  ;;  %v243_v10 = vpack.c.bf16 %v237_v8, %v236_v7  ;;  %v240_v11 = vld [vmem:[%s224_s28 + $0x30] sm:$0xff]  ;;  %v241_v12 = vld [vmem:[%s224_s28 + $0x38] sm:$0xff] }
  0x13   : > { %2768 = vmatprep.mubr.msk.bf16.mxu0 %vm262_vm0, %v242_v5  ;;  %v245_v13 = vpack.c.bf16 %v241_v12, %v240_v11  ;;  %v351_v2 = vld [vmem:[%s3861_s4 + $0x38] sm:$0xff] }
  0x14   : > { %2772 = vmatprep.mubr.msk.bf16.mxu1 %vm262_vm0, %v244_v9  ;;  %2769 = vmatmul.mubr.msk.bf16.vlgmr.msra.gmra.mrb[0].mxu0 %vm262_vm0, %v243_v10 }
  0x15   : > { %2773 = vmatmul.mubr.msk.bf16.vlgmr.msra.gmra.mrb[0].mxu1 %vm262_vm0, %v245_v13  ;;  %2790 = vmatprep.mubr.msk.bf16.mxu0 %vm3209_vm1, %v3208_v14 }
  0x16   : > { %2778 = vmatprep.mubr.msk.bf16.mxu1 %vm3209_vm1, %v3208_v14 }
  0xe7   : > { %v2770_v15 = vpop.f32.mrb[0].mxu0 }
  0xe8   : > { %v2774_v16 = vpop.f32.mrb[0].mxu1  ;;  %v309_v17 = vpop.f32.mrb[1].mxu0 }
  0xe9   : > { %v325_v18 = vpop.f32.mrb[1].mxu1  ;;  %v2771_v19 = vpop.f32.mrb[2].mxu0 }
  0xea   : > { %v3286_v20 = vpack.c.bf16 %v2771_v19, %v2770_v15  ;;  %v2775_v21 = vpop.f32.mrb[2].mxu1  ;;  %v312_v22 = vpop.f32.mrb[3].mxu0 }
  0xeb   : > { %v3288_v23 = vpack.c.bf16 %v2775_v21, %v2774_v16  ;;  %v3290_v24 = vpack.c.bf16 %v312_v22, %v309_v17  ;;  %v328_v25 = vpop.f32.mrb[3].mxu1 }
  0xec   : > { %v3292_v26 = vpack.c.bf16 %v328_v25, %v325_v18 }
  0xed   : > { %353 = vrot.lane.b32.xlu0 %v3290_v24, %s3210_s29 }
  0xee   : > { %454 = vrot.lane.b32.xlu1 %v3292_v26, %s3210_s29 }
  0xf1   : > { %404 = vrot.lane.b32.xlu0 %v3286_v20, %s3210_s29 }
  0xf2   : > { %504 = vrot.lane.b32.xlu1 %v3288_v23, %s3210_s29 }
 0x15f   : > { %v354_v27 = vpop.permute.xlu0 %353 }
 0x160   : > { %v455_v28 = vpop.permute.xlu1 %454  ;;  %v360_v29 = vsel %vm355_vm2, %v354_v27, 0 }
 0x161   : > { %v460_v30 = vsel %vm355_vm2, %v455_v28, 0  ;;  %2777 = vmatpush3.bf16.xpose.msra.mxu1 %v360_v29 }
 0x162   : > { %2789 = vmatpush3.bf16.xpose.msra.mxu0 %v460_v30  ;;  %2782 = vmatprep.subr.bf16.mxu1 %v3208_v14 }
 0x163   : > { %2800 = vmatprep.subr.bf16.mxu0 %v3208_v14  ;;  %v405_v31 = vpop.permute.xlu0 %404 }
 0x164   : > { %v410_v32 = vsel %vm355_vm2, %v405_v31, 0  ;;  %v505_v33 = vpop.permute.xlu1 %504 }
 0x165   : > { %v510_v34 = vsel %vm355_vm2, %v505_v33, 0 }
 0x168   : > { %2779 = vmatmul.mubr.msk.bf16.vlgmr.msra.gmra.mrb[4].mxu1 %vm355_vm2, %v3290_v24 }
 0x169   : > { %2791 = vmatmul.mubr.msk.bf16.vlgmr.msra.gmra.mrb[4].mxu0 %vm355_vm2, %v3292_v26  ;;  %2783 = vmatpush3.bf16.xpose.msra.mxu1 %v410_v32 }
 0x16a   : > { %2784 = vmatprep.mubr.msk.bf16.mxu1 %vm3209_vm1, %v3208_v14  ;;  %2794 = vmatprep.subr.bf16.mxu1 %v3208_v14 }
 0x16b   : > { %2802 = vmatprep.mubr.msk.bf16.mxu0 %vm3209_vm1, %v3208_v14 }
 0x170   : > { %2785 = vmatmul.mubr.msk.bf16.vlgmr.msra.gmra.mrb[8].mxu1 %vm355_vm2, %v3286_v20 }
 0x171   : > { %2795 = vmatpush3.bf16.xpose.msra.mxu1 %v510_v34  ;;  %2796 = vmatprep.mubr.msk.bf16.mxu1 %vm3209_vm1, %v3208_v14 }
 0x172   : > { %2806 = vmatprep.subr.bf16.mxu1 %v3208_v14 }
 0x178   : > { %2797 = vmatmul.mubr.msk.bf16.vlgmr.msra.gmra.mrb[12].mxu1 %vm355_vm2, %v3288_v23 }
 0x179   : > { %2808 = vmatprep.mubr.msk.bf16.mxu1 %vm3209_vm1, %v3208_v14 }
 0x23b   : > { %v396_v37 = vpop.f32.mrb[4].mxu1 }
 0x23c   : > { %v397_v38 = vadd.f32 %v396_v37, %v344_v35  ;;  %v496_v39 = vpop.f32.mrb[4].mxu0  ;;  %v2780_v40 = vpop.f32.mrb[5].mxu1 }
 0x23d   : > { %v497_v42 = vadd.f32 %v496_v39, %v348_v36  ;;  %v2792_v43 = vpop.f32.mrb[5].mxu0  ;;  %v399_v44 = vpop.f32.mrb[6].mxu1 }
 0x23e   : > { %v499_v45 = vpop.f32.mrb[6].mxu0  ;;  %v2781_v46 = vpop.f32.mrb[7].mxu1  ;;  %v554_v47 = vsel %vm553_vm3, %v397_v38, -inf  ;;  %v400_v48 = vadd.f32 %v399_v44, %v345_v41 }
 0x23f   : > { %v2793_v49 = vpop.f32.mrb[7].mxu0  ;;  %v566_v50 = vsel %vm553_vm3, %v497_v42, -inf  ;;  %555 = vmax.xlane.f32.xlu0 %v554_v47  ;;  %v500_v63 = vadd.f32 %v499_v45, %v349_v61 }
 0x240   : > { %567 = vmax.xlane.f32.xlu1 %v566_v50  ;;  %v557_v52 = vsel %vm553_vm3, %v400_v48, -inf }
 0x241   : > { %v569_v8 = vsel %vm553_vm3, %v500_v63, -inf }
 0x243   : > { %v446_v53 = vpop.f32.mrb[8].mxu1 }
 0x244   : > { %558 = vmax.xlane.f32.xlu1 %v557_v52  ;;  %v447_v55 = vadd.f32 %v446_v53, %v346_v51  ;;  %v2786_v56 = vpop.f32.mrb[9].mxu1 }
 0x245   : > { %v449_v57 = vpop.f32.mrb[10].mxu1 }
 0x246   : > { %v450_v58 = vadd.f32 %v449_v57, %v347_v54  ;;  %v2787_v59 = vpop.f32.mrb[11].mxu1  ;;  %v560_v60 = vsel %vm553_vm3, %v447_v55, -inf }
 0x247   : > { %561 = vmax.xlane.f32.xlu0 %v560_v60 }
 0x248   : > { %v563_v0 = vsel %vm553_vm3, %v450_v58, -inf }
 0x24b   : > { %564 = vmax.xlane.f32.xlu0 %v563_v0  ;;  %v546_v1 = vpop.f32.mrb[12].mxu1 }
 0x24c   : > { %v3351_v3 = vadd.f32 %v546_v1, %v350_v62  ;;  %v2798_v4 = vpop.f32.mrb[13].mxu1 }
 0x24d   : > { %v549_v5 = vpop.f32.mrb[14].mxu1 }
 0x24e   : > { %v3353_v6 = vadd.f32 %v549_v5, %v351_v2  ;;  %v2799_v7 = vpop.f32.mrb[15].mxu1  ;;  %v572_v9 = vsel %vm553_vm3, %v3351_v3, -inf }
 0x24f   : > { %570 = vmax.xlane.f32.xlu0 %v569_v8  ;;  %573 = vmax.xlane.f32.xlu1 %v572_v9 }
 0x250   : > { %v575_v10 = vsel %vm553_vm3, %v3353_v6, -inf }
 0x253   : > { %576 = vmax.xlane.f32.xlu0 %v575_v10 }
 0x260   : > { %646 = vrot.lane.b32.xlu1 %v3290_v24, %s3211_s23 }
 0x2cc   : > { %v556_v11 = vpop.xlane.xlu0 %555 }
 0x2cd   : > { %v568_v12 = vpop.xlane.xlu1 %567  ;;  %v578_v13 = vsub.f32 %v397_v38, %v556_v11 }
 0x2ce   : > { %v582_v15 = vsub.f32 %v497_v42, %v568_v12 }
 0x2cf   : > { %v586_v16 = vmul.f32 1.442695, %v578_v13 }
 0x2d0   : > { %v594_v17 = vmul.f32 1.442695, %v582_v15 }
 0x2d1   : > { %3072 = vpow2.f32 %v586_v16  ;;  %v559_v18 = vpop.xlane.xlu1 %558 }
 0x2d2   : > { %v579_v19 = vsub.f32 %v400_v48, %v559_v18  ;;  %3074 = vpow2.f32 %v594_v17 }
 0x2d4   : > { %v588_v21 = vmul.f32 1.442695, %v579_v19  ;;  %v562_v22 = vpop.xlane.xlu0 %561 }
 0x2d5   : > { %v580_v25 = vsub.f32 %v447_v55, %v562_v22 }
 0x2d6   : > { %3076 = vpow2.f32 %v588_v21 }
 0x2d7   : > { %v590_v27 = vmul.f32 1.442695, %v580_v25 }
 0x2d8   : > { %v565_v28 = vpop.xlane.xlu0 %564 }
 0x2d9   : > { %3078 = vpow2.f32 %v590_v27  ;;  %v581_v30 = vsub.f32 %v450_v58, %v565_v28 }
 0x2db   : > { %v3362_v29 = vpop.eup %3072  ;;  %v592_v38 = vmul.f32 1.442695, %v581_v30 }
 0x2dc   : > { %v574_v31 = vpop.xlane.xlu1 %573  ;;  %v571_v32 = vpop.xlane.xlu0 %570  ;;  %v602_v33 = vsel %vm553_vm3, %v3362_v29, 0.0 }
 0x2dd   : > { %v3366_v34 = vpop.eup %3074  ;;  %v583_v35 = vsub.f32 %v500_v63, %v571_v32  ;;  %603 = vadd.xlane.f32.xlu1 %v602_v33  ;;  %v584_v48 = vsub.f32 %v3351_v3, %v574_v31 }
 0x2de   : > { %v614_v40 = vsel %vm553_vm3, %v3366_v34, 0.0 }
 0x2df   : > { %v596_v36 = vmul.f32 1.442695, %v583_v35  ;;  %v598_v49 = vmul.f32 1.442695, %v584_v48 }
 0x2e0   : > { %v3077_v37 = vpop.eup %3076  ;;  %v647_v39 = vpop.permute.xlu1 %646 }
 0x2e1   : > { %2801 = vmatpush3.bf16.msra.mxu0 %v647_v39  ;;  %v605_v41 = vsel %vm553_vm3, %v3077_v37, 0.0  ;;  %615 = vadd.xlane.f32.xlu1 %v614_v40  ;;  %3080 = vpow2.f32 %v596_v36  ;;  %v577_v50 = vpop.xlane.xlu0 %576 }
 0x2e2   : > { %606 = vadd.xlane.f32.xlu0 %v605_v41  ;;  %2812 = vmatprep.subr.bf16.mxu0 %v3208_v14  ;;  %3082 = vpow2.f32 %v592_v38  ;;  %v585_v51 = vsub.f32 %v3353_v6, %v577_v50 }
 0x2e3   : > { %v3372_v42 = vpop.eup %3078  ;;  %3084 = vpow2.f32 %v598_v49 }
 0x2e4   : > { %v608_v43 = vsel %vm553_vm3, %v3372_v42, 0.0  ;;  %v600_v52 = vmul.f32 1.442695, %v585_v51 }
 0x2e5   : > { %609 = vadd.xlane.f32.xlu1 %v608_v43 }
 0x2e6   : > { %3086 = vpow2.f32 %v600_v52 }
 0x2eb   : > { %v3081_v44 = vpop.eup %3080 }
 0x2ec   : > { %v617_v45 = vsel %vm553_vm3, %v3081_v44, 0.0  ;;  %v3377_v46 = vpop.eup %3082 }
 0x2ed   : > { %618 = vadd.xlane.f32.xlu0 %v617_v45  ;;  %v611_v47 = vsel %vm553_vm3, %v3377_v46, 0.0  ;;  %v3389_v53 = vpop.eup %3084 }
 0x2ee   : > { %v620_v54 = vsel %vm553_vm3, %v3389_v53, 0.0 }
 0x2f0   : > { %v3393_v55 = vpop.eup %3086 }
 0x2f1   : > { %612 = vadd.xlane.f32.xlu0 %v611_v47  ;;  %v623_v56 = vsel %vm553_vm3, %v3393_v55, 0.0 }
 0x2f6   : > { %740 = vrot.lane.b32.xlu1 %v3292_v26, %s3211_s23 }
 0x2fa   : > { %787 = vrot.lane.b32.xlu1 %v3288_v23, %s3211_s23 }
 0x307   : > { %693 = vrot.lane.b32.xlu0 %v3286_v20, %s3211_s23 }
 0x31e   : > { %621 = vadd.xlane.f32.xlu1 %v620_v54 }
 0x326   : > { %624 = vadd.xlane.f32.xlu0 %v623_v56 }
 0x32f   : > { %896 = vrot.lane.b32.xlu1 %v3286_v20, %s3212_s24 }
 0x333   : > { %947 = vrot.lane.b32.xlu1 %v3292_v26, %s3212_s24 }
 0x337   : > { %998 = vrot.lane.b32.xlu1 %v3288_v23, %s3212_s24 }
 0x33b   : > { %996 = vrot.lane.b32.xlu1 %v3288_v23, %s3213_s26 }
 0x33c   : > { %845 = vrot.lane.b32.xlu0 %v3290_v24, %s3212_s24 }
 0x340   : > { %843 = vrot.lane.b32.xlu0 %v3290_v24, %s3213_s26 }
 0x344   : > { %894 = vrot.lane.b32.xlu0 %v3286_v20, %s3213_s26 }
 0x348   : > { %945 = vrot.lane.b32.xlu0 %v3292_v26, %s3213_s26 }
 0x36a   : > { %v604_v57 = vpop.xlane.xlu1 %603 }
 0x36b   : > { %3088 = vrcp.f32 %v604_v57 }
 0x36e   : > { %v616_v59 = vpop.xlane.xlu1 %615 }
 0x36f   : > { %v607_v58 = vpop.xlane.xlu0 %606 }
 0x370   : > { %3090 = vrcp.f32 %v607_v58 }
 0x371   : > { %3092 = vrcp.f32 %v616_v59 }
 0x372   : > { %v610_v61 = vpop.xlane.xlu1 %609 }
 0x375   : > { %v3089_v60 = vpop.eup %3088 }
 0x376   : > { %v634_v63 = vmul.f32 %v3089_v60, %v3362_v29  ;;  %v741_v3 = vpop.permute.xlu1 %740 }
 0x37a   : > { %v3091_v62 = vpop.eup %3090  ;;  %v619_v1 = vpop.xlane.xlu0 %618 }
 0x37b   : > { %v635_v0 = vmul.f32 %v3091_v62, %v3077_v37  ;;  %3094 = vrcp.f32 %v619_v1  ;;  %v3093_v6 = vpop.eup %3092  ;;  %v788_v17 = vpop.permute.xlu1 %787 }
 0x37c   : > { %3096 = vrcp.f32 %v610_v61  ;;  %v638_v8 = vmul.f32 %v3093_v6, %v3366_v34 }
 0x37d   : > { %v642_v2 = vpack.c.bf16 %v635_v0, %v634_v63 }
 0x37e   : > { %v613_v4 = vpop.xlane.xlu0 %612 }
 0x37f   : > { %2803 = vmatmul.mubr.msk.bf16.vlgmr.msra.gmra.mrb[8].mxu0 %vm553_vm3, %v642_v2  ;;  %3098 = vrcp.f32 %v613_v4 }
 0x380   : > { %2813 = vmatpush3.bf16.msra.mxu0 %v741_v3  ;;  %2814 = vmatprep.mubr.msk.bf16.mxu0 %vm3209_vm1, %v3208_v14  ;;  %v2633_v3 = vld [vmem:[%s3861_s4 + $0x60] sm:$0xff] }
 0x381   : > { %2824 = vmatprep.subr.bf16.mxu0 %v3208_v14 }
 0x382   : > { %v694_v5 = vpop.permute.xlu0 %693 }
 0x383   : > { %2807 = vmatpush3.bf16.msra.mxu1 %v694_v5 }
 0x384   : > { %2818 = vmatprep.subr.bf16.mxu1 %v3208_v14 }
 0x385   : > { %v3095_v7 = vpop.eup %3094 }
 0x386   : > { %v639_v9 = vmul.f32 %v3095_v7, %v3081_v44  ;;  %v3097_v10 = vpop.eup %3096  ;;  %v2631_v7 = vld [vmem:[%s3861_s4 + $0x50] sm:$0xff] }
 0x387   : > { %v636_v13 = vmul.f32 %v3097_v10, %v3372_v42 }
 0x388   : > { %v644_v11 = vpack.c.bf16 %v639_v9, %v638_v8 }
 0x389   : > { %v3099_v12 = vpop.eup %3098 }
 0x38a   : > { %v637_v15 = vmul.f32 %v3099_v12, %v3377_v46  ;;  %2815 = vmatmul.mubr.msk.bf16.vlgmr.msra.gmra.mrb[12].mxu0 %vm553_vm3, %v644_v11  ;;  %v2632_v12 = vld [vmem:[%s3861_s4 + $0x58] sm:$0xff] }
 0x38b   : > { %2826 = vmatprep.mubr.msk.bf16.mxu0 %vm3209_vm1, %v3208_v14 }
 0x38c   : > { %v643_v16 = vpack.c.bf16 %v637_v15, %v636_v13 }
 0x38e   : > { %2809 = vmatmul.mubr.msk.bf16.vlgmr.msra.gmra.mrb[16].mxu1 %vm553_vm3, %v643_v16 }
 0x38f   : > { %2819 = vmatpush3.bf16.msra.mxu1 %v788_v17  ;;  %2820 = vmatprep.mubr.msk.bf16.mxu1 %vm3209_vm1, %v3208_v14 }
 0x390   : > { %2830 = vmatprep.subr.bf16.mxu1 %v3208_v14 }
 0x3ab   : > { %v622_v18 = vpop.xlane.xlu1 %621 }
 0x3ac   : > { %3100 = vrcp.f32 %v622_v18 }
 0x3af   : > { %v897_v21 = vpop.permute.xlu1 %896 }
 0x3b0   : > { %v902_v36 = vsel %vm355_vm2, %v897_v21, 0  ;;  %v2634_v21 = vld [vmem:[%s3861_s4 + $0x68] sm:$0xff] }
 0x3b3   : > { %v625_v19 = vpop.xlane.xlu0 %624  ;;  %v948_v29 = vpop.permute.xlu1 %947 }
 0x3b4   : > { %3102 = vrcp.f32 %v625_v19  ;;  %v953_v33 = vsel %vm355_vm2, %v948_v29, 0  ;;  %v2636_v29 = vld [vmem:[%s3861_s4 + $0x78] sm:$0xff] }
 0x3b6   : > { %v3101_v28 = vpop.eup %3100 }
 0x3b7   : > { %v846_v22 = vpop.permute.xlu0 %845  ;;  %v640_v31 = vmul.f32 %v3101_v28, %v3389_v53  ;;  %v999_v38 = vpop.permute.xlu1 %998  ;;  %v2629_v53 = vld [vmem:[%s3861_s4 + $0x40] sm:$0xff] }
 0x3b8   : > { %v851_v25 = vsel %vm355_vm2, %v846_v22, 0  ;;  %v1004_v39 = vsel %vm355_vm2, %v999_v38, 0  ;;  %v2635_v22 = vld [vmem:[%s3861_s4 + $0x70] sm:$0xff] }
 0x3b9   : > { %2825 = vmatpush3.bf16.xpose.msra.mxu0 %v851_v25 }
 0x3ba   : > { %2836 = vmatprep.subr.bf16.mxu0 %v3208_v14 }
 0x3bb   : > { %v844_v27 = vpop.permute.xlu0 %843  ;;  %v997_v40 = vpop.permute.xlu1 %996 }
 0x3be   : > { %v3103_v30 = vpop.eup %3102 }
 0x3bf   : > { %v641_v32 = vmul.f32 %v3103_v30, %v3393_v55  ;;  %v895_v34 = vpop.permute.xlu0 %894  ;;  %v2630_v55 = vld [vmem:[%s3861_s4 + $0x48] sm:$0xff] }
 0x3c0   : > { %2827 = vmatmul.mubr.msk.bf16.vlgmr.msra.gmra.mrb[16].mxu0 %vm355_vm2, %v844_v27 }
 0x3c1   : > { %2837 = vmatpush3.bf16.xpose.msra.mxu0 %v953_v33  ;;  %v645_v35 = vpack.c.bf16 %v641_v32, %v640_v31  ;;  %2838 = vmatprep.mubr.msk.bf16.mxu0 %vm3209_vm1, %v3208_v14 }
 0x3c2   : > { %2848 = vmatprep.subr.bf16.mxu0 %v3208_v14 }
 0x3c3   : > { %2821 = vmatmul.mubr.msk.bf16.vlgmr.msra.gmra.mrb[20].mxu1 %vm553_vm3, %v645_v35  ;;  %v946_v37 = vpop.permute.xlu0 %945 }
 0x3c4   : > { %2831 = vmatpush3.bf16.xpose.msra.mxu1 %v902_v36  ;;  %2832 = vmatprep.mubr.msk.bf16.mxu1 %vm3209_vm1, %v3208_v14 }
 0x3c5   : > { %2842 = vmatprep.subr.bf16.mxu1 %v3208_v14 }
 0x3c8   : > { %2839 = vmatmul.mubr.msk.bf16.vlgmr.msra.gmra.mrb[20].mxu0 %vm355_vm2, %v946_v37 }
 0x3c9   : > { %2850 = vmatprep.mubr.msk.bf16.mxu0 %vm3209_vm1, %v3208_v14 }
 0x3cb   : > { %2833 = vmatmul.mubr.msk.bf16.vlgmr.msra.gmra.mrb[24].mxu1 %vm355_vm2, %v895_v34 }
 0x3cc   : > { %2843 = vmatpush3.bf16.xpose.msra.mxu1 %v1004_v39  ;;  %2844 = vmatprep.mubr.msk.bf16.mxu1 %vm3209_vm1, %v3208_v14 }
 0x3cd   : > { %2854 = vmatprep.subr.bf16.mxu1 %v3208_v14 }
 0x3d3   : > { %2845 = vmatmul.mubr.msk.bf16.vlgmr.msra.gmra.mrb[28].mxu1 %vm355_vm2, %v997_v40 }
 0x3d4   : > { %2856 = vmatprep.mubr.msk.bf16.mxu1 %vm3209_vm1, %v3208_v14 }
 0x452   : > { %v3446_v41 = vpop.f32.mrb[8].mxu0 }
 0x453   : > { %v2804_v42 = vpop.f32.mrb[9].mxu0 }
 0x454   : > { %v3448_v43 = vpop.f32.mrb[10].mxu0 }
 0x455   : > { %v2805_v44 = vpop.f32.mrb[11].mxu0 }
 0x45d   : > { %v3450_v45 = vpop.f32.mrb[12].mxu0 }
 0x45e   : > { %v2816_v46 = vpop.f32.mrb[13].mxu0 }
 0x45f   : > { %v3452_v47 = vpop.f32.mrb[14].mxu0 }
 0x460   : > { %v2817_v48 = vpop.f32.mrb[15].mxu0 }
 0x461   : > { %v3454_v49 = vpop.f32.mrb[16].mxu1 }
 0x462   : > { %v2810_v50 = vpop.f32.mrb[17].mxu1 }
 0x463   : > { %v3456_v51 = vpop.f32.mrb[18].mxu1 }
 0x464   : > { %v2811_v52 = vpop.f32.mrb[19].mxu1 }
 0x493   : > { %v887_v54 = vpop.f32.mrb[16].mxu0 }
 0x494   : > { %v888_v56 = vadd.f32 %v2629_v53, %v887_v54  ;;  %v2828_v57 = vpop.f32.mrb[17].mxu0 }
 0x495   : > { %v890_v58 = vpop.f32.mrb[18].mxu0 }
 0x496   : > { %v891_v59 = vadd.f32 %v2630_v55, %v890_v58  ;;  %v3464_v60 = vpop.f32.mrb[20].mxu1  ;;  %v2829_v61 = vpop.f32.mrb[19].mxu0  ;;  %v1047_v62 = vsel %vm553_vm3, %v888_v56, -inf }
 0x497   : > { %v2822_v63 = vpop.f32.mrb[21].mxu1  ;;  %1048 = vmax.xlane.f32.xlu0 %v1047_v62 }
 0x498   : > { %v3467_v0 = vpop.f32.mrb[22].mxu1  ;;  %v1050_v1 = vsel %vm553_vm3, %v891_v59, -inf }
 0x499   : > { %v2823_v2 = vpop.f32.mrb[23].mxu1  ;;  %1051 = vmax.xlane.f32.xlu1 %v1050_v1 }
 0x49b   : > { %v989_v4 = vpop.f32.mrb[20].mxu0 }
 0x49c   : > { %v990_v5 = vadd.f32 %v2633_v3, %v989_v4  ;;  %v2840_v6 = vpop.f32.mrb[21].mxu0 }
 0x49d   : > { %v992_v8 = vpop.f32.mrb[22].mxu0 }
 0x49e   : > { %v938_v9 = vpop.f32.mrb[24].mxu1  ;;  %v2841_v10 = vpop.f32.mrb[23].mxu0  ;;  %v1059_v11 = vsel %vm553_vm3, %v990_v5, -inf  ;;  %v993_v25 = vadd.f32 %v2634_v21, %v992_v8 }
 0x49f   : > { %v939_v13 = vadd.f32 %v2631_v7, %v938_v9  ;;  %v2834_v15 = vpop.f32.mrb[25].mxu1  ;;  %1060 = vmax.xlane.f32.xlu1 %v1059_v11 }
 0x4a0   : > { %v941_v16 = vpop.f32.mrb[26].mxu1  ;;  %v1062_v36 = vsel %vm553_vm3, %v993_v25, -inf }
 0x4a1   : > { %v942_v17 = vadd.f32 %v2632_v12, %v941_v16  ;;  %v2835_v18 = vpop.f32.mrb[27].mxu1  ;;  %v1053_v19 = vsel %vm553_vm3, %v939_v13, -inf }
 0x4a2   : > { %1054 = vmax.xlane.f32.xlu0 %v1053_v19 }
 0x4a3   : > { %v1056_v27 = vsel %vm553_vm3, %v942_v17, -inf }
 0x4a6   : > { %1057 = vmax.xlane.f32.xlu0 %v1056_v27  ;;  %v1040_v28 = vpop.f32.mrb[28].mxu1 }
 0x4a7   : > { %v1041_v30 = vadd.f32 %v2635_v22, %v1040_v28  ;;  %v2846_v31 = vpop.f32.mrb[29].mxu1 }
 0x4a8   : > { %v1043_v32 = vpop.f32.mrb[30].mxu1 }
 0x4a9   : > { %v1044_v33 = vadd.f32 %v2636_v29, %v1043_v32  ;;  %v2847_v34 = vpop.f32.mrb[31].mxu1  ;;  %v1065_v35 = vsel %vm553_vm3, %v1041_v30, -inf }
 0x4aa   : > { %1066 = vmax.xlane.f32.xlu1 %v1065_v35  ;;  %1063 = vmax.xlane.f32.xlu0 %v1062_v36 }
 0x4ab   : > { %v1068_v37 = vsel %vm553_vm3, %v1044_v33, -inf }
 0x4ae   : > { %1069 = vmax.xlane.f32.xlu0 %v1068_v37 }
 0x4bb   : > { %1139 = vrot.lane.b32.xlu1 %v3290_v24, %s3214_s19 }
 0x4bf   : > { %1233 = vrot.lane.b32.xlu1 %v3292_v26, %s3214_s19 }
 0x4c3   : > { %1280 = vrot.lane.b32.xlu1 %v3288_v23, %s3214_s19 }
 0x4c4   : > { %1186 = vrot.lane.b32.xlu0 %v3286_v20, %s3214_s19 }
 0x524   : > { %v1049_v38 = vpop.xlane.xlu0 %1048 }
 0x525   : > { %v1071_v39 = vsub.f32 %v888_v56, %v1049_v38 }
 0x526   : > { %v1052_v40 = vpop.xlane.xlu1 %1051 }
 0x527   : > { %v1079_v42 = vmul.f32 1.442695, %v1071_v39  ;;  %v1072_v44 = vsub.f32 %v891_v59, %v1052_v40 }
 0x529   : > { %3104 = vpow2.f32 %v1079_v42  ;;  %v1081_v46 = vmul.f32 1.442695, %v1072_v44 }
 0x52b   : > { %3106 = vpow2.f32 %v1081_v46 }
 0x52c   : > { %v1061_v48 = vpop.xlane.xlu1 %1060 }
 0x52d   : > { %v1075_v50 = vsub.f32 %v990_v5, %v1061_v48 }
 0x52f   : > { %v1055_v52 = vpop.xlane.xlu0 %1054  ;;  %v1087_v54 = vmul.f32 1.442695, %v1075_v50 }
 0x530   : > { %v1073_v53 = vsub.f32 %v939_v13, %v1055_v52 }
 0x532   : > { %v1083_v55 = vmul.f32 1.442695, %v1073_v53 }
 0x533   : > { %v3498_v57 = vpop.eup %3104  ;;  %v1058_v58 = vpop.xlane.xlu0 %1057 }
 0x534   : > { %3108 = vpow2.f32 %v1083_v55  ;;  %v1074_v61 = vsub.f32 %v942_v17, %v1058_v58  ;;  %v1095_v56 = vsel %vm553_vm3, %v3498_v57, 0.0 }
 0x535   : > { %v3502_v62 = vpop.eup %3106  ;;  %1096 = vadd.xlane.f32.xlu1 %v1095_v56  ;;  %3110 = vpow2.f32 %v1087_v54 }
 0x536   : > { %v1085_v59 = vmul.f32 1.442695, %v1074_v61  ;;  %v1098_v63 = vsel %vm553_vm3, %v3502_v62, 0.0 }
 0x537   : > { %v1067_v1 = vpop.xlane.xlu1 %1066  ;;  %1099 = vadd.xlane.f32.xlu0 %v1098_v63  ;;  %v1064_v2 = vpop.xlane.xlu0 %1063 }
 0x538   : > { %3112 = vpow2.f32 %v1085_v59  ;;  %v1077_v3 = vsub.f32 %v1041_v30, %v1067_v1  ;;  %v1076_v4 = vsub.f32 %v993_v25, %v1064_v2 }
 0x53a   : > { %v1091_v5 = vmul.f32 1.442695, %v1077_v3  ;;  %v1089_v6 = vmul.f32 1.442695, %v1076_v4 }
 0x53b   : > { %v1140_v7 = vpop.permute.xlu1 %1139  ;;  %v1070_v8 = vpop.xlane.xlu0 %1069 }
 0x53c   : > { %3114 = vpow2.f32 %v1091_v5  ;;  %v1078_v9 = vsub.f32 %v1044_v33, %v1070_v8  ;;  %2849 = vmatpush3.bf16.msra.mxu0 %v1140_v7 }
 0x53d   : > { %3116 = vpow2.f32 %v1089_v6  ;;  %2860 = vmatprep.subr.bf16.mxu0 %v3208_v14 }
 0x53e   : > { %v3109_v10 = vpop.eup %3108  ;;  %v1093_v11 = vmul.f32 1.442695, %v1078_v9 }
 0x53f   : > { %v1187_v12 = vpop.permute.xlu0 %1186  ;;  %v1101_v13 = vsel %vm553_vm3, %v3109_v10, 0.0  ;;  %v3508_v15 = vpop.eup %3110 }
 0x540   : > { %3118 = vpow2.f32 %v1093_v11  ;;  %1102 = vadd.xlane.f32.xlu1 %v1101_v13  ;;  %2855 = vmatpush3.bf16.msra.mxu1 %v1187_v12  ;;  %v1107_v17 = vsel %vm553_vm3, %v3508_v15, 0.0  ;;  %v1234_v29 = vpop.permute.xlu1 %1233 }
 0x541   : > { %2866 = vmatprep.subr.bf16.mxu1 %v3208_v14 }
 0x542   : > { %v3113_v16 = vpop.eup %3112 }
 0x543   : > { %v1104_v18 = vsel %vm553_vm3, %v3113_v16, 0.0 }
 0x544   : > { %1108 = vadd.xlane.f32.xlu1 %v1107_v17  ;;  %1105 = vadd.xlane.f32.xlu0 %v1104_v18  ;;  %v1281_v30 = vpop.permute.xlu1 %1280 }
 0x546   : > { %v3514_v19 = vpop.eup %3114 }
 0x547   : > { %v3117_v21 = vpop.eup %3116  ;;  %v1113_v22 = vsel %vm553_vm3, %v3514_v19, 0.0 }
 0x548   : > { %1114 = vadd.xlane.f32.xlu1 %v1113_v22  ;;  %v1110_v25 = vsel %vm553_vm3, %v3117_v21, 0.0 }
 0x549   : > { %1111 = vadd.xlane.f32.xlu0 %v1110_v25 }
 0x54a   : > { %v3119_v27 = vpop.eup %3118 }
 0x54b   : > { %v1116_v28 = vsel %vm553_vm3, %v3119_v27, 0.0 }
 0x54d   : > { %1117 = vadd.xlane.f32.xlu0 %v1116_v28 }
 0x559   : > { %1389 = vrot.lane.b32.xlu1 %v3286_v20, %s3215_s20 }
 0x55d   : > { %1440 = vrot.lane.b32.xlu1 %v3292_v26, %s3215_s20 }
 0x561   : > { %1491 = vrot.lane.b32.xlu1 %v3288_v23, %s3215_s20 }
 0x563   : > { %1338 = vrot.lane.b32.xlu0 %v3290_v24, %s3215_s20  ;;  %s3223_s20 = smov 24  }
 0x565   : > { %1489 = vrot.lane.b32.xlu1 %v3288_v23, %s3216_s21 }
 0x567   : > { %1336 = vrot.lane.b32.xlu0 %v3290_v24, %s3216_s21 }
 0x56b   : > { %1387 = vrot.lane.b32.xlu0 %v3286_v20, %s3216_s21 }
 0x56f   : > { %1438 = vrot.lane.b32.xlu0 %v3292_v26, %s3216_s21 }
 0x5c2   : > { %v1097_v31 = vpop.xlane.xlu1 %1096 }
 0x5c3   : > { %3120 = vrcp.f32 %v1097_v31 }
 0x5c4   : > { %v1100_v32 = vpop.xlane.xlu0 %1099 }
 0x5c5   : > { %3122 = vrcp.f32 %v1100_v32 }
 0x5cd   : > { %v3121_v33 = vpop.eup %3120  ;;  %v1103_v34 = vpop.xlane.xlu1 %1102 }
 0x5ce   : > { %v1127_v36 = vmul.f32 %v3121_v33, %v3498_v57  ;;  %3124 = vrcp.f32 %v1103_v34 }
 0x5cf   : > { %v3123_v35 = vpop.eup %3122 }
 0x5d0   : > { %v1128_v37 = vmul.f32 %v3123_v35, %v3502_v62 }
 0x5d1   : > { %v1109_v38 = vpop.xlane.xlu1 %1108  ;;  %v1106_v39 = vpop.xlane.xlu0 %1105 }
 0x5d2   : > { %v1135_v40 = vpack.c.bf16 %v1128_v37, %v1127_v36  ;;  %3126 = vrcp.f32 %v1106_v39 }
 0x5d3   : > { %3128 = vrcp.f32 %v1109_v38  ;;  %v2645_v38 = vld [vmem:[%s3861_s4 + $0x80] sm:$0xff] }
 0x5d4   : > { %2851 = vmatmul.mubr.msk.bf16.vlgmr.msra.gmra.mrb[24].mxu0 %vm553_vm3, %v1135_v40 }
 0x5d5   : > { %2861 = vmatpush3.bf16.msra.mxu0 %v1234_v29  ;;  %2862 = vmatprep.mubr.msk.bf16.mxu0 %vm3209_vm1, %v3208_v14  ;;  %v1115_v42 = vpop.xlane.xlu1 %1114 }
 0x5d6   : > { %v1112_v44 = vpop.xlane.xlu0 %1111  ;;  %2872 = vmatprep.subr.bf16.mxu0 %v3208_v14 }
 0x5d7   : > { %3130 = vrcp.f32 %v1112_v44  ;;  %v2646_v44 = vld [vmem:[%s3861_s4 + $0x88] sm:$0xff] }
 0x5d8   : > { %3132 = vrcp.f32 %v1115_v42  ;;  %v3125_v48 = vpop.eup %3124 }
 0x5d9   : > { %v1129_v52 = vmul.f32 %v3125_v48, %v3109_v10  ;;  %v1390_v59 = vpop.permute.xlu1 %1389 }
 0x5da   : > { %v1118_v46 = vpop.xlane.xlu0 %1117  ;;  %v1395_v8 = vsel %vm355_vm2, %v1390_v59, 0  ;;  %v2649_v59 = vld [vmem:[%s3861_s4 + $0xa0] sm:$0xff] }
 0x5db   : > { %3134 = vrcp.f32 %v1118_v46 }
 0x5dc   : > { %v3127_v50 = vpop.eup %3126 }
 0x5dd   : > { %v1130_v53 = vmul.f32 %v3127_v50, %v3113_v16  ;;  %v3129_v54 = vpop.eup %3128  ;;  %v1441_v7 = vpop.permute.xlu1 %1440 }
 0x5de   : > { %v1131_v58 = vmul.f32 %v3129_v54, %v3508_v15  ;;  %v1339_v62 = vpop.permute.xlu0 %1338  ;;  %v1446_v9 = vsel %vm355_vm2, %v1441_v7, 0  ;;  %v2650_v7 = vld [vmem:[%s3861_s4 + $0xa8] sm:$0xff] }
 0x5df   : > { %v1136_v55 = vpack.c.bf16 %v1130_v53, %v1129_v52  ;;  %v1344_v4 = vsel %vm355_vm2, %v1339_v62, 0 }
 0x5e1   : > { %v3131_v57 = vpop.eup %3130  ;;  %2857 = vmatmul.mubr.msk.bf16.vlgmr.msra.gmra.mrb[32].mxu1 %vm553_vm3, %v1136_v55  ;;  %v1492_v11 = vpop.permute.xlu1 %1491  ;;  %v2647_v55 = vld [vmem:[%s3861_s4 + $0x90] sm:$0xff] }
 0x5e2   : > { %v1132_v61 = vmul.f32 %v3131_v57, %v3117_v21  ;;  %v3133_v56 = vpop.eup %3132  ;;  %2867 = vmatpush3.bf16.msra.mxu1 %v1281_v30  ;;  %2868 = vmatprep.mubr.msk.bf16.mxu1 %vm3209_vm1, %v3208_v14  ;;  %v1337_v6 = vpop.permute.xlu0 %1336  ;;  %v1497_v12 = vsel %vm355_vm2, %v1492_v11, 0 }
 0x5e3   : > { %2878 = vmatprep.subr.bf16.mxu1 %v3208_v14  ;;  %v1133_v2 = vmul.f32 %v3133_v56, %v3514_v19 }
 0x5e4   : > { %v1137_v63 = vpack.c.bf16 %v1132_v61, %v1131_v58  ;;  %v2648_v61 = vld [vmem:[%s3861_s4 + $0x98] sm:$0xff] }
 0x5e5   : > { %v3135_v1 = vpop.eup %3134  ;;  %v1490_v15 = vpop.permute.xlu1 %1489 }
 0x5e6   : > { %v1134_v3 = vmul.f32 %v3135_v1, %v3119_v27  ;;  %2863 = vmatmul.mubr.msk.bf16.vlgmr.msra.gmra.mrb[28].mxu0 %vm553_vm3, %v1137_v63  ;;  %v1388_v10 = vpop.permute.xlu0 %1387 }
 0x5e7   : > { %2873 = vmatpush3.bf16.xpose.msra.mxu0 %v1344_v4  ;;  %2874 = vmatprep.mubr.msk.bf16.mxu0 %vm3209_vm1, %v3208_v14 }
 0x5e8   : > { %v1138_v5 = vpack.c.bf16 %v1134_v3, %v1133_v2  ;;  %2884 = vmatprep.subr.bf16.mxu0 %v3208_v14 }
 0x5ea   : > { %2869 = vmatmul.mubr.msk.bf16.vlgmr.msra.gmra.mrb[36].mxu1 %vm553_vm3, %v1138_v5  ;;  %v1439_v13 = vpop.permute.xlu0 %1438 }
 0x5eb   : > { %2880 = vmatprep.mubr.msk.bf16.mxu1 %vm3209_vm1, %v3208_v14  ;;  %2879 = vmatpush3.bf16.xpose.msra.mxu1 %v1395_v8 }
 0x5ec   : > { %2890 = vmatprep.subr.bf16.mxu1 %v3208_v14 }
 0x5ee   : > { %2875 = vmatmul.mubr.msk.bf16.vlgmr.msra.gmra.mrb[32].mxu0 %vm355_vm2, %v1337_v6 }
 0x5ef   : > { %2885 = vmatpush3.bf16.xpose.msra.mxu0 %v1446_v9  ;;  %2886 = vmatprep.mubr.msk.bf16.mxu0 %vm3209_vm1, %v3208_v14 }
 0x5f0   : > { %2896 = vmatprep.subr.bf16.mxu0 %v3208_v14 }
 0x5f2   : > { %2881 = vmatmul.mubr.msk.bf16.vlgmr.msra.gmra.mrb[40].mxu1 %vm355_vm2, %v1388_v10  ;;  %v2651_v10 = vld [vmem:[%s3861_s4 + $0xb0] sm:$0xff] }
 0x5f3   : > { %2891 = vmatpush3.bf16.xpose.msra.mxu1 %v1497_v12  ;;  %2892 = vmatprep.mubr.msk.bf16.mxu1 %vm3209_vm1, %v3208_v14 }
 0x5f4   : > { %2902 = vmatprep.subr.bf16.mxu1 %v3208_v14 }
 0x5f6   : > { %2887 = vmatmul.mubr.msk.bf16.vlgmr.msra.gmra.mrb[36].mxu0 %vm355_vm2, %v1439_v13 }
 0x5f7   : > { %2898 = vmatprep.mubr.msk.bf16.mxu0 %vm3209_vm1, %v3208_v14 }
 0x5fa   : > { %2893 = vmatmul.mubr.msk.bf16.vlgmr.msra.gmra.mrb[44].mxu1 %vm355_vm2, %v1490_v15 }
 0x5fb   : > { %2904 = vmatprep.mubr.msk.bf16.mxu1 %vm3209_vm1, %v3208_v14 }
 0x6a7   : > { %v3566_v16 = vpop.f32.mrb[24].mxu0 }
 0x6a8   : > { %v2852_v17 = vpop.f32.mrb[25].mxu0 }
 0x6a9   : > { %v3568_v18 = vpop.f32.mrb[26].mxu0  ;;  %v2652_v17 = vld [vmem:[%s3861_s4 + $0xb8] sm:$0xff] }
 0x6aa   : > { %v3008_v19 = vpack.i.bf16 %v3568_v18, %v3566_v16  ;;  %v2853_v21 = vpop.f32.mrb[27].mxu0 }
 0x6b4   : > { %v3572_v22 = vpop.f32.mrb[32].mxu1 }
 0x6b5   : > { %v2858_v25 = vpop.f32.mrb[33].mxu1 }
 0x6b6   : > { %v3574_v27 = vpop.f32.mrb[34].mxu1 }
 0x6b7   : > { %v3013_v28 = vpack.i.bf16 %v3574_v27, %v3572_v22  ;;  %v2859_v29 = vpop.f32.mrb[35].mxu1 }
 0x6b9   : > { %v3578_v30 = vpop.f32.mrb[28].mxu0 }
 0x6ba   : > { %v2864_v31 = vpop.f32.mrb[29].mxu0 }
 0x6bb   : > { %v3580_v32 = vpop.f32.mrb[30].mxu0 }
 0x6bc   : > { %v3028_v33 = vpack.i.bf16 %v3580_v32, %v3578_v30  ;;  %v2865_v34 = vpop.f32.mrb[31].mxu0 }
 0x6bd   : > { %v3584_v35 = vpop.f32.mrb[36].mxu1 }
 0x6be   : > { %v2870_v36 = vpop.f32.mrb[37].mxu1 }
 0x6bf   : > { %v3586_v37 = vpop.f32.mrb[38].mxu1 }
 0x6c0   : > { %v3033_v39 = vpack.i.bf16 %v3586_v37, %v3584_v35  ;;  %v2871_v40 = vpop.f32.mrb[39].mxu1 }
 0x6c1   : > { %v1380_v42 = vpop.f32.mrb[32].mxu0 }
 0x6c2   : > { %v1381_v46 = vadd.f32 %v2645_v38, %v1380_v42  ;;  %v2876_v48 = vpop.f32.mrb[33].mxu0 }
 0x6c3   : > { %v1383_v50 = vpop.f32.mrb[34].mxu0 }
 0x6c4   : > { %v1384_v52 = vadd.f32 %v2646_v44, %v1383_v50  ;;  %v2877_v53 = vpop.f32.mrb[35].mxu0  ;;  %v1540_v54 = vsel %vm553_vm3, %v1381_v46, -inf }
 0x6c5   : > { %1541 = vmax.xlane.f32.xlu0 %v1540_v54  ;;  %v1431_v57 = vpop.f32.mrb[40].mxu1 }
 0x6c6   : > { %v1543_v58 = vsel %vm553_vm3, %v1384_v52, -inf  ;;  %v1432_v56 = vadd.f32 %v2647_v55, %v1431_v57  ;;  %v2882_v62 = vpop.f32.mrb[41].mxu1 }
 0x6c7   : > { %1544 = vmax.xlane.f32.xlu1 %v1543_v58  ;;  %v1434_v63 = vpop.f32.mrb[42].mxu1 }
 0x6c8   : > { %v1435_v1 = vadd.f32 %v2648_v61, %v1434_v63  ;;  %v2883_v2 = vpop.f32.mrb[43].mxu1  ;;  %v1546_v3 = vsel %vm553_vm3, %v1432_v56, -inf }
 0x6c9   : > { %v1482_v4 = vpop.f32.mrb[36].mxu0  ;;  %1547 = vmax.xlane.f32.xlu0 %v1546_v3 }
 0x6ca   : > { %v1483_v5 = vadd.f32 %v2649_v59, %v1482_v4  ;;  %v2888_v6 = vpop.f32.mrb[37].mxu0  ;;  %v1549_v13 = vsel %vm553_vm3, %v1435_v1, -inf }
 0x6cb   : > { %v1485_v8 = vpop.f32.mrb[38].mxu0 }
 0x6cc   : > { %v2889_v9 = vpop.f32.mrb[39].mxu0  ;;  %v1552_v11 = vsel %vm553_vm3, %v1483_v5, -inf  ;;  %v1486_v12 = vadd.f32 %v2650_v7, %v1485_v8 }
 0x6cd   : > { %1553 = vmax.xlane.f32.xlu1 %v1552_v11  ;;  %1550 = vmax.xlane.f32.xlu0 %v1549_v13  ;;  %v1533_v15 = vpop.f32.mrb[44].mxu1 }
 0x6ce   : > { %v1534_v21 = vadd.f32 %v2651_v10, %v1533_v15  ;;  %v2894_v25 = vpop.f32.mrb[45].mxu1  ;;  %v1555_v38 = vsel %vm553_vm3, %v1486_v12, -inf }
 0x6cf   : > { %v1536_v29 = vpop.f32.mrb[46].mxu1 }
 0x6d0   : > { %v1537_v31 = vadd.f32 %v2652_v17, %v1536_v29  ;;  %v2895_v34 = vpop.f32.mrb[47].mxu1  ;;  %v1558_v36 = vsel %vm553_vm3, %v1534_v21, -inf }
 0x6d1   : > { %1559 = vmax.xlane.f32.xlu1 %v1558_v36  ;;  %1556 = vmax.xlane.f32.xlu0 %v1555_v38 }
 0x6d2   : > { %v1561_v40 = vsel %vm553_vm3, %v1537_v31, -inf }
 0x6d5   : > { %1562 = vmax.xlane.f32.xlu0 %v1561_v40 }
 0x6e2   : > { %1632 = vrot.lane.b32.xlu1 %v3290_v24, %s3217_s15 }
 0x6e6   : > { %1726 = vrot.lane.b32.xlu1 %v3292_v26, %s3217_s15 }
 0x6ea   : > { %1773 = vrot.lane.b32.xlu1 %v3288_v23, %s3217_s15 }
 0x6eb   : > { %1679 = vrot.lane.b32.xlu0 %v3286_v20, %s3217_s15 }
 0x752   : > { %v1542_v42 = vpop.xlane.xlu0 %1541 }
 0x753   : > { %v1564_v44 = vsub.f32 %v1381_v46, %v1542_v42 }
 0x754   : > { %v1545_v48 = vpop.xlane.xlu1 %1544 }
 0x755   : > { %v1572_v50 = vmul.f32 1.442695, %v1564_v44  ;;  %v1565_v53 = vsub.f32 %v1384_v52, %v1545_v48 }
 0x756   : > { %v1548_v55 = vpop.xlane.xlu0 %1547 }
 0x757   : > { %3136 = vpow2.f32 %v1572_v50  ;;  %v1574_v54 = vmul.f32 1.442695, %v1565_v53  ;;  %v1566_v57 = vsub.f32 %v1432_v56, %v1548_v55 }
 0x759   : > { %3138 = vpow2.f32 %v1574_v54  ;;  %v1576_v58 = vmul.f32 1.442695, %v1566_v57 }
 0x75a   : > { %v1554_v61 = vpop.xlane.xlu1 %1553  ;;  %v1551_v59 = vpop.xlane.xlu0 %1550 }
 0x75b   : > { %v1568_v62 = vsub.f32 %v1483_v5, %v1554_v61  ;;  %3140 = vpow2.f32 %v1576_v58  ;;  %v1567_v63 = vsub.f32 %v1435_v1, %v1551_v59 }
 0x75d   : > { %v1580_v2 = vmul.f32 1.442695, %v1568_v62  ;;  %v1578_v3 = vmul.f32 1.442695, %v1567_v63 }
 0x75e   : > { %v1560_v4 = vpop.xlane.xlu1 %1559  ;;  %v1557_v6 = vpop.xlane.xlu0 %1556 }
 0x75f   : > { %3142 = vpow2.f32 %v1580_v2  ;;  %v1570_v46 = vsub.f32 %v1534_v21, %v1560_v4  ;;  %v1569_v7 = vsub.f32 %v1486_v12, %v1557_v6 }
 0x760   : > { %3144 = vpow2.f32 %v1578_v3 }
 0x761   : > { %v3137_v52 = vpop.eup %3136  ;;  %v1584_v8 = vmul.f32 1.442695, %v1570_v46  ;;  %v1582_v9 = vmul.f32 1.442695, %v1569_v7 }
 0x762   : > { %v1588_v56 = vsel %vm553_vm3, %v3137_v52, 0.0  ;;  %v1633_v11 = vpop.permute.xlu1 %1632  ;;  %v1563_v13 = vpop.xlane.xlu0 %1562 }
 0x763   : > { %v3139_v10 = vpop.eup %3138  ;;  %1589 = vadd.xlane.f32.xlu1 %v1588_v56  ;;  %3146 = vpow2.f32 %v1584_v8  ;;  %v1571_v5 = vsub.f32 %v1537_v31, %v1563_v13  ;;  %2897 = vmatpush3.bf16.msra.mxu0 %v1633_v11 }
 0x764   : > { %v1591_v1 = vsel %vm553_vm3, %v3139_v10, 0.0  ;;  %3148 = vpow2.f32 %v1582_v9  ;;  %2908 = vmatprep.subr.bf16.mxu0 %v3208_v14 }
 0x765   : > { %1592 = vadd.xlane.f32.xlu0 %v1591_v1  ;;  %v3141_v15 = vpop.eup %3140  ;;  %v1586_v12 = vmul.f32 1.442695, %v1571_v5 }
 0x766   : > { %v1680_v17 = vpop.permute.xlu0 %1679  ;;  %v1594_v21 = vsel %vm553_vm3, %v3141_v15, 0.0  ;;  %v1727_v50 = vpop.permute.xlu1 %1726 }
 0x767   : > { %3150 = vpow2.f32 %v1586_v12  ;;  %1595 = vadd.xlane.f32.xlu1 %v1594_v21  ;;  %2903 = vmatpush3.bf16.msra.mxu1 %v1680_v17 }
 0x768   : > { %2914 = vmatprep.subr.bf16.mxu1 %v3208_v14 }
 0x769   : > { %v3143_v25 = vpop.eup %3142 }
 0x76a   : > { %v3145_v29 = vpop.eup %3144  ;;  %v1600_v31 = vsel %vm553_vm3, %v3143_v25, 0.0  ;;  %v1774_v53 = vpop.permute.xlu1 %1773 }
 0x76b   : > { %v1597_v34 = vsel %vm553_vm3, %v3145_v29, 0.0  ;;  %1601 = vadd.xlane.f32.xlu1 %v1600_v31 }
 0x76c   : > { %1598 = vadd.xlane.f32.xlu0 %v1597_v34 }
 0x76d   : > { %v3633_v36 = vpop.eup %3146 }
 0x76e   : > { %v3149_v38 = vpop.eup %3148  ;;  %v1606_v40 = vsel %vm553_vm3, %v3633_v36, 0.0 }
 0x76f   : > { %1607 = vadd.xlane.f32.xlu1 %v1606_v40  ;;  %v1603_v42 = vsel %vm553_vm3, %v3149_v38, 0.0 }
 0x770   : > { %1604 = vadd.xlane.f32.xlu0 %v1603_v42 }
 0x771   : > { %v3151_v44 = vpop.eup %3150 }
 0x772   : > { %v1609_v48 = vsel %vm553_vm3, %v3151_v44, 0.0 }
 0x774   : > { %1610 = vadd.xlane.f32.xlu0 %v1609_v48 }
 0x780   : > { %1882 = vrot.lane.b32.xlu1 %v3286_v20, %s3218_s16 }
 0x784   : > { %1933 = vrot.lane.b32.xlu1 %v3292_v26, %s3218_s16 }
 0x788   : > { %1984 = vrot.lane.b32.xlu1 %v3288_v23, %s3218_s16 }
 0x78a   : > { %1831 = vrot.lane.b32.xlu0 %v3290_v24, %s3218_s16 }
 0x78c   : > { %1982 = vrot.lane.b32.xlu1 %v3288_v23, %s3219_s17 }
 0x78e   : > { %1829 = vrot.lane.b32.xlu0 %v3290_v24, %s3219_s17 }
 0x792   : > { %1880 = vrot.lane.b32.xlu0 %v3286_v20, %s3219_s17 }
 0x796   : > { %1931 = vrot.lane.b32.xlu0 %v3292_v26, %s3219_s17 }
 0x7f0   : > { %v1590_v54 = vpop.xlane.xlu1 %1589 }
 0x7f1   : > { %3152 = vrcp.f32 %v1590_v54 }
 0x7f2   : > { %v1593_v55 = vpop.xlane.xlu0 %1592 }
 0x7f3   : > { %3154 = vrcp.f32 %v1593_v55 }
 0x7f4   : > { %v1596_v57 = vpop.xlane.xlu1 %1595 }
 0x7f5   : > { %3156 = vrcp.f32 %v1596_v57 }
 0x7f8   : > { %v1602_v58 = vpop.xlane.xlu1 %1601 }
 0x7f9   : > { %v1599_v61 = vpop.xlane.xlu0 %1598 }
 0x7fa   : > { %3158 = vrcp.f32 %v1599_v61 }
 0x7fb   : > { %v3153_v62 = vpop.eup %3152  ;;  %3160 = vrcp.f32 %v1602_v58 }
 0x7fc   : > { %v1620_v63 = vmul.f32 %v3153_v62, %v3137_v52  ;;  %v1608_v3 = vpop.xlane.xlu1 %1607 }
 0x7fd   : > { %v3155_v59 = vpop.eup %3154  ;;  %v1605_v4 = vpop.xlane.xlu0 %1604 }
 0x7fe   : > { %v1621_v2 = vmul.f32 %v3155_v59, %v3139_v10  ;;  %3162 = vrcp.f32 %v1605_v4 }
 0x7ff   : > { %3164 = vrcp.f32 %v1608_v3  ;;  %v3157_v7 = vpop.eup %3156 }
 0x800   : > { %v1628_v6 = vpack.c.bf16 %v1621_v2, %v1620_v63  ;;  %v1622_v9 = vmul.f32 %v3157_v7, %v3141_v15  ;;  %v1883_v17 = vpop.permute.xlu1 %1882 }
 0x801   : > { %v1611_v46 = vpop.xlane.xlu0 %1610  ;;  %v1888_v42 = vsel %vm355_vm2, %v1883_v17, 0 }
 0x802   : > { %2899 = vmatmul.mubr.msk.bf16.vlgmr.msra.gmra.mrb[40].mxu0 %vm553_vm3, %v1628_v6  ;;  %3166 = vrcp.f32 %v1611_v46 }
 0x803   : > { %2909 = vmatpush3.bf16.msra.mxu0 %v1727_v50  ;;  %2910 = vmatprep.mubr.msk.bf16.mxu0 %vm3209_vm1, %v3208_v14 }
 0x804   : > { %2920 = vmatprep.subr.bf16.mxu0 %v3208_v14  ;;  %v3159_v8 = vpop.eup %3158  ;;  %v1934_v40 = vpop.permute.xlu1 %1933 }
 0x805   : > { %v1623_v52 = vmul.f32 %v3159_v8, %v3145_v29  ;;  %v3161_v56 = vpop.eup %3160  ;;  %v1832_v12 = vpop.permute.xlu0 %1831 }
 0x806   : > { %v1624_v13 = vmul.f32 %v3161_v56, %v3143_v25  ;;  %v1837_v34 = vsel %vm355_vm2, %v1832_v12, 0  ;;  %v2662_v12 = vld [vmem:[%s3861_s4 + $0xc8] sm:$0xff] }
 0x807   : > { %v1629_v10 = vpack.c.bf16 %v1623_v52, %v1622_v9 }
 0x808   : > { %v3163_v11 = vpop.eup %3162  ;;  %v1985_v48 = vpop.permute.xlu1 %1984 }
 0x809   : > { %v1625_v5 = vmul.f32 %v3163_v11, %v3149_v38  ;;  %2905 = vmatmul.mubr.msk.bf16.vlgmr.msra.gmra.mrb[48].mxu1 %vm553_vm3, %v1629_v10  ;;  %v3165_v1 = vpop.eup %3164  ;;  %v1830_v38 = vpop.permute.xlu0 %1829  ;;  %v1990_v50 = vsel %vm355_vm2, %v1985_v48, 0  ;;  %v2661_v11 = vld [vmem:[%s3861_s4 + $0xc0] sm:$0xff] }
 0x80a   : > { %2915 = vmatpush3.bf16.msra.mxu1 %v1774_v53  ;;  %2916 = vmatprep.mubr.msk.bf16.mxu1 %vm3209_vm1, %v3208_v14  ;;  %v1626_v15 = vmul.f32 %v3165_v1, %v3633_v36  ;;  %v1939_v36 = vsel %vm355_vm2, %v1934_v40, 0  ;;  %v2665_v48 = vld [vmem:[%s3861_s4 + $0xe0] sm:$0xff] }
 0x80b   : > { %v1630_v21 = vpack.c.bf16 %v1625_v5, %v1624_v13  ;;  %2926 = vmatprep.subr.bf16.mxu1 %v3208_v14 }
 0x80c   : > { %v3167_v31 = vpop.eup %3166  ;;  %v1983_v54 = vpop.permute.xlu1 %1982 }
 0x80d   : > { %v1627_v29 = vmul.f32 %v3167_v31, %v3151_v44  ;;  %2911 = vmatmul.mubr.msk.bf16.vlgmr.msra.gmra.mrb[44].mxu0 %vm553_vm3, %v1630_v21  ;;  %v1881_v44 = vpop.permute.xlu0 %1880 }
 0x80e   : > { %2921 = vmatpush3.bf16.xpose.msra.mxu0 %v1837_v34  ;;  %2922 = vmatprep.mubr.msk.bf16.mxu0 %vm3209_vm1, %v3208_v14 }
 0x80f   : > { %v1631_v25 = vpack.c.bf16 %v1627_v29, %v1626_v15  ;;  %2932 = vmatprep.subr.bf16.mxu0 %v3208_v14 }
 0x811   : > { %2917 = vmatmul.mubr.msk.bf16.vlgmr.msra.gmra.mrb[52].mxu1 %vm553_vm3, %v1631_v25  ;;  %v1932_v53 = vpop.permute.xlu0 %1931  ;;  %v2663_v25 = vld [vmem:[%s3861_s4 + $0xd0] sm:$0xff] }
 0x812   : > { %2928 = vmatprep.mubr.msk.bf16.mxu1 %vm3209_vm1, %v3208_v14 }
 0x813   : > { %2927 = vmatpush3.bf16.xpose.msra.mxu1 %v1888_v42  ;;  %v2664_v42 = vld [vmem:[%s3861_s4 + $0xd8] sm:$0xff] }
 0x814   : > { %2938 = vmatprep.subr.bf16.mxu1 %v3208_v14 }
 0x815   : > { %2923 = vmatmul.mubr.msk.bf16.vlgmr.msra.gmra.mrb[48].mxu0 %vm355_vm2, %v1830_v38 }
 0x816   : > { %2933 = vmatpush3.bf16.xpose.msra.mxu0 %v1939_v36  ;;  %2934 = vmatprep.mubr.msk.bf16.mxu0 %vm3209_vm1, %v3208_v14 }
 0x817   : > { %2944 = vmatprep.subr.bf16.mxu0 %v3208_v14 }
 0x81a   : > { %2929 = vmatmul.mubr.msk.bf16.vlgmr.msra.gmra.mrb[56].mxu1 %vm355_vm2, %v1881_v44 }
 0x81b   : > { %2939 = vmatpush3.bf16.xpose.msra.mxu1 %v1990_v50  ;;  %2940 = vmatprep.mubr.msk.bf16.mxu1 %vm3209_vm1, %v3208_v14 }
 0x81c   : > { %2950 = vmatprep.subr.bf16.mxu1 %v3208_v14 }
 0x81d   : > { %2935 = vmatmul.mubr.msk.bf16.vlgmr.msra.gmra.mrb[52].mxu0 %vm355_vm2, %v1932_v53 }
 0x81e   : > { %2946 = vmatprep.mubr.msk.bf16.mxu0 %vm3209_vm1, %v3208_v14 }
 0x822   : > { %2941 = vmatmul.mubr.msk.bf16.vlgmr.msra.gmra.mrb[60].mxu1 %vm355_vm2, %v1983_v54 }
 0x823   : > { %2952 = vmatprep.mubr.msk.bf16.mxu1 %vm3209_vm1, %v3208_v14 }
 0x8d5   : > { %v3682_v55 = vpop.f32.mrb[40].mxu0 }
 0x8d6   : > { %v2900_v57 = vpop.f32.mrb[41].mxu0 }
 0x8d7   : > { %v3684_v58 = vpop.f32.mrb[42].mxu0 }
 0x8d8   : > { %v3018_v61 = vpack.i.bf16 %v3684_v58, %v3682_v55  ;;  %v2901_v62 = vpop.f32.mrb[43].mxu0 }
 0x8dc   : > { %v3688_v59 = vpop.f32.mrb[48].mxu1 }
 0x8dd   : > { %v2906_v63 = vpop.f32.mrb[49].mxu1 }
 0x8de   : > { %v3690_v2 = vpop.f32.mrb[50].mxu1 }
 0x8df   : > { %v3023_v3 = vpack.i.bf16 %v3690_v2, %v3688_v59  ;;  %v2907_v4 = vpop.f32.mrb[51].mxu1 }
 0x8e0   : > { %v3694_v6 = vpop.f32.mrb[44].mxu0 }
 0x8e1   : > { %v2912_v46 = vpop.f32.mrb[45].mxu0 }
 0x8e2   : > { %v3696_v7 = vpop.f32.mrb[46].mxu0  ;;  %v2666_v46 = vld [vmem:[%s3861_s4 + $0xe8] sm:$0xff] }
 0x8e3   : > { %v3043_v8 = vpack.i.bf16 %v3696_v7, %v3694_v6  ;;  %v2913_v9 = vpop.f32.mrb[47].mxu0 }
 0x8e4   : > { %v3700_v52 = vpop.f32.mrb[52].mxu1 }
 0x8e5   : > { %v2918_v56 = vpop.f32.mrb[53].mxu1 }
 0x8e6   : > { %v3702_v10 = vpop.f32.mrb[54].mxu1 }
 0x8e7   : > { %v3053_v13 = vpack.i.bf16 %v3702_v10, %v3700_v52  ;;  %v2919_v5 = vpop.f32.mrb[55].mxu1 }
 0x8e8   : > { %v1873_v1 = vpop.f32.mrb[48].mxu0 }
 0x8e9   : > { %v1874_v17 = vadd.f32 %v2661_v11, %v1873_v1  ;;  %v2924_v21 = vpop.f32.mrb[49].mxu0  ;;  %v2667_v11 = vld [vmem:[%s3861_s4 + $0xf0] sm:$0xff] }
 0x8ea   : > { %v1876_v31 = vpop.f32.mrb[50].mxu0 }
 0x8eb   : > { %v1877_v15 = vadd.f32 %v2662_v12, %v1876_v31  ;;  %v2925_v29 = vpop.f32.mrb[51].mxu0  ;;  %v2033_v34 = vsel %vm553_vm3, %v1874_v17, -inf  ;;  %v2668_v31 = vld [vmem:[%s3861_s4 + $0xf8] sm:$0xff] }
 0x8ec   : > { %2034 = vmax.xlane.f32.xlu0 %v2033_v34 }
 0x8ed   : > { %v1924_v38 = vpop.f32.mrb[56].mxu1  ;;  %v2036_v40 = vsel %vm553_vm3, %v1877_v15, -inf }
 0x8ee   : > { %v1925_v36 = vadd.f32 %v2663_v25, %v1924_v38  ;;  %v2930_v44 = vpop.f32.mrb[57].mxu1  ;;  %2037 = vmax.xlane.f32.xlu1 %v2036_v40 }
 0x8ef   : > { %v1927_v50 = vpop.f32.mrb[58].mxu1 }
 0x8f0   : > { %v1928_v53 = vadd.f32 %v2664_v42, %v1927_v50  ;;  %v2931_v54 = vpop.f32.mrb[59].mxu1  ;;  %v2039_v57 = vsel %vm553_vm3, %v1925_v36, -inf  ;;  %v1975_v62 = vpop.f32.mrb[52].mxu0 }
 0x8f1   : > { %2040 = vmax.xlane.f32.xlu0 %v2039_v57  ;;  %v1976_v63 = vadd.f32 %v2665_v48, %v1975_v62  ;;  %v2936_v4 = vpop.f32.mrb[53].mxu0 }
 0x8f2   : > { %v1978_v9 = vpop.f32.mrb[54].mxu0  ;;  %v2042_v12 = vsel %vm553_vm3, %v1928_v53, -inf }
 0x8f3   : > { %v2937_v56 = vpop.f32.mrb[55].mxu0  ;;  %v2045_v5 = vsel %vm553_vm3, %v1976_v63, -inf  ;;  %v1979_v1 = vadd.f32 %v2666_v46, %v1978_v9 }
 0x8f4   : > { %2046 = vmax.xlane.f32.xlu1 %v2045_v5 }
 0x8f5   : > { %2043 = vmax.xlane.f32.xlu0 %v2042_v12  ;;  %v2026_v21 = vpop.f32.mrb[60].mxu1  ;;  %v2048_v44 = vsel %vm553_vm3, %v1979_v1, -inf }
 0x8f6   : > { %v2027_v29 = vadd.f32 %v2667_v11, %v2026_v21  ;;  %v2942_v34 = vpop.f32.mrb[61].mxu1 }
 0x8f7   : > { %v2029_v25 = vpop.f32.mrb[62].mxu1 }
 0x8f8   : > { %v2030_v38 = vadd.f32 %v2668_v31, %v2029_v25  ;;  %v2943_v40 = vpop.f32.mrb[63].mxu1  ;;  %v2051_v42 = vsel %vm553_vm3, %v2027_v29, -inf }
 0x8f9   : > { %2052 = vmax.xlane.f32.xlu1 %v2051_v42  ;;  %2049 = vmax.xlane.f32.xlu0 %v2048_v44 }
 0x8fa   : > { %v2054_v48 = vsel %vm553_vm3, %v2030_v38, -inf }
 0x8fd   : > { %2055 = vmax.xlane.f32.xlu0 %v2054_v48 }
 0x90a   : > { %2125 = vrot.lane.b32.xlu1 %v3290_v24, %s3220_s12 }
 0x979   : > { %v2035_v50 = vpop.xlane.xlu0 %2034 }
 0x97a   : > { %v2057_v54 = vsub.f32 %v1874_v17, %v2035_v50 }
 0x97b   : > { %v2038_v57 = vpop.xlane.xlu1 %2037 }
 0x97c   : > { %v2065_v62 = vmul.f32 1.442695, %v2057_v54  ;;  %v2058_v4 = vsub.f32 %v1877_v15, %v2038_v57 }
 0x97e   : > { %3168 = vpow2.f32 %v2065_v62  ;;  %v2067_v46 = vmul.f32 1.442695, %v2058_v4  ;;  %v2041_v9 = vpop.xlane.xlu0 %2040 }
 0x97f   : > { %v2059_v56 = vsub.f32 %v1925_v36, %v2041_v9 }
 0x980   : > { %3170 = vpow2.f32 %v2067_v46 }
 0x981   : > { %v2069_v11 = vmul.f32 1.442695, %v2059_v56  ;;  %v2047_v5 = vpop.xlane.xlu1 %2046 }
 0x982   : > { %v2061_v12 = vsub.f32 %v1976_v63, %v2047_v5  ;;  %v2044_v21 = vpop.xlane.xlu0 %2043 }
 0x983   : > { %3172 = vpow2.f32 %v2069_v11  ;;  %v2060_v31 = vsub.f32 %v1928_v53, %v2044_v21 }
 0x984   : > { %v2073_v34 = vmul.f32 1.442695, %v2061_v12 }
 0x985   : > { %v2071_v25 = vmul.f32 1.442695, %v2060_v31 }
 0x986   : > { %3174 = vpow2.f32 %v2073_v34  ;;  %v2053_v24 = vpop.xlane.xlu1 %2052  ;;  %v2050_v40 = vpop.xlane.xlu0 %2049 }
 0x987   : > { %3176 = vpow2.f32 %v2071_v25  ;;  %v2063_v17 = vsub.f32 %v2027_v29, %v2053_v24  ;;  %v2062_v42 = vsub.f32 %v1979_v1, %v2050_v40 }
 0x988   : > { %v3169_v15 = vpop.eup %3168 }
 0x989   : > { %v2077_v44 = vmul.f32 1.442695, %v2063_v17  ;;  %v2075_v48 = vmul.f32 1.442695, %v2062_v42  ;;  %v2081_v36 = vsel %vm553_vm3, %v3169_v15, 0.0 }
 0x98a   : > { %v3171_v50 = vpop.eup %3170  ;;  %v2126_v54 = vpop.permute.xlu1 %2125  ;;  %2082 = vadd.xlane.f32.xlu1 %v2081_v36 }
 0x98b   : > { %v2056_v57 = vpop.xlane.xlu0 %2055  ;;  %3178 = vpow2.f32 %v2077_v44  ;;  %2945 = vmatpush3.bf16.msra.mxu0 %v2126_v54  ;;  %v2084_v53 = vsel %vm553_vm3, %v3171_v50, 0.0 }
 0x98c   : > { %v2064_v63 = vsub.f32 %v2030_v38, %v2056_v57  ;;  %3180 = vpow2.f32 %v2075_v48  ;;  %2085 = vadd.xlane.f32.xlu0 %v2084_v53  ;;  %2956 = vmatprep.subr.bf16.mxu0 %v3208_v14 }
 0x98d   : > { %v3173_v29 = vpop.eup %3172 }
 0x98e   : > { %v2079_v1 = vmul.f32 1.442695, %v2064_v63  ;;  %v2087_v62 = vsel %vm553_vm3, %v3173_v29, 0.0 }
 0x98f   : > { %2088 = vadd.xlane.f32.xlu1 %v2087_v62 }
 0x990   : > { %3182 = vpow2.f32 %v2079_v1  ;;  %v3175_v4 = vpop.eup %3174 }
 0x991   : > { %v3177_v46 = vpop.eup %3176  ;;  %v2093_v9 = vsel %vm553_vm3, %v3175_v4, 0.0 }
 0x992   : > { %v2090_v56 = vsel %vm553_vm3, %v3177_v46, 0.0 }
 0x993   : > { %2094 = vadd.xlane.f32.xlu1 %v2093_v9  ;;  %2091 = vadd.xlane.f32.xlu0 %v2090_v56 }
 0x995   : > { %v3746_v38 = vpop.eup %3178 }
 0x996   : > { %v3181_v11 = vpop.eup %3180  ;;  %v2099_v5 = vsel %vm553_vm3, %v3746_v38, 0.0 }
 0x997   : > { %2100 = vadd.xlane.f32.xlu1 %v2099_v5  ;;  %v2096_v12 = vsel %vm553_vm3, %v3181_v11, 0.0 }
 0x998   : > { %2097 = vadd.xlane.f32.xlu0 %v2096_v12 }
 0x99a   : > { %v3183_v21 = vpop.eup %3182 }
 0x99b   : > { %v2102_v31 = vsel %vm553_vm3, %v3183_v21, 0.0 }
 0x99c   : > { %2103 = vadd.xlane.f32.xlu0 %v2102_v31 }
 0x9a8   : > { %2219 = vrot.lane.b32.xlu1 %v3292_v26, %s3220_s12 }
 0x9ac   : > { %2266 = vrot.lane.b32.xlu1 %v3288_v23, %s3220_s12 }
 0x9b0   : > { %3014 = vrot.lane.b32.xlu1 %v3013_v28, %s3221_s13 }
 0x9b2   : > { %2172 = vrot.lane.b32.xlu0 %v3286_v20, %s3220_s12 }
 0x9b4   : > { %3024 = vrot.lane.b32.xlu1 %v3023_v3, %s3222_s14 }
 0x9b6   : > { %3009 = vrot.lane.b32.xlu0 %v3008_v19, %s3221_s13 }
 0x9b8   : > { %3034 = vrot.lane.b32.xlu1 %v3033_v39, %s3221_s13 }
 0x9ba   : > { %3019 = vrot.lane.b32.xlu0 %v3018_v61, %s3222_s14 }
 0x9be   : > { %3029 = vrot.lane.b32.xlu0 %v3028_v33, %s3221_s13 }
 0xa17   : > { %v2083_v20 = vpop.xlane.xlu1 %2082 }
 0xa18   : > { %3184 = vrcp.f32 %v2083_v20 }
 0xa19   : > { %v2086_v23 = vpop.xlane.xlu0 %2085 }
 0xa1a   : > { %3186 = vrcp.f32 %v2086_v23 }
 0xa1c   : > { %v2089_v26 = vpop.xlane.xlu1 %2088 }
 0xa1d   : > { %3188 = vrcp.f32 %v2089_v26 }
 0xa20   : > { %v2095_v16 = vpop.xlane.xlu1 %2094  ;;  %v2092_v18 = vpop.xlane.xlu0 %2091 }
 0xa21   : > { %3190 = vrcp.f32 %v2092_v18 }
 0xa22   : > { %v3185_v19 = vpop.eup %3184  ;;  %3192 = vrcp.f32 %v2095_v16 }
 0xa23   : > { %v2113_v28 = vmul.f32 %v3185_v19, %v3169_v15 }
 0xa24   : > { %v3187_v22 = vpop.eup %3186  ;;  %v2101_v27 = vpop.xlane.xlu1 %2100 }
 0xa25   : > { %v2114_v35 = vmul.f32 %v3187_v22, %v3171_v50  ;;  %v2098_v37 = vpop.xlane.xlu0 %2097  ;;  %v3070_v50 = vld [vmem:[%s3859_s2] sm:$0xff]  }
 0xa26   : > { %3194 = vrcp.f32 %v2098_v37 }
 0xa27   : > { %v2121_v39 = vpack.c.bf16 %v2114_v35, %v2113_v28  ;;  %3196 = vrcp.f32 %v2101_v27  ;;  %v3189_v33 = vpop.eup %3188 }
 0xa28   : > { %v2220_v30 = vpop.permute.xlu1 %2219  ;;  %v2115_v58 = vmul.f32 %v3189_v33, %v3173_v29 }
 0xa29   : > { %v2104_v32 = vpop.xlane.xlu0 %2103  ;;  %2947 = vmatmul.mubr.msk.bf16.vlgmr.msra.gmra.mrb[56].mxu0 %vm553_vm3, %v2121_v39 }
 0xa2a   : > { %3198 = vrcp.f32 %v2104_v32  ;;  %2957 = vmatpush3.bf16.msra.mxu0 %v2220_v30  ;;  %2958 = vmatprep.mubr.msk.bf16.mxu0 %vm3209_vm1, %v3208_v14 }
 0xa2b   : > { %v3191_v55 = vpop.eup %3190  ;;  %2968 = vmatprep.subr.bf16.mxu0 %v3070_v50 }
 0xa2c   : > { %v2116_v61 = vmul.f32 %v3191_v55, %v3177_v46  ;;  %v3193_v2 = vpop.eup %3192  ;;  %v2267_v40 = vpop.permute.xlu1 %2266 }
 0xa2d   : > { %v2173_v59 = vpop.permute.xlu0 %2172  ;;  %v2117_v25 = vmul.f32 %v3193_v2, %v3175_v4 }
 0xa2e   : > { %2951 = vmatpush3.bf16.msra.mxu1 %v2173_v59  ;;  %v2122_v3 = vpack.c.bf16 %v2116_v61, %v2115_v58 }
 0xa2f   : > { %2962 = vmatprep.subr.bf16.mxu1 %v3208_v14 }
 0xa30   : > { %v3195_v34 = vpop.eup %3194  ;;  %v3015_v26 = vpop.permute.xlu1 %3014 }
 0xa31   : > { %v2118_v24 = vmul.f32 %v3195_v34, %v3181_v11  ;;  %2953 = vmatmul.mubr.msk.bf16.vlgmr.msra.gmra.mrb[64].mxu1 %vm553_vm3, %v2122_v3  ;;  %v3197_v17 = vpop.eup %3196  ;;  %v3017_v55 = vunpack.i.h.bf16 %v3015_v26  ;;  %v3016_v58 = vunpack.i.l.bf16 %v3015_v26 }
 0xa32   : > { %2963 = vmatpush3.bf16.msra.mxu1 %v2267_v40  ;;  %2964 = vmatprep.mubr.msk.bf16.mxu1 %vm3209_vm1, %v3208_v14  ;;  %v2119_v44 = vmul.f32 %v3197_v17, %v3746_v38  ;;  %v3071_v14 = vld [vmem:[%s3859_s2 + $0x8] sm:$0xff]  }
 0xa33   : > { %v2123_v42 = vpack.c.bf16 %v2118_v24, %v2117_v25  ;;  %v2411_v34 = vsel %vm355_vm2, %v3454_v49, %v3016_v58 }
 0xa34   : > { %v3199_v15 = vpop.eup %3198  ;;  %v3025_v22 = vpop.permute.xlu1 %3024 }
 0xa35   : > { %v2120_v48 = vmul.f32 %v3199_v15, %v3183_v21  ;;  %2959 = vmatmul.mubr.msk.bf16.vlgmr.msra.gmra.mrb[60].mxu0 %vm553_vm3, %v2123_v42  ;;  %v3027_v2 = vunpack.i.h.bf16 %v3025_v22  ;;  %v3026_v3 = vunpack.i.l.bf16 %v3025_v22 }
 0xa36   : > { %2969 = vmatpush3.bf16.msra.mxu0 %v3070_v50 }
 0xa37   : > { %v2124_v36 = vpack.c.bf16 %v2120_v48, %v2119_v44  ;;  %2970 = vmatprep.subr.bf16.mxu0 %v3071_v14  ;;  %v2419_v15 = vsel %vm553_vm3, %v2411_v34, %v3026_v3 }
 0xa38   : > { %v3035_v61 = vpop.permute.xlu1 %3034 }
 0xa39   : > { %2965 = vmatmul.mubr.msk.bf16.vlgmr.msra.gmra.mrb[68].mxu1 %vm553_vm3, %v2124_v36 }
 0xa3a   : > { %2971 = vmatpush3.bf16.msra.mxu0 %v3071_v14 }
 0xafc   : > { %v2165_v54 = vpop.f32.mrb[56].mxu0 }
 0xafd   : > { %v2948_v57 = vpop.f32.mrb[57].mxu0 }
 0xafe   : > { %v2168_v63 = vpop.f32.mrb[58].mxu0 }
 0xaff   : > { %v3038_v53 = vpack.i.bf16 %v2168_v63, %v2165_v54  ;;  %v2949_v29 = vpop.f32.mrb[59].mxu0  ;;  %v3037_v54 = vunpack.i.h.bf16 %v3035_v61 }
 0xb01   : > { %3039 = vrot.lane.b32.xlu0 %v3038_v53, %s3223_s20 }
 0xb04   : > { %v2212_v1 = vpop.f32.mrb[64].mxu1 }
 0xb05   : > { %v2954_v62 = vpop.f32.mrb[65].mxu1  ;;  %3044 = vrot.lane.b32.xlu0 %v3043_v8, %s3222_s14  ;;  %v3010_v8 = vpop.permute.xlu0 %3009 }
 0xb06   : > { %v2215_v4 = vpop.f32.mrb[66].mxu1  ;;  %v3012_v18 = vunpack.i.h.bf16 %v3010_v8  ;;  %v3011_v19 = vunpack.i.l.bf16 %v3010_v8 }
 0xb07   : > { %v3048_v46 = vpack.i.bf16 %v2215_v4, %v2212_v1  ;;  %v2955_v9 = vpop.f32.mrb[67].mxu1 }
 0xb08   : > { %v2259_v56 = vpop.f32.mrb[60].mxu0  ;;  %v2410_v52 = vsel %vm355_vm2, %v3448_v43, %v3012_v18  ;;  %v2409_v10 = vsel %vm355_vm2, %v3446_v41, %v3011_v19  ;;  %v2412_v41 = vsel %vm355_vm2, %v3456_v51, %v3017_v55  ;;  %v3036_v51 = vunpack.i.l.bf16 %v3035_v61 }
 0xb09   : > { %v2960_v38 = vpop.f32.mrb[61].mxu0  ;;  %3049 = vrot.lane.b32.xlu1 %v3048_v46, %s3223_s20  ;;  %v3020_v23 = vpop.permute.xlu0 %3019  ;;  %v2420_v44 = vsel %vm553_vm3, %v2412_v41, %v3027_v2 }
 0xb0a   : > { %v2262_v11 = vpop.f32.mrb[62].mxu0  ;;  %v3022_v27 = vunpack.i.h.bf16 %v3020_v23  ;;  %v3021_v28 = vunpack.i.l.bf16 %v3020_v23 }
 0xb0b   : > { %v3058_v5 = vpack.i.bf16 %v2262_v11, %v2259_v56  ;;  %v2961_v12 = vpop.f32.mrb[63].mxu0 }
 0xb0c   : > { %v2306_v21 = vpop.f32.mrb[68].mxu1  ;;  %v2417_v39 = vsel %vm553_vm3, %v2409_v10, %v3021_v28  ;;  %v2418_v30 = vsel %vm553_vm3, %v2410_v52, %v3022_v27  ;;  %v2415_v12 = vsel %vm355_vm2, %v3464_v60, %v3036_v51 }
 0xb0d   : > { %3059 = vrot.lane.b32.xlu0 %v3058_v5, %s3223_s20  ;;  %3054 = vrot.lane.b32.xlu1 %v3053_v13, %s3222_s14  ;;  %v2966_v31 = vpop.f32.mrb[69].mxu1  ;;  %v3030_v16 = vpop.permute.xlu0 %3029 }
 0xb0e   : > { %v2309_v20 = vpop.f32.mrb[70].mxu1  ;;  %v3032_v24 = vunpack.i.h.bf16 %v3030_v16  ;;  %v3031_v40 = vunpack.i.l.bf16 %v3030_v16 }
 0xb0f   : > { %v3063_v6 = vpack.i.bf16 %v2309_v20, %v2306_v21  ;;  %v2967_v7 = vpop.f32.mrb[71].mxu1 }
 0xb10   : > { %v2414_v53 = vsel %vm355_vm2, %v3452_v47, %v3032_v24  ;;  %v2413_v29 = vsel %vm355_vm2, %v3450_v45, %v3031_v40  ;;  %v2416_v45 = vsel %vm355_vm2, %v3467_v0, %v3037_v54  ;;  %v2677_v0 = vld [vmem:[%s3860_s3] ss:$0 sm:$0xff] }
 0xb11   : > { %3064 = vrot.lane.b32.xlu1 %v3063_v6, %s3223_s20 }
 0xb73   : > { %v3040_v35 = vpop.permute.xlu0 %3039 }
 0xb74   : > { %v3042_v13 = vunpack.i.h.bf16 %v3040_v35  ;;  %v3041_v37 = vunpack.i.l.bf16 %v3040_v35 }
 0xb76   : > { %v2426_v32 = vsel %vm2425_vm4, %v2417_v39, %v3041_v37  ;;  %v2427_v33 = vsel %vm2425_vm4, %v2418_v30, %v3042_v13 }
 0xb77   : > { %v2434_v59 = vpack.c.bf16 %v2427_v33, %v2426_v32  ;;  %v3045_v43 = vpop.permute.xlu0 %3044 }
 0xb78   : > { %v3047_v48 = vunpack.i.h.bf16 %v3045_v43  ;;  %v3046_v36 = vunpack.i.l.bf16 %v3045_v43 }
 0xb79   : > { %2972 = vmatprep.mubr.msk.bf16.mxu0 %vm262_vm0, %v2434_v59 }
 0xb7a   : > { %v2421_v4 = vsel %vm553_vm3, %v2413_v29, %v3046_v36  ;;  %v2422_v46 = vsel %vm553_vm3, %v2414_v53, %v3047_v48 }
 0xb7b   : > { %v3050_v25 = vpop.permute.xlu1 %3049 }
 0xb7c   : > { %v3052_v17 = vunpack.i.h.bf16 %v3050_v25  ;;  %v3051_v42 = vunpack.i.l.bf16 %v3050_v25 }
 0xb7e   : > { %v2429_v50 = vsel %vm2425_vm4, %v2420_v44, %v3052_v17  ;;  %v2428_v14 = vsel %vm2425_vm4, %v2419_v15, %v3051_v42 }
 0xb7f   : > { %v2435_v57 = vpack.c.bf16 %v2429_v50, %v2428_v14  ;;  %v3055_v63 = vpop.permute.xlu1 %3054  ;;  %v3060_v49 = vpop.permute.xlu0 %3059 }
 0xb80   : > { %v3062_v1 = vunpack.i.h.bf16 %v3060_v49  ;;  %v3061_v62 = vunpack.i.l.bf16 %v3060_v49  ;;  %v3057_v9 = vunpack.i.h.bf16 %v3055_v63  ;;  %v3056_v56 = vunpack.i.l.bf16 %v3055_v63 }
 0xb81   : > { %2973 = vmatmul.mubr.msk.bf16.vlgmr.msra.gmra.mrb[64].mxu0 %vm262_vm0, %v2435_v57 }
 0xb82   : > { %v2430_v38 = vsel %vm2425_vm4, %v2421_v4, %v3061_v62  ;;  %v2431_v11 = vsel %vm2425_vm4, %v2422_v46, %v3062_v1  ;;  %v2424_v20 = vsel %vm553_vm3, %v2416_v45, %v3057_v9  ;;  %v2423_v6 = vsel %vm553_vm3, %v2415_v12, %v3056_v56 }
 0xb83   : > { %v2436_v5 = vpack.c.bf16 %v2431_v11, %v2430_v38  ;;  %v3065_v47 = vpop.permute.xlu1 %3064 }
 0xb84   : > { %v3067_v21 = vunpack.i.h.bf16 %v3065_v47  ;;  %v3066_v31 = vunpack.i.l.bf16 %v3065_v47 }
 0xb85   : > { %2976 = vmatprep.mubr.msk.bf16.mxu0 %vm262_vm0, %v2436_v5 }
 0xb86   : > { %v2433_v7 = vsel %vm2425_vm4, %v2424_v20, %v3067_v21  ;;  %v2432_v8 = vsel %vm2425_vm4, %v2423_v6, %v3066_v31 }
 0xb87   : > { %v2437_v23 = vpack.c.bf16 %v2433_v7, %v2432_v8 }
 0xb89   : > { %2977 = vmatmul.mubr.msk.bf16.gmra.mrb[68].mxu0 %vm262_vm0, %v2437_v23 }
 0xc54   : > { %v2974_v60 = vpop.f32.mrb[64].mxu0 }
 0xc55   : > { %v2507_v26 = vpop.f32.mrb[65].mxu0  ;;  %v2516_v19 = vadd.f32 %v2974_v60, %v2677_v0 }
 0xc56   : > { %v2508_v16 = vadd.f32 %v2677_v0, %v2507_v26  ;;  %v2975_v18 = vpop.f32.mrb[66].mxu0 }
 0xc57   : > { %v2510_v22 = vpop.f32.mrb[67].mxu0  ;;  %2540 = vst.msk [vmem:[%s231_s27 + $0x10] sm:$0xff] %vm262_vm0, %v2516_v19  ;;  %v2519_v28 = vadd.f32 %v2975_v18, %v2677_v0 }
 0xc58   : > { %2538 = vst.msk [vmem:[%s231_s27] sm:$0xff] %vm262_vm0, %v2508_v16  ;;  %v2511_v27 = vadd.f32 %v2677_v0, %v2510_v22 }
 0xc59   : > { %2541 = vst.msk [vmem:[%s231_s27 + $0x18] sm:$0xff] %vm262_vm0, %v2519_v28 }
 0xc5a   : > { %2539 = vst.msk [vmem:[%s231_s27 + $0x8] sm:$0xff] %vm262_vm0, %v2511_v27 }
 0xc5c   : > { %v2978_v35 = vpop.f32.mrb[68].mxu0 }
 0xc5d   : > { %v2523_v52 = vpop.f32.mrb[69].mxu0  ;;  %v2532_v37 = vadd.f32 %v2978_v35, %v2677_v0 }
 0xc5e   : > { %v2524_v10 = vadd.f32 %v2677_v0, %v2523_v52  ;;  %v2979_v13 = vpop.f32.mrb[70].mxu0 }
 0xc5f   : > { %v2526_v39 = vpop.f32.mrb[71].mxu0  ;;  %2544 = vst.msk [vmem:[%s231_s27 + $0x30] sm:$0xff] %vm262_vm0, %v2532_v37  ;;  %v2535_v32 = vadd.f32 %v2979_v13, %v2677_v0 }
 0xc60   : > { %2542 = vst.msk [vmem:[%s231_s27 + $0x20] sm:$0xff] %vm262_vm0, %v2524_v10  ;;  %v2527_v30 = vadd.f32 %v2677_v0, %v2526_v39 }
 0xc61   : > { %2545 = vst.msk [vmem:[%s231_s27 + $0x38] sm:$0xff] %vm262_vm0, %v2535_v32 }
 0xc62   : > { %2543 = vst.msk [vmem:[%s231_s27 + $0x28] sm:$0xff] %vm262_vm0, %v2527_v30 }
 0xc63 PF: > { %s15_s18 = sadd.s32 1, %s3206_s18  }
 0xc64   : > { %p12_p4 = scmp.ge.s32.totalorder %s15_s18, 4  }
 0xc66   :  { %14 = sbr.rel (!%p12_p4) target bundleno = 1 (0x1), region = 73 }

// kernel: _lambda_.17
= control target key start
LH: loop header
LB: loop body
LE: loop exit
PB: predicated region body
PF: predicated region fallthrough
CT: control target
= control target key end

     0   :  { %13 = vsyncpa [#allocation5], 0  ;;  %s1431_s0 = inlined_call_operand.vmem [shape: f32[2,4,2,4,64], index: 0, kind: input, shape index: {}, may-alias: {0,1}]   ;;  %s1432_s1 = inlined_call_operand.vmem [shape: f32[2,4,2,4,64], index: 1, kind: input, shape index: {}, may-alias: {0,1}]   ;;  %s1433_s2 = inlined_call_operand.vmem [shape: f32[1,64], index: 2, kind: input, shape index: {}]   ;;  %s1434_s3 = inlined_call_operand.vmem [shape: f32[1,64], index: 3, kind: input, shape index: {}]   ;;  %s1435_s4 = inlined_call_operand.vmem [shape: f32[1,64], index: 4, kind: input, shape index: {}]   ;;  %s1436_s5 = inlined_call_operand.vmem [shape: f32[1,64], index: 5, kind: input, shape index: {}]   ;;  %s1437_s6 = inlined_call_operand.vmem [shape: bf16[64,64], index: 6, kind: input, shape index: {}]   ;;  %s1438_s7 = inlined_call_operand.vmem [shape: bf16[64,64], index: 7, kind: input, shape index: {}]   ;;  %s1439_s8 = inlined_call_operand.hbm [shape: f32[2,4,4,64], index: 8, kind: output, shape index: {}]  }
   0x1   :  { %15 = vsyncpa [#allocation5 + $0x1], 0  ;;  %s1193_s27 = smov 0   ;;  %s1195_s28 = smov 0  }
   0x2   :  { %s1197_s29 = smov 0   ;;  %s1199_s30 = smov 0  }
   0x3   :  { %s1201_s9 = smov 0   ;;  %s1203_s10 = smov 0  }
   0x4 LB: > { %s912_s11 = sadd.s32 4294967295, %s1141_s10   ;;  %s913_s12 = sadd.s32 4294967294, %s1141_s10   ;;  %s1141_s10 = sphi %s1203_s10, %s21_s10   ;;  %s1137_s9 = sphi %s1201_s9, %s1447_s9   ;;  %s1133_s30 = sphi %s1199_s30, %s1446_s30   ;;  %s1129_s29 = sphi %s1197_s29, %s1445_s29   ;;  %s1125_s28 = sphi %s1195_s28, %s1444_s28   ;;  %s1121_s27 = sphi %s1193_s27, %s1443_s27  }
   0x5   : > { %s33_s13 = sadd.s32 1, %s1137_s9  ;;  %s42_s14 = sadd.s32 1, %s1129_s29 }
   0x6   : > { %p35_p0 = scmp.ge.s32.totalorder %s33_s13, 2  ;;  %p49_p1 = scmp.ne.s32.totalorder %s1129_s29, %s1125_s28 }
   0x7   : > { %p50_p2 = scmp.eq.s32.totalorder %s1141_s10, 0  ;;  %p235_p3 = scmp.eq.s32.totalorder %s912_s11, 1 }
   0x8   : > { %s1449_s13 = smov (%p35_p0, %s33_s13), 0  ;;  %p240_p6 = scmp.ne.s32.totalorder %s1125_s28, %s1121_s27 }
   0x9   : > { %p1232_p4 = por %p50_p2, %p49_p1  ;;  %p1236_p5 = por %p235_p3, %p49_p1 }
   0xa   : > { %s37_s17 = ssub.s32 %s1137_s9, %s1449_s13  ;;  %p241_p8 = scmp.eq.s32.totalorder %s913_s12, 1 }
   0xb   : > { %p40_p7 = scmp.eq.s32.totalorder %s37_s17, 0  ;;  %p915_p10 = scmp.ge.s32.totalorder %s1141_s10, 2 }
   0xc   : > { %p1247_p9 = por %p241_p8, %p240_p6 }
   0xd   : > { %s1245_s18 = scalar_select %p40_p7, %s1129_s29, %s42_s14  }
   0xe   : > { %275 = sbr.rel (%p915_p10) target bundleno = 35 (0x23), region = 40 }
  0x15   : > { %278 = sbr.rel (!%p1232_p4) target bundleno = 28 (0x1c), region = 44  ;;  %s280_s20 = sand.u32 (%p1232_p4), 1, %s1129_s29  }
  0x16   : > { %s949_s21 = sshll.u32 (%p1232_p4), %s1137_s9, 5  ;;  %s916_s22 = sshll.u32 (%p1232_p4), %s280_s20, 4 }
  0x17   : > { %s288_s25 = scalar_lea.vmem (%p1232_p4), %s1431_s0, %s949_s21  ;;  %s282_s26 = scalar_lea.vmem (%p1232_p4), [#allocation2], %s916_s22 }
  0x18   : > { %v304_v0 = vld [vmem:[%s288_s25] sm:$0xf] (%p1232_p4)  ;;  %v306_v1 = vld [vmem:[%s288_s25 + $0x8] sm:$0xf] (%p1232_p4)  ;;  %v308_v2 = vld [vmem:[%s288_s25 + $0x10] sm:$0xf] (%p1232_p4) }
  0x19   : > { %305 = vst [vmem:[%s282_s26] sm:$0xf] (%p1232_p4), %v304_v0  ;;  %307 = vst [vmem:[%s282_s26 + $0x4] sm:$0xf] (%p1232_p4), %v306_v1  ;;  %v310_v3 = vld [vmem:[%s288_s25 + $0x18] sm:$0xf] (%p1232_p4) }
  0x1a   : > { %309 = vst [vmem:[%s282_s26 + $0x8] sm:$0xf] (%p1232_p4), %v308_v2  ;;  %311 = vst [vmem:[%s282_s26 + $0xc] sm:$0xf] (%p1232_p4), %v310_v3 }
  0x1c PF: > { %342 = sbr.rel (!%p1232_p4) target bundleno = 35 (0x23), region = 85  ;;  %s344_s11 = sand.u32 (%p1232_p4), 1, %s1129_s29  }
  0x1d   : > { %s950_s12 = sshll.u32 (%p1232_p4), %s1137_s9, 5  ;;  %s919_s14 = sshll.u32 (%p1232_p4), %s344_s11, 4 }
  0x1e   : > { %s845_s21 = scalar_lea.vmem (%p1232_p4), %s1432_s1, %s950_s12  ;;  %s346_s22 = scalar_lea.vmem (%p1232_p4), [#allocation3], %s919_s14 }
  0x1f   : > { %v922_v4 = vld [vmem:[%s845_s21 + $0x4] sm:$0xf] (%p1232_p4)  ;;  %v923_v5 = vld [vmem:[%s845_s21 + $0xc] sm:$0xf] (%p1232_p4)  ;;  %v924_v6 = vld [vmem:[%s845_s21 + $0x14] sm:$0xf] (%p1232_p4) }
  0x20   : > { %370 = vst [vmem:[%s346_s22] sm:$0xf] (%p1232_p4), %v922_v4  ;;  %372 = vst [vmem:[%s346_s22 + $0x4] sm:$0xf] (%p1232_p4), %v923_v5  ;;  %v925_v7 = vld [vmem:[%s845_s21 + $0x1c] sm:$0xf] (%p1232_p4) }
  0x21   : > { %374 = vst [vmem:[%s346_s22 + $0x8] sm:$0xf] (%p1232_p4), %v924_v6  ;;  %376 = vst [vmem:[%s346_s22 + $0xc] sm:$0xf] (%p1232_p4), %v925_v7 }
  0x23 PF: > { %p926_p11 = scmp.ge.s32.totalorder %s1141_s10, 1  ;;  %p406_p12 = scmp.lt.s32.totalorder %s1141_s10, 3 }
  0x25   : > { %p407_p13 = pnand %p926_p11, %p406_p12 }
  0x26   : > { %s413_s15 = sand.u32 (!%p407_p13), 1, %s1125_s28   ;;  %vm469_vm0 = vcmask (!%p407_p13), 519168   ;;  %v1047_v0 = vld [vmem:[%s1438_s7] sm:$0xff] (!%p407_p13)   ;;  %v1143_v2 = vmov (!%p407_p13), 0.0   ;;  %v1049_v3 = vld [vmem:[%s1438_s7 + $0x8] sm:$0xff] (!%p407_p13)   ;;  %v1051_v5 = vld [vmem:[%s1438_s7 + $0x10] sm:$0xff] (!%p407_p13)  }
  0x27   : > { %410 = sbr.rel (%p407_p13) target bundleno = 617 (0x269), region = 126  ;;  %s1273_s23 = sshll.u32 (!%p407_p13), %s413_s15, 4  ;;  %v1048_v1 = vld [vmem:[%s1437_s6] sm:$0xff] (!%p407_p13)   ;;  %962 = vmatprep.subr.bf16.mxu1 (!%p407_p13), %v1143_v2  ;;  %974 = vmatprep.subr.bf16.mxu0 (!%p407_p13), %v1143_v2  ;;  %v1050_v4 = vld [vmem:[%s1437_s6 + $0x8] sm:$0xff] (!%p407_p13)   ;;  %v1052_v6 = vld [vmem:[%s1437_s6 + $0x10] sm:$0xff] (!%p407_p13)   ;;  %vm1144_vm1 = vmmov (!%p407_p13), 0  }
  0x28   : > { %s415_s24 = scalar_lea.vmem (!%p407_p13), [#allocation2], %s1273_s23  ;;  %s422_s25 = scalar_lea.vmem (!%p407_p13), [#allocation3], %s1273_s23  ;;  %963 = vmatpush3.bf16.msra.mxu1 (!%p407_p13), %v1047_v0  ;;  %975 = vmatpush3.bf16.msra.mxu0 (!%p407_p13), %v1048_v1  ;;  %v1053_v7 = vld [vmem:[%s1438_s7 + $0x18] sm:$0xff] (!%p407_p13)   ;;  %vm669_vm2 = vcmask (!%p407_p13), 523264  }
  0x29   : > { %v463_v8 = vld [vmem:[%s415_s24 + $0x8] sm:$0xf] (!%p407_p13)  ;;  %v461_v9 = vld [vmem:[%s415_s24] sm:$0xf] (!%p407_p13)  ;;  %v464_v12 = vld [vmem:[%s415_s24 + $0xc] sm:$0xf] (!%p407_p13)  ;;  %964 = vmatprep.subr.bf16.mxu1 (!%p407_p13), %v1143_v2  ;;  %976 = vmatprep.subr.bf16.mxu0 (!%p407_p13), %v1143_v2 }
  0x2a   : > { %v476_v10 = vsel (!%p407_p13), %vm469_vm0, %v463_v8, 0.0  ;;  %v470_v11 = vsel (!%p407_p13), %vm469_vm0, %v461_v9, 0.0  ;;  %v462_v13 = vld [vmem:[%s415_s24 + $0x4] sm:$0xf] (!%p407_p13)  ;;  %v479_v14 = vsel (!%p407_p13), %vm469_vm0, %v464_v12, 0.0  ;;  %970 = vmatprep.mubr.msk.bf16.mxu1 (!%p407_p13), %vm1144_vm1, %v1143_v2  ;;  %982 = vmatprep.mubr.msk.bf16.mxu0 (!%p407_p13), %vm1144_vm1, %v1143_v2  ;;  %s456_s17 = scalar_lea.vmem (!%p407_p13), [#allocation4], %s1273_s23 }
  0x2b   : > { %477 = vadd.xlane.f32.xlu1 (!%p407_p13), %v476_v10  ;;  %471 = vadd.xlane.f32.xlu0 (!%p407_p13), %v470_v11  ;;  %v473_v15 = vsel (!%p407_p13), %vm469_vm0, %v462_v13, 0.0  ;;  %v466_v16 = vld [vmem:[%s422_s25 + $0x4] sm:$0xf] (!%p407_p13)  ;;  %v465_v17 = vld [vmem:[%s422_s25] sm:$0xf] (!%p407_p13)  ;;  %s808_s20 = sshll.u32 (!%p407_p13), %s456_s17, 4  ;;  %s1372_s20 = int_to_ptr.vmem [resolvable:$true] %s808_s20 }
  0x2c   : > { %v485_v18 = vsel (!%p407_p13), %vm469_vm0, %v466_v16, 0.0  ;;  %v482_v19 = vsel (!%p407_p13), %vm469_vm0, %v465_v17, 0.0  ;;  %v468_v20 = vld [vmem:[%s422_s25 + $0xc] sm:$0xf] (!%p407_p13)  ;;  %v467_v21 = vld [vmem:[%s422_s25 + $0x8] sm:$0xf] (!%p407_p13)  ;;  %965 = vmatpush3.bf16.msra.mxu1 (!%p407_p13), %v1049_v3  ;;  %977 = vmatpush3.bf16.msra.mxu0 (!%p407_p13), %v1050_v4 }
  0x2d   : > { %v491_v22 = vsel (!%p407_p13), %vm469_vm0, %v468_v20, 0.0  ;;  %v488_v23 = vsel (!%p407_p13), %vm469_vm0, %v467_v21, 0.0  ;;  %966 = vmatprep.subr.bf16.mxu1 (!%p407_p13), %v1143_v2  ;;  %978 = vmatprep.subr.bf16.mxu0 (!%p407_p13), %v1143_v2  ;;  %s951_s21 = sshll.u32 (!%p407_p13), %s1133_s30, 8  ;;  %s1384_s30 = scalar_lea.sflag (!%p407_p13), [#allocation5], %s413_s15 }
  0x2e   : > { %s1377_s23 = scalar_lea.hbm %s1439_s8, %s951_s21  ;;  %s1063_s25 = scalar_lea.vmem %s1372_s20, 256 }
  0x2f   : > { %480 = vadd.xlane.f32.xlu1 %v479_v14  ;;  %474 = vadd.xlane.f32.xlu0 %v473_v15  ;;  %p1064_p0 = scmp.ne.s32.totalorder %s1372_s20, %s1063_s25  ;;  %s1145_s26 = smov [#allocation4]  }
  0x30   : > { %967 = vmatpush3.bf16.msra.mxu1 %v1051_v5  ;;  %979 = vmatpush3.bf16.msra.mxu0 %v1052_v6  ;;  %s1067_s11 = sshll.u32 %s1145_s26, 4  ;;  %s1068_s11 = int_to_ptr.vmem [resolvable:$false] %s1067_s11 }
  0x31   : > { %968 = vmatprep.subr.bf16.mxu1 %v1143_v2  ;;  %980 = vmatprep.subr.bf16.mxu0 %v1143_v2  ;;  %p1065_p1 = pnand %p1064_p0, %p1236_p5  ;;  %s1069_s12 = scalar_lea.vmem %s1068_s11, 512 }
  0x32   : > { %p1070_p3 = scmp.lt.s32.totalorder %s1372_s20, %s1068_s11  ;;  %p1071_p4 = scmp.lt.s32.totalorder %s1069_s12, %s1063_s25 }
  0x33   : > { %486 = vadd.xlane.f32.xlu1 %v485_v18  ;;  %483 = vadd.xlane.f32.xlu0 %v482_v19  ;;  %p1066_p2 = pneg %p1065_p1 }
  0x34   : > { %969 = vmatpush3.bf16.msra.mxu1 %v1053_v7  ;;  %p1072_p6 = por %p1071_p4, %p1070_p3 }
  0x36   : > { %p1073_p7 = pnand %p1072_p6, %p1066_p2 }
  0x37   : > { %492 = vadd.xlane.f32.xlu1 %v491_v22  ;;  %489 = vadd.xlane.f32.xlu0 %v488_v23 }
  0xb8   : > { %v478_v24 = vpop.xlane.xlu1 %477  ;;  %v472_v25 = vpop.xlane.xlu0 %471 }
  0xbc   : > { %v481_v26 = vpop.xlane.xlu1 %480  ;;  %v475_v27 = vpop.xlane.xlu0 %474 }
  0xc0   : > { %v487_v28 = vpop.xlane.xlu1 %486  ;;  %v484_v29 = vpop.xlane.xlu0 %483 }
  0xc1   : > { %v495_v30 = vadd.f32 %v487_v28, %v475_v27  ;;  %v494_v31 = vadd.f32 %v484_v29, %v472_v25 }
  0xc3   : > { %v500_v32 = vmul.f32 0.0078125, %v495_v30  ;;  %v499_v33 = vmul.f32 0.0078125, %v494_v31  ;;  %v932_v30 = vld [vmem:[%s1435_s4] ss:$0 sm:$0xff] }
  0xc4   : > { %v493_v34 = vpop.xlane.xlu1 %492  ;;  %v490_v35 = vpop.xlane.xlu0 %489  ;;  %v930_v31 = vld [vmem:[%s1433_s2] ss:$0 sm:$0xff] }
  0xc5   : > { %v1285_v36 = vsub.f32 %v462_v13, %v500_v32  ;;  %v1287_v37 = vsub.f32 %v461_v9, %v499_v33  ;;  %v497_v38 = vadd.f32 %v493_v34, %v481_v26  ;;  %v496_v39 = vadd.f32 %v490_v35, %v478_v24 }
  0xc6   : > { %v1293_v44 = vsub.f32 %v466_v16, %v500_v32  ;;  %v1295_v45 = vsub.f32 %v465_v17, %v499_v33 }
  0xc7   : > { %v508_v40 = vmul.f32 %v1285_v36, %v1285_v36  ;;  %v507_v41 = vmul.f32 %v1287_v37, %v1287_v37  ;;  %v502_v42 = vmul.f32 0.0078125, %v497_v38  ;;  %v501_v43 = vmul.f32 0.0078125, %v496_v39 }
  0xc8   : > { %v528_v52 = vmul.f32 %v1293_v44, %v1293_v44  ;;  %v527_v53 = vmul.f32 %v1295_v45, %v1295_v45 }
  0xc9   : > { %v514_v46 = vsel %vm469_vm0, %v508_v40, 0.0  ;;  %v511_v47 = vsel %vm469_vm0, %v507_v41, 0.0  ;;  %v1299_v48 = vsub.f32 %v464_v12, %v502_v42  ;;  %v1301_v49 = vsub.f32 %v463_v8, %v501_v43  ;;  %v1054_v8 = vld [vmem:[%s1437_s6 + $0x18] sm:$0xff]  }
  0xca   : > { %515 = vadd.xlane.f32.xlu1 %v514_v46  ;;  %512 = vadd.xlane.f32.xlu0 %v511_v47  ;;  %v1311_v54 = vsub.f32 %v468_v20, %v502_v42  ;;  %v1313_v55 = vsub.f32 %v467_v21, %v501_v43  ;;  %v534_v58 = vsel %vm469_vm0, %v528_v52, 0.0  ;;  %v531_v59 = vsel %vm469_vm0, %v527_v53, 0.0  ;;  %v933_v43 = vld [vmem:[%s1436_s5] ss:$0 sm:$0xff] }
  0xcb   : > { %v510_v50 = vmul.f32 %v1299_v48, %v1299_v48  ;;  %v509_v51 = vmul.f32 %v1301_v49, %v1301_v49  ;;  %981 = vmatpush3.bf16.msra.mxu0 %v1054_v8  ;;  %v931_v47 = vld [vmem:[%s1434_s3] ss:$0 sm:$0xff] }
  0xcc   : > { %v530_v60 = vmul.f32 %v1311_v54, %v1311_v54  ;;  %v529_v61 = vmul.f32 %v1313_v55, %v1313_v55 }
  0xcd   : > { %v520_v56 = vsel %vm469_vm0, %v510_v50, 0.0  ;;  %v517_v57 = vsel %vm469_vm0, %v509_v51, 0.0 }
  0xce   : > { %521 = vadd.xlane.f32.xlu1 %v520_v56  ;;  %518 = vadd.xlane.f32.xlu0 %v517_v57  ;;  %v540_v62 = vsel %vm469_vm0, %v530_v60, 0.0  ;;  %v537_v63 = vsel %vm469_vm0, %v529_v61, 0.0 }
  0xd2   : > { %535 = vadd.xlane.f32.xlu1 %v534_v58  ;;  %532 = vadd.xlane.f32.xlu0 %v531_v59 }
  0xd6   : > { %541 = vadd.xlane.f32.xlu1 %v540_v62  ;;  %538 = vadd.xlane.f32.xlu0 %v537_v63 }
 0x157   : > { %v516_v9 = vpop.xlane.xlu1 %515  ;;  %v513_v10 = vpop.xlane.xlu0 %512 }
 0x15b   : > { %v522_v11 = vpop.xlane.xlu1 %521  ;;  %v519_v12 = vpop.xlane.xlu0 %518 }
 0x15f   : > { %v536_v13 = vpop.xlane.xlu1 %535  ;;  %v533_v14 = vpop.xlane.xlu0 %532 }
 0x160   : > { %v544_v15 = vadd.f32 %v536_v13, %v516_v9  ;;  %v543_v16 = vadd.f32 %v533_v14, %v513_v10 }
 0x162   : > { %v548_v17 = vmul.f32 0.0078125, %v544_v15  ;;  %v547_v18 = vmul.f32 0.0078125, %v543_v16 }
 0x163   : > { %v542_v19 = vpop.xlane.xlu1 %541  ;;  %v539_v20 = vpop.xlane.xlu0 %538 }
 0x164   : > { %v552_v21 = vadd.f32 1e-05, %v548_v17  ;;  %v551_v22 = vadd.f32 1e-05, %v547_v18  ;;  %v546_v23 = vadd.f32 %v542_v19, %v522_v11  ;;  %v545_v24 = vadd.f32 %v539_v20, %v519_v12 }
 0x166   : > { %1055 = vrsqrt.f32 %v552_v21  ;;  %v550_v25 = vmul.f32 0.0078125, %v546_v23  ;;  %v549_v26 = vmul.f32 0.0078125, %v545_v24 }
 0x167   : > { %1057 = vrsqrt.f32 %v551_v22 }
 0x168   : > { %v554_v27 = vadd.f32 1e-05, %v550_v25  ;;  %v553_v28 = vadd.f32 1e-05, %v549_v26 }
 0x16a   : > { %1059 = vrsqrt.f32 %v554_v27 }
 0x16b   : > { %1061 = vrsqrt.f32 %v553_v28 }
 0x170   : > { %v1056_v29 = vpop.eup %1055 }
 0x171   : > { %v1058_v32 = vpop.eup %1057  ;;  %v560_v33 = vmul.f32 %v1056_v29, %v1285_v36  ;;  %v586_v34 = vmul.f32 %v1056_v29, %v1293_v44 }
 0x172   : > { %v559_v35 = vmul.f32 %v1058_v32, %v1287_v37  ;;  %v585_v38 = vmul.f32 %v1058_v32, %v1295_v45 }
 0x173   : > { %v597_v39 = vmul.f32 %v932_v30, %v586_v34  ;;  %v571_v40 = vmul.f32 %v930_v31, %v560_v33 }
 0x174   : > { %v1060_v41 = vpop.eup %1059  ;;  %v596_v42 = vmul.f32 %v932_v30, %v585_v38  ;;  %v570_v46 = vmul.f32 %v930_v31, %v559_v35 }
 0x175   : > { %v1062_v36 = vpop.eup %1061  ;;  %v562_v44 = vmul.f32 %v1060_v41, %v1299_v48  ;;  %v588_v37 = vmul.f32 %v1060_v41, %v1311_v54  ;;  %v608_v52 = vadd.f32 %v933_v43, %v597_v39  ;;  %v582_v56 = vadd.f32 %v931_v47, %v571_v40 }
 0x176   : > { %v561_v45 = vmul.f32 %v1062_v36, %v1301_v49  ;;  %v587_v50 = vmul.f32 %v1062_v36, %v1313_v55  ;;  %v607_v58 = vadd.f32 %v933_v43, %v596_v42  ;;  %v581_v60 = vadd.f32 %v931_v47, %v570_v46 }
 0x177   : > { %v599_v51 = vmul.f32 %v932_v30, %v588_v37  ;;  %v573_v53 = vmul.f32 %v930_v31, %v562_v44 }
 0x178   : > { %v598_v57 = vmul.f32 %v932_v30, %v587_v50  ;;  %v572_v59 = vmul.f32 %v930_v31, %v561_v45  ;;  %v632_v48 = vcombine.low %v607_v58, %v608_v52  ;;  %v615_v1 = vcombine.low %v581_v60, %v582_v56 }
 0x179   : > { %v610_v61 = vadd.f32 %v933_v43, %v599_v51  ;;  %v584_v62 = vadd.f32 %v931_v47, %v573_v53 }
 0x17a   : > { %v609_v63 = vadd.f32 %v933_v43, %v598_v57  ;;  %v583_v0 = vadd.f32 %v931_v47, %v572_v59 }
 0x17c   : > { %v633_v54 = vcombine.low %v609_v63, %v610_v61  ;;  %v616_v49 = vcombine.low %v583_v0, %v584_v62 }
 0x17e   : > { %v636_v55 = vpack.c.bf16 %v633_v54, %v632_v48  ;;  %v619_v2 = vpack.c.bf16 %v616_v49, %v615_v1 }
 0x180   : > { %971 = vmatmul.mubr.msk.bf16.vlgmr.msra.gmra.mrb[0].mxu1 %vm669_vm2, %v636_v55  ;;  %983 = vmatmul.mubr.msk.bf16.vlgmr.msra.gmra.mrb[0].mxu0 %vm669_vm2, %v619_v2 }
 0x253   : > { %v707_v3 = vpop.f32.mrb[0].mxu1  ;;  %v775_v4 = vpop.f32.mrb[0].mxu0 }
 0x254   : > { %v776_v5 = vadd.f32 %v775_v4, %v707_v3  ;;  %v972_v6 = vpop.f32.mrb[1].mxu1  ;;  %v984_v7 = vpop.f32.mrb[1].mxu0 }
 0x255   : > { %v710_v8 = vpop.f32.mrb[2].mxu1  ;;  %v778_v9 = vpop.f32.mrb[2].mxu0 }
 0x256   : > { %v784_v10 = vcombine.high %v776_v5, %v776_v5  ;;  %788 = vst.msk [vmem:[%s456_s17] sm:$0xf] %vm469_vm0, %v776_v5  ;;  %v779_v11 = vadd.f32 %v778_v9, %v710_v8  ;;  %v973_v12 = vpop.f32.mrb[3].mxu1  ;;  %v985_v13 = vpop.f32.mrb[3].mxu0 }
 0x258   : > { %789 = vst.msk [vmem:[%s456_s17 + $0x4] sm:$0xf] %vm469_vm0, %v784_v10  ;;  %v785_v14 = vcombine.high %v779_v11, %v779_v11  ;;  %790 = vst.msk [vmem:[%s456_s17 + $0x8] sm:$0xf] %vm469_vm0, %v779_v11 }
 0x25a   : > { %791 = vst.msk [vmem:[%s456_s17 + $0xc] sm:$0xf] %vm469_vm0, %v785_v14 }
 0x25b   : > { %1076 = shalt.err (!%p1073_p7)
}
 0x25c   : > { %s1077_s15 = scalar_lea.hbm %s1377_s23, 256  ;;  %s1081_s21 = scalar_lea.hbm %s1439_s8, 512 }
 0x25d   : > { %p1078_p8 = scmp.ne.s32.totalorder %s1377_s23, %s1077_s15  ;;  %p1082_p13 = scmp.lt.u32.totalorder %s1377_s23, %s1439_s8 }
 0x25e   : > { %p1083_p0 = scmp.lt.u32.totalorder %s1081_s21, %s1077_s15  ;;  %p1085_p2 = scmp.lt.u32.totalorder %s1077_s15, %s1377_s23 }
 0x25f   : > { %p1079_p11 = pnand %p1078_p8, %p1236_p5 }
 0x260   : > { %p1084_p1 = por %p1083_p0, %p1082_p13 }
 0x261   : > { %p1080_p12 = pneg %p1079_p11 }
 0x262   : > { %p1086_p3 = por %p1085_p2, %p1084_p1 }
 0x264   : > { %p1087_p4 = pnand %p1086_p3, %p1080_p12 }
 0x266   : > { %1090 = shalt.err (!%p1087_p4)
}
 0x267   : > { %s1146_s25 = smov 64   ;;  %s1147_s26 = smov 4  }
 0x268   : > { %988 = dma.vmem_to_hbm [thread:$0]  (%p1236_p5), %s1372_s20, 256, %s1377_s23, %s1384_s30, %s1146_s25, %s1146_s25, %s1147_s26  }
 0x269 PF: > { %s823_s11 = sand.u32 1, %s1121_s27   ;;  %p991_p6 = pnand %p915_p10, %p1247_p9 }
 0x26a   : > { %s824_s12 = scalar_lea.sflag [#allocation5], %s823_s11 }
 0x26b   : > { %1116 = dma.done.wait (!%p991_p6), %s824_s12, 256  }
 0x26c   : > { %1118 = vsyncadd (!%p991_p6), %s824_s12, 4294967040  ;;  %s21_s10 = sadd.s32 1, %s1141_s10   ;;  %s1443_s27 = smov %s1125_s28 }
 0x26d   : > { %p18_p7 = scmp.ge.s32.totalorder %s21_s10, 4   ;;  %s1444_s28 = smov %s1129_s29 }
 0x26e   : > { %s1445_s29 = smov %s1245_s18  ;;  %s1446_s30 = smov %s1137_s9 }
 0x26f   : > { %s1447_s9 = smov %s1449_s13  ;;  %20 = sbr.rel (!%p18_p7) target bundleno = 4 (0x4), region = 182 }
 0x276   :  { %829 = vsyncpa [#allocation5], 1 }
 0x277   :  { %831 = vsyncpa [#allocation5 + $0x1], 1 }

</bundles_post_ra>
